<compile_context>
chip_gen: v6e
topology: v6e:2x2x1
jax: 0.10.0
libtpu: 0.0.40
codegen_flags: <defaults>
</compile_context>

<pallas_src>
import math

import jax
import jax.numpy as jnp
from jax import lax
from jax.experimental import pallas as pl
from jax.experimental.pallas import tpu as pltpu


# ---------------------------------------------------------------------------
# Parameter / buffer construction (plain-JAX glue; deterministic init)
# ---------------------------------------------------------------------------
def positional_encoding(seq_len, d_model):
    position = jnp.arange(seq_len, dtype=jnp.float32)[:, None]
    div_term = jnp.exp(
        jnp.arange(0, d_model, 2, dtype=jnp.float32) * (-math.log(10000.0) / d_model)
    )
    pe = jnp.zeros((seq_len, d_model), jnp.float32)
    pe = pe.at[:, 0::2].set(jnp.sin(position * div_term))
    pe = pe.at[:, 1::2].set(jnp.cos(position * div_term))  # d_model is even here
    return pe


def init_params(key, *, input_dim, hidden_dim, ff_dim, num_layers, output_dim, seq_len):
    """Weights stored already transposed to (in, out) so the forward does x @ W + b.

    The large stacked weights (QKV, out-proj, FF w1/w2) are stored bfloat16 (halves
    HBM->VMEM DMA volume and VMEM residency); matmuls feed them to the MXU as bf16
    with f32 accumulation. NOTE: this is a (small) semantic deviation from an all-f32
    PyTorch TransformerEncoderLayer; the reference below applies the same casts.
    """
    H, L, FF = hidden_dim, num_layers, ff_dim
    ks = iter(jax.random.split(key, 24))

    def uni(k, fan_in, shape):
        bound = 1.0 / math.sqrt(fan_in)
        return jax.random.uniform(k, shape, jnp.float32, -bound, bound)

    p = {}
    p["w_emb"] = uni(next(ks), input_dim, (input_dim, H))
    p["b_emb"] = uni(next(ks), input_dim, (1, H))
    p["pe"] = positional_encoding(seq_len, H)
    # stacked per-layer parameters, leading dim = num_layers
    p["w_q"] = uni(next(ks), H, (L, H, H)).astype(jnp.bfloat16)
    p["w_k"] = uni(next(ks), H, (L, H, H)).astype(jnp.bfloat16)
    p["w_v"] = uni(next(ks), H, (L, H, H)).astype(jnp.bfloat16)
    p["b_q"] = uni(next(ks), H, (L, 1, H))
    p["b_k"] = uni(next(ks), H, (L, 1, H))
    p["b_v"] = uni(next(ks), H, (L, 1, H))
    p["w_o"] = uni(next(ks), H, (L, H, H)).astype(jnp.bfloat16)
    p["b_o"] = jnp.zeros((L, 1, H), jnp.float32)
    p["g1"] = jnp.ones((L, 1, H), jnp.float32)
    p["be1"] = jnp.zeros((L, 1, H), jnp.float32)
    p["w1"] = uni(next(ks), H, (L, H, FF)).astype(jnp.bfloat16)
    p["b1"] = uni(next(ks), H, (L, 1, FF))
    p["w2"] = uni(next(ks), FF, (L, FF, H)).astype(jnp.bfloat16)
    p["b2"] = uni(next(ks), FF, (L, 1, H))
    p["g2"] = jnp.ones((L, 1, H), jnp.float32)
    p["be2"] = jnp.zeros((L, 1, H), jnp.float32)
    p["w_fc"] = uni(next(ks), H, (H, output_dim))
    p["b_fc"] = uni(next(ks), H, (1, output_dim))
    return p


# ---------------------------------------------------------------------------
# Shared numerics
# ---------------------------------------------------------------------------
def _layer_norm(x, gamma, beta, eps=1e-5):
    mu = jnp.mean(x, axis=-1, keepdims=True)
    var = jnp.mean(jnp.square(x - mu), axis=-1, keepdims=True)
    return (x - mu) * lax.rsqrt(var + eps) * gamma + beta


# ---------------------------------------------------------------------------
# Host-side packing: per-head weight split, constant coalescing, lane padding
# ---------------------------------------------------------------------------
def pack_params(params, *, num_layers, num_heads, hidden_dim, seq_len, output_dim):
    H, L, nh, S = hidden_dim, num_layers, num_heads, seq_len
    hd = H // nh

    def split_w(w):  # (L, H, H) -> (L, nh, H, hd); head h <- output cols [h*hd:(h+1)*hd]
        return w.reshape(L, H, nh, hd).transpose(0, 2, 1, 3)

    def split_b(b):  # (L, 1, H) -> (L, nh, 1, hd)
        return b.reshape(L, nh, hd)[:, :, None, :]

    # per-head QKV weights, flattened to a single leading index: (L*3*nh, H, hd) bf16
    w_qkv = jnp.stack(
        [split_w(params["w_q"]), split_w(params["w_k"]), split_w(params["w_v"])], axis=1
    ).reshape(L * 3 * nh, H, hd)
    b_qkv = jnp.stack(
        [split_b(params["b_q"]), split_b(params["b_k"]), split_b(params["b_v"])], axis=1
    ).reshape(L * 3 * nh, 1, hd).astype(jnp.float32)
    # per-head out-projection rows: (L*nh, hd, H) bf16
    w_o = params["w_o"].reshape(L, nh, hd, H).reshape(L * nh, hd, H)

    # packed small width-H constants: [b_emb, pe(S rows), per layer: b_o,g1,be1,b2,g2,be2]
    rows = [params["b_emb"], params["pe"]]
    for l in range(L):
        rows += [params["b_o"][l], params["g1"][l], params["be1"][l],
                 params["b2"][l], params["g2"][l], params["be2"][l]]
    const = jnp.concatenate(rows, axis=0).astype(jnp.float32)  # (1 + S + 6L, H)

    # lane-dense fc: pad output_dim up to a multiple of 128 (sliced back outside)
    out_pad = -(-output_dim // 128) * 128
    pad = out_pad - output_dim
    w_fc = jnp.pad(params["w_fc"], ((0, 0), (0, pad)))
    b_fc = jnp.pad(params["b_fc"], ((0, 0), (0, pad)))

    args = (params["w_emb"], const, w_qkv, b_qkv, w_o,
            params["w1"], params["b1"], params["w2"], w_fc, b_fc)
    return args, out_pad


# ---------------------------------------------------------------------------
# Pallas kernel
# ---------------------------------------------------------------------------
def _make_kernel(*, num_layers, num_heads, hidden_dim, seq_len, block_batch, input_dim):
    H, nh = hidden_dim, num_heads
    hd = H // nh
    S, BB, D_in, L = seq_len, block_batch, input_dim, num_layers
    scale = 1.0 / math.sqrt(hd)
    f32, bf16 = jnp.float32, jnp.bfloat16
    CBASE = 1 + S  # const rows: [b_emb, pe(S), then 6 rows per layer]

    def kernel(x_ref, w_emb_ref, const_ref, w_qkv_ref, b_qkv_ref, w_o_ref,
               w1_ref, b1_ref, w2_ref, w_fc_ref, b_fc_ref, o_ref):
        # ---- embedding + positional encoding on the flattened (BB*S, .) operand ----
        x2 = x_ref[...].reshape(BB * S, D_in)
        h = jnp.dot(x2, w_emb_ref[...], preferred_element_type=f32) + const_ref[0:1, :]
        h = (h.reshape(BB, S, H) + const_ref[1:1 + S, :]).reshape(BB * S, H)

        # Small num_layers -> full unroll (compact schedule, no carry).
        for l in range(L):
            cb = CBASE + 6 * l
            h16 = h.astype(bf16)

            # ---- multi-head self attention (post-norm encoder layer) ----
            # Per-head weights were pre-split host-side, so there is no in-kernel
            # lane slicing or concatenation; head outputs are merged by accumulating
            # per-head out-projection partial products (== concat(heads) @ W_o).
            attn = jnp.zeros((BB * S, H), f32)
            for hh in range(nh):
                def qkv(t, _l=l, _h=hh):
                    i = (_l * 3 + t) * nh + _h
                    return (jnp.dot(h16, w_qkv_ref[i], preferred_element_type=f32)
                            + b_qkv_ref[i])                          # (BB*S, hd)

                # NOTE(synk): scale could be folded into w_q at pack time; kept as a
                # tiny explicit multiply for exact mirroring with the reference.
                q3 = (qkv(0) * scale).reshape(BB, S, hd)
                k3 = qkv(1).reshape(BB, S, hd)
                v3 = qkv(2).reshape(BB, S, hd)

                s = jnp.einsum("bqd,bkd->bqk", q3, k3,
                               preferred_element_type=f32)            # (BB, S, S)
                s = s - jnp.max(s, axis=-1, keepdims=True)
                p = jnp.exp(s)
                p = p * pl.reciprocal(
                    jnp.sum(p, axis=-1, keepdims=True), approx=True)
                o = jnp.einsum("bqk,bkd->bqd", p, v3,
                               preferred_element_type=f32)            # (BB, S, hd)
                attn = attn + jnp.dot(o.reshape(BB * S, hd).astype(bf16),
                                      w_o_ref[l * nh + hh],
                                      preferred_element_type=f32)
            attn = attn + const_ref[cb + 0:cb + 1, :]                 # out-proj bias
            h = _layer_norm(h + attn,
                            const_ref[cb + 1:cb + 2, :], const_ref[cb + 2:cb + 3, :])

            # ---- feed-forward (ReLU); bf16 MXU feeds with f32 accumulation ----
            ff = (jnp.dot(h.astype(bf16), w1_ref[l], preferred_element_type=f32)
                  + b1_ref[l])
            ff = jnp.maximum(ff, 0.0)
            ff = (jnp.dot(ff.astype(bf16), w2_ref[l], preferred_element_type=f32)
                  + const_ref[cb + 3:cb + 4, :])
            h = _layer_norm(h + ff,
                            const_ref[cb + 4:cb + 5, :], const_ref[cb + 5:cb + 6, :])

        # ---- final fc on the last timestep; one lane-dense (BB, out_pad) store ----
        last = h.reshape(BB, S, H)[:, S - 1:S, :].reshape(BB, H)
        o_ref[...] = (jnp.dot(last, w_fc_ref[...], preferred_element_type=f32)
                      + b_fc_ref[...])

    return kernel


# ---------------------------------------------------------------------------
# Wrapper
# ---------------------------------------------------------------------------
def _pick_block_batch(B, S, target_rows=256):
    """Examples per grid step so BB*S roughly fills the MXU M dimension."""
    bb = max(1, min(B, pl.cdiv(target_rows, S)))
    if pl.cdiv(B, bb) < 2 and B > 1 and (B // 2) * S >= target_rows:
        bb = pl.cdiv(B, 2)
    # TODO(synk): on v7x (2 TensorCores) prefer n_blocks >= 2 even below target_rows
    # so both cores are used; on v5e/v6e (1 TC) keep the single largest BB.
    return bb


def _padded_nbytes(a):
    shape = list(a.shape)
    if len(shape) < 2:
        shape = [1] * (2 - len(shape)) + shape
    itemsize = a.dtype.itemsize
    sub = 8 * max(1, 4 // itemsize)          # 8 sublanes for f32, 16 for bf16
    shape[-1] = pl.cdiv(shape[-1], 128) * 128
    shape[-2] = pl.cdiv(shape[-2], sub) * sub
    n = 1
    for d in shape:
        n *= int(d)
    return n * itemsize


def _estimate_vmem_limit(args, BB, S, D_in, H, FF, out_pad, single_buffer_weights):
    wf = 1 if single_buffer_weights else 2
    weights = wf * sum(_padded_nbytes(a) for a in args)
    io = 2 * 4 * (BB * S * max(D_in, 128) + BB * out_pad)
    acts = 4 * BB * S * (3 * FF + 16 * max(H, 128))
    est = weights + io + acts + (8 << 20)
    # headroom x2, floor at 32 MiB, cap below the v7x 64 MiB physical VMEM
    return int(min(56 << 20, max(32 << 20, 2 * est)))


def _forward(x, args, out_pad, *, num_layers, num_heads, hidden_dim, ff_dim,
             seq_len, block_batch, single_buffer_weights):
    B, S, D_in = x.shape
    BB = block_batch
    n_blocks = pl.cdiv(B, BB)
    B_pad = n_blocks * BB
    if B_pad != B:
        x = jnp.pad(x, ((0, B_pad - B), (0, 0), (0, 0)))

    kernel = _make_kernel(num_layers=num_layers, num_heads=num_heads,
                          hidden_dim=hidden_dim, seq_len=S, block_batch=BB,
                          input_dim=D_in)

    def weight_spec(a):
        zeros = (0,) * a.ndim
        if single_buffer_weights:
            # Constant index_map -> the block is never re-fetched across grid steps;
            # a single buffer halves weight VMEM residency (matters as L*H*FF grows,
            # especially on v7x's 64 MiB VMEM).
            return pl.BlockSpec(a.shape, lambda b, _z=zeros: _z,
                                pipeline_mode=pl.Buffered(1))
        return pl.BlockSpec(a.shape, lambda b, _z=zeros: _z)

    in_specs = [pl.BlockSpec((BB, S, D_in), lambda b: (b, 0, 0))]
    in_specs += [weight_spec(a) for a in args]

    vmem_limit = _estimate_vmem_limit(args, BB, S, D_in, hidden_dim, ff_dim,
                                      out_pad, single_buffer_weights)

    out = pl.pallas_call(
        kernel,
        out_shape=jax.ShapeDtypeStruct((n_blocks, BB, out_pad), jnp.float32),
        grid=(n_blocks,),
        in_specs=in_specs,
        out_specs=pl.BlockSpec((None, BB, out_pad), lambda b: (b, 0, 0)),
        compiler_params=pltpu.CompilerParams(
            dimension_semantics=("parallel",),
            vmem_limit_bytes=vmem_limit),
    )(x, *args)
    return out.reshape(B_pad, out_pad)[:B]


def transformer_seq_predictor(x, params, *, num_layers, num_heads, hidden_dim,
                              ff_dim, seq_len, output_dim, block_batch=None,
                              single_buffer_weights=True):
    B, S, D_in = x.shape
    assert S == seq_len and hidden_dim % num_heads == 0

    BB = _pick_block_batch(B, S) if block_batch is None else block_batch
    args, out_pad = pack_params(params, num_layers=num_layers, num_heads=num_heads,
                                hidden_dim=hidden_dim, seq_len=seq_len,
                                output_dim=output_dim)
    kw = dict(num_layers=num_layers, num_heads=num_heads, hidden_dim=hidden_dim,
              ff_dim=ff_dim, seq_len=seq_len, block_batch=BB)
    try:
        out = jax.block_until_ready(
            _forward(x, args, out_pad, single_buffer_weights=single_buffer_weights, **kw))
    except Exception as first_err:  # noqa: BLE001
        if not single_buffer_weights:
            raise
        # pl.Buffered(1) (single-buffered resident weights) is rejected by some jax
        # builds; retry once with default double buffering.  If the retry also fails,
        # the failure was unrelated to Buffered(1) -> surface the ORIGINAL error
        # (so unrelated problems are never silently masked).
        try:
            out = jax.block_until_ready(
                _forward(x, args, out_pad, single_buffer_weights=False, **kw))
        except Exception:
            raise first_err
    return out[:, :output_dim]


# ---------------------------------------------------------------------------
# Pure-JAX reference (mirrors PyTorch eval-mode forward + the kernel's bf16 feeds)
# ---------------------------------------------------------------------------
def reference_forward(x, p, *, num_layers, num_heads, hidden_dim):
    B, S, _ = x.shape
    H = hidden_dim
    hd = H // num_heads
    scale = 1.0 / math.sqrt(hd)
    f32, bf16 = jnp.float32, jnp.bfloat16

    def dot16(a, b):  # bf16 x bf16 -> f32, mirroring the kernel's MXU feeds
        return jnp.matmul(a.astype(bf16), b, preferred_element_type=f32)

    h = x @ p["w_emb"] + p["b_emb"]
    h = h + p["pe"]
    for l in range(num_layers):
        q = dot16(h, p["w_q"][l]) + p["b_q"][l]
        k = dot16(h, p["w_k"][l]) + p["b_k"][l]
        v = dot16(h, p["w_v"][l]) + p["b_v"][l]

        def heads(t):
            return t.reshape(B, S, num_heads, hd).transpose(0, 2, 1, 3)

        qh, kh, vh = heads(q) * scale, heads(k), heads(v)
        s = jnp.einsum("bhqd,bhkd->bhqk", qh, kh)
        pm = jax.nn.softmax(s, axis=-1)
        a = jnp.einsum("bhqk,bhkd->bhqd", pm, vh).transpose(0, 2, 1, 3).reshape(B, S, H)
        a = dot16(a, p["w_o"][l]) + p["b_o"][l]
        h = _layer_norm(h + a, p["g1"][l], p["be1"][l])
        ff = jnp.maximum(dot16(h, p["w1"][l]) + p["b1"][l], 0.0)
        ff = dot16(ff, p["w2"][l]) + p["b2"][l]
        h = _layer_norm(h + ff, p["g2"][l], p["be2"][l])
    return h[:, -1, :] @ p["w_fc"] + p["b_fc"]


if __name__ == "__main__":
    # Small shapes consistent with the module's constructor.
    B, SEQ, D_IN, HIDDEN, LAYERS, HEADS, D_OUT = 2, 8, 16, 32, 2, 4, 4
    FF = 2048  # PyTorch nn.TransformerEncoderLayer default dim_feedforward

    key = jax.random.PRNGKey(0)
    k_param, k_x = jax.random.split(key)
    params = init_params(k_param, input_dim=D_IN, hidden_dim=HIDDEN, ff_dim=FF,
                         num_layers=LAYERS, output_dim=D_OUT, seq_len=SEQ)
    x = jax.random.normal(k_x, (B, SEQ, D_IN), jnp.float32)

    out = transformer_seq_predictor(x, params, num_layers=LAYERS, num_heads=HEADS,
                                    hidden_dim=HIDDEN, ff_dim=FF, seq_len=SEQ,
                                    output_dim=D_OUT)
    out = jax.block_until_ready(out)

    ref = reference_forward(x, params, num_layers=LAYERS, num_heads=HEADS,
                            hidden_dim=HIDDEN)
    assert out.shape == (B, D_OUT)
    # tolerance budget dominated by the approximate EUP reciprocal in the softmax
    assert jnp.allclose(out, ref, rtol=5e-3, atol=5e-3), (out, ref)
    print("KERNEL_OK")
</pallas_src>

<mosaic_0001>
module attributes {stable_mosaic.version = 11 : i64} {
  func.func @kernel(%arg0: i32, %arg1: memref<2x8x16xf32, #tpu.memory_space<vmem>>, %arg2: memref<16x32xf32, #tpu.memory_space<vmem>>, %arg3: memref<21x32xf32, #tpu.memory_space<vmem>>, %arg4: memref<24x32x8xbf16, #tpu.memory_space<vmem>>, %arg5: memref<24x1x8xf32, #tpu.memory_space<vmem>>, %arg6: memref<8x8x32xbf16, #tpu.memory_space<vmem>>, %arg7: memref<2x32x2048xbf16, #tpu.memory_space<vmem>>, %arg8: memref<2x1x2048xf32, #tpu.memory_space<vmem>>, %arg9: memref<2x2048x32xbf16, #tpu.memory_space<vmem>>, %arg10: memref<32x128xf32, #tpu.memory_space<vmem>>, %arg11: memref<1x128xf32, #tpu.memory_space<vmem>>, %arg12: memref<1x2x128xf32, #tpu.memory_space<vmem>>) attributes {dimension_semantics = [#tpu.dimension_semantics<parallel>], iteration_bounds = array<i64: 1>, scalar_prefetch = 0 : i64, scratch_operands = 0 : i64, tpu.core_type = #tpu.core_type<tc>, window_params = [{transform_indices = @transform_0, window_bounds = array<i64: 2, 8, 16>}, {pipeline_mode = #tpu.pipeline_mode<synchronous>, transform_indices = @transform_1, window_bounds = array<i64: 16, 32>}, {pipeline_mode = #tpu.pipeline_mode<synchronous>, transform_indices = @transform_2, window_bounds = array<i64: 21, 32>}, {pipeline_mode = #tpu.pipeline_mode<synchronous>, transform_indices = @transform_3, window_bounds = array<i64: 24, 32, 8>}, {pipeline_mode = #tpu.pipeline_mode<synchronous>, transform_indices = @transform_4, window_bounds = array<i64: 24, 1, 8>}, {pipeline_mode = #tpu.pipeline_mode<synchronous>, transform_indices = @transform_5, window_bounds = array<i64: 8, 8, 32>}, {pipeline_mode = #tpu.pipeline_mode<synchronous>, transform_indices = @transform_6, window_bounds = array<i64: 2, 32, 2048>}, {pipeline_mode = #tpu.pipeline_mode<synchronous>, transform_indices = @transform_7, window_bounds = array<i64: 2, 1, 2048>}, {pipeline_mode = #tpu.pipeline_mode<synchronous>, transform_indices = @transform_8, window_bounds = array<i64: 2, 2048, 32>}, {pipeline_mode = #tpu.pipeline_mode<synchronous>, transform_indices = @transform_9, window_bounds = array<i64: 32, 128>}, {pipeline_mode = #tpu.pipeline_mode<synchronous>, transform_indices = @transform_10, window_bounds = array<i64: 1, 128>}, {transform_indices = @transform_11, window_bounds = array<i64: 1, 2, 128>}]} {
    %c0 = arith.constant 0 : index
    %c0_0 = arith.constant 0 : index
    %c0_1 = arith.constant 0 : index
    %0 = vector.load %arg1[%c0, %c0_0, %c0_1] : memref<2x8x16xf32, #tpu.memory_space<vmem>>, vector<2x8x16xf32>
    %1 = vector.shape_cast %0 : vector<2x8x16xf32> to vector<16x16xf32>
    %c0_2 = arith.constant 0 : index
    %c0_3 = arith.constant 0 : index
    %2 = vector.load %arg2[%c0_2, %c0_3] : memref<16x32xf32, #tpu.memory_space<vmem>>, vector<16x32xf32>
    %cst = arith.constant dense<0.000000e+00> : vector<16x32xf32>
    %3 = tpu.matmul %1, %2, %cst {dimension_numbers = #tpu.dot_dimension_numbers<[1], [0], [0], [1], [0, 0, 1, 1], [], []>} : vector<16x16xf32>, vector<16x32xf32>, vector<16x32xf32> -> vector<16x32xf32>
    %c0_4 = arith.constant 0 : index
    %c0_5 = arith.constant 0 : index
    %4 = vector.load %arg3[%c0_4, %c0_5] : memref<21x32xf32, #tpu.memory_space<vmem>>, vector<1x32xf32>
    %5 = vector.broadcast %4 : vector<1x32xf32> to vector<16x32xf32>
    %6 = arith.addf %3, %5 : vector<16x32xf32>
    %7 = vector.shape_cast %6 : vector<16x32xf32> to vector<2x8x32xf32>
    %c1 = arith.constant 1 : index
    %c0_6 = arith.constant 0 : index
    %8 = vector.load %arg3[%c1, %c0_6] : memref<21x32xf32, #tpu.memory_space<vmem>>, vector<8x32xf32>
    %9 = vector.shape_cast %8 : vector<8x32xf32> to vector<1x8x32xf32>
    %10 = vector.broadcast %9 : vector<1x8x32xf32> to vector<2x8x32xf32>
    %11 = arith.addf %7, %10 : vector<2x8x32xf32>
    %12 = vector.shape_cast %11 : vector<2x8x32xf32> to vector<16x32xf32>
    %13 = arith.truncf %12 : vector<16x32xf32> to vector<16x32xbf16>
    %cst_7 = arith.constant 0.000000e+00 : f32
    %14 = vector.broadcast %cst_7 : f32 to vector<16x32xf32>
    %c0_8 = arith.constant 0 : index
    %c0_9 = arith.constant 0 : index
    %c0_10 = arith.constant 0 : index
    %15 = vector.load %arg4[%c0_8, %c0_9, %c0_10] : memref<24x32x8xbf16, #tpu.memory_space<vmem>>, vector<1x32x8xbf16>
    %16 = vector.shape_cast %15 : vector<1x32x8xbf16> to vector<32x8xbf16>
    %cst_11 = arith.constant dense<0.000000e+00> : vector<16x8xf32>
    %17 = tpu.matmul %13, %16, %cst_11 {dimension_numbers = #tpu.dot_dimension_numbers<[1], [0], [0], [1], [0, 0, 1, 1], [], []>} : vector<16x32xbf16>, vector<32x8xbf16>, vector<16x8xf32> -> vector<16x8xf32>
    %c0_12 = arith.constant 0 : index
    %c0_13 = arith.constant 0 : index
    %c0_14 = arith.constant 0 : index
    %18 = vector.load %arg5[%c0_12, %c0_13, %c0_14] : memref<24x1x8xf32, #tpu.memory_space<vmem>>, vector<1x1x8xf32>
    %19 = vector.shape_cast %18 : vector<1x1x8xf32> to vector<1x8xf32>
    %20 = vector.broadcast %19 : vector<1x8xf32> to vector<16x8xf32>
    %21 = arith.addf %17, %20 : vector<16x8xf32>
    %cst_15 = arith.constant 0.353553385 : f32
    %22 = vector.broadcast %cst_15 : f32 to vector<16x8xf32>
    %23 = arith.mulf %21, %22 : vector<16x8xf32>
    %24 = vector.shape_cast %23 : vector<16x8xf32> to vector<2x8x8xf32>
    %c4 = arith.constant 4 : index
    %c0_16 = arith.constant 0 : index
    %c0_17 = arith.constant 0 : index
    %25 = vector.load %arg4[%c4, %c0_16, %c0_17] : memref<24x32x8xbf16, #tpu.memory_space<vmem>>, vector<1x32x8xbf16>
    %26 = vector.shape_cast %25 : vector<1x32x8xbf16> to vector<32x8xbf16>
    %cst_18 = arith.constant dense<0.000000e+00> : vector<16x8xf32>
    %27 = tpu.matmul %13, %26, %cst_18 {dimension_numbers = #tpu.dot_dimension_numbers<[1], [0], [0], [1], [0, 0, 1, 1], [], []>} : vector<16x32xbf16>, vector<32x8xbf16>, vector<16x8xf32> -> vector<16x8xf32>
    %c4_19 = arith.constant 4 : index
    %c0_20 = arith.constant 0 : index
    %c0_21 = arith.constant 0 : index
    %28 = vector.load %arg5[%c4_19, %c0_20, %c0_21] : memref<24x1x8xf32, #tpu.memory_space<vmem>>, vector<1x1x8xf32>
    %29 = vector.shape_cast %28 : vector<1x1x8xf32> to vector<1x8xf32>
    %30 = vector.broadcast %29 : vector<1x8xf32> to vector<16x8xf32>
    %31 = arith.addf %27, %30 : vector<16x8xf32>
    %32 = vector.shape_cast %31 : vector<16x8xf32> to vector<2x8x8xf32>
    %c8 = arith.constant 8 : index
    %c0_22 = arith.constant 0 : index
    %c0_23 = arith.constant 0 : index
    %33 = vector.load %arg4[%c8, %c0_22, %c0_23] : memref<24x32x8xbf16, #tpu.memory_space<vmem>>, vector<1x32x8xbf16>
    %34 = vector.shape_cast %33 : vector<1x32x8xbf16> to vector<32x8xbf16>
    %cst_24 = arith.constant dense<0.000000e+00> : vector<16x8xf32>
    %35 = tpu.matmul %13, %34, %cst_24 {dimension_numbers = #tpu.dot_dimension_numbers<[1], [0], [0], [1], [0, 0, 1, 1], [], []>} : vector<16x32xbf16>, vector<32x8xbf16>, vector<16x8xf32> -> vector<16x8xf32>
    %c8_25 = arith.constant 8 : index
    %c0_26 = arith.constant 0 : index
    %c0_27 = arith.constant 0 : index
    %36 = vector.load %arg5[%c8_25, %c0_26, %c0_27] : memref<24x1x8xf32, #tpu.memory_space<vmem>>, vector<1x1x8xf32>
    %37 = vector.shape_cast %36 : vector<1x1x8xf32> to vector<1x8xf32>
    %38 = vector.broadcast %37 : vector<1x8xf32> to vector<16x8xf32>
    %39 = arith.addf %35, %38 : vector<16x8xf32>
    %40 = vector.shape_cast %39 : vector<16x8xf32> to vector<2x8x8xf32>
    "tpu.trace_start"() <{level = 10 : i32, message = "bqd,bkd->bqk"}> : () -> ()
    %cst_28 = arith.constant dense<0.000000e+00> : vector<2x8x8xf32>
    %41 = tpu.matmul %24, %32, %cst_28 {dimension_numbers = #tpu.dot_dimension_numbers<[2], [2], [1], [1], [0, 0, 0, 1, 1, 1], [0], [0]>} : vector<2x8x8xf32>, vector<2x8x8xf32>, vector<2x8x8xf32> -> vector<2x8x8xf32>
    "tpu.trace_stop"() : () -> ()
    %cst_29 = arith.constant dense<0xFF800000> : vector<2x8xf32>
    %42 = vector.multi_reduction <maximumf>, %41, %cst_29 [2] : vector<2x8x8xf32> to vector<2x8xf32>
    %43 = vector.shape_cast %42 : vector<2x8xf32> to vector<2x8x1xf32>
    %44 = vector.broadcast %43 : vector<2x8x1xf32> to vector<2x8x8xf32>
    %45 = arith.subf %41, %44 : vector<2x8x8xf32>
    %46 = math.exp %45 : vector<2x8x8xf32>
    %cst_30 = arith.constant dense<0.000000e+00> : vector<2x8xf32>
    %47 = vector.multi_reduction <add>, %46, %cst_30 [2] : vector<2x8x8xf32> to vector<2x8xf32>
    %48 = vector.shape_cast %47 : vector<2x8xf32> to vector<2x8x1xf32>
    %49 = tpu.reciprocal %48 {approx = true} : vector<2x8x1xf32> -> vector<2x8x1xf32>
    %50 = vector.broadcast %49 : vector<2x8x1xf32> to vector<2x8x8xf32>
    %51 = arith.mulf %46, %50 : vector<2x8x8xf32>
    "tpu.trace_start"() <{level = 10 : i32, message = "bqk,bkd->bqd"}> : () -> ()
    %cst_31 = arith.constant dense<0.000000e+00> : vector<2x8x8xf32>
    %52 = tpu.matmul %51, %40, %cst_31 {dimension_numbers = #tpu.dot_dimension_numbers<[2], [1], [1], [2], [0, 0, 0, 1, 1, 2], [0], [0]>} : vector<2x8x8xf32>, vector<2x8x8xf32>, vector<2x8x8xf32> -> vector<2x8x8xf32>
    "tpu.trace_stop"() : () -> ()
    %53 = vector.shape_cast %52 : vector<2x8x8xf32> to vector<16x8xf32>
    %54 = arith.truncf %53 : vector<16x8xf32> to vector<16x8xbf16>
    %c0_32 = arith.constant 0 : index
    %c0_33 = arith.constant 0 : index
    %c0_34 = arith.constant 0 : index
    %55 = vector.load %arg6[%c0_32, %c0_33, %c0_34] : memref<8x8x32xbf16, #tpu.memory_space<vmem>>, vector<1x8x32xbf16>
    %56 = vector.shape_cast %55 : vector<1x8x32xbf16> to vector<8x32xbf16>
    %cst_35 = arith.constant dense<0.000000e+00> : vector<16x32xf32>
    %57 = tpu.matmul %54, %56, %cst_35 {dimension_numbers = #tpu.dot_dimension_numbers<[1], [0], [0], [1], [0, 0, 1, 1], [], []>} : vector<16x8xbf16>, vector<8x32xbf16>, vector<16x32xf32> -> vector<16x32xf32>
    %58 = arith.addf %14, %57 : vector<16x32xf32>
    %c1_36 = arith.constant 1 : index
    %c0_37 = arith.constant 0 : index
    %c0_38 = arith.constant 0 : index
    %59 = vector.load %arg4[%c1_36, %c0_37, %c0_38] : memref<24x32x8xbf16, #tpu.memory_space<vmem>>, vector<1x32x8xbf16>
    %60 = vector.shape_cast %59 : vector<1x32x8xbf16> to vector<32x8xbf16>
    %cst_39 = arith.constant dense<0.000000e+00> : vector<16x8xf32>
    %61 = tpu.matmul %13, %60, %cst_39 {dimension_numbers = #tpu.dot_dimension_numbers<[1], [0], [0], [1], [0, 0, 1, 1], [], []>} : vector<16x32xbf16>, vector<32x8xbf16>, vector<16x8xf32> -> vector<16x8xf32>
    %c1_40 = arith.constant 1 : index
    %c0_41 = arith.constant 0 : index
    %c0_42 = arith.constant 0 : index
    %62 = vector.load %arg5[%c1_40, %c0_41, %c0_42] : memref<24x1x8xf32, #tpu.memory_space<vmem>>, vector<1x1x8xf32>
    %63 = vector.shape_cast %62 : vector<1x1x8xf32> to vector<1x8xf32>
    %64 = vector.broadcast %63 : vector<1x8xf32> to vector<16x8xf32>
    %65 = arith.addf %61, %64 : vector<16x8xf32>
    %cst_43 = arith.constant 0.353553385 : f32
    %66 = vector.broadcast %cst_43 : f32 to vector<16x8xf32>
    %67 = arith.mulf %65, %66 : vector<16x8xf32>
    %68 = vector.shape_cast %67 : vector<16x8xf32> to vector<2x8x8xf32>
    %c5 = arith.constant 5 : index
    %c0_44 = arith.constant 0 : index
    %c0_45 = arith.constant 0 : index
    %69 = vector.load %arg4[%c5, %c0_44, %c0_45] : memref<24x32x8xbf16, #tpu.memory_space<vmem>>, vector<1x32x8xbf16>
    %70 = vector.shape_cast %69 : vector<1x32x8xbf16> to vector<32x8xbf16>
    %cst_46 = arith.constant dense<0.000000e+00> : vector<16x8xf32>
    %71 = tpu.matmul %13, %70, %cst_46 {dimension_numbers = #tpu.dot_dimension_numbers<[1], [0], [0], [1], [0, 0, 1, 1], [], []>} : vector<16x32xbf16>, vector<32x8xbf16>, vector<16x8xf32> -> vector<16x8xf32>
    %c5_47 = arith.constant 5 : index
    %c0_48 = arith.constant 0 : index
    %c0_49 = arith.constant 0 : index
    %72 = vector.load %arg5[%c5_47, %c0_48, %c0_49] : memref<24x1x8xf32, #tpu.memory_space<vmem>>, vector<1x1x8xf32>
    %73 = vector.shape_cast %72 : vector<1x1x8xf32> to vector<1x8xf32>
    %74 = vector.broadcast %73 : vector<1x8xf32> to vector<16x8xf32>
    %75 = arith.addf %71, %74 : vector<16x8xf32>
    %76 = vector.shape_cast %75 : vector<16x8xf32> to vector<2x8x8xf32>
    %c9 = arith.constant 9 : index
    %c0_50 = arith.constant 0 : index
    %c0_51 = arith.constant 0 : index
    %77 = vector.load %arg4[%c9, %c0_50, %c0_51] : memref<24x32x8xbf16, #tpu.memory_space<vmem>>, vector<1x32x8xbf16>
    %78 = vector.shape_cast %77 : vector<1x32x8xbf16> to vector<32x8xbf16>
    %cst_52 = arith.constant dense<0.000000e+00> : vector<16x8xf32>
    %79 = tpu.matmul %13, %78, %cst_52 {dimension_numbers = #tpu.dot_dimension_numbers<[1], [0], [0], [1], [0, 0, 1, 1], [], []>} : vector<16x32xbf16>, vector<32x8xbf16>, vector<16x8xf32> -> vector<16x8xf32>
    %c9_53 = arith.constant 9 : index
    %c0_54 = arith.constant 0 : index
    %c0_55 = arith.constant 0 : index
    %80 = vector.load %arg5[%c9_53, %c0_54, %c0_55] : memref<24x1x8xf32, #tpu.memory_space<vmem>>, vector<1x1x8xf32>
    %81 = vector.shape_cast %80 : vector<1x1x8xf32> to vector<1x8xf32>
    %82 = vector.broadcast %81 : vector<1x8xf32> to vector<16x8xf32>
    %83 = arith.addf %79, %82 : vector<16x8xf32>
    %84 = vector.shape_cast %83 : vector<16x8xf32> to vector<2x8x8xf32>
    "tpu.trace_start"() <{level = 10 : i32, message = "bqd,bkd->bqk"}> : () -> ()
    %cst_56 = arith.constant dense<0.000000e+00> : vector<2x8x8xf32>
    %85 = tpu.matmul %68, %76, %cst_56 {dimension_numbers = #tpu.dot_dimension_numbers<[2], [2], [1], [1], [0, 0, 0, 1, 1, 1], [0], [0]>} : vector<2x8x8xf32>, vector<2x8x8xf32>, vector<2x8x8xf32> -> vector<2x8x8xf32>
    "tpu.trace_stop"() : () -> ()
    %cst_57 = arith.constant dense<0xFF800000> : vector<2x8xf32>
    %86 = vector.multi_reduction <maximumf>, %85, %cst_57 [2] : vector<2x8x8xf32> to vector<2x8xf32>
    %87 = vector.shape_cast %86 : vector<2x8xf32> to vector<2x8x1xf32>
    %88 = vector.broadcast %87 : vector<2x8x1xf32> to vector<2x8x8xf32>
    %89 = arith.subf %85, %88 : vector<2x8x8xf32>
    %90 = math.exp %89 : vector<2x8x8xf32>
    %cst_58 = arith.constant dense<0.000000e+00> : vector<2x8xf32>
    %91 = vector.multi_reduction <add>, %90, %cst_58 [2] : vector<2x8x8xf32> to vector<2x8xf32>
    %92 = vector.shape_cast %91 : vector<2x8xf32> to vector<2x8x1xf32>
    %93 = tpu.reciprocal %92 {approx = true} : vector<2x8x1xf32> -> vector<2x8x1xf32>
    %94 = vector.broadcast %93 : vector<2x8x1xf32> to vector<2x8x8xf32>
    %95 = arith.mulf %90, %94 : vector<2x8x8xf32>
    "tpu.trace_start"() <{level = 10 : i32, message = "bqk,bkd->bqd"}> : () -> ()
    %cst_59 = arith.constant dense<0.000000e+00> : vector<2x8x8xf32>
    %96 = tpu.matmul %95, %84, %cst_59 {dimension_numbers = #tpu.dot_dimension_numbers<[2], [1], [1], [2], [0, 0, 0, 1, 1, 2], [0], [0]>} : vector<2x8x8xf32>, vector<2x8x8xf32>, vector<2x8x8xf32> -> vector<2x8x8xf32>
    "tpu.trace_stop"() : () -> ()
    %97 = vector.shape_cast %96 : vector<2x8x8xf32> to vector<16x8xf32>
    %98 = arith.truncf %97 : vector<16x8xf32> to vector<16x8xbf16>
    %c1_60 = arith.constant 1 : index
    %c0_61 = arith.constant 0 : index
    %c0_62 = arith.constant 0 : index
    %99 = vector.load %arg6[%c1_60, %c0_61, %c0_62] : memref<8x8x32xbf16, #tpu.memory_space<vmem>>, vector<1x8x32xbf16>
    %100 = vector.shape_cast %99 : vector<1x8x32xbf16> to vector<8x32xbf16>
    %cst_63 = arith.constant dense<0.000000e+00> : vector<16x32xf32>
    %101 = tpu.matmul %98, %100, %cst_63 {dimension_numbers = #tpu.dot_dimension_numbers<[1], [0], [0], [1], [0, 0, 1, 1], [], []>} : vector<16x8xbf16>, vector<8x32xbf16>, vector<16x32xf32> -> vector<16x32xf32>
    %102 = arith.addf %58, %101 : vector<16x32xf32>
    %c2 = arith.constant 2 : index
    %c0_64 = arith.constant 0 : index
    %c0_65 = arith.constant 0 : index
    %103 = vector.load %arg4[%c2, %c0_64, %c0_65] : memref<24x32x8xbf16, #tpu.memory_space<vmem>>, vector<1x32x8xbf16>
    %104 = vector.shape_cast %103 : vector<1x32x8xbf16> to vector<32x8xbf16>
    %cst_66 = arith.constant dense<0.000000e+00> : vector<16x8xf32>
    %105 = tpu.matmul %13, %104, %cst_66 {dimension_numbers = #tpu.dot_dimension_numbers<[1], [0], [0], [1], [0, 0, 1, 1], [], []>} : vector<16x32xbf16>, vector<32x8xbf16>, vector<16x8xf32> -> vector<16x8xf32>
    %c2_67 = arith.constant 2 : index
    %c0_68 = arith.constant 0 : index
    %c0_69 = arith.constant 0 : index
    %106 = vector.load %arg5[%c2_67, %c0_68, %c0_69] : memref<24x1x8xf32, #tpu.memory_space<vmem>>, vector<1x1x8xf32>
    %107 = vector.shape_cast %106 : vector<1x1x8xf32> to vector<1x8xf32>
    %108 = vector.broadcast %107 : vector<1x8xf32> to vector<16x8xf32>
    %109 = arith.addf %105, %108 : vector<16x8xf32>
    %cst_70 = arith.constant 0.353553385 : f32
    %110 = vector.broadcast %cst_70 : f32 to vector<16x8xf32>
    %111 = arith.mulf %109, %110 : vector<16x8xf32>
    %112 = vector.shape_cast %111 : vector<16x8xf32> to vector<2x8x8xf32>
    %c6 = arith.constant 6 : index
    %c0_71 = arith.constant 0 : index
    %c0_72 = arith.constant 0 : index
    %113 = vector.load %arg4[%c6, %c0_71, %c0_72] : memref<24x32x8xbf16, #tpu.memory_space<vmem>>, vector<1x32x8xbf16>
    %114 = vector.shape_cast %113 : vector<1x32x8xbf16> to vector<32x8xbf16>
    %cst_73 = arith.constant dense<0.000000e+00> : vector<16x8xf32>
    %115 = tpu.matmul %13, %114, %cst_73 {dimension_numbers = #tpu.dot_dimension_numbers<[1], [0], [0], [1], [0, 0, 1, 1], [], []>} : vector<16x32xbf16>, vector<32x8xbf16>, vector<16x8xf32> -> vector<16x8xf32>
    %c6_74 = arith.constant 6 : index
    %c0_75 = arith.constant 0 : index
    %c0_76 = arith.constant 0 : index
    %116 = vector.load %arg5[%c6_74, %c0_75, %c0_76] : memref<24x1x8xf32, #tpu.memory_space<vmem>>, vector<1x1x8xf32>
    %117 = vector.shape_cast %116 : vector<1x1x8xf32> to vector<1x8xf32>
    %118 = vector.broadcast %117 : vector<1x8xf32> to vector<16x8xf32>
    %119 = arith.addf %115, %118 : vector<16x8xf32>
    %120 = vector.shape_cast %119 : vector<16x8xf32> to vector<2x8x8xf32>
    %c10 = arith.constant 10 : index
    %c0_77 = arith.constant 0 : index
    %c0_78 = arith.constant 0 : index
    %121 = vector.load %arg4[%c10, %c0_77, %c0_78] : memref<24x32x8xbf16, #tpu.memory_space<vmem>>, vector<1x32x8xbf16>
    %122 = vector.shape_cast %121 : vector<1x32x8xbf16> to vector<32x8xbf16>
    %cst_79 = arith.constant dense<0.000000e+00> : vector<16x8xf32>
    %123 = tpu.matmul %13, %122, %cst_79 {dimension_numbers = #tpu.dot_dimension_numbers<[1], [0], [0], [1], [0, 0, 1, 1], [], []>} : vector<16x32xbf16>, vector<32x8xbf16>, vector<16x8xf32> -> vector<16x8xf32>
    %c10_80 = arith.constant 10 : index
    %c0_81 = arith.constant 0 : index
    %c0_82 = arith.constant 0 : index
    %124 = vector.load %arg5[%c10_80, %c0_81, %c0_82] : memref<24x1x8xf32, #tpu.memory_space<vmem>>, vector<1x1x8xf32>
    %125 = vector.shape_cast %124 : vector<1x1x8xf32> to vector<1x8xf32>
    %126 = vector.broadcast %125 : vector<1x8xf32> to vector<16x8xf32>
    %127 = arith.addf %123, %126 : vector<16x8xf32>
    %128 = vector.shape_cast %127 : vector<16x8xf32> to vector<2x8x8xf32>
    "tpu.trace_start"() <{level = 10 : i32, message = "bqd,bkd->bqk"}> : () -> ()
    %cst_83 = arith.constant dense<0.000000e+00> : vector<2x8x8xf32>
    %129 = tpu.matmul %112, %120, %cst_83 {dimension_numbers = #tpu.dot_dimension_numbers<[2], [2], [1], [1], [0, 0, 0, 1, 1, 1], [0], [0]>} : vector<2x8x8xf32>, vector<2x8x8xf32>, vector<2x8x8xf32> -> vector<2x8x8xf32>
    "tpu.trace_stop"() : () -> ()
    %cst_84 = arith.constant dense<0xFF800000> : vector<2x8xf32>
    %130 = vector.multi_reduction <maximumf>, %129, %cst_84 [2] : vector<2x8x8xf32> to vector<2x8xf32>
    %131 = vector.shape_cast %130 : vector<2x8xf32> to vector<2x8x1xf32>
    %132 = vector.broadcast %131 : vector<2x8x1xf32> to vector<2x8x8xf32>
    %133 = arith.subf %129, %132 : vector<2x8x8xf32>
    %134 = math.exp %133 : vector<2x8x8xf32>
    %cst_85 = arith.constant dense<0.000000e+00> : vector<2x8xf32>
    %135 = vector.multi_reduction <add>, %134, %cst_85 [2] : vector<2x8x8xf32> to vector<2x8xf32>
    %136 = vector.shape_cast %135 : vector<2x8xf32> to vector<2x8x1xf32>
    %137 = tpu.reciprocal %136 {approx = true} : vector<2x8x1xf32> -> vector<2x8x1xf32>
    %138 = vector.broadcast %137 : vector<2x8x1xf32> to vector<2x8x8xf32>
    %139 = arith.mulf %134, %138 : vector<2x8x8xf32>
    "tpu.trace_start"() <{level = 10 : i32, message = "bqk,bkd->bqd"}> : () -> ()
    %cst_86 = arith.constant dense<0.000000e+00> : vector<2x8x8xf32>
    %140 = tpu.matmul %139, %128, %cst_86 {dimension_numbers = #tpu.dot_dimension_numbers<[2], [1], [1], [2], [0, 0, 0, 1, 1, 2], [0], [0]>} : vector<2x8x8xf32>, vector<2x8x8xf32>, vector<2x8x8xf32> -> vector<2x8x8xf32>
    "tpu.trace_stop"() : () -> ()
    %141 = vector.shape_cast %140 : vector<2x8x8xf32> to vector<16x8xf32>
    %142 = arith.truncf %141 : vector<16x8xf32> to vector<16x8xbf16>
    %c2_87 = arith.constant 2 : index
    %c0_88 = arith.constant 0 : index
    %c0_89 = arith.constant 0 : index
    %143 = vector.load %arg6[%c2_87, %c0_88, %c0_89] : memref<8x8x32xbf16, #tpu.memory_space<vmem>>, vector<1x8x32xbf16>
    %144 = vector.shape_cast %143 : vector<1x8x32xbf16> to vector<8x32xbf16>
    %cst_90 = arith.constant dense<0.000000e+00> : vector<16x32xf32>
    %145 = tpu.matmul %142, %144, %cst_90 {dimension_numbers = #tpu.dot_dimension_numbers<[1], [0], [0], [1], [0, 0, 1, 1], [], []>} : vector<16x8xbf16>, vector<8x32xbf16>, vector<16x32xf32> -> vector<16x32xf32>
    %146 = arith.addf %102, %145 : vector<16x32xf32>
    %c3 = arith.constant 3 : index
    %c0_91 = arith.constant 0 : index
    %c0_92 = arith.constant 0 : index
    %147 = vector.load %arg4[%c3, %c0_91, %c0_92] : memref<24x32x8xbf16, #tpu.memory_space<vmem>>, vector<1x32x8xbf16>
    %148 = vector.shape_cast %147 : vector<1x32x8xbf16> to vector<32x8xbf16>
    %cst_93 = arith.constant dense<0.000000e+00> : vector<16x8xf32>
    %149 = tpu.matmul %13, %148, %cst_93 {dimension_numbers = #tpu.dot_dimension_numbers<[1], [0], [0], [1], [0, 0, 1, 1], [], []>} : vector<16x32xbf16>, vector<32x8xbf16>, vector<16x8xf32> -> vector<16x8xf32>
    %c3_94 = arith.constant 3 : index
    %c0_95 = arith.constant 0 : index
    %c0_96 = arith.constant 0 : index
    %150 = vector.load %arg5[%c3_94, %c0_95, %c0_96] : memref<24x1x8xf32, #tpu.memory_space<vmem>>, vector<1x1x8xf32>
    %151 = vector.shape_cast %150 : vector<1x1x8xf32> to vector<1x8xf32>
    %152 = vector.broadcast %151 : vector<1x8xf32> to vector<16x8xf32>
    %153 = arith.addf %149, %152 : vector<16x8xf32>
    %cst_97 = arith.constant 0.353553385 : f32
    %154 = vector.broadcast %cst_97 : f32 to vector<16x8xf32>
    %155 = arith.mulf %153, %154 : vector<16x8xf32>
    %156 = vector.shape_cast %155 : vector<16x8xf32> to vector<2x8x8xf32>
    %c7 = arith.constant 7 : index
    %c0_98 = arith.constant 0 : index
    %c0_99 = arith.constant 0 : index
    %157 = vector.load %arg4[%c7, %c0_98, %c0_99] : memref<24x32x8xbf16, #tpu.memory_space<vmem>>, vector<1x32x8xbf16>
    %158 = vector.shape_cast %157 : vector<1x32x8xbf16> to vector<32x8xbf16>
    %cst_100 = arith.constant dense<0.000000e+00> : vector<16x8xf32>
    %159 = tpu.matmul %13, %158, %cst_100 {dimension_numbers = #tpu.dot_dimension_numbers<[1], [0], [0], [1], [0, 0, 1, 1], [], []>} : vector<16x32xbf16>, vector<32x8xbf16>, vector<16x8xf32> -> vector<16x8xf32>
    %c7_101 = arith.constant 7 : index
    %c0_102 = arith.constant 0 : index
    %c0_103 = arith.constant 0 : index
    %160 = vector.load %arg5[%c7_101, %c0_102, %c0_103] : memref<24x1x8xf32, #tpu.memory_space<vmem>>, vector<1x1x8xf32>
    %161 = vector.shape_cast %160 : vector<1x1x8xf32> to vector<1x8xf32>
    %162 = vector.broadcast %161 : vector<1x8xf32> to vector<16x8xf32>
    %163 = arith.addf %159, %162 : vector<16x8xf32>
    %164 = vector.shape_cast %163 : vector<16x8xf32> to vector<2x8x8xf32>
    %c11 = arith.constant 11 : index
    %c0_104 = arith.constant 0 : index
    %c0_105 = arith.constant 0 : index
    %165 = vector.load %arg4[%c11, %c0_104, %c0_105] : memref<24x32x8xbf16, #tpu.memory_space<vmem>>, vector<1x32x8xbf16>
    %166 = vector.shape_cast %165 : vector<1x32x8xbf16> to vector<32x8xbf16>
    %cst_106 = arith.constant dense<0.000000e+00> : vector<16x8xf32>
    %167 = tpu.matmul %13, %166, %cst_106 {dimension_numbers = #tpu.dot_dimension_numbers<[1], [0], [0], [1], [0, 0, 1, 1], [], []>} : vector<16x32xbf16>, vector<32x8xbf16>, vector<16x8xf32> -> vector<16x8xf32>
    %c11_107 = arith.constant 11 : index
    %c0_108 = arith.constant 0 : index
    %c0_109 = arith.constant 0 : index
    %168 = vector.load %arg5[%c11_107, %c0_108, %c0_109] : memref<24x1x8xf32, #tpu.memory_space<vmem>>, vector<1x1x8xf32>
    %169 = vector.shape_cast %168 : vector<1x1x8xf32> to vector<1x8xf32>
    %170 = vector.broadcast %169 : vector<1x8xf32> to vector<16x8xf32>
    %171 = arith.addf %167, %170 : vector<16x8xf32>
    %172 = vector.shape_cast %171 : vector<16x8xf32> to vector<2x8x8xf32>
    "tpu.trace_start"() <{level = 10 : i32, message = "bqd,bkd->bqk"}> : () -> ()
    %cst_110 = arith.constant dense<0.000000e+00> : vector<2x8x8xf32>
    %173 = tpu.matmul %156, %164, %cst_110 {dimension_numbers = #tpu.dot_dimension_numbers<[2], [2], [1], [1], [0, 0, 0, 1, 1, 1], [0], [0]>} : vector<2x8x8xf32>, vector<2x8x8xf32>, vector<2x8x8xf32> -> vector<2x8x8xf32>
    "tpu.trace_stop"() : () -> ()
    %cst_111 = arith.constant dense<0xFF800000> : vector<2x8xf32>
    %174 = vector.multi_reduction <maximumf>, %173, %cst_111 [2] : vector<2x8x8xf32> to vector<2x8xf32>
    %175 = vector.shape_cast %174 : vector<2x8xf32> to vector<2x8x1xf32>
    %176 = vector.broadcast %175 : vector<2x8x1xf32> to vector<2x8x8xf32>
    %177 = arith.subf %173, %176 : vector<2x8x8xf32>
    %178 = math.exp %177 : vector<2x8x8xf32>
    %cst_112 = arith.constant dense<0.000000e+00> : vector<2x8xf32>
    %179 = vector.multi_reduction <add>, %178, %cst_112 [2] : vector<2x8x8xf32> to vector<2x8xf32>
    %180 = vector.shape_cast %179 : vector<2x8xf32> to vector<2x8x1xf32>
    %181 = tpu.reciprocal %180 {approx = true} : vector<2x8x1xf32> -> vector<2x8x1xf32>
    %182 = vector.broadcast %181 : vector<2x8x1xf32> to vector<2x8x8xf32>
    %183 = arith.mulf %178, %182 : vector<2x8x8xf32>
    "tpu.trace_start"() <{level = 10 : i32, message = "bqk,bkd->bqd"}> : () -> ()
    %cst_113 = arith.constant dense<0.000000e+00> : vector<2x8x8xf32>
    %184 = tpu.matmul %183, %172, %cst_113 {dimension_numbers = #tpu.dot_dimension_numbers<[2], [1], [1], [2], [0, 0, 0, 1, 1, 2], [0], [0]>} : vector<2x8x8xf32>, vector<2x8x8xf32>, vector<2x8x8xf32> -> vector<2x8x8xf32>
    "tpu.trace_stop"() : () -> ()
    %185 = vector.shape_cast %184 : vector<2x8x8xf32> to vector<16x8xf32>
    %186 = arith.truncf %185 : vector<16x8xf32> to vector<16x8xbf16>
    %c3_114 = arith.constant 3 : index
    %c0_115 = arith.constant 0 : index
    %c0_116 = arith.constant 0 : index
    %187 = vector.load %arg6[%c3_114, %c0_115, %c0_116] : memref<8x8x32xbf16, #tpu.memory_space<vmem>>, vector<1x8x32xbf16>
    %188 = vector.shape_cast %187 : vector<1x8x32xbf16> to vector<8x32xbf16>
    %cst_117 = arith.constant dense<0.000000e+00> : vector<16x32xf32>
    %189 = tpu.matmul %186, %188, %cst_117 {dimension_numbers = #tpu.dot_dimension_numbers<[1], [0], [0], [1], [0, 0, 1, 1], [], []>} : vector<16x8xbf16>, vector<8x32xbf16>, vector<16x32xf32> -> vector<16x32xf32>
    %190 = arith.addf %146, %189 : vector<16x32xf32>
    %c9_118 = arith.constant 9 : index
    %c0_119 = arith.constant 0 : index
    %191 = vector.load %arg3[%c9_118, %c0_119] : memref<21x32xf32, #tpu.memory_space<vmem>>, vector<1x32xf32>
    %192 = vector.broadcast %191 : vector<1x32xf32> to vector<16x32xf32>
    %193 = arith.addf %190, %192 : vector<16x32xf32>
    %194 = arith.addf %12, %193 : vector<16x32xf32>
    %c10_120 = arith.constant 10 : index
    %c0_121 = arith.constant 0 : index
    %195 = vector.load %arg3[%c10_120, %c0_121] : memref<21x32xf32, #tpu.memory_space<vmem>>, vector<1x32xf32>
    %c11_122 = arith.constant 11 : index
    %c0_123 = arith.constant 0 : index
    %196 = vector.load %arg3[%c11_122, %c0_123] : memref<21x32xf32, #tpu.memory_space<vmem>>, vector<1x32xf32>
    %cst_124 = arith.constant dense<0.000000e+00> : vector<16xf32>
    %197 = vector.multi_reduction <add>, %194, %cst_124 [1] : vector<16x32xf32> to vector<16xf32>
    %198 = vector.shape_cast %197 : vector<16xf32> to vector<16x1xf32>
    %cst_125 = arith.constant 3.200000e+01 : f32
    %199 = vector.broadcast %cst_125 : f32 to vector<16x1xf32>
    %200 = arith.divf %198, %199 : vector<16x1xf32>
    %201 = vector.broadcast %200 : vector<16x1xf32> to vector<16x32xf32>
    %202 = arith.subf %194, %201 : vector<16x32xf32>
    %203 = arith.mulf %202, %202 : vector<16x32xf32>
    %cst_126 = arith.constant dense<0.000000e+00> : vector<16xf32>
    %204 = vector.multi_reduction <add>, %203, %cst_126 [1] : vector<16x32xf32> to vector<16xf32>
    %205 = vector.shape_cast %204 : vector<16xf32> to vector<16x1xf32>
    %cst_127 = arith.constant 3.200000e+01 : f32
    %206 = vector.broadcast %cst_127 : f32 to vector<16x1xf32>
    %207 = arith.divf %205, %206 : vector<16x1xf32>
    %208 = vector.broadcast %200 : vector<16x1xf32> to vector<16x32xf32>
    %209 = arith.subf %194, %208 : vector<16x32xf32>
    %cst_128 = arith.constant 9.99999974E-6 : f32
    %210 = vector.broadcast %cst_128 : f32 to vector<16x1xf32>
    %211 = arith.addf %207, %210 : vector<16x1xf32>
    %212 = math.rsqrt %211 : vector<16x1xf32>
    %213 = vector.broadcast %212 : vector<16x1xf32> to vector<16x32xf32>
    %214 = arith.mulf %209, %213 : vector<16x32xf32>
    %215 = vector.broadcast %195 : vector<1x32xf32> to vector<16x32xf32>
    %216 = arith.mulf %214, %215 : vector<16x32xf32>
    %217 = vector.broadcast %196 : vector<1x32xf32> to vector<16x32xf32>
    %218 = arith.addf %216, %217 : vector<16x32xf32>
    %219 = arith.truncf %218 : vector<16x32xf32> to vector<16x32xbf16>
    %c0_129 = arith.constant 0 : index
    %c0_130 = arith.constant 0 : index
    %c0_131 = arith.constant 0 : index
    %220 = vector.load %arg7[%c0_129, %c0_130, %c0_131] : memref<2x32x2048xbf16, #tpu.memory_space<vmem>>, vector<1x32x2048xbf16>
    %221 = vector.shape_cast %220 : vector<1x32x2048xbf16> to vector<32x2048xbf16>
    %cst_132 = arith.constant dense<0.000000e+00> : vector<16x2048xf32>
    %222 = tpu.matmul %219, %221, %cst_132 {dimension_numbers = #tpu.dot_dimension_numbers<[1], [0], [0], [1], [0, 0, 1, 1], [], []>} : vector<16x32xbf16>, vector<32x2048xbf16>, vector<16x2048xf32> -> vector<16x2048xf32>
    %c0_133 = arith.constant 0 : index
    %c0_134 = arith.constant 0 : index
    %c0_135 = arith.constant 0 : index
    %223 = vector.load %arg8[%c0_133, %c0_134, %c0_135] : memref<2x1x2048xf32, #tpu.memory_space<vmem>>, vector<1x1x2048xf32>
    %224 = vector.shape_cast %223 : vector<1x1x2048xf32> to vector<1x2048xf32>
    %225 = vector.broadcast %224 : vector<1x2048xf32> to vector<16x2048xf32>
    %226 = arith.addf %222, %225 : vector<16x2048xf32>
    %cst_136 = arith.constant 0.000000e+00 : f32
    %227 = vector.broadcast %cst_136 : f32 to vector<16x2048xf32>
    %228 = arith.maximumf %226, %227 : vector<16x2048xf32>
    %229 = arith.truncf %228 : vector<16x2048xf32> to vector<16x2048xbf16>
    %c0_137 = arith.constant 0 : index
    %c0_138 = arith.constant 0 : index
    %c0_139 = arith.constant 0 : index
    %230 = vector.load %arg9[%c0_137, %c0_138, %c0_139] : memref<2x2048x32xbf16, #tpu.memory_space<vmem>>, vector<1x2048x32xbf16>
    %231 = vector.shape_cast %230 : vector<1x2048x32xbf16> to vector<2048x32xbf16>
    %cst_140 = arith.constant dense<0.000000e+00> : vector<16x32xf32>
    %232 = tpu.matmul %229, %231, %cst_140 {dimension_numbers = #tpu.dot_dimension_numbers<[1], [0], [0], [1], [0, 0, 1, 1], [], []>} : vector<16x2048xbf16>, vector<2048x32xbf16>, vector<16x32xf32> -> vector<16x32xf32>
    %c12 = arith.constant 12 : index
    %c0_141 = arith.constant 0 : index
    %233 = vector.load %arg3[%c12, %c0_141] : memref<21x32xf32, #tpu.memory_space<vmem>>, vector<1x32xf32>
    %234 = vector.broadcast %233 : vector<1x32xf32> to vector<16x32xf32>
    %235 = arith.addf %232, %234 : vector<16x32xf32>
    %236 = arith.addf %218, %235 : vector<16x32xf32>
    %c13 = arith.constant 13 : index
    %c0_142 = arith.constant 0 : index
    %237 = vector.load %arg3[%c13, %c0_142] : memref<21x32xf32, #tpu.memory_space<vmem>>, vector<1x32xf32>
    %c14 = arith.constant 14 : index
    %c0_143 = arith.constant 0 : index
    %238 = vector.load %arg3[%c14, %c0_143] : memref<21x32xf32, #tpu.memory_space<vmem>>, vector<1x32xf32>
    %cst_144 = arith.constant dense<0.000000e+00> : vector<16xf32>
    %239 = vector.multi_reduction <add>, %236, %cst_144 [1] : vector<16x32xf32> to vector<16xf32>
    %240 = vector.shape_cast %239 : vector<16xf32> to vector<16x1xf32>
    %cst_145 = arith.constant 3.200000e+01 : f32
    %241 = vector.broadcast %cst_145 : f32 to vector<16x1xf32>
    %242 = arith.divf %240, %241 : vector<16x1xf32>
    %243 = vector.broadcast %242 : vector<16x1xf32> to vector<16x32xf32>
    %244 = arith.subf %236, %243 : vector<16x32xf32>
    %245 = arith.mulf %244, %244 : vector<16x32xf32>
    %cst_146 = arith.constant dense<0.000000e+00> : vector<16xf32>
    %246 = vector.multi_reduction <add>, %245, %cst_146 [1] : vector<16x32xf32> to vector<16xf32>
    %247 = vector.shape_cast %246 : vector<16xf32> to vector<16x1xf32>
    %cst_147 = arith.constant 3.200000e+01 : f32
    %248 = vector.broadcast %cst_147 : f32 to vector<16x1xf32>
    %249 = arith.divf %247, %248 : vector<16x1xf32>
    %250 = vector.broadcast %242 : vector<16x1xf32> to vector<16x32xf32>
    %251 = arith.subf %236, %250 : vector<16x32xf32>
    %cst_148 = arith.constant 9.99999974E-6 : f32
    %252 = vector.broadcast %cst_148 : f32 to vector<16x1xf32>
    %253 = arith.addf %249, %252 : vector<16x1xf32>
    %254 = math.rsqrt %253 : vector<16x1xf32>
    %255 = vector.broadcast %254 : vector<16x1xf32> to vector<16x32xf32>
    %256 = arith.mulf %251, %255 : vector<16x32xf32>
    %257 = vector.broadcast %237 : vector<1x32xf32> to vector<16x32xf32>
    %258 = arith.mulf %256, %257 : vector<16x32xf32>
    %259 = vector.broadcast %238 : vector<1x32xf32> to vector<16x32xf32>
    %260 = arith.addf %258, %259 : vector<16x32xf32>
    %261 = arith.truncf %260 : vector<16x32xf32> to vector<16x32xbf16>
    %cst_149 = arith.constant 0.000000e+00 : f32
    %262 = vector.broadcast %cst_149 : f32 to vector<16x32xf32>
    %c12_150 = arith.constant 12 : index
    %c0_151 = arith.constant 0 : index
    %c0_152 = arith.constant 0 : index
    %263 = vector.load %arg4[%c12_150, %c0_151, %c0_152] : memref<24x32x8xbf16, #tpu.memory_space<vmem>>, vector<1x32x8xbf16>
    %264 = vector.shape_cast %263 : vector<1x32x8xbf16> to vector<32x8xbf16>
    %cst_153 = arith.constant dense<0.000000e+00> : vector<16x8xf32>
    %265 = tpu.matmul %261, %264, %cst_153 {dimension_numbers = #tpu.dot_dimension_numbers<[1], [0], [0], [1], [0, 0, 1, 1], [], []>} : vector<16x32xbf16>, vector<32x8xbf16>, vector<16x8xf32> -> vector<16x8xf32>
    %c12_154 = arith.constant 12 : index
    %c0_155 = arith.constant 0 : index
    %c0_156 = arith.constant 0 : index
    %266 = vector.load %arg5[%c12_154, %c0_155, %c0_156] : memref<24x1x8xf32, #tpu.memory_space<vmem>>, vector<1x1x8xf32>
    %267 = vector.shape_cast %266 : vector<1x1x8xf32> to vector<1x8xf32>
    %268 = vector.broadcast %267 : vector<1x8xf32> to vector<16x8xf32>
    %269 = arith.addf %265, %268 : vector<16x8xf32>
    %cst_157 = arith.constant 0.353553385 : f32
    %270 = vector.broadcast %cst_157 : f32 to vector<16x8xf32>
    %271 = arith.mulf %269, %270 : vector<16x8xf32>
    %272 = vector.shape_cast %271 : vector<16x8xf32> to vector<2x8x8xf32>
    %c16 = arith.constant 16 : index
    %c0_158 = arith.constant 0 : index
    %c0_159 = arith.constant 0 : index
    %273 = vector.load %arg4[%c16, %c0_158, %c0_159] : memref<24x32x8xbf16, #tpu.memory_space<vmem>>, vector<1x32x8xbf16>
    %274 = vector.shape_cast %273 : vector<1x32x8xbf16> to vector<32x8xbf16>
    %cst_160 = arith.constant dense<0.000000e+00> : vector<16x8xf32>
    %275 = tpu.matmul %261, %274, %cst_160 {dimension_numbers = #tpu.dot_dimension_numbers<[1], [0], [0], [1], [0, 0, 1, 1], [], []>} : vector<16x32xbf16>, vector<32x8xbf16>, vector<16x8xf32> -> vector<16x8xf32>
    %c16_161 = arith.constant 16 : index
    %c0_162 = arith.constant 0 : index
    %c0_163 = arith.constant 0 : index
    %276 = vector.load %arg5[%c16_161, %c0_162, %c0_163] : memref<24x1x8xf32, #tpu.memory_space<vmem>>, vector<1x1x8xf32>
    %277 = vector.shape_cast %276 : vector<1x1x8xf32> to vector<1x8xf32>
    %278 = vector.broadcast %277 : vector<1x8xf32> to vector<16x8xf32>
    %279 = arith.addf %275, %278 : vector<16x8xf32>
    %280 = vector.shape_cast %279 : vector<16x8xf32> to vector<2x8x8xf32>
    %c20 = arith.constant 20 : index
    %c0_164 = arith.constant 0 : index
    %c0_165 = arith.constant 0 : index
    %281 = vector.load %arg4[%c20, %c0_164, %c0_165] : memref<24x32x8xbf16, #tpu.memory_space<vmem>>, vector<1x32x8xbf16>
    %282 = vector.shape_cast %281 : vector<1x32x8xbf16> to vector<32x8xbf16>
    %cst_166 = arith.constant dense<0.000000e+00> : vector<16x8xf32>
    %283 = tpu.matmul %261, %282, %cst_166 {dimension_numbers = #tpu.dot_dimension_numbers<[1], [0], [0], [1], [0, 0, 1, 1], [], []>} : vector<16x32xbf16>, vector<32x8xbf16>, vector<16x8xf32> -> vector<16x8xf32>
    %c20_167 = arith.constant 20 : index
    %c0_168 = arith.constant 0 : index
    %c0_169 = arith.constant 0 : index
    %284 = vector.load %arg5[%c20_167, %c0_168, %c0_169] : memref<24x1x8xf32, #tpu.memory_space<vmem>>, vector<1x1x8xf32>
    %285 = vector.shape_cast %284 : vector<1x1x8xf32> to vector<1x8xf32>
    %286 = vector.broadcast %285 : vector<1x8xf32> to vector<16x8xf32>
    %287 = arith.addf %283, %286 : vector<16x8xf32>
    %288 = vector.shape_cast %287 : vector<16x8xf32> to vector<2x8x8xf32>
    "tpu.trace_start"() <{level = 10 : i32, message = "bqd,bkd->bqk"}> : () -> ()
    %cst_170 = arith.constant dense<0.000000e+00> : vector<2x8x8xf32>
    %289 = tpu.matmul %272, %280, %cst_170 {dimension_numbers = #tpu.dot_dimension_numbers<[2], [2], [1], [1], [0, 0, 0, 1, 1, 1], [0], [0]>} : vector<2x8x8xf32>, vector<2x8x8xf32>, vector<2x8x8xf32> -> vector<2x8x8xf32>
    "tpu.trace_stop"() : () -> ()
    %cst_171 = arith.constant dense<0xFF800000> : vector<2x8xf32>
    %290 = vector.multi_reduction <maximumf>, %289, %cst_171 [2] : vector<2x8x8xf32> to vector<2x8xf32>
    %291 = vector.shape_cast %290 : vector<2x8xf32> to vector<2x8x1xf32>
    %292 = vector.broadcast %291 : vector<2x8x1xf32> to vector<2x8x8xf32>
    %293 = arith.subf %289, %292 : vector<2x8x8xf32>
    %294 = math.exp %293 : vector<2x8x8xf32>
    %cst_172 = arith.constant dense<0.000000e+00> : vector<2x8xf32>
    %295 = vector.multi_reduction <add>, %294, %cst_172 [2] : vector<2x8x8xf32> to vector<2x8xf32>
    %296 = vector.shape_cast %295 : vector<2x8xf32> to vector<2x8x1xf32>
    %297 = tpu.reciprocal %296 {approx = true} : vector<2x8x1xf32> -> vector<2x8x1xf32>
    %298 = vector.broadcast %297 : vector<2x8x1xf32> to vector<2x8x8xf32>
    %299 = arith.mulf %294, %298 : vector<2x8x8xf32>
    "tpu.trace_start"() <{level = 10 : i32, message = "bqk,bkd->bqd"}> : () -> ()
    %cst_173 = arith.constant dense<0.000000e+00> : vector<2x8x8xf32>
    %300 = tpu.matmul %299, %288, %cst_173 {dimension_numbers = #tpu.dot_dimension_numbers<[2], [1], [1], [2], [0, 0, 0, 1, 1, 2], [0], [0]>} : vector<2x8x8xf32>, vector<2x8x8xf32>, vector<2x8x8xf32> -> vector<2x8x8xf32>
    "tpu.trace_stop"() : () -> ()
    %301 = vector.shape_cast %300 : vector<2x8x8xf32> to vector<16x8xf32>
    %302 = arith.truncf %301 : vector<16x8xf32> to vector<16x8xbf16>
    %c4_174 = arith.constant 4 : index
    %c0_175 = arith.constant 0 : index
    %c0_176 = arith.constant 0 : index
    %303 = vector.load %arg6[%c4_174, %c0_175, %c0_176] : memref<8x8x32xbf16, #tpu.memory_space<vmem>>, vector<1x8x32xbf16>
    %304 = vector.shape_cast %303 : vector<1x8x32xbf16> to vector<8x32xbf16>
    %cst_177 = arith.constant dense<0.000000e+00> : vector<16x32xf32>
    %305 = tpu.matmul %302, %304, %cst_177 {dimension_numbers = #tpu.dot_dimension_numbers<[1], [0], [0], [1], [0, 0, 1, 1], [], []>} : vector<16x8xbf16>, vector<8x32xbf16>, vector<16x32xf32> -> vector<16x32xf32>
    %306 = arith.addf %262, %305 : vector<16x32xf32>
    %c13_178 = arith.constant 13 : index
    %c0_179 = arith.constant 0 : index
    %c0_180 = arith.constant 0 : index
    %307 = vector.load %arg4[%c13_178, %c0_179, %c0_180] : memref<24x32x8xbf16, #tpu.memory_space<vmem>>, vector<1x32x8xbf16>
    %308 = vector.shape_cast %307 : vector<1x32x8xbf16> to vector<32x8xbf16>
    %cst_181 = arith.constant dense<0.000000e+00> : vector<16x8xf32>
    %309 = tpu.matmul %261, %308, %cst_181 {dimension_numbers = #tpu.dot_dimension_numbers<[1], [0], [0], [1], [0, 0, 1, 1], [], []>} : vector<16x32xbf16>, vector<32x8xbf16>, vector<16x8xf32> -> vector<16x8xf32>
    %c13_182 = arith.constant 13 : index
    %c0_183 = arith.constant 0 : index
    %c0_184 = arith.constant 0 : index
    %310 = vector.load %arg5[%c13_182, %c0_183, %c0_184] : memref<24x1x8xf32, #tpu.memory_space<vmem>>, vector<1x1x8xf32>
    %311 = vector.shape_cast %310 : vector<1x1x8xf32> to vector<1x8xf32>
    %312 = vector.broadcast %311 : vector<1x8xf32> to vector<16x8xf32>
    %313 = arith.addf %309, %312 : vector<16x8xf32>
    %cst_185 = arith.constant 0.353553385 : f32
    %314 = vector.broadcast %cst_185 : f32 to vector<16x8xf32>
    %315 = arith.mulf %313, %314 : vector<16x8xf32>
    %316 = vector.shape_cast %315 : vector<16x8xf32> to vector<2x8x8xf32>
    %c17 = arith.constant 17 : index
    %c0_186 = arith.constant 0 : index
    %c0_187 = arith.constant 0 : index
    %317 = vector.load %arg4[%c17, %c0_186, %c0_187] : memref<24x32x8xbf16, #tpu.memory_space<vmem>>, vector<1x32x8xbf16>
    %318 = vector.shape_cast %317 : vector<1x32x8xbf16> to vector<32x8xbf16>
    %cst_188 = arith.constant dense<0.000000e+00> : vector<16x8xf32>
    %319 = tpu.matmul %261, %318, %cst_188 {dimension_numbers = #tpu.dot_dimension_numbers<[1], [0], [0], [1], [0, 0, 1, 1], [], []>} : vector<16x32xbf16>, vector<32x8xbf16>, vector<16x8xf32> -> vector<16x8xf32>
    %c17_189 = arith.constant 17 : index
    %c0_190 = arith.constant 0 : index
    %c0_191 = arith.constant 0 : index
    %320 = vector.load %arg5[%c17_189, %c0_190, %c0_191] : memref<24x1x8xf32, #tpu.memory_space<vmem>>, vector<1x1x8xf32>
    %321 = vector.shape_cast %320 : vector<1x1x8xf32> to vector<1x8xf32>
    %322 = vector.broadcast %321 : vector<1x8xf32> to vector<16x8xf32>
    %323 = arith.addf %319, %322 : vector<16x8xf32>
    %324 = vector.shape_cast %323 : vector<16x8xf32> to vector<2x8x8xf32>
    %c21 = arith.constant 21 : index
    %c0_192 = arith.constant 0 : index
    %c0_193 = arith.constant 0 : index
    %325 = vector.load %arg4[%c21, %c0_192, %c0_193] : memref<24x32x8xbf16, #tpu.memory_space<vmem>>, vector<1x32x8xbf16>
    %326 = vector.shape_cast %325 : vector<1x32x8xbf16> to vector<32x8xbf16>
    %cst_194 = arith.constant dense<0.000000e+00> : vector<16x8xf32>
    %327 = tpu.matmul %261, %326, %cst_194 {dimension_numbers = #tpu.dot_dimension_numbers<[1], [0], [0], [1], [0, 0, 1, 1], [], []>} : vector<16x32xbf16>, vector<32x8xbf16>, vector<16x8xf32> -> vector<16x8xf32>
    %c21_195 = arith.constant 21 : index
    %c0_196 = arith.constant 0 : index
    %c0_197 = arith.constant 0 : index
    %328 = vector.load %arg5[%c21_195, %c0_196, %c0_197] : memref<24x1x8xf32, #tpu.memory_space<vmem>>, vector<1x1x8xf32>
    %329 = vector.shape_cast %328 : vector<1x1x8xf32> to vector<1x8xf32>
    %330 = vector.broadcast %329 : vector<1x8xf32> to vector<16x8xf32>
    %331 = arith.addf %327, %330 : vector<16x8xf32>
    %332 = vector.shape_cast %331 : vector<16x8xf32> to vector<2x8x8xf32>
    "tpu.trace_start"() <{level = 10 : i32, message = "bqd,bkd->bqk"}> : () -> ()
    %cst_198 = arith.constant dense<0.000000e+00> : vector<2x8x8xf32>
    %333 = tpu.matmul %316, %324, %cst_198 {dimension_numbers = #tpu.dot_dimension_numbers<[2], [2], [1], [1], [0, 0, 0, 1, 1, 1], [0], [0]>} : vector<2x8x8xf32>, vector<2x8x8xf32>, vector<2x8x8xf32> -> vector<2x8x8xf32>
    "tpu.trace_stop"() : () -> ()
    %cst_199 = arith.constant dense<0xFF800000> : vector<2x8xf32>
    %334 = vector.multi_reduction <maximumf>, %333, %cst_199 [2] : vector<2x8x8xf32> to vector<2x8xf32>
    %335 = vector.shape_cast %334 : vector<2x8xf32> to vector<2x8x1xf32>
    %336 = vector.broadcast %335 : vector<2x8x1xf32> to vector<2x8x8xf32>
    %337 = arith.subf %333, %336 : vector<2x8x8xf32>
    %338 = math.exp %337 : vector<2x8x8xf32>
    %cst_200 = arith.constant dense<0.000000e+00> : vector<2x8xf32>
    %339 = vector.multi_reduction <add>, %338, %cst_200 [2] : vector<2x8x8xf32> to vector<2x8xf32>
    %340 = vector.shape_cast %339 : vector<2x8xf32> to vector<2x8x1xf32>
    %341 = tpu.reciprocal %340 {approx = true} : vector<2x8x1xf32> -> vector<2x8x1xf32>
    %342 = vector.broadcast %341 : vector<2x8x1xf32> to vector<2x8x8xf32>
    %343 = arith.mulf %338, %342 : vector<2x8x8xf32>
    "tpu.trace_start"() <{level = 10 : i32, message = "bqk,bkd->bqd"}> : () -> ()
    %cst_201 = arith.constant dense<0.000000e+00> : vector<2x8x8xf32>
    %344 = tpu.matmul %343, %332, %cst_201 {dimension_numbers = #tpu.dot_dimension_numbers<[2], [1], [1], [2], [0, 0, 0, 1, 1, 2], [0], [0]>} : vector<2x8x8xf32>, vector<2x8x8xf32>, vector<2x8x8xf32> -> vector<2x8x8xf32>
    "tpu.trace_stop"() : () -> ()
    %345 = vector.shape_cast %344 : vector<2x8x8xf32> to vector<16x8xf32>
    %346 = arith.truncf %345 : vector<16x8xf32> to vector<16x8xbf16>
    %c5_202 = arith.constant 5 : index
    %c0_203 = arith.constant 0 : index
    %c0_204 = arith.constant 0 : index
    %347 = vector.load %arg6[%c5_202, %c0_203, %c0_204] : memref<8x8x32xbf16, #tpu.memory_space<vmem>>, vector<1x8x32xbf16>
    %348 = vector.shape_cast %347 : vector<1x8x32xbf16> to vector<8x32xbf16>
    %cst_205 = arith.constant dense<0.000000e+00> : vector<16x32xf32>
    %349 = tpu.matmul %346, %348, %cst_205 {dimension_numbers = #tpu.dot_dimension_numbers<[1], [0], [0], [1], [0, 0, 1, 1], [], []>} : vector<16x8xbf16>, vector<8x32xbf16>, vector<16x32xf32> -> vector<16x32xf32>
    %350 = arith.addf %306, %349 : vector<16x32xf32>
    %c14_206 = arith.constant 14 : index
    %c0_207 = arith.constant 0 : index
    %c0_208 = arith.constant 0 : index
    %351 = vector.load %arg4[%c14_206, %c0_207, %c0_208] : memref<24x32x8xbf16, #tpu.memory_space<vmem>>, vector<1x32x8xbf16>
    %352 = vector.shape_cast %351 : vector<1x32x8xbf16> to vector<32x8xbf16>
    %cst_209 = arith.constant dense<0.000000e+00> : vector<16x8xf32>
    %353 = tpu.matmul %261, %352, %cst_209 {dimension_numbers = #tpu.dot_dimension_numbers<[1], [0], [0], [1], [0, 0, 1, 1], [], []>} : vector<16x32xbf16>, vector<32x8xbf16>, vector<16x8xf32> -> vector<16x8xf32>
    %c14_210 = arith.constant 14 : index
    %c0_211 = arith.constant 0 : index
    %c0_212 = arith.constant 0 : index
    %354 = vector.load %arg5[%c14_210, %c0_211, %c0_212] : memref<24x1x8xf32, #tpu.memory_space<vmem>>, vector<1x1x8xf32>
    %355 = vector.shape_cast %354 : vector<1x1x8xf32> to vector<1x8xf32>
    %356 = vector.broadcast %355 : vector<1x8xf32> to vector<16x8xf32>
    %357 = arith.addf %353, %356 : vector<16x8xf32>
    %cst_213 = arith.constant 0.353553385 : f32
    %358 = vector.broadcast %cst_213 : f32 to vector<16x8xf32>
    %359 = arith.mulf %357, %358 : vector<16x8xf32>
    %360 = vector.shape_cast %359 : vector<16x8xf32> to vector<2x8x8xf32>
    %c18 = arith.constant 18 : index
    %c0_214 = arith.constant 0 : index
    %c0_215 = arith.constant 0 : index
    %361 = vector.load %arg4[%c18, %c0_214, %c0_215] : memref<24x32x8xbf16, #tpu.memory_space<vmem>>, vector<1x32x8xbf16>
    %362 = vector.shape_cast %361 : vector<1x32x8xbf16> to vector<32x8xbf16>
    %cst_216 = arith.constant dense<0.000000e+00> : vector<16x8xf32>
    %363 = tpu.matmul %261, %362, %cst_216 {dimension_numbers = #tpu.dot_dimension_numbers<[1], [0], [0], [1], [0, 0, 1, 1], [], []>} : vector<16x32xbf16>, vector<32x8xbf16>, vector<16x8xf32> -> vector<16x8xf32>
    %c18_217 = arith.constant 18 : index
    %c0_218 = arith.constant 0 : index
    %c0_219 = arith.constant 0 : index
    %364 = vector.load %arg5[%c18_217, %c0_218, %c0_219] : memref<24x1x8xf32, #tpu.memory_space<vmem>>, vector<1x1x8xf32>
    %365 = vector.shape_cast %364 : vector<1x1x8xf32> to vector<1x8xf32>
    %366 = vector.broadcast %365 : vector<1x8xf32> to vector<16x8xf32>
    %367 = arith.addf %363, %366 : vector<16x8xf32>
    %368 = vector.shape_cast %367 : vector<16x8xf32> to vector<2x8x8xf32>
    %c22 = arith.constant 22 : index
    %c0_220 = arith.constant 0 : index
    %c0_221 = arith.constant 0 : index
    %369 = vector.load %arg4[%c22, %c0_220, %c0_221] : memref<24x32x8xbf16, #tpu.memory_space<vmem>>, vector<1x32x8xbf16>
    %370 = vector.shape_cast %369 : vector<1x32x8xbf16> to vector<32x8xbf16>
    %cst_222 = arith.constant dense<0.000000e+00> : vector<16x8xf32>
    %371 = tpu.matmul %261, %370, %cst_222 {dimension_numbers = #tpu.dot_dimension_numbers<[1], [0], [0], [1], [0, 0, 1, 1], [], []>} : vector<16x32xbf16>, vector<32x8xbf16>, vector<16x8xf32> -> vector<16x8xf32>
    %c22_223 = arith.constant 22 : index
    %c0_224 = arith.constant 0 : index
    %c0_225 = arith.constant 0 : index
    %372 = vector.load %arg5[%c22_223, %c0_224, %c0_225] : memref<24x1x8xf32, #tpu.memory_space<vmem>>, vector<1x1x8xf32>
    %373 = vector.shape_cast %372 : vector<1x1x8xf32> to vector<1x8xf32>
    %374 = vector.broadcast %373 : vector<1x8xf32> to vector<16x8xf32>
    %375 = arith.addf %371, %374 : vector<16x8xf32>
    %376 = vector.shape_cast %375 : vector<16x8xf32> to vector<2x8x8xf32>
    "tpu.trace_start"() <{level = 10 : i32, message = "bqd,bkd->bqk"}> : () -> ()
    %cst_226 = arith.constant dense<0.000000e+00> : vector<2x8x8xf32>
    %377 = tpu.matmul %360, %368, %cst_226 {dimension_numbers = #tpu.dot_dimension_numbers<[2], [2], [1], [1], [0, 0, 0, 1, 1, 1], [0], [0]>} : vector<2x8x8xf32>, vector<2x8x8xf32>, vector<2x8x8xf32> -> vector<2x8x8xf32>
    "tpu.trace_stop"() : () -> ()
    %cst_227 = arith.constant dense<0xFF800000> : vector<2x8xf32>
    %378 = vector.multi_reduction <maximumf>, %377, %cst_227 [2] : vector<2x8x8xf32> to vector<2x8xf32>
    %379 = vector.shape_cast %378 : vector<2x8xf32> to vector<2x8x1xf32>
    %380 = vector.broadcast %379 : vector<2x8x1xf32> to vector<2x8x8xf32>
    %381 = arith.subf %377, %380 : vector<2x8x8xf32>
    %382 = math.exp %381 : vector<2x8x8xf32>
    %cst_228 = arith.constant dense<0.000000e+00> : vector<2x8xf32>
    %383 = vector.multi_reduction <add>, %382, %cst_228 [2] : vector<2x8x8xf32> to vector<2x8xf32>
    %384 = vector.shape_cast %383 : vector<2x8xf32> to vector<2x8x1xf32>
    %385 = tpu.reciprocal %384 {approx = true} : vector<2x8x1xf32> -> vector<2x8x1xf32>
    %386 = vector.broadcast %385 : vector<2x8x1xf32> to vector<2x8x8xf32>
    %387 = arith.mulf %382, %386 : vector<2x8x8xf32>
    "tpu.trace_start"() <{level = 10 : i32, message = "bqk,bkd->bqd"}> : () -> ()
    %cst_229 = arith.constant dense<0.000000e+00> : vector<2x8x8xf32>
    %388 = tpu.matmul %387, %376, %cst_229 {dimension_numbers = #tpu.dot_dimension_numbers<[2], [1], [1], [2], [0, 0, 0, 1, 1, 2], [0], [0]>} : vector<2x8x8xf32>, vector<2x8x8xf32>, vector<2x8x8xf32> -> vector<2x8x8xf32>
    "tpu.trace_stop"() : () -> ()
    %389 = vector.shape_cast %388 : vector<2x8x8xf32> to vector<16x8xf32>
    %390 = arith.truncf %389 : vector<16x8xf32> to vector<16x8xbf16>
    %c6_230 = arith.constant 6 : index
    %c0_231 = arith.constant 0 : index
    %c0_232 = arith.constant 0 : index
    %391 = vector.load %arg6[%c6_230, %c0_231, %c0_232] : memref<8x8x32xbf16, #tpu.memory_space<vmem>>, vector<1x8x32xbf16>
    %392 = vector.shape_cast %391 : vector<1x8x32xbf16> to vector<8x32xbf16>
    %cst_233 = arith.constant dense<0.000000e+00> : vector<16x32xf32>
    %393 = tpu.matmul %390, %392, %cst_233 {dimension_numbers = #tpu.dot_dimension_numbers<[1], [0], [0], [1], [0, 0, 1, 1], [], []>} : vector<16x8xbf16>, vector<8x32xbf16>, vector<16x32xf32> -> vector<16x32xf32>
    %394 = arith.addf %350, %393 : vector<16x32xf32>
    %c15 = arith.constant 15 : index
    %c0_234 = arith.constant 0 : index
    %c0_235 = arith.constant 0 : index
    %395 = vector.load %arg4[%c15, %c0_234, %c0_235] : memref<24x32x8xbf16, #tpu.memory_space<vmem>>, vector<1x32x8xbf16>
    %396 = vector.shape_cast %395 : vector<1x32x8xbf16> to vector<32x8xbf16>
    %cst_236 = arith.constant dense<0.000000e+00> : vector<16x8xf32>
    %397 = tpu.matmul %261, %396, %cst_236 {dimension_numbers = #tpu.dot_dimension_numbers<[1], [0], [0], [1], [0, 0, 1, 1], [], []>} : vector<16x32xbf16>, vector<32x8xbf16>, vector<16x8xf32> -> vector<16x8xf32>
    %c15_237 = arith.constant 15 : index
    %c0_238 = arith.constant 0 : index
    %c0_239 = arith.constant 0 : index
    %398 = vector.load %arg5[%c15_237, %c0_238, %c0_239] : memref<24x1x8xf32, #tpu.memory_space<vmem>>, vector<1x1x8xf32>
    %399 = vector.shape_cast %398 : vector<1x1x8xf32> to vector<1x8xf32>
    %400 = vector.broadcast %399 : vector<1x8xf32> to vector<16x8xf32>
    %401 = arith.addf %397, %400 : vector<16x8xf32>
    %cst_240 = arith.constant 0.353553385 : f32
    %402 = vector.broadcast %cst_240 : f32 to vector<16x8xf32>
    %403 = arith.mulf %401, %402 : vector<16x8xf32>
    %404 = vector.shape_cast %403 : vector<16x8xf32> to vector<2x8x8xf32>
    %c19 = arith.constant 19 : index
    %c0_241 = arith.constant 0 : index
    %c0_242 = arith.constant 0 : index
    %405 = vector.load %arg4[%c19, %c0_241, %c0_242] : memref<24x32x8xbf16, #tpu.memory_space<vmem>>, vector<1x32x8xbf16>
    %406 = vector.shape_cast %405 : vector<1x32x8xbf16> to vector<32x8xbf16>
    %cst_243 = arith.constant dense<0.000000e+00> : vector<16x8xf32>
    %407 = tpu.matmul %261, %406, %cst_243 {dimension_numbers = #tpu.dot_dimension_numbers<[1], [0], [0], [1], [0, 0, 1, 1], [], []>} : vector<16x32xbf16>, vector<32x8xbf16>, vector<16x8xf32> -> vector<16x8xf32>
    %c19_244 = arith.constant 19 : index
    %c0_245 = arith.constant 0 : index
    %c0_246 = arith.constant 0 : index
    %408 = vector.load %arg5[%c19_244, %c0_245, %c0_246] : memref<24x1x8xf32, #tpu.memory_space<vmem>>, vector<1x1x8xf32>
    %409 = vector.shape_cast %408 : vector<1x1x8xf32> to vector<1x8xf32>
    %410 = vector.broadcast %409 : vector<1x8xf32> to vector<16x8xf32>
    %411 = arith.addf %407, %410 : vector<16x8xf32>
    %412 = vector.shape_cast %411 : vector<16x8xf32> to vector<2x8x8xf32>
    %c23 = arith.constant 23 : index
    %c0_247 = arith.constant 0 : index
    %c0_248 = arith.constant 0 : index
    %413 = vector.load %arg4[%c23, %c0_247, %c0_248] : memref<24x32x8xbf16, #tpu.memory_space<vmem>>, vector<1x32x8xbf16>
    %414 = vector.shape_cast %413 : vector<1x32x8xbf16> to vector<32x8xbf16>
    %cst_249 = arith.constant dense<0.000000e+00> : vector<16x8xf32>
    %415 = tpu.matmul %261, %414, %cst_249 {dimension_numbers = #tpu.dot_dimension_numbers<[1], [0], [0], [1], [0, 0, 1, 1], [], []>} : vector<16x32xbf16>, vector<32x8xbf16>, vector<16x8xf32> -> vector<16x8xf32>
    %c23_250 = arith.constant 23 : index
    %c0_251 = arith.constant 0 : index
    %c0_252 = arith.constant 0 : index
    %416 = vector.load %arg5[%c23_250, %c0_251, %c0_252] : memref<24x1x8xf32, #tpu.memory_space<vmem>>, vector<1x1x8xf32>
    %417 = vector.shape_cast %416 : vector<1x1x8xf32> to vector<1x8xf32>
    %418 = vector.broadcast %417 : vector<1x8xf32> to vector<16x8xf32>
    %419 = arith.addf %415, %418 : vector<16x8xf32>
    %420 = vector.shape_cast %419 : vector<16x8xf32> to vector<2x8x8xf32>
    "tpu.trace_start"() <{level = 10 : i32, message = "bqd,bkd->bqk"}> : () -> ()
    %cst_253 = arith.constant dense<0.000000e+00> : vector<2x8x8xf32>
    %421 = tpu.matmul %404, %412, %cst_253 {dimension_numbers = #tpu.dot_dimension_numbers<[2], [2], [1], [1], [0, 0, 0, 1, 1, 1], [0], [0]>} : vector<2x8x8xf32>, vector<2x8x8xf32>, vector<2x8x8xf32> -> vector<2x8x8xf32>
    "tpu.trace_stop"() : () -> ()
    %cst_254 = arith.constant dense<0xFF800000> : vector<2x8xf32>
    %422 = vector.multi_reduction <maximumf>, %421, %cst_254 [2] : vector<2x8x8xf32> to vector<2x8xf32>
    %423 = vector.shape_cast %422 : vector<2x8xf32> to vector<2x8x1xf32>
    %424 = vector.broadcast %423 : vector<2x8x1xf32> to vector<2x8x8xf32>
    %425 = arith.subf %421, %424 : vector<2x8x8xf32>
    %426 = math.exp %425 : vector<2x8x8xf32>
    %cst_255 = arith.constant dense<0.000000e+00> : vector<2x8xf32>
    %427 = vector.multi_reduction <add>, %426, %cst_255 [2] : vector<2x8x8xf32> to vector<2x8xf32>
    %428 = vector.shape_cast %427 : vector<2x8xf32> to vector<2x8x1xf32>
    %429 = tpu.reciprocal %428 {approx = true} : vector<2x8x1xf32> -> vector<2x8x1xf32>
    %430 = vector.broadcast %429 : vector<2x8x1xf32> to vector<2x8x8xf32>
    %431 = arith.mulf %426, %430 : vector<2x8x8xf32>
    "tpu.trace_start"() <{level = 10 : i32, message = "bqk,bkd->bqd"}> : () -> ()
    %cst_256 = arith.constant dense<0.000000e+00> : vector<2x8x8xf32>
    %432 = tpu.matmul %431, %420, %cst_256 {dimension_numbers = #tpu.dot_dimension_numbers<[2], [1], [1], [2], [0, 0, 0, 1, 1, 2], [0], [0]>} : vector<2x8x8xf32>, vector<2x8x8xf32>, vector<2x8x8xf32> -> vector<2x8x8xf32>
    "tpu.trace_stop"() : () -> ()
    %433 = vector.shape_cast %432 : vector<2x8x8xf32> to vector<16x8xf32>
    %434 = arith.truncf %433 : vector<16x8xf32> to vector<16x8xbf16>
    %c7_257 = arith.constant 7 : index
    %c0_258 = arith.constant 0 : index
    %c0_259 = arith.constant 0 : index
    %435 = vector.load %arg6[%c7_257, %c0_258, %c0_259] : memref<8x8x32xbf16, #tpu.memory_space<vmem>>, vector<1x8x32xbf16>
    %436 = vector.shape_cast %435 : vector<1x8x32xbf16> to vector<8x32xbf16>
    %cst_260 = arith.constant dense<0.000000e+00> : vector<16x32xf32>
    %437 = tpu.matmul %434, %436, %cst_260 {dimension_numbers = #tpu.dot_dimension_numbers<[1], [0], [0], [1], [0, 0, 1, 1], [], []>} : vector<16x8xbf16>, vector<8x32xbf16>, vector<16x32xf32> -> vector<16x32xf32>
    %438 = arith.addf %394, %437 : vector<16x32xf32>
    %c15_261 = arith.constant 15 : index
    %c0_262 = arith.constant 0 : index
    %439 = vector.load %arg3[%c15_261, %c0_262] : memref<21x32xf32, #tpu.memory_space<vmem>>, vector<1x32xf32>
    %440 = vector.broadcast %439 : vector<1x32xf32> to vector<16x32xf32>
    %441 = arith.addf %438, %440 : vector<16x32xf32>
    %442 = arith.addf %260, %441 : vector<16x32xf32>
    %c16_263 = arith.constant 16 : index
    %c0_264 = arith.constant 0 : index
    %443 = vector.load %arg3[%c16_263, %c0_264] : memref<21x32xf32, #tpu.memory_space<vmem>>, vector<1x32xf32>
    %c17_265 = arith.constant 17 : index
    %c0_266 = arith.constant 0 : index
    %444 = vector.load %arg3[%c17_265, %c0_266] : memref<21x32xf32, #tpu.memory_space<vmem>>, vector<1x32xf32>
    %cst_267 = arith.constant dense<0.000000e+00> : vector<16xf32>
    %445 = vector.multi_reduction <add>, %442, %cst_267 [1] : vector<16x32xf32> to vector<16xf32>
    %446 = vector.shape_cast %445 : vector<16xf32> to vector<16x1xf32>
    %cst_268 = arith.constant 3.200000e+01 : f32
    %447 = vector.broadcast %cst_268 : f32 to vector<16x1xf32>
    %448 = arith.divf %446, %447 : vector<16x1xf32>
    %449 = vector.broadcast %448 : vector<16x1xf32> to vector<16x32xf32>
    %450 = arith.subf %442, %449 : vector<16x32xf32>
    %451 = arith.mulf %450, %450 : vector<16x32xf32>
    %cst_269 = arith.constant dense<0.000000e+00> : vector<16xf32>
    %452 = vector.multi_reduction <add>, %451, %cst_269 [1] : vector<16x32xf32> to vector<16xf32>
    %453 = vector.shape_cast %452 : vector<16xf32> to vector<16x1xf32>
    %cst_270 = arith.constant 3.200000e+01 : f32
    %454 = vector.broadcast %cst_270 : f32 to vector<16x1xf32>
    %455 = arith.divf %453, %454 : vector<16x1xf32>
    %456 = vector.broadcast %448 : vector<16x1xf32> to vector<16x32xf32>
    %457 = arith.subf %442, %456 : vector<16x32xf32>
    %cst_271 = arith.constant 9.99999974E-6 : f32
    %458 = vector.broadcast %cst_271 : f32 to vector<16x1xf32>
    %459 = arith.addf %455, %458 : vector<16x1xf32>
    %460 = math.rsqrt %459 : vector<16x1xf32>
    %461 = vector.broadcast %460 : vector<16x1xf32> to vector<16x32xf32>
    %462 = arith.mulf %457, %461 : vector<16x32xf32>
    %463 = vector.broadcast %443 : vector<1x32xf32> to vector<16x32xf32>
    %464 = arith.mulf %462, %463 : vector<16x32xf32>
    %465 = vector.broadcast %444 : vector<1x32xf32> to vector<16x32xf32>
    %466 = arith.addf %464, %465 : vector<16x32xf32>
    %467 = arith.truncf %466 : vector<16x32xf32> to vector<16x32xbf16>
    %c1_272 = arith.constant 1 : index
    %c0_273 = arith.constant 0 : index
    %c0_274 = arith.constant 0 : index
    %468 = vector.load %arg7[%c1_272, %c0_273, %c0_274] : memref<2x32x2048xbf16, #tpu.memory_space<vmem>>, vector<1x32x2048xbf16>
    %469 = vector.shape_cast %468 : vector<1x32x2048xbf16> to vector<32x2048xbf16>
    %cst_275 = arith.constant dense<0.000000e+00> : vector<16x2048xf32>
    %470 = tpu.matmul %467, %469, %cst_275 {dimension_numbers = #tpu.dot_dimension_numbers<[1], [0], [0], [1], [0, 0, 1, 1], [], []>} : vector<16x32xbf16>, vector<32x2048xbf16>, vector<16x2048xf32> -> vector<16x2048xf32>
    %c1_276 = arith.constant 1 : index
    %c0_277 = arith.constant 0 : index
    %c0_278 = arith.constant 0 : index
    %471 = vector.load %arg8[%c1_276, %c0_277, %c0_278] : memref<2x1x2048xf32, #tpu.memory_space<vmem>>, vector<1x1x2048xf32>
    %472 = vector.shape_cast %471 : vector<1x1x2048xf32> to vector<1x2048xf32>
    %473 = vector.broadcast %472 : vector<1x2048xf32> to vector<16x2048xf32>
    %474 = arith.addf %470, %473 : vector<16x2048xf32>
    %cst_279 = arith.constant 0.000000e+00 : f32
    %475 = vector.broadcast %cst_279 : f32 to vector<16x2048xf32>
    %476 = arith.maximumf %474, %475 : vector<16x2048xf32>
    %477 = arith.truncf %476 : vector<16x2048xf32> to vector<16x2048xbf16>
    %c1_280 = arith.constant 1 : index
    %c0_281 = arith.constant 0 : index
    %c0_282 = arith.constant 0 : index
    %478 = vector.load %arg9[%c1_280, %c0_281, %c0_282] : memref<2x2048x32xbf16, #tpu.memory_space<vmem>>, vector<1x2048x32xbf16>
    %479 = vector.shape_cast %478 : vector<1x2048x32xbf16> to vector<2048x32xbf16>
    %cst_283 = arith.constant dense<0.000000e+00> : vector<16x32xf32>
    %480 = tpu.matmul %477, %479, %cst_283 {dimension_numbers = #tpu.dot_dimension_numbers<[1], [0], [0], [1], [0, 0, 1, 1], [], []>} : vector<16x2048xbf16>, vector<2048x32xbf16>, vector<16x32xf32> -> vector<16x32xf32>
    %c18_284 = arith.constant 18 : index
    %c0_285 = arith.constant 0 : index
    %481 = vector.load %arg3[%c18_284, %c0_285] : memref<21x32xf32, #tpu.memory_space<vmem>>, vector<1x32xf32>
    %482 = vector.broadcast %481 : vector<1x32xf32> to vector<16x32xf32>
    %483 = arith.addf %480, %482 : vector<16x32xf32>
    %484 = arith.addf %466, %483 : vector<16x32xf32>
    %c19_286 = arith.constant 19 : index
    %c0_287 = arith.constant 0 : index
    %485 = vector.load %arg3[%c19_286, %c0_287] : memref<21x32xf32, #tpu.memory_space<vmem>>, vector<1x32xf32>
    %c20_288 = arith.constant 20 : index
    %c0_289 = arith.constant 0 : index
    %486 = vector.load %arg3[%c20_288, %c0_289] : memref<21x32xf32, #tpu.memory_space<vmem>>, vector<1x32xf32>
    %cst_290 = arith.constant dense<0.000000e+00> : vector<16xf32>
    %487 = vector.multi_reduction <add>, %484, %cst_290 [1] : vector<16x32xf32> to vector<16xf32>
    %488 = vector.shape_cast %487 : vector<16xf32> to vector<16x1xf32>
    %cst_291 = arith.constant 3.200000e+01 : f32
    %489 = vector.broadcast %cst_291 : f32 to vector<16x1xf32>
    %490 = arith.divf %488, %489 : vector<16x1xf32>
    %491 = vector.broadcast %490 : vector<16x1xf32> to vector<16x32xf32>
    %492 = arith.subf %484, %491 : vector<16x32xf32>
    %493 = arith.mulf %492, %492 : vector<16x32xf32>
    %cst_292 = arith.constant dense<0.000000e+00> : vector<16xf32>
    %494 = vector.multi_reduction <add>, %493, %cst_292 [1] : vector<16x32xf32> to vector<16xf32>
    %495 = vector.shape_cast %494 : vector<16xf32> to vector<16x1xf32>
    %cst_293 = arith.constant 3.200000e+01 : f32
    %496 = vector.broadcast %cst_293 : f32 to vector<16x1xf32>
    %497 = arith.divf %495, %496 : vector<16x1xf32>
    %498 = vector.broadcast %490 : vector<16x1xf32> to vector<16x32xf32>
    %499 = arith.subf %484, %498 : vector<16x32xf32>
    %cst_294 = arith.constant 9.99999974E-6 : f32
    %500 = vector.broadcast %cst_294 : f32 to vector<16x1xf32>
    %501 = arith.addf %497, %500 : vector<16x1xf32>
    %502 = math.rsqrt %501 : vector<16x1xf32>
    %503 = vector.broadcast %502 : vector<16x1xf32> to vector<16x32xf32>
    %504 = arith.mulf %499, %503 : vector<16x32xf32>
    %505 = vector.broadcast %485 : vector<1x32xf32> to vector<16x32xf32>
    %506 = arith.mulf %504, %505 : vector<16x32xf32>
    %507 = vector.broadcast %486 : vector<1x32xf32> to vector<16x32xf32>
    %508 = arith.addf %506, %507 : vector<16x32xf32>
    %509 = vector.shape_cast %508 : vector<16x32xf32> to vector<2x8x32xf32>
    %510 = vector.extract_strided_slice %509 {offsets = [0, 7, 0], sizes = [2, 1, 32], strides = [1, 1, 1]} : vector<2x8x32xf32> to vector<2x1x32xf32>
    %511 = vector.shape_cast %510 : vector<2x1x32xf32> to vector<2x32xf32>
    %c0_295 = arith.constant 0 : index
    %c0_296 = arith.constant 0 : index
    %512 = vector.load %arg10[%c0_295, %c0_296] : memref<32x128xf32, #tpu.memory_space<vmem>>, vector<32x128xf32>
    %cst_297 = arith.constant dense<0.000000e+00> : vector<2x128xf32>
    %513 = tpu.matmul %511, %512, %cst_297 {dimension_numbers = #tpu.dot_dimension_numbers<[1], [0], [0], [1], [0, 0, 1, 1], [], []>} : vector<2x32xf32>, vector<32x128xf32>, vector<2x128xf32> -> vector<2x128xf32>
    %c0_298 = arith.constant 0 : index
    %c0_299 = arith.constant 0 : index
    %514 = vector.load %arg11[%c0_298, %c0_299] : memref<1x128xf32, #tpu.memory_space<vmem>>, vector<1x128xf32>
    %515 = vector.broadcast %514 : vector<1x128xf32> to vector<2x128xf32>
    %516 = arith.addf %513, %515 : vector<2x128xf32>
    %c0_300 = arith.constant 0 : index
    %c0_301 = arith.constant 0 : index
    %c0_302 = arith.constant 0 : index
    %517 = vector.load %arg12[%c0_300, %c0_301, %c0_302] : memref<1x2x128xf32, #tpu.memory_space<vmem>>, vector<1x2x128xf32>
    %518 = vector.shape_cast %517 : vector<1x2x128xf32> to vector<2x128xf32>
    %519 = vector.shape_cast %516 : vector<2x128xf32> to vector<1x2x128xf32>
    tpu.vector_store %arg12[%c0_300, %c0_301, %c0_302], %519 {strides = array<i32>} : memref<1x2x128xf32, #tpu.memory_space<vmem>>, vector<1x2x128xf32>,
    return
  }
  func.func @transform_0(%arg0: i32) -> (i32, i32, i32) {
    %c0_i32 = arith.constant 0 : i32
    %c0_i32_0 = arith.constant 0 : i32
    %c0_i32_1 = arith.constant 0 : i32
    return %arg0, %c0_i32, %c0_i32_0 : i32, i32, i32
  }
  func.func @transform_1(%arg0: i32) -> (i32, i32) {
    %c0_i32 = arith.constant 0 : i32
    %c0_i32_0 = arith.constant 0 : i32
    %c0_i32_1 = arith.constant 0 : i32
    return %c0_i32, %c0_i32_0 : i32, i32
  }
  func.func @transform_2(%arg0: i32) -> (i32, i32) {
    %c0_i32 = arith.constant 0 : i32
    %c0_i32_0 = arith.constant 0 : i32
    %c0_i32_1 = arith.constant 0 : i32
    return %c0_i32, %c0_i32_0 : i32, i32
  }
  func.func @transform_3(%arg0: i32) -> (i32, i32, i32) {
    %c0_i32 = arith.constant 0 : i32
    %c0_i32_0 = arith.constant 0 : i32
    %c0_i32_1 = arith.constant 0 : i32
    %c0_i32_2 = arith.constant 0 : i32
    return %c0_i32, %c0_i32_0, %c0_i32_1 : i32, i32, i32
  }
  func.func @transform_4(%arg0: i32) -> (i32, i32, i32) {
    %c0_i32 = arith.constant 0 : i32
    %c0_i32_0 = arith.constant 0 : i32
    %c0_i32_1 = arith.constant 0 : i32
    %c0_i32_2 = arith.constant 0 : i32
    return %c0_i32, %c0_i32_0, %c0_i32_1 : i32, i32, i32
  }
  func.func @transform_5(%arg0: i32) -> (i32, i32, i32) {
    %c0_i32 = arith.constant 0 : i32
    %c0_i32_0 = arith.constant 0 : i32
    %c0_i32_1 = arith.constant 0 : i32
    %c0_i32_2 = arith.constant 0 : i32
    return %c0_i32, %c0_i32_0, %c0_i32_1 : i32, i32, i32
  }
  func.func @transform_6(%arg0: i32) -> (i32, i32, i32) {
    %c0_i32 = arith.constant 0 : i32
    %c0_i32_0 = arith.constant 0 : i32
    %c0_i32_1 = arith.constant 0 : i32
    %c0_i32_2 = arith.constant 0 : i32
    return %c0_i32, %c0_i32_0, %c0_i32_1 : i32, i32, i32
  }
  func.func @transform_7(%arg0: i32) -> (i32, i32, i32) {
    %c0_i32 = arith.constant 0 : i32
    %c0_i32_0 = arith.constant 0 : i32
    %c0_i32_1 = arith.constant 0 : i32
    %c0_i32_2 = arith.constant 0 : i32
    return %c0_i32, %c0_i32_0, %c0_i32_1 : i32, i32, i32
  }
  func.func @transform_8(%arg0: i32) -> (i32, i32, i32) {
    %c0_i32 = arith.constant 0 : i32
    %c0_i32_0 = arith.constant 0 : i32
    %c0_i32_1 = arith.constant 0 : i32
    %c0_i32_2 = arith.constant 0 : i32
    return %c0_i32, %c0_i32_0, %c0_i32_1 : i32, i32, i32
  }
  func.func @transform_9(%arg0: i32) -> (i32, i32) {
    %c0_i32 = arith.constant 0 : i32
    %c0_i32_0 = arith.constant 0 : i32
    %c0_i32_1 = arith.constant 0 : i32
    return %c0_i32, %c0_i32_0 : i32, i32
  }
  func.func @transform_10(%arg0: i32) -> (i32, i32) {
    %c0_i32 = arith.constant 0 : i32
    %c0_i32_0 = arith.constant 0 : i32
    %c0_i32_1 = arith.constant 0 : i32
    return %c0_i32, %c0_i32_0 : i32, i32
  }
  func.func @transform_11(%arg0: i32) -> (i32, i32, i32) {
    %c0_i32 = arith.constant 0 : i32
    %c0_i32_0 = arith.constant 0 : i32
    %c0_i32_1 = arith.constant 0 : i32
    return %arg0, %c0_i32, %c0_i32_0 : i32, i32, i32
  }
}

module attributes {stable_mosaic.version = 11 : i64} {
  func.func @kernel(%arg0: i32, %arg1: memref<2x8x16xf32, #tpu.memory_space<vmem>>, %arg2: memref<16x32xf32, #tpu.memory_space<vmem>>, %arg3: memref<21x32xf32, #tpu.memory_space<vmem>>, %arg4: memref<24x32x8xbf16, #tpu.memory_space<vmem>>, %arg5: memref<24x1x8xf32, #tpu.memory_space<vmem>>, %arg6: memref<8x8x32xbf16, #tpu.memory_space<vmem>>, %arg7: memref<2x32x2048xbf16, #tpu.memory_space<vmem>>, %arg8: memref<2x1x2048xf32, #tpu.memory_space<vmem>>, %arg9: memref<2x2048x32xbf16, #tpu.memory_space<vmem>>, %arg10: memref<32x128xf32, #tpu.memory_space<vmem>>, %arg11: memref<1x128xf32, #tpu.memory_space<vmem>>, %arg12: memref<1x2x128xf32, #tpu.memory_space<vmem>>) attributes {dimension_semantics = [#tpu.dimension_semantics<parallel>], iteration_bounds = array<i64: 1>, scalar_prefetch = 0 : i64, scratch_operands = 0 : i64, tpu.core_type = #tpu.core_type<tc>, window_params = [{transform_indices = @transform_0, window_bounds = array<i64: 2, 8, 16>}, {pipeline_mode = #tpu.pipeline_mode<synchronous>, transform_indices = @transform_1, window_bounds = array<i64: 16, 32>}, {pipeline_mode = #tpu.pipeline_mode<synchronous>, transform_indices = @transform_2, window_bounds = array<i64: 21, 32>}, {pipeline_mode = #tpu.pipeline_mode<synchronous>, transform_indices = @transform_3, window_bounds = array<i64: 24, 32, 8>}, {pipeline_mode = #tpu.pipeline_mode<synchronous>, transform_indices = @transform_4, window_bounds = array<i64: 24, 1, 8>}, {pipeline_mode = #tpu.pipeline_mode<synchronous>, transform_indices = @transform_5, window_bounds = array<i64: 8, 8, 32>}, {pipeline_mode = #tpu.pipeline_mode<synchronous>, transform_indices = @transform_6, window_bounds = array<i64: 2, 32, 2048>}, {pipeline_mode = #tpu.pipeline_mode<synchronous>, transform_indices = @transform_7, window_bounds = array<i64: 2, 1, 2048>}, {pipeline_mode = #tpu.pipeline_mode<synchronous>, transform_indices = @transform_8, window_bounds = array<i64: 2, 2048, 32>}, {pipeline_mode = #tpu.pipeline_mode<synchronous>, transform_indices = @transform_9, window_bounds = array<i64: 32, 128>}, {pipeline_mode = #tpu.pipeline_mode<synchronous>, transform_indices = @transform_10, window_bounds = array<i64: 1, 128>}, {transform_indices = @transform_11, window_bounds = array<i64: 1, 2, 128>}]} {
    %c0 = arith.constant 0 : index
    %c0_0 = arith.constant 0 : index
    %c0_1 = arith.constant 0 : index
    %0 = vector.load %arg1[%c0, %c0_0, %c0_1] : memref<2x8x16xf32, #tpu.memory_space<vmem>>, vector<2x8x16xf32>
    %1 = vector.shape_cast %0 : vector<2x8x16xf32> to vector<16x16xf32>
    %c0_2 = arith.constant 0 : index
    %c0_3 = arith.constant 0 : index
    %2 = vector.load %arg2[%c0_2, %c0_3] : memref<16x32xf32, #tpu.memory_space<vmem>>, vector<16x32xf32>
    %cst = arith.constant dense<0.000000e+00> : vector<16x32xf32>
    %3 = tpu.matmul %1, %2, %cst {dimension_numbers = #tpu.dot_dimension_numbers<[1], [0], [0], [1], [0, 0, 1, 1], [], []>} : vector<16x16xf32>, vector<16x32xf32>, vector<16x32xf32> -> vector<16x32xf32>
    %c0_4 = arith.constant 0 : index
    %c0_5 = arith.constant 0 : index
    %4 = vector.load %arg3[%c0_4, %c0_5] : memref<21x32xf32, #tpu.memory_space<vmem>>, vector<1x32xf32>
    %5 = vector.broadcast %4 : vector<1x32xf32> to vector<16x32xf32>
    %6 = arith.addf %3, %5 : vector<16x32xf32>
    %7 = vector.shape_cast %6 : vector<16x32xf32> to vector<2x8x32xf32>
    %c1 = arith.constant 1 : index
    %c0_6 = arith.constant 0 : index
    %8 = vector.load %arg3[%c1, %c0_6] : memref<21x32xf32, #tpu.memory_space<vmem>>, vector<8x32xf32>
    %9 = vector.shape_cast %8 : vector<8x32xf32> to vector<1x8x32xf32>
    %10 = vector.broadcast %9 : vector<1x8x32xf32> to vector<2x8x32xf32>
    %11 = arith.addf %7, %10 : vector<2x8x32xf32>
    %12 = vector.shape_cast %11 : vector<2x8x32xf32> to vector<16x32xf32>
    %13 = arith.truncf %12 : vector<16x32xf32> to vector<16x32xbf16>
    %cst_7 = arith.constant 0.000000e+00 : f32
    %14 = vector.broadcast %cst_7 : f32 to vector<16x32xf32>
    %c0_8 = arith.constant 0 : index
    %c0_9 = arith.constant 0 : index
    %c0_10 = arith.constant 0 : index
    %15 = vector.load %arg4[%c0_8, %c0_9, %c0_10] : memref<24x32x8xbf16, #tpu.memory_space<vmem>>, vector<1x32x8xbf16>
    %16 = vector.shape_cast %15 : vector<1x32x8xbf16> to vector<32x8xbf16>
    %cst_11 = arith.constant dense<0.000000e+00> : vector<16x8xf32>
    %17 = tpu.matmul %13, %16, %cst_11 {dimension_numbers = #tpu.dot_dimension_numbers<[1], [0], [0], [1], [0, 0, 1, 1], [], []>} : vector<16x32xbf16>, vector<32x8xbf16>, vector<16x8xf32> -> vector<16x8xf32>
    %c0_12 = arith.constant 0 : index
    %c0_13 = arith.constant 0 : index
    %c0_14 = arith.constant 0 : index
    %18 = vector.load %arg5[%c0_12, %c0_13, %c0_14] : memref<24x1x8xf32, #tpu.memory_space<vmem>>, vector<1x1x8xf32>
    %19 = vector.shape_cast %18 : vector<1x1x8xf32> to vector<1x8xf32>
    %20 = vector.broadcast %19 : vector<1x8xf32> to vector<16x8xf32>
    %21 = arith.addf %17, %20 : vector<16x8xf32>
    %cst_15 = arith.constant 0.353553385 : f32
    %22 = vector.broadcast %cst_15 : f32 to vector<16x8xf32>
    %23 = arith.mulf %21, %22 : vector<16x8xf32>
    %24 = vector.shape_cast %23 : vector<16x8xf32> to vector<2x8x8xf32>
    %c4 = arith.constant 4 : index
    %c0_16 = arith.constant 0 : index
    %c0_17 = arith.constant 0 : index
    %25 = vector.load %arg4[%c4, %c0_16, %c0_17] : memref<24x32x8xbf16, #tpu.memory_space<vmem>>, vector<1x32x8xbf16>
    %26 = vector.shape_cast %25 : vector<1x32x8xbf16> to vector<32x8xbf16>
    %cst_18 = arith.constant dense<0.000000e+00> : vector<16x8xf32>
    %27 = tpu.matmul %13, %26, %cst_18 {dimension_numbers = #tpu.dot_dimension_numbers<[1], [0], [0], [1], [0, 0, 1, 1], [], []>} : vector<16x32xbf16>, vector<32x8xbf16>, vector<16x8xf32> -> vector<16x8xf32>
    %c4_19 = arith.constant 4 : index
    %c0_20 = arith.constant 0 : index
    %c0_21 = arith.constant 0 : index
    %28 = vector.load %arg5[%c4_19, %c0_20, %c0_21] : memref<24x1x8xf32, #tpu.memory_space<vmem>>, vector<1x1x8xf32>
    %29 = vector.shape_cast %28 : vector<1x1x8xf32> to vector<1x8xf32>
    %30 = vector.broadcast %29 : vector<1x8xf32> to vector<16x8xf32>
    %31 = arith.addf %27, %30 : vector<16x8xf32>
    %32 = vector.shape_cast %31 : vector<16x8xf32> to vector<2x8x8xf32>
    %c8 = arith.constant 8 : index
    %c0_22 = arith.constant 0 : index
    %c0_23 = arith.constant 0 : index
    %33 = vector.load %arg4[%c8, %c0_22, %c0_23] : memref<24x32x8xbf16, #tpu.memory_space<vmem>>, vector<1x32x8xbf16>
    %34 = vector.shape_cast %33 : vector<1x32x8xbf16> to vector<32x8xbf16>
    %cst_24 = arith.constant dense<0.000000e+00> : vector<16x8xf32>
    %35 = tpu.matmul %13, %34, %cst_24 {dimension_numbers = #tpu.dot_dimension_numbers<[1], [0], [0], [1], [0, 0, 1, 1], [], []>} : vector<16x32xbf16>, vector<32x8xbf16>, vector<16x8xf32> -> vector<16x8xf32>
    %c8_25 = arith.constant 8 : index
    %c0_26 = arith.constant 0 : index
    %c0_27 = arith.constant 0 : index
    %36 = vector.load %arg5[%c8_25, %c0_26, %c0_27] : memref<24x1x8xf32, #tpu.memory_space<vmem>>, vector<1x1x8xf32>
    %37 = vector.shape_cast %36 : vector<1x1x8xf32> to vector<1x8xf32>
    %38 = vector.broadcast %37 : vector<1x8xf32> to vector<16x8xf32>
    %39 = arith.addf %35, %38 : vector<16x8xf32>
    %40 = vector.shape_cast %39 : vector<16x8xf32> to vector<2x8x8xf32>
    "tpu.trace_start"() <{level = 10 : i32, message = "bqd,bkd->bqk"}> : () -> ()
    %cst_28 = arith.constant dense<0.000000e+00> : vector<2x8x8xf32>
    %41 = tpu.matmul %24, %32, %cst_28 {dimension_numbers = #tpu.dot_dimension_numbers<[2], [2], [1], [1], [0, 0, 0, 1, 1, 1], [0], [0]>} : vector<2x8x8xf32>, vector<2x8x8xf32>, vector<2x8x8xf32> -> vector<2x8x8xf32>
    "tpu.trace_stop"() : () -> ()
    %cst_29 = arith.constant dense<0xFF800000> : vector<2x8xf32>
    %42 = vector.multi_reduction <maximumf>, %41, %cst_29 [2] : vector<2x8x8xf32> to vector<2x8xf32>
    %43 = vector.shape_cast %42 : vector<2x8xf32> to vector<2x8x1xf32>
    %44 = vector.broadcast %43 : vector<2x8x1xf32> to vector<2x8x8xf32>
    %45 = arith.subf %41, %44 : vector<2x8x8xf32>
    %46 = math.exp %45 : vector<2x8x8xf32>
    %cst_30 = arith.constant dense<0.000000e+00> : vector<2x8xf32>
    %47 = vector.multi_reduction <add>, %46, %cst_30 [2] : vector<2x8x8xf32> to vector<2x8xf32>
    %48 = vector.shape_cast %47 : vector<2x8xf32> to vector<2x8x1xf32>
    %49 = tpu.reciprocal %48 {approx = true} : vector<2x8x1xf32> -> vector<2x8x1xf32>
    %50 = vector.broadcast %49 : vector<2x8x1xf32> to vector<2x8x8xf32>
    %51 = arith.mulf %46, %50 : vector<2x8x8xf32>
    "tpu.trace_start"() <{level = 10 : i32, message = "bqk,bkd->bqd"}> : () -> ()
    %cst_31 = arith.constant dense<0.000000e+00> : vector<2x8x8xf32>
    %52 = tpu.matmul %51, %40, %cst_31 {dimension_numbers = #tpu.dot_dimension_numbers<[2], [1], [1], [2], [0, 0, 0, 1, 1, 2], [0], [0]>} : vector<2x8x8xf32>, vector<2x8x8xf32>, vector<2x8x8xf32> -> vector<2x8x8xf32>
    "tpu.trace_stop"() : () -> ()
    %53 = vector.shape_cast %52 : vector<2x8x8xf32> to vector<16x8xf32>
    %54 = arith.truncf %53 : vector<16x8xf32> to vector<16x8xbf16>
    %c0_32 = arith.constant 0 : index
    %c0_33 = arith.constant 0 : index
    %c0_34 = arith.constant 0 : index
    %55 = vector.load %arg6[%c0_32, %c0_33, %c0_34] : memref<8x8x32xbf16, #tpu.memory_space<vmem>>, vector<1x8x32xbf16>
    %56 = vector.shape_cast %55 : vector<1x8x32xbf16> to vector<8x32xbf16>
    %cst_35 = arith.constant dense<0.000000e+00> : vector<16x32xf32>
    %57 = tpu.matmul %54, %56, %cst_35 {dimension_numbers = #tpu.dot_dimension_numbers<[1], [0], [0], [1], [0, 0, 1, 1], [], []>} : vector<16x8xbf16>, vector<8x32xbf16>, vector<16x32xf32> -> vector<16x32xf32>
    %58 = arith.addf %14, %57 : vector<16x32xf32>
    %c1_36 = arith.constant 1 : index
    %c0_37 = arith.constant 0 : index
    %c0_38 = arith.constant 0 : index
    %59 = vector.load %arg4[%c1_36, %c0_37, %c0_38] : memref<24x32x8xbf16, #tpu.memory_space<vmem>>, vector<1x32x8xbf16>
    %60 = vector.shape_cast %59 : vector<1x32x8xbf16> to vector<32x8xbf16>
    %cst_39 = arith.constant dense<0.000000e+00> : vector<16x8xf32>
    %61 = tpu.matmul %13, %60, %cst_39 {dimension_numbers = #tpu.dot_dimension_numbers<[1], [0], [0], [1], [0, 0, 1, 1], [], []>} : vector<16x32xbf16>, vector<32x8xbf16>, vector<16x8xf32> -> vector<16x8xf32>
    %c1_40 = arith.constant 1 : index
    %c0_41 = arith.constant 0 : index
    %c0_42 = arith.constant 0 : index
    %62 = vector.load %arg5[%c1_40, %c0_41, %c0_42] : memref<24x1x8xf32, #tpu.memory_space<vmem>>, vector<1x1x8xf32>
    %63 = vector.shape_cast %62 : vector<1x1x8xf32> to vector<1x8xf32>
    %64 = vector.broadcast %63 : vector<1x8xf32> to vector<16x8xf32>
    %65 = arith.addf %61, %64 : vector<16x8xf32>
    %cst_43 = arith.constant 0.353553385 : f32
    %66 = vector.broadcast %cst_43 : f32 to vector<16x8xf32>
    %67 = arith.mulf %65, %66 : vector<16x8xf32>
    %68 = vector.shape_cast %67 : vector<16x8xf32> to vector<2x8x8xf32>
    %c5 = arith.constant 5 : index
    %c0_44 = arith.constant 0 : index
    %c0_45 = arith.constant 0 : index
    %69 = vector.load %arg4[%c5, %c0_44, %c0_45] : memref<24x32x8xbf16, #tpu.memory_space<vmem>>, vector<1x32x8xbf16>
    %70 = vector.shape_cast %69 : vector<1x32x8xbf16> to vector<32x8xbf16>
    %cst_46 = arith.constant dense<0.000000e+00> : vector<16x8xf32>
    %71 = tpu.matmul %13, %70, %cst_46 {dimension_numbers = #tpu.dot_dimension_numbers<[1], [0], [0], [1], [0, 0, 1, 1], [], []>} : vector<16x32xbf16>, vector<32x8xbf16>, vector<16x8xf32> -> vector<16x8xf32>
    %c5_47 = arith.constant 5 : index
    %c0_48 = arith.constant 0 : index
    %c0_49 = arith.constant 0 : index
    %72 = vector.load %arg5[%c5_47, %c0_48, %c0_49] : memref<24x1x8xf32, #tpu.memory_space<vmem>>, vector<1x1x8xf32>
    %73 = vector.shape_cast %72 : vector<1x1x8xf32> to vector<1x8xf32>
    %74 = vector.broadcast %73 : vector<1x8xf32> to vector<16x8xf32>
    %75 = arith.addf %71, %74 : vector<16x8xf32>
    %76 = vector.shape_cast %75 : vector<16x8xf32> to vector<2x8x8xf32>
    %c9 = arith.constant 9 : index
    %c0_50 = arith.constant 0 : index
    %c0_51 = arith.constant 0 : index
    %77 = vector.load %arg4[%c9, %c0_50, %c0_51] : memref<24x32x8xbf16, #tpu.memory_space<vmem>>, vector<1x32x8xbf16>
    %78 = vector.shape_cast %77 : vector<1x32x8xbf16> to vector<32x8xbf16>
    %cst_52 = arith.constant dense<0.000000e+00> : vector<16x8xf32>
    %79 = tpu.matmul %13, %78, %cst_52 {dimension_numbers = #tpu.dot_dimension_numbers<[1], [0], [0], [1], [0, 0, 1, 1], [], []>} : vector<16x32xbf16>, vector<32x8xbf16>, vector<16x8xf32> -> vector<16x8xf32>
    %c9_53 = arith.constant 9 : index
    %c0_54 = arith.constant 0 : index
    %c0_55 = arith.constant 0 : index
    %80 = vector.load %arg5[%c9_53, %c0_54, %c0_55] : memref<24x1x8xf32, #tpu.memory_space<vmem>>, vector<1x1x8xf32>
    %81 = vector.shape_cast %80 : vector<1x1x8xf32> to vector<1x8xf32>
    %82 = vector.broadcast %81 : vector<1x8xf32> to vector<16x8xf32>
    %83 = arith.addf %79, %82 : vector<16x8xf32>
    %84 = vector.shape_cast %83 : vector<16x8xf32> to vector<2x8x8xf32>
    "tpu.trace_start"() <{level = 10 : i32, message = "bqd,bkd->bqk"}> : () -> ()
    %cst_56 = arith.constant dense<0.000000e+00> : vector<2x8x8xf32>
    %85 = tpu.matmul %68, %76, %cst_56 {dimension_numbers = #tpu.dot_dimension_numbers<[2], [2], [1], [1], [0, 0, 0, 1, 1, 1], [0], [0]>} : vector<2x8x8xf32>, vector<2x8x8xf32>, vector<2x8x8xf32> -> vector<2x8x8xf32>
    "tpu.trace_stop"() : () -> ()
    %cst_57 = arith.constant dense<0xFF800000> : vector<2x8xf32>
    %86 = vector.multi_reduction <maximumf>, %85, %cst_57 [2] : vector<2x8x8xf32> to vector<2x8xf32>
    %87 = vector.shape_cast %86 : vector<2x8xf32> to vector<2x8x1xf32>
    %88 = vector.broadcast %87 : vector<2x8x1xf32> to vector<2x8x8xf32>
    %89 = arith.subf %85, %88 : vector<2x8x8xf32>
    %90 = math.exp %89 : vector<2x8x8xf32>
    %cst_58 = arith.constant dense<0.000000e+00> : vector<2x8xf32>
    %91 = vector.multi_reduction <add>, %90, %cst_58 [2] : vector<2x8x8xf32> to vector<2x8xf32>
    %92 = vector.shape_cast %91 : vector<2x8xf32> to vector<2x8x1xf32>
    %93 = tpu.reciprocal %92 {approx = true} : vector<2x8x1xf32> -> vector<2x8x1xf32>
    %94 = vector.broadcast %93 : vector<2x8x1xf32> to vector<2x8x8xf32>
    %95 = arith.mulf %90, %94 : vector<2x8x8xf32>
    "tpu.trace_start"() <{level = 10 : i32, message = "bqk,bkd->bqd"}> : () -> ()
    %cst_59 = arith.constant dense<0.000000e+00> : vector<2x8x8xf32>
    %96 = tpu.matmul %95, %84, %cst_59 {dimension_numbers = #tpu.dot_dimension_numbers<[2], [1], [1], [2], [0, 0, 0, 1, 1, 2], [0], [0]>} : vector<2x8x8xf32>, vector<2x8x8xf32>, vector<2x8x8xf32> -> vector<2x8x8xf32>
    "tpu.trace_stop"() : () -> ()
    %97 = vector.shape_cast %96 : vector<2x8x8xf32> to vector<16x8xf32>
    %98 = arith.truncf %97 : vector<16x8xf32> to vector<16x8xbf16>
    %c1_60 = arith.constant 1 : index
    %c0_61 = arith.constant 0 : index
    %c0_62 = arith.constant 0 : index
    %99 = vector.load %arg6[%c1_60, %c0_61, %c0_62] : memref<8x8x32xbf16, #tpu.memory_space<vmem>>, vector<1x8x32xbf16>
    %100 = vector.shape_cast %99 : vector<1x8x32xbf16> to vector<8x32xbf16>
    %cst_63 = arith.constant dense<0.000000e+00> : vector<16x32xf32>
    %101 = tpu.matmul %98, %100, %cst_63 {dimension_numbers = #tpu.dot_dimension_numbers<[1], [0], [0], [1], [0, 0, 1, 1], [], []>} : vector<16x8xbf16>, vector<8x32xbf16>, vector<16x32xf32> -> vector<16x32xf32>
    %102 = arith.addf %58, %101 : vector<16x32xf32>
    %c2 = arith.constant 2 : index
    %c0_64 = arith.constant 0 : index
    %c0_65 = arith.constant 0 : index
    %103 = vector.load %arg4[%c2, %c0_64, %c0_65] : memref<24x32x8xbf16, #tpu.memory_space<vmem>>, vector<1x32x8xbf16>
    %104 = vector.shape_cast %103 : vector<1x32x8xbf16> to vector<32x8xbf16>
    %cst_66 = arith.constant dense<0.000000e+00> : vector<16x8xf32>
    %105 = tpu.matmul %13, %104, %cst_66 {dimension_numbers = #tpu.dot_dimension_numbers<[1], [0], [0], [1], [0, 0, 1, 1], [], []>} : vector<16x32xbf16>, vector<32x8xbf16>, vector<16x8xf32> -> vector<16x8xf32>
    %c2_67 = arith.constant 2 : index
    %c0_68 = arith.constant 0 : index
    %c0_69 = arith.constant 0 : index
    %106 = vector.load %arg5[%c2_67, %c0_68, %c0_69] : memref<24x1x8xf32, #tpu.memory_space<vmem>>, vector<1x1x8xf32>
    %107 = vector.shape_cast %106 : vector<1x1x8xf32> to vector<1x8xf32>
    %108 = vector.broadcast %107 : vector<1x8xf32> to vector<16x8xf32>
    %109 = arith.addf %105, %108 : vector<16x8xf32>
    %cst_70 = arith.constant 0.353553385 : f32
    %110 = vector.broadcast %cst_70 : f32 to vector<16x8xf32>
    %111 = arith.mulf %109, %110 : vector<16x8xf32>
    %112 = vector.shape_cast %111 : vector<16x8xf32> to vector<2x8x8xf32>
    %c6 = arith.constant 6 : index
    %c0_71 = arith.constant 0 : index
    %c0_72 = arith.constant 0 : index
    %113 = vector.load %arg4[%c6, %c0_71, %c0_72] : memref<24x32x8xbf16, #tpu.memory_space<vmem>>, vector<1x32x8xbf16>
    %114 = vector.shape_cast %113 : vector<1x32x8xbf16> to vector<32x8xbf16>
    %cst_73 = arith.constant dense<0.000000e+00> : vector<16x8xf32>
    %115 = tpu.matmul %13, %114, %cst_73 {dimension_numbers = #tpu.dot_dimension_numbers<[1], [0], [0], [1], [0, 0, 1, 1], [], []>} : vector<16x32xbf16>, vector<32x8xbf16>, vector<16x8xf32> -> vector<16x8xf32>
    %c6_74 = arith.constant 6 : index
    %c0_75 = arith.constant 0 : index
    %c0_76 = arith.constant 0 : index
    %116 = vector.load %arg5[%c6_74, %c0_75, %c0_76] : memref<24x1x8xf32, #tpu.memory_space<vmem>>, vector<1x1x8xf32>
    %117 = vector.shape_cast %116 : vector<1x1x8xf32> to vector<1x8xf32>
    %118 = vector.broadcast %117 : vector<1x8xf32> to vector<16x8xf32>
    %119 = arith.addf %115, %118 : vector<16x8xf32>
    %120 = vector.shape_cast %119 : vector<16x8xf32> to vector<2x8x8xf32>
    %c10 = arith.constant 10 : index
    %c0_77 = arith.constant 0 : index
    %c0_78 = arith.constant 0 : index
    %121 = vector.load %arg4[%c10, %c0_77, %c0_78] : memref<24x32x8xbf16, #tpu.memory_space<vmem>>, vector<1x32x8xbf16>
    %122 = vector.shape_cast %121 : vector<1x32x8xbf16> to vector<32x8xbf16>
    %cst_79 = arith.constant dense<0.000000e+00> : vector<16x8xf32>
    %123 = tpu.matmul %13, %122, %cst_79 {dimension_numbers = #tpu.dot_dimension_numbers<[1], [0], [0], [1], [0, 0, 1, 1], [], []>} : vector<16x32xbf16>, vector<32x8xbf16>, vector<16x8xf32> -> vector<16x8xf32>
    %c10_80 = arith.constant 10 : index
    %c0_81 = arith.constant 0 : index
    %c0_82 = arith.constant 0 : index
    %124 = vector.load %arg5[%c10_80, %c0_81, %c0_82] : memref<24x1x8xf32, #tpu.memory_space<vmem>>, vector<1x1x8xf32>
    %125 = vector.shape_cast %124 : vector<1x1x8xf32> to vector<1x8xf32>
    %126 = vector.broadcast %125 : vector<1x8xf32> to vector<16x8xf32>
    %127 = arith.addf %123, %126 : vector<16x8xf32>
    %128 = vector.shape_cast %127 : vector<16x8xf32> to vector<2x8x8xf32>
    "tpu.trace_start"() <{level = 10 : i32, message = "bqd,bkd->bqk"}> : () -> ()
    %cst_83 = arith.constant dense<0.000000e+00> : vector<2x8x8xf32>
    %129 = tpu.matmul %112, %120, %cst_83 {dimension_numbers = #tpu.dot_dimension_numbers<[2], [2], [1], [1], [0, 0, 0, 1, 1, 1], [0], [0]>} : vector<2x8x8xf32>, vector<2x8x8xf32>, vector<2x8x8xf32> -> vector<2x8x8xf32>
    "tpu.trace_stop"() : () -> ()
    %cst_84 = arith.constant dense<0xFF800000> : vector<2x8xf32>
    %130 = vector.multi_reduction <maximumf>, %129, %cst_84 [2] : vector<2x8x8xf32> to vector<2x8xf32>
    %131 = vector.shape_cast %130 : vector<2x8xf32> to vector<2x8x1xf32>
    %132 = vector.broadcast %131 : vector<2x8x1xf32> to vector<2x8x8xf32>
    %133 = arith.subf %129, %132 : vector<2x8x8xf32>
    %134 = math.exp %133 : vector<2x8x8xf32>
    %cst_85 = arith.constant dense<0.000000e+00> : vector<2x8xf32>
    %135 = vector.multi_reduction <add>, %134, %cst_85 [2] : vector<2x8x8xf32> to vector<2x8xf32>
    %136 = vector.shape_cast %135 : vector<2x8xf32> to vector<2x8x1xf32>
    %137 = tpu.reciprocal %136 {approx = true} : vector<2x8x1xf32> -> vector<2x8x1xf32>
    %138 = vector.broadcast %137 : vector<2x8x1xf32> to vector<2x8x8xf32>
    %139 = arith.mulf %134, %138 : vector<2x8x8xf32>
    "tpu.trace_start"() <{level = 10 : i32, message = "bqk,bkd->bqd"}> : () -> ()
    %cst_86 = arith.constant dense<0.000000e+00> : vector<2x8x8xf32>
    %140 = tpu.matmul %139, %128, %cst_86 {dimension_numbers = #tpu.dot_dimension_numbers<[2], [1], [1], [2], [0, 0, 0, 1, 1, 2], [0], [0]>} : vector<2x8x8xf32>, vector<2x8x8xf32>, vector<2x8x8xf32> -> vector<2x8x8xf32>
    "tpu.trace_stop"() : () -> ()
    %141 = vector.shape_cast %140 : vector<2x8x8xf32> to vector<16x8xf32>
    %142 = arith.truncf %141 : vector<16x8xf32> to vector<16x8xbf16>
    %c2_87 = arith.constant 2 : index
    %c0_88 = arith.constant 0 : index
    %c0_89 = arith.constant 0 : index
    %143 = vector.load %arg6[%c2_87, %c0_88, %c0_89] : memref<8x8x32xbf16, #tpu.memory_space<vmem>>, vector<1x8x32xbf16>
    %144 = vector.shape_cast %143 : vector<1x8x32xbf16> to vector<8x32xbf16>
    %cst_90 = arith.constant dense<0.000000e+00> : vector<16x32xf32>
    %145 = tpu.matmul %142, %144, %cst_90 {dimension_numbers = #tpu.dot_dimension_numbers<[1], [0], [0], [1], [0, 0, 1, 1], [], []>} : vector<16x8xbf16>, vector<8x32xbf16>, vector<16x32xf32> -> vector<16x32xf32>
    %146 = arith.addf %102, %145 : vector<16x32xf32>
    %c3 = arith.constant 3 : index
    %c0_91 = arith.constant 0 : index
    %c0_92 = arith.constant 0 : index
    %147 = vector.load %arg4[%c3, %c0_91, %c0_92] : memref<24x32x8xbf16, #tpu.memory_space<vmem>>, vector<1x32x8xbf16>
    %148 = vector.shape_cast %147 : vector<1x32x8xbf16> to vector<32x8xbf16>
    %cst_93 = arith.constant dense<0.000000e+00> : vector<16x8xf32>
    %149 = tpu.matmul %13, %148, %cst_93 {dimension_numbers = #tpu.dot_dimension_numbers<[1], [0], [0], [1], [0, 0, 1, 1], [], []>} : vector<16x32xbf16>, vector<32x8xbf16>, vector<16x8xf32> -> vector<16x8xf32>
    %c3_94 = arith.constant 3 : index
    %c0_95 = arith.constant 0 : index
    %c0_96 = arith.constant 0 : index
    %150 = vector.load %arg5[%c3_94, %c0_95, %c0_96] : memref<24x1x8xf32, #tpu.memory_space<vmem>>, vector<1x1x8xf32>
    %151 = vector.shape_cast %150 : vector<1x1x8xf32> to vector<1x8xf32>
    %152 = vector.broadcast %151 : vector<1x8xf32> to vector<16x8xf32>
    %153 = arith.addf %149, %152 : vector<16x8xf32>
    %cst_97 = arith.constant 0.353553385 : f32
    %154 = vector.broadcast %cst_97 : f32 to vector<16x8xf32>
    %155 = arith.mulf %153, %154 : vector<16x8xf32>
    %156 = vector.shape_cast %155 : vector<16x8xf32> to vector<2x8x8xf32>
    %c7 = arith.constant 7 : index
    %c0_98 = arith.constant 0 : index
    %c0_99 = arith.constant 0 : index
    %157 = vector.load %arg4[%c7, %c0_98, %c0_99] : memref<24x32x8xbf16, #tpu.memory_space<vmem>>, vector<1x32x8xbf16>
    %158 = vector.shape_cast %157 : vector<1x32x8xbf16> to vector<32x8xbf16>
    %cst_100 = arith.constant dense<0.000000e+00> : vector<16x8xf32>
    %159 = tpu.matmul %13, %158, %cst_100 {dimension_numbers = #tpu.dot_dimension_numbers<[1], [0], [0], [1], [0, 0, 1, 1], [], []>} : vector<16x32xbf16>, vector<32x8xbf16>, vector<16x8xf32> -> vector<16x8xf32>
    %c7_101 = arith.constant 7 : index
    %c0_102 = arith.constant 0 : index
    %c0_103 = arith.constant 0 : index
    %160 = vector.load %arg5[%c7_101, %c0_102, %c0_103] : memref<24x1x8xf32, #tpu.memory_space<vmem>>, vector<1x1x8xf32>
    %161 = vector.shape_cast %160 : vector<1x1x8xf32> to vector<1x8xf32>
    %162 = vector.broadcast %161 : vector<1x8xf32> to vector<16x8xf32>
    %163 = arith.addf %159, %162 : vector<16x8xf32>
    %164 = vector.shape_cast %163 : vector<16x8xf32> to vector<2x8x8xf32>
    %c11 = arith.constant 11 : index
    %c0_104 = arith.constant 0 : index
    %c0_105 = arith.constant 0 : index
    %165 = vector.load %arg4[%c11, %c0_104, %c0_105] : memref<24x32x8xbf16, #tpu.memory_space<vmem>>, vector<1x32x8xbf16>
    %166 = vector.shape_cast %165 : vector<1x32x8xbf16> to vector<32x8xbf16>
    %cst_106 = arith.constant dense<0.000000e+00> : vector<16x8xf32>
    %167 = tpu.matmul %13, %166, %cst_106 {dimension_numbers = #tpu.dot_dimension_numbers<[1], [0], [0], [1], [0, 0, 1, 1], [], []>} : vector<16x32xbf16>, vector<32x8xbf16>, vector<16x8xf32> -> vector<16x8xf32>
    %c11_107 = arith.constant 11 : index
    %c0_108 = arith.constant 0 : index
    %c0_109 = arith.constant 0 : index
    %168 = vector.load %arg5[%c11_107, %c0_108, %c0_109] : memref<24x1x8xf32, #tpu.memory_space<vmem>>, vector<1x1x8xf32>
    %169 = vector.shape_cast %168 : vector<1x1x8xf32> to vector<1x8xf32>
    %170 = vector.broadcast %169 : vector<1x8xf32> to vector<16x8xf32>
    %171 = arith.addf %167, %170 : vector<16x8xf32>
    %172 = vector.shape_cast %171 : vector<16x8xf32> to vector<2x8x8xf32>
    "tpu.trace_start"() <{level = 10 : i32, message = "bqd,bkd->bqk"}> : () -> ()
    %cst_110 = arith.constant dense<0.000000e+00> : vector<2x8x8xf32>
    %173 = tpu.matmul %156, %164, %cst_110 {dimension_numbers = #tpu.dot_dimension_numbers<[2], [2], [1], [1], [0, 0, 0, 1, 1, 1], [0], [0]>} : vector<2x8x8xf32>, vector<2x8x8xf32>, vector<2x8x8xf32> -> vector<2x8x8xf32>
    "tpu.trace_stop"() : () -> ()
    %cst_111 = arith.constant dense<0xFF800000> : vector<2x8xf32>
    %174 = vector.multi_reduction <maximumf>, %173, %cst_111 [2] : vector<2x8x8xf32> to vector<2x8xf32>
    %175 = vector.shape_cast %174 : vector<2x8xf32> to vector<2x8x1xf32>
    %176 = vector.broadcast %175 : vector<2x8x1xf32> to vector<2x8x8xf32>
    %177 = arith.subf %173, %176 : vector<2x8x8xf32>
    %178 = math.exp %177 : vector<2x8x8xf32>
    %cst_112 = arith.constant dense<0.000000e+00> : vector<2x8xf32>
    %179 = vector.multi_reduction <add>, %178, %cst_112 [2] : vector<2x8x8xf32> to vector<2x8xf32>
    %180 = vector.shape_cast %179 : vector<2x8xf32> to vector<2x8x1xf32>
    %181 = tpu.reciprocal %180 {approx = true} : vector<2x8x1xf32> -> vector<2x8x1xf32>
    %182 = vector.broadcast %181 : vector<2x8x1xf32> to vector<2x8x8xf32>
    %183 = arith.mulf %178, %182 : vector<2x8x8xf32>
    "tpu.trace_start"() <{level = 10 : i32, message = "bqk,bkd->bqd"}> : () -> ()
    %cst_113 = arith.constant dense<0.000000e+00> : vector<2x8x8xf32>
    %184 = tpu.matmul %183, %172, %cst_113 {dimension_numbers = #tpu.dot_dimension_numbers<[2], [1], [1], [2], [0, 0, 0, 1, 1, 2], [0], [0]>} : vector<2x8x8xf32>, vector<2x8x8xf32>, vector<2x8x8xf32> -> vector<2x8x8xf32>
    "tpu.trace_stop"() : () -> ()
    %185 = vector.shape_cast %184 : vector<2x8x8xf32> to vector<16x8xf32>
    %186 = arith.truncf %185 : vector<16x8xf32> to vector<16x8xbf16>
    %c3_114 = arith.constant 3 : index
    %c0_115 = arith.constant 0 : index
    %c0_116 = arith.constant 0 : index
    %187 = vector.load %arg6[%c3_114, %c0_115, %c0_116] : memref<8x8x32xbf16, #tpu.memory_space<vmem>>, vector<1x8x32xbf16>
    %188 = vector.shape_cast %187 : vector<1x8x32xbf16> to vector<8x32xbf16>
    %cst_117 = arith.constant dense<0.000000e+00> : vector<16x32xf32>
    %189 = tpu.matmul %186, %188, %cst_117 {dimension_numbers = #tpu.dot_dimension_numbers<[1], [0], [0], [1], [0, 0, 1, 1], [], []>} : vector<16x8xbf16>, vector<8x32xbf16>, vector<16x32xf32> -> vector<16x32xf32>
    %190 = arith.addf %146, %189 : vector<16x32xf32>
    %c9_118 = arith.constant 9 : index
    %c0_119 = arith.constant 0 : index
    %191 = vector.load %arg3[%c9_118, %c0_119] : memref<21x32xf32, #tpu.memory_space<vmem>>, vector<1x32xf32>
    %192 = vector.broadcast %191 : vector<1x32xf32> to vector<16x32xf32>
    %193 = arith.addf %190, %192 : vector<16x32xf32>
    %194 = arith.addf %12, %193 : vector<16x32xf32>
    %c10_120 = arith.constant 10 : index
    %c0_121 = arith.constant 0 : index
    %195 = vector.load %arg3[%c10_120, %c0_121] : memref<21x32xf32, #tpu.memory_space<vmem>>, vector<1x32xf32>
    %c11_122 = arith.constant 11 : index
    %c0_123 = arith.constant 0 : index
    %196 = vector.load %arg3[%c11_122, %c0_123] : memref<21x32xf32, #tpu.memory_space<vmem>>, vector<1x32xf32>
    %cst_124 = arith.constant dense<0.000000e+00> : vector<16xf32>
    %197 = vector.multi_reduction <add>, %194, %cst_124 [1] : vector<16x32xf32> to vector<16xf32>
    %198 = vector.shape_cast %197 : vector<16xf32> to vector<16x1xf32>
    %cst_125 = arith.constant 3.200000e+01 : f32
    %199 = vector.broadcast %cst_125 : f32 to vector<16x1xf32>
    %200 = arith.divf %198, %199 : vector<16x1xf32>
    %201 = vector.broadcast %200 : vector<16x1xf32> to vector<16x32xf32>
    %202 = arith.subf %194, %201 : vector<16x32xf32>
    %203 = arith.mulf %202, %202 : vector<16x32xf32>
    %cst_126 = arith.constant dense<0.000000e+00> : vector<16xf32>
    %204 = vector.multi_reduction <add>, %203, %cst_126 [1] : vector<16x32xf32> to vector<16xf32>
    %205 = vector.shape_cast %204 : vector<16xf32> to vector<16x1xf32>
    %cst_127 = arith.constant 3.200000e+01 : f32
    %206 = vector.broadcast %cst_127 : f32 to vector<16x1xf32>
    %207 = arith.divf %205, %206 : vector<16x1xf32>
    %208 = vector.broadcast %200 : vector<16x1xf32> to vector<16x32xf32>
    %209 = arith.subf %194, %208 : vector<16x32xf32>
    %cst_128 = arith.constant 9.99999974E-6 : f32
    %210 = vector.broadcast %cst_128 : f32 to vector<16x1xf32>
    %211 = arith.addf %207, %210 : vector<16x1xf32>
    %212 = math.rsqrt %211 : vector<16x1xf32>
    %213 = vector.broadcast %212 : vector<16x1xf32> to vector<16x32xf32>
    %214 = arith.mulf %209, %213 : vector<16x32xf32>
    %215 = vector.broadcast %195 : vector<1x32xf32> to vector<16x32xf32>
    %216 = arith.mulf %214, %215 : vector<16x32xf32>
    %217 = vector.broadcast %196 : vector<1x32xf32> to vector<16x32xf32>
    %218 = arith.addf %216, %217 : vector<16x32xf32>
    %219 = arith.truncf %218 : vector<16x32xf32> to vector<16x32xbf16>
    %c0_129 = arith.constant 0 : index
    %c0_130 = arith.constant 0 : index
    %c0_131 = arith.constant 0 : index
    %220 = vector.load %arg7[%c0_129, %c0_130, %c0_131] : memref<2x32x2048xbf16, #tpu.memory_space<vmem>>, vector<1x32x2048xbf16>
    %221 = vector.shape_cast %220 : vector<1x32x2048xbf16> to vector<32x2048xbf16>
    %cst_132 = arith.constant dense<0.000000e+00> : vector<16x2048xf32>
    %222 = tpu.matmul %219, %221, %cst_132 {dimension_numbers = #tpu.dot_dimension_numbers<[1], [0], [0], [1], [0, 0, 1, 1], [], []>} : vector<16x32xbf16>, vector<32x2048xbf16>, vector<16x2048xf32> -> vector<16x2048xf32>
    %c0_133 = arith.constant 0 : index
    %c0_134 = arith.constant 0 : index
    %c0_135 = arith.constant 0 : index
    %223 = vector.load %arg8[%c0_133, %c0_134, %c0_135] : memref<2x1x2048xf32, #tpu.memory_space<vmem>>, vector<1x1x2048xf32>
    %224 = vector.shape_cast %223 : vector<1x1x2048xf32> to vector<1x2048xf32>
    %225 = vector.broadcast %224 : vector<1x2048xf32> to vector<16x2048xf32>
    %226 = arith.addf %222, %225 : vector<16x2048xf32>
    %cst_136 = arith.constant 0.000000e+00 : f32
    %227 = vector.broadcast %cst_136 : f32 to vector<16x2048xf32>
    %228 = arith.maximumf %226, %227 : vector<16x2048xf32>
    %229 = arith.truncf %228 : vector<16x2048xf32> to vector<16x2048xbf16>
    %c0_137 = arith.constant 0 : index
    %c0_138 = arith.constant 0 : index
    %c0_139 = arith.constant 0 : index
    %230 = vector.load %arg9[%c0_137, %c0_138, %c0_139] : memref<2x2048x32xbf16, #tpu.memory_space<vmem>>, vector<1x2048x32xbf16>
    %231 = vector.shape_cast %230 : vector<1x2048x32xbf16> to vector<2048x32xbf16>
    %cst_140 = arith.constant dense<0.000000e+00> : vector<16x32xf32>
    %232 = tpu.matmul %229, %231, %cst_140 {dimension_numbers = #tpu.dot_dimension_numbers<[1], [0], [0], [1], [0, 0, 1, 1], [], []>} : vector<16x2048xbf16>, vector<2048x32xbf16>, vector<16x32xf32> -> vector<16x32xf32>
    %c12 = arith.constant 12 : index
    %c0_141 = arith.constant 0 : index
    %233 = vector.load %arg3[%c12, %c0_141] : memref<21x32xf32, #tpu.memory_space<vmem>>, vector<1x32xf32>
    %234 = vector.broadcast %233 : vector<1x32xf32> to vector<16x32xf32>
    %235 = arith.addf %232, %234 : vector<16x32xf32>
    %236 = arith.addf %218, %235 : vector<16x32xf32>
    %c13 = arith.constant 13 : index
    %c0_142 = arith.constant 0 : index
    %237 = vector.load %arg3[%c13, %c0_142] : memref<21x32xf32, #tpu.memory_space<vmem>>, vector<1x32xf32>
    %c14 = arith.constant 14 : index
    %c0_143 = arith.constant 0 : index
    %238 = vector.load %arg3[%c14, %c0_143] : memref<21x32xf32, #tpu.memory_space<vmem>>, vector<1x32xf32>
    %cst_144 = arith.constant dense<0.000000e+00> : vector<16xf32>
    %239 = vector.multi_reduction <add>, %236, %cst_144 [1] : vector<16x32xf32> to vector<16xf32>
    %240 = vector.shape_cast %239 : vector<16xf32> to vector<16x1xf32>
    %cst_145 = arith.constant 3.200000e+01 : f32
    %241 = vector.broadcast %cst_145 : f32 to vector<16x1xf32>
    %242 = arith.divf %240, %241 : vector<16x1xf32>
    %243 = vector.broadcast %242 : vector<16x1xf32> to vector<16x32xf32>
    %244 = arith.subf %236, %243 : vector<16x32xf32>
    %245 = arith.mulf %244, %244 : vector<16x32xf32>
    %cst_146 = arith.constant dense<0.000000e+00> : vector<16xf32>
    %246 = vector.multi_reduction <add>, %245, %cst_146 [1] : vector<16x32xf32> to vector<16xf32>
    %247 = vector.shape_cast %246 : vector<16xf32> to vector<16x1xf32>
    %cst_147 = arith.constant 3.200000e+01 : f32
    %248 = vector.broadcast %cst_147 : f32 to vector<16x1xf32>
    %249 = arith.divf %247, %248 : vector<16x1xf32>
    %250 = vector.broadcast %242 : vector<16x1xf32> to vector<16x32xf32>
    %251 = arith.subf %236, %250 : vector<16x32xf32>
    %cst_148 = arith.constant 9.99999974E-6 : f32
    %252 = vector.broadcast %cst_148 : f32 to vector<16x1xf32>
    %253 = arith.addf %249, %252 : vector<16x1xf32>
    %254 = math.rsqrt %253 : vector<16x1xf32>
    %255 = vector.broadcast %254 : vector<16x1xf32> to vector<16x32xf32>
    %256 = arith.mulf %251, %255 : vector<16x32xf32>
    %257 = vector.broadcast %237 : vector<1x32xf32> to vector<16x32xf32>
    %258 = arith.mulf %256, %257 : vector<16x32xf32>
    %259 = vector.broadcast %238 : vector<1x32xf32> to vector<16x32xf32>
    %260 = arith.addf %258, %259 : vector<16x32xf32>
    %261 = arith.truncf %260 : vector<16x32xf32> to vector<16x32xbf16>
    %cst_149 = arith.constant 0.000000e+00 : f32
    %262 = vector.broadcast %cst_149 : f32 to vector<16x32xf32>
    %c12_150 = arith.constant 12 : index
    %c0_151 = arith.constant 0 : index
    %c0_152 = arith.constant 0 : index
    %263 = vector.load %arg4[%c12_150, %c0_151, %c0_152] : memref<24x32x8xbf16, #tpu.memory_space<vmem>>, vector<1x32x8xbf16>
    %264 = vector.shape_cast %263 : vector<1x32x8xbf16> to vector<32x8xbf16>
    %cst_153 = arith.constant dense<0.000000e+00> : vector<16x8xf32>
    %265 = tpu.matmul %261, %264, %cst_153 {dimension_numbers = #tpu.dot_dimension_numbers<[1], [0], [0], [1], [0, 0, 1, 1], [], []>} : vector<16x32xbf16>, vector<32x8xbf16>, vector<16x8xf32> -> vector<16x8xf32>
    %c12_154 = arith.constant 12 : index
    %c0_155 = arith.constant 0 : index
    %c0_156 = arith.constant 0 : index
    %266 = vector.load %arg5[%c12_154, %c0_155, %c0_156] : memref<24x1x8xf32, #tpu.memory_space<vmem>>, vector<1x1x8xf32>
    %267 = vector.shape_cast %266 : vector<1x1x8xf32> to vector<1x8xf32>
    %268 = vector.broadcast %267 : vector<1x8xf32> to vector<16x8xf32>
    %269 = arith.addf %265, %268 : vector<16x8xf32>
    %cst_157 = arith.constant 0.353553385 : f32
    %270 = vector.broadcast %cst_157 : f32 to vector<16x8xf32>
    %271 = arith.mulf %269, %270 : vector<16x8xf32>
    %272 = vector.shape_cast %271 : vector<16x8xf32> to vector<2x8x8xf32>
    %c16 = arith.constant 16 : index
    %c0_158 = arith.constant 0 : index
    %c0_159 = arith.constant 0 : index
    %273 = vector.load %arg4[%c16, %c0_158, %c0_159] : memref<24x32x8xbf16, #tpu.memory_space<vmem>>, vector<1x32x8xbf16>
    %274 = vector.shape_cast %273 : vector<1x32x8xbf16> to vector<32x8xbf16>
    %cst_160 = arith.constant dense<0.000000e+00> : vector<16x8xf32>
    %275 = tpu.matmul %261, %274, %cst_160 {dimension_numbers = #tpu.dot_dimension_numbers<[1], [0], [0], [1], [0, 0, 1, 1], [], []>} : vector<16x32xbf16>, vector<32x8xbf16>, vector<16x8xf32> -> vector<16x8xf32>
    %c16_161 = arith.constant 16 : index
    %c0_162 = arith.constant 0 : index
    %c0_163 = arith.constant 0 : index
    %276 = vector.load %arg5[%c16_161, %c0_162, %c0_163] : memref<24x1x8xf32, #tpu.memory_space<vmem>>, vector<1x1x8xf32>
    %277 = vector.shape_cast %276 : vector<1x1x8xf32> to vector<1x8xf32>
    %278 = vector.broadcast %277 : vector<1x8xf32> to vector<16x8xf32>
    %279 = arith.addf %275, %278 : vector<16x8xf32>
    %280 = vector.shape_cast %279 : vector<16x8xf32> to vector<2x8x8xf32>
    %c20 = arith.constant 20 : index
    %c0_164 = arith.constant 0 : index
    %c0_165 = arith.constant 0 : index
    %281 = vector.load %arg4[%c20, %c0_164, %c0_165] : memref<24x32x8xbf16, #tpu.memory_space<vmem>>, vector<1x32x8xbf16>
    %282 = vector.shape_cast %281 : vector<1x32x8xbf16> to vector<32x8xbf16>
    %cst_166 = arith.constant dense<0.000000e+00> : vector<16x8xf32>
    %283 = tpu.matmul %261, %282, %cst_166 {dimension_numbers = #tpu.dot_dimension_numbers<[1], [0], [0], [1], [0, 0, 1, 1], [], []>} : vector<16x32xbf16>, vector<32x8xbf16>, vector<16x8xf32> -> vector<16x8xf32>
    %c20_167 = arith.constant 20 : index
    %c0_168 = arith.constant 0 : index
    %c0_169 = arith.constant 0 : index
    %284 = vector.load %arg5[%c20_167, %c0_168, %c0_169] : memref<24x1x8xf32, #tpu.memory_space<vmem>>, vector<1x1x8xf32>
    %285 = vector.shape_cast %284 : vector<1x1x8xf32> to vector<1x8xf32>
    %286 = vector.broadcast %285 : vector<1x8xf32> to vector<16x8xf32>
    %287 = arith.addf %283, %286 : vector<16x8xf32>
    %288 = vector.shape_cast %287 : vector<16x8xf32> to vector<2x8x8xf32>
    "tpu.trace_start"() <{level = 10 : i32, message = "bqd,bkd->bqk"}> : () -> ()
    %cst_170 = arith.constant dense<0.000000e+00> : vector<2x8x8xf32>
    %289 = tpu.matmul %272, %280, %cst_170 {dimension_numbers = #tpu.dot_dimension_numbers<[2], [2], [1], [1], [0, 0, 0, 1, 1, 1], [0], [0]>} : vector<2x8x8xf32>, vector<2x8x8xf32>, vector<2x8x8xf32> -> vector<2x8x8xf32>
    "tpu.trace_stop"() : () -> ()
    %cst_171 = arith.constant dense<0xFF800000> : vector<2x8xf32>
    %290 = vector.multi_reduction <maximumf>, %289, %cst_171 [2] : vector<2x8x8xf32> to vector<2x8xf32>
    %291 = vector.shape_cast %290 : vector<2x8xf32> to vector<2x8x1xf32>
    %292 = vector.broadcast %291 : vector<2x8x1xf32> to vector<2x8x8xf32>
    %293 = arith.subf %289, %292 : vector<2x8x8xf32>
    %294 = math.exp %293 : vector<2x8x8xf32>
    %cst_172 = arith.constant dense<0.000000e+00> : vector<2x8xf32>
    %295 = vector.multi_reduction <add>, %294, %cst_172 [2] : vector<2x8x8xf32> to vector<2x8xf32>
    %296 = vector.shape_cast %295 : vector<2x8xf32> to vector<2x8x1xf32>
    %297 = tpu.reciprocal %296 {approx = true} : vector<2x8x1xf32> -> vector<2x8x1xf32>
    %298 = vector.broadcast %297 : vector<2x8x1xf32> to vector<2x8x8xf32>
    %299 = arith.mulf %294, %298 : vector<2x8x8xf32>
    "tpu.trace_start"() <{level = 10 : i32, message = "bqk,bkd->bqd"}> : () -> ()
    %cst_173 = arith.constant dense<0.000000e+00> : vector<2x8x8xf32>
    %300 = tpu.matmul %299, %288, %cst_173 {dimension_numbers = #tpu.dot_dimension_numbers<[2], [1], [1], [2], [0, 0, 0, 1, 1, 2], [0], [0]>} : vector<2x8x8xf32>, vector<2x8x8xf32>, vector<2x8x8xf32> -> vector<2x8x8xf32>
    "tpu.trace_stop"() : () -> ()
    %301 = vector.shape_cast %300 : vector<2x8x8xf32> to vector<16x8xf32>
    %302 = arith.truncf %301 : vector<16x8xf32> to vector<16x8xbf16>
    %c4_174 = arith.constant 4 : index
    %c0_175 = arith.constant 0 : index
    %c0_176 = arith.constant 0 : index
    %303 = vector.load %arg6[%c4_174, %c0_175, %c0_176] : memref<8x8x32xbf16, #tpu.memory_space<vmem>>, vector<1x8x32xbf16>
    %304 = vector.shape_cast %303 : vector<1x8x32xbf16> to vector<8x32xbf16>
    %cst_177 = arith.constant dense<0.000000e+00> : vector<16x32xf32>
    %305 = tpu.matmul %302, %304, %cst_177 {dimension_numbers = #tpu.dot_dimension_numbers<[1], [0], [0], [1], [0, 0, 1, 1], [], []>} : vector<16x8xbf16>, vector<8x32xbf16>, vector<16x32xf32> -> vector<16x32xf32>
    %306 = arith.addf %262, %305 : vector<16x32xf32>
    %c13_178 = arith.constant 13 : index
    %c0_179 = arith.constant 0 : index
    %c0_180 = arith.constant 0 : index
    %307 = vector.load %arg4[%c13_178, %c0_179, %c0_180] : memref<24x32x8xbf16, #tpu.memory_space<vmem>>, vector<1x32x8xbf16>
    %308 = vector.shape_cast %307 : vector<1x32x8xbf16> to vector<32x8xbf16>
    %cst_181 = arith.constant dense<0.000000e+00> : vector<16x8xf32>
    %309 = tpu.matmul %261, %308, %cst_181 {dimension_numbers = #tpu.dot_dimension_numbers<[1], [0], [0], [1], [0, 0, 1, 1], [], []>} : vector<16x32xbf16>, vector<32x8xbf16>, vector<16x8xf32> -> vector<16x8xf32>
    %c13_182 = arith.constant 13 : index
    %c0_183 = arith.constant 0 : index
    %c0_184 = arith.constant 0 : index
    %310 = vector.load %arg5[%c13_182, %c0_183, %c0_184] : memref<24x1x8xf32, #tpu.memory_space<vmem>>, vector<1x1x8xf32>
    %311 = vector.shape_cast %310 : vector<1x1x8xf32> to vector<1x8xf32>
    %312 = vector.broadcast %311 : vector<1x8xf32> to vector<16x8xf32>
    %313 = arith.addf %309, %312 : vector<16x8xf32>
    %cst_185 = arith.constant 0.353553385 : f32
    %314 = vector.broadcast %cst_185 : f32 to vector<16x8xf32>
    %315 = arith.mulf %313, %314 : vector<16x8xf32>
    %316 = vector.shape_cast %315 : vector<16x8xf32> to vector<2x8x8xf32>
    %c17 = arith.constant 17 : index
    %c0_186 = arith.constant 0 : index
    %c0_187 = arith.constant 0 : index
    %317 = vector.load %arg4[%c17, %c0_186, %c0_187] : memref<24x32x8xbf16, #tpu.memory_space<vmem>>, vector<1x32x8xbf16>
    %318 = vector.shape_cast %317 : vector<1x32x8xbf16> to vector<32x8xbf16>
    %cst_188 = arith.constant dense<0.000000e+00> : vector<16x8xf32>
    %319 = tpu.matmul %261, %318, %cst_188 {dimension_numbers = #tpu.dot_dimension_numbers<[1], [0], [0], [1], [0, 0, 1, 1], [], []>} : vector<16x32xbf16>, vector<32x8xbf16>, vector<16x8xf32> -> vector<16x8xf32>
    %c17_189 = arith.constant 17 : index
    %c0_190 = arith.constant 0 : index
    %c0_191 = arith.constant 0 : index
    %320 = vector.load %arg5[%c17_189, %c0_190, %c0_191] : memref<24x1x8xf32, #tpu.memory_space<vmem>>, vector<1x1x8xf32>
    %321 = vector.shape_cast %320 : vector<1x1x8xf32> to vector<1x8xf32>
    %322 = vector.broadcast %321 : vector<1x8xf32> to vector<16x8xf32>
    %323 = arith.addf %319, %322 : vector<16x8xf32>
    %324 = vector.shape_cast %323 : vector<16x8xf32> to vector<2x8x8xf32>
    %c21 = arith.constant 21 : index
    %c0_192 = arith.constant 0 : index
    %c0_193 = arith.constant 0 : index
    %325 = vector.load %arg4[%c21, %c0_192, %c0_193] : memref<24x32x8xbf16, #tpu.memory_space<vmem>>, vector<1x32x8xbf16>
    %326 = vector.shape_cast %325 : vector<1x32x8xbf16> to vector<32x8xbf16>
    %cst_194 = arith.constant dense<0.000000e+00> : vector<16x8xf32>
    %327 = tpu.matmul %261, %326, %cst_194 {dimension_numbers = #tpu.dot_dimension_numbers<[1], [0], [0], [1], [0, 0, 1, 1], [], []>} : vector<16x32xbf16>, vector<32x8xbf16>, vector<16x8xf32> -> vector<16x8xf32>
    %c21_195 = arith.constant 21 : index
    %c0_196 = arith.constant 0 : index
    %c0_197 = arith.constant 0 : index
    %328 = vector.load %arg5[%c21_195, %c0_196, %c0_197] : memref<24x1x8xf32, #tpu.memory_space<vmem>>, vector<1x1x8xf32>
    %329 = vector.shape_cast %328 : vector<1x1x8xf32> to vector<1x8xf32>
    %330 = vector.broadcast %329 : vector<1x8xf32> to vector<16x8xf32>
    %331 = arith.addf %327, %330 : vector<16x8xf32>
    %332 = vector.shape_cast %331 : vector<16x8xf32> to vector<2x8x8xf32>
    "tpu.trace_start"() <{level = 10 : i32, message = "bqd,bkd->bqk"}> : () -> ()
    %cst_198 = arith.constant dense<0.000000e+00> : vector<2x8x8xf32>
    %333 = tpu.matmul %316, %324, %cst_198 {dimension_numbers = #tpu.dot_dimension_numbers<[2], [2], [1], [1], [0, 0, 0, 1, 1, 1], [0], [0]>} : vector<2x8x8xf32>, vector<2x8x8xf32>, vector<2x8x8xf32> -> vector<2x8x8xf32>
    "tpu.trace_stop"() : () -> ()
    %cst_199 = arith.constant dense<0xFF800000> : vector<2x8xf32>
    %334 = vector.multi_reduction <maximumf>, %333, %cst_199 [2] : vector<2x8x8xf32> to vector<2x8xf32>
    %335 = vector.shape_cast %334 : vector<2x8xf32> to vector<2x8x1xf32>
    %336 = vector.broadcast %335 : vector<2x8x1xf32> to vector<2x8x8xf32>
    %337 = arith.subf %333, %336 : vector<2x8x8xf32>
    %338 = math.exp %337 : vector<2x8x8xf32>
    %cst_200 = arith.constant dense<0.000000e+00> : vector<2x8xf32>
    %339 = vector.multi_reduction <add>, %338, %cst_200 [2] : vector<2x8x8xf32> to vector<2x8xf32>
    %340 = vector.shape_cast %339 : vector<2x8xf32> to vector<2x8x1xf32>
    %341 = tpu.reciprocal %340 {approx = true} : vector<2x8x1xf32> -> vector<2x8x1xf32>
    %342 = vector.broadcast %341 : vector<2x8x1xf32> to vector<2x8x8xf32>
    %343 = arith.mulf %338, %342 : vector<2x8x8xf32>
    "tpu.trace_start"() <{level = 10 : i32, message = "bqk,bkd->bqd"}> : () -> ()
    %cst_201 = arith.constant dense<0.000000e+00> : vector<2x8x8xf32>
    %344 = tpu.matmul %343, %332, %cst_201 {dimension_numbers = #tpu.dot_dimension_numbers<[2], [1], [1], [2], [0, 0, 0, 1, 1, 2], [0], [0]>} : vector<2x8x8xf32>, vector<2x8x8xf32>, vector<2x8x8xf32> -> vector<2x8x8xf32>
    "tpu.trace_stop"() : () -> ()
    %345 = vector.shape_cast %344 : vector<2x8x8xf32> to vector<16x8xf32>
    %346 = arith.truncf %345 : vector<16x8xf32> to vector<16x8xbf16>
    %c5_202 = arith.constant 5 : index
    %c0_203 = arith.constant 0 : index
    %c0_204 = arith.constant 0 : index
    %347 = vector.load %arg6[%c5_202, %c0_203, %c0_204] : memref<8x8x32xbf16, #tpu.memory_space<vmem>>, vector<1x8x32xbf16>
    %348 = vector.shape_cast %347 : vector<1x8x32xbf16> to vector<8x32xbf16>
    %cst_205 = arith.constant dense<0.000000e+00> : vector<16x32xf32>
    %349 = tpu.matmul %346, %348, %cst_205 {dimension_numbers = #tpu.dot_dimension_numbers<[1], [0], [0], [1], [0, 0, 1, 1], [], []>} : vector<16x8xbf16>, vector<8x32xbf16>, vector<16x32xf32> -> vector<16x32xf32>
    %350 = arith.addf %306, %349 : vector<16x32xf32>
    %c14_206 = arith.constant 14 : index
    %c0_207 = arith.constant 0 : index
    %c0_208 = arith.constant 0 : index
    %351 = vector.load %arg4[%c14_206, %c0_207, %c0_208] : memref<24x32x8xbf16, #tpu.memory_space<vmem>>, vector<1x32x8xbf16>
    %352 = vector.shape_cast %351 : vector<1x32x8xbf16> to vector<32x8xbf16>
    %cst_209 = arith.constant dense<0.000000e+00> : vector<16x8xf32>
    %353 = tpu.matmul %261, %352, %cst_209 {dimension_numbers = #tpu.dot_dimension_numbers<[1], [0], [0], [1], [0, 0, 1, 1], [], []>} : vector<16x32xbf16>, vector<32x8xbf16>, vector<16x8xf32> -> vector<16x8xf32>
    %c14_210 = arith.constant 14 : index
    %c0_211 = arith.constant 0 : index
    %c0_212 = arith.constant 0 : index
    %354 = vector.load %arg5[%c14_210, %c0_211, %c0_212] : memref<24x1x8xf32, #tpu.memory_space<vmem>>, vector<1x1x8xf32>
    %355 = vector.shape_cast %354 : vector<1x1x8xf32> to vector<1x8xf32>
    %356 = vector.broadcast %355 : vector<1x8xf32> to vector<16x8xf32>
    %357 = arith.addf %353, %356 : vector<16x8xf32>
    %cst_213 = arith.constant 0.353553385 : f32
    %358 = vector.broadcast %cst_213 : f32 to vector<16x8xf32>
    %359 = arith.mulf %357, %358 : vector<16x8xf32>
    %360 = vector.shape_cast %359 : vector<16x8xf32> to vector<2x8x8xf32>
    %c18 = arith.constant 18 : index
    %c0_214 = arith.constant 0 : index
    %c0_215 = arith.constant 0 : index
    %361 = vector.load %arg4[%c18, %c0_214, %c0_215] : memref<24x32x8xbf16, #tpu.memory_space<vmem>>, vector<1x32x8xbf16>
    %362 = vector.shape_cast %361 : vector<1x32x8xbf16> to vector<32x8xbf16>
    %cst_216 = arith.constant dense<0.000000e+00> : vector<16x8xf32>
    %363 = tpu.matmul %261, %362, %cst_216 {dimension_numbers = #tpu.dot_dimension_numbers<[1], [0], [0], [1], [0, 0, 1, 1], [], []>} : vector<16x32xbf16>, vector<32x8xbf16>, vector<16x8xf32> -> vector<16x8xf32>
    %c18_217 = arith.constant 18 : index
    %c0_218 = arith.constant 0 : index
    %c0_219 = arith.constant 0 : index
    %364 = vector.load %arg5[%c18_217, %c0_218, %c0_219] : memref<24x1x8xf32, #tpu.memory_space<vmem>>, vector<1x1x8xf32>
    %365 = vector.shape_cast %364 : vector<1x1x8xf32> to vector<1x8xf32>
    %366 = vector.broadcast %365 : vector<1x8xf32> to vector<16x8xf32>
    %367 = arith.addf %363, %366 : vector<16x8xf32>
    %368 = vector.shape_cast %367 : vector<16x8xf32> to vector<2x8x8xf32>
    %c22 = arith.constant 22 : index
    %c0_220 = arith.constant 0 : index
    %c0_221 = arith.constant 0 : index
    %369 = vector.load %arg4[%c22, %c0_220, %c0_221] : memref<24x32x8xbf16, #tpu.memory_space<vmem>>, vector<1x32x8xbf16>
    %370 = vector.shape_cast %369 : vector<1x32x8xbf16> to vector<32x8xbf16>
    %cst_222 = arith.constant dense<0.000000e+00> : vector<16x8xf32>
    %371 = tpu.matmul %261, %370, %cst_222 {dimension_numbers = #tpu.dot_dimension_numbers<[1], [0], [0], [1], [0, 0, 1, 1], [], []>} : vector<16x32xbf16>, vector<32x8xbf16>, vector<16x8xf32> -> vector<16x8xf32>
    %c22_223 = arith.constant 22 : index
    %c0_224 = arith.constant 0 : index
    %c0_225 = arith.constant 0 : index
    %372 = vector.load %arg5[%c22_223, %c0_224, %c0_225] : memref<24x1x8xf32, #tpu.memory_space<vmem>>, vector<1x1x8xf32>
    %373 = vector.shape_cast %372 : vector<1x1x8xf32> to vector<1x8xf32>
    %374 = vector.broadcast %373 : vector<1x8xf32> to vector<16x8xf32>
    %375 = arith.addf %371, %374 : vector<16x8xf32>
    %376 = vector.shape_cast %375 : vector<16x8xf32> to vector<2x8x8xf32>
    "tpu.trace_start"() <{level = 10 : i32, message = "bqd,bkd->bqk"}> : () -> ()
    %cst_226 = arith.constant dense<0.000000e+00> : vector<2x8x8xf32>
    %377 = tpu.matmul %360, %368, %cst_226 {dimension_numbers = #tpu.dot_dimension_numbers<[2], [2], [1], [1], [0, 0, 0, 1, 1, 1], [0], [0]>} : vector<2x8x8xf32>, vector<2x8x8xf32>, vector<2x8x8xf32> -> vector<2x8x8xf32>
    "tpu.trace_stop"() : () -> ()
    %cst_227 = arith.constant dense<0xFF800000> : vector<2x8xf32>
    %378 = vector.multi_reduction <maximumf>, %377, %cst_227 [2] : vector<2x8x8xf32> to vector<2x8xf32>
    %379 = vector.shape_cast %378 : vector<2x8xf32> to vector<2x8x1xf32>
    %380 = vector.broadcast %379 : vector<2x8x1xf32> to vector<2x8x8xf32>
    %381 = arith.subf %377, %380 : vector<2x8x8xf32>
    %382 = math.exp %381 : vector<2x8x8xf32>
    %cst_228 = arith.constant dense<0.000000e+00> : vector<2x8xf32>
    %383 = vector.multi_reduction <add>, %382, %cst_228 [2] : vector<2x8x8xf32> to vector<2x8xf32>
    %384 = vector.shape_cast %383 : vector<2x8xf32> to vector<2x8x1xf32>
    %385 = tpu.reciprocal %384 {approx = true} : vector<2x8x1xf32> -> vector<2x8x1xf32>
    %386 = vector.broadcast %385 : vector<2x8x1xf32> to vector<2x8x8xf32>
    %387 = arith.mulf %382, %386 : vector<2x8x8xf32>
    "tpu.trace_start"() <{level = 10 : i32, message = "bqk,bkd->bqd"}> : () -> ()
    %cst_229 = arith.constant dense<0.000000e+00> : vector<2x8x8xf32>
    %388 = tpu.matmul %387, %376, %cst_229 {dimension_numbers = #tpu.dot_dimension_numbers<[2], [1], [1], [2], [0, 0, 0, 1, 1, 2], [0], [0]>} : vector<2x8x8xf32>, vector<2x8x8xf32>, vector<2x8x8xf32> -> vector<2x8x8xf32>
    "tpu.trace_stop"() : () -> ()
    %389 = vector.shape_cast %388 : vector<2x8x8xf32> to vector<16x8xf32>
    %390 = arith.truncf %389 : vector<16x8xf32> to vector<16x8xbf16>
    %c6_230 = arith.constant 6 : index
    %c0_231 = arith.constant 0 : index
    %c0_232 = arith.constant 0 : index
    %391 = vector.load %arg6[%c6_230, %c0_231, %c0_232] : memref<8x8x32xbf16, #tpu.memory_space<vmem>>, vector<1x8x32xbf16>
    %392 = vector.shape_cast %391 : vector<1x8x32xbf16> to vector<8x32xbf16>
    %cst_233 = arith.constant dense<0.000000e+00> : vector<16x32xf32>
    %393 = tpu.matmul %390, %392, %cst_233 {dimension_numbers = #tpu.dot_dimension_numbers<[1], [0], [0], [1], [0, 0, 1, 1], [], []>} : vector<16x8xbf16>, vector<8x32xbf16>, vector<16x32xf32> -> vector<16x32xf32>
    %394 = arith.addf %350, %393 : vector<16x32xf32>
    %c15 = arith.constant 15 : index
    %c0_234 = arith.constant 0 : index
    %c0_235 = arith.constant 0 : index
    %395 = vector.load %arg4[%c15, %c0_234, %c0_235] : memref<24x32x8xbf16, #tpu.memory_space<vmem>>, vector<1x32x8xbf16>
    %396 = vector.shape_cast %395 : vector<1x32x8xbf16> to vector<32x8xbf16>
    %cst_236 = arith.constant dense<0.000000e+00> : vector<16x8xf32>
    %397 = tpu.matmul %261, %396, %cst_236 {dimension_numbers = #tpu.dot_dimension_numbers<[1], [0], [0], [1], [0, 0, 1, 1], [], []>} : vector<16x32xbf16>, vector<32x8xbf16>, vector<16x8xf32> -> vector<16x8xf32>
    %c15_237 = arith.constant 15 : index
    %c0_238 = arith.constant 0 : index
    %c0_239 = arith.constant 0 : index
    %398 = vector.load %arg5[%c15_237, %c0_238, %c0_239] : memref<24x1x8xf32, #tpu.memory_space<vmem>>, vector<1x1x8xf32>
    %399 = vector.shape_cast %398 : vector<1x1x8xf32> to vector<1x8xf32>
    %400 = vector.broadcast %399 : vector<1x8xf32> to vector<16x8xf32>
    %401 = arith.addf %397, %400 : vector<16x8xf32>
    %cst_240 = arith.constant 0.353553385 : f32
    %402 = vector.broadcast %cst_240 : f32 to vector<16x8xf32>
    %403 = arith.mulf %401, %402 : vector<16x8xf32>
    %404 = vector.shape_cast %403 : vector<16x8xf32> to vector<2x8x8xf32>
    %c19 = arith.constant 19 : index
    %c0_241 = arith.constant 0 : index
    %c0_242 = arith.constant 0 : index
    %405 = vector.load %arg4[%c19, %c0_241, %c0_242] : memref<24x32x8xbf16, #tpu.memory_space<vmem>>, vector<1x32x8xbf16>
    %406 = vector.shape_cast %405 : vector<1x32x8xbf16> to vector<32x8xbf16>
    %cst_243 = arith.constant dense<0.000000e+00> : vector<16x8xf32>
    %407 = tpu.matmul %261, %406, %cst_243 {dimension_numbers = #tpu.dot_dimension_numbers<[1], [0], [0], [1], [0, 0, 1, 1], [], []>} : vector<16x32xbf16>, vector<32x8xbf16>, vector<16x8xf32> -> vector<16x8xf32>
    %c19_244 = arith.constant 19 : index
    %c0_245 = arith.constant 0 : index
    %c0_246 = arith.constant 0 : index
    %408 = vector.load %arg5[%c19_244, %c0_245, %c0_246] : memref<24x1x8xf32, #tpu.memory_space<vmem>>, vector<1x1x8xf32>
    %409 = vector.shape_cast %408 : vector<1x1x8xf32> to vector<1x8xf32>
    %410 = vector.broadcast %409 : vector<1x8xf32> to vector<16x8xf32>
    %411 = arith.addf %407, %410 : vector<16x8xf32>
    %412 = vector.shape_cast %411 : vector<16x8xf32> to vector<2x8x8xf32>
    %c23 = arith.constant 23 : index
    %c0_247 = arith.constant 0 : index
    %c0_248 = arith.constant 0 : index
    %413 = vector.load %arg4[%c23, %c0_247, %c0_248] : memref<24x32x8xbf16, #tpu.memory_space<vmem>>, vector<1x32x8xbf16>
    %414 = vector.shape_cast %413 : vector<1x32x8xbf16> to vector<32x8xbf16>
    %cst_249 = arith.constant dense<0.000000e+00> : vector<16x8xf32>
    %415 = tpu.matmul %261, %414, %cst_249 {dimension_numbers = #tpu.dot_dimension_numbers<[1], [0], [0], [1], [0, 0, 1, 1], [], []>} : vector<16x32xbf16>, vector<32x8xbf16>, vector<16x8xf32> -> vector<16x8xf32>
    %c23_250 = arith.constant 23 : index
    %c0_251 = arith.constant 0 : index
    %c0_252 = arith.constant 0 : index
    %416 = vector.load %arg5[%c23_250, %c0_251, %c0_252] : memref<24x1x8xf32, #tpu.memory_space<vmem>>, vector<1x1x8xf32>
    %417 = vector.shape_cast %416 : vector<1x1x8xf32> to vector<1x8xf32>
    %418 = vector.broadcast %417 : vector<1x8xf32> to vector<16x8xf32>
    %419 = arith.addf %415, %418 : vector<16x8xf32>
    %420 = vector.shape_cast %419 : vector<16x8xf32> to vector<2x8x8xf32>
    "tpu.trace_start"() <{level = 10 : i32, message = "bqd,bkd->bqk"}> : () -> ()
    %cst_253 = arith.constant dense<0.000000e+00> : vector<2x8x8xf32>
    %421 = tpu.matmul %404, %412, %cst_253 {dimension_numbers = #tpu.dot_dimension_numbers<[2], [2], [1], [1], [0, 0, 0, 1, 1, 1], [0], [0]>} : vector<2x8x8xf32>, vector<2x8x8xf32>, vector<2x8x8xf32> -> vector<2x8x8xf32>
    "tpu.trace_stop"() : () -> ()
    %cst_254 = arith.constant dense<0xFF800000> : vector<2x8xf32>
    %422 = vector.multi_reduction <maximumf>, %421, %cst_254 [2] : vector<2x8x8xf32> to vector<2x8xf32>
    %423 = vector.shape_cast %422 : vector<2x8xf32> to vector<2x8x1xf32>
    %424 = vector.broadcast %423 : vector<2x8x1xf32> to vector<2x8x8xf32>
    %425 = arith.subf %421, %424 : vector<2x8x8xf32>
    %426 = math.exp %425 : vector<2x8x8xf32>
    %cst_255 = arith.constant dense<0.000000e+00> : vector<2x8xf32>
    %427 = vector.multi_reduction <add>, %426, %cst_255 [2] : vector<2x8x8xf32> to vector<2x8xf32>
    %428 = vector.shape_cast %427 : vector<2x8xf32> to vector<2x8x1xf32>
    %429 = tpu.reciprocal %428 {approx = true} : vector<2x8x1xf32> -> vector<2x8x1xf32>
    %430 = vector.broadcast %429 : vector<2x8x1xf32> to vector<2x8x8xf32>
    %431 = arith.mulf %426, %430 : vector<2x8x8xf32>
    "tpu.trace_start"() <{level = 10 : i32, message = "bqk,bkd->bqd"}> : () -> ()
    %cst_256 = arith.constant dense<0.000000e+00> : vector<2x8x8xf32>
    %432 = tpu.matmul %431, %420, %cst_256 {dimension_numbers = #tpu.dot_dimension_numbers<[2], [1], [1], [2], [0, 0, 0, 1, 1, 2], [0], [0]>} : vector<2x8x8xf32>, vector<2x8x8xf32>, vector<2x8x8xf32> -> vector<2x8x8xf32>
    "tpu.trace_stop"() : () -> ()
    %433 = vector.shape_cast %432 : vector<2x8x8xf32> to vector<16x8xf32>
    %434 = arith.truncf %433 : vector<16x8xf32> to vector<16x8xbf16>
    %c7_257 = arith.constant 7 : index
    %c0_258 = arith.constant 0 : index
    %c0_259 = arith.constant 0 : index
    %435 = vector.load %arg6[%c7_257, %c0_258, %c0_259] : memref<8x8x32xbf16, #tpu.memory_space<vmem>>, vector<1x8x32xbf16>
    %436 = vector.shape_cast %435 : vector<1x8x32xbf16> to vector<8x32xbf16>
    %cst_260 = arith.constant dense<0.000000e+00> : vector<16x32xf32>
    %437 = tpu.matmul %434, %436, %cst_260 {dimension_numbers = #tpu.dot_dimension_numbers<[1], [0], [0], [1], [0, 0, 1, 1], [], []>} : vector<16x8xbf16>, vector<8x32xbf16>, vector<16x32xf32> -> vector<16x32xf32>
    %438 = arith.addf %394, %437 : vector<16x32xf32>
    %c15_261 = arith.constant 15 : index
    %c0_262 = arith.constant 0 : index
    %439 = vector.load %arg3[%c15_261, %c0_262] : memref<21x32xf32, #tpu.memory_space<vmem>>, vector<1x32xf32>
    %440 = vector.broadcast %439 : vector<1x32xf32> to vector<16x32xf32>
    %441 = arith.addf %438, %440 : vector<16x32xf32>
    %442 = arith.addf %260, %441 : vector<16x32xf32>
    %c16_263 = arith.constant 16 : index
    %c0_264 = arith.constant 0 : index
    %443 = vector.load %arg3[%c16_263, %c0_264] : memref<21x32xf32, #tpu.memory_space<vmem>>, vector<1x32xf32>
    %c17_265 = arith.constant 17 : index
    %c0_266 = arith.constant 0 : index
    %444 = vector.load %arg3[%c17_265, %c0_266] : memref<21x32xf32, #tpu.memory_space<vmem>>, vector<1x32xf32>
    %cst_267 = arith.constant dense<0.000000e+00> : vector<16xf32>
    %445 = vector.multi_reduction <add>, %442, %cst_267 [1] : vector<16x32xf32> to vector<16xf32>
    %446 = vector.shape_cast %445 : vector<16xf32> to vector<16x1xf32>
    %cst_268 = arith.constant 3.200000e+01 : f32
    %447 = vector.broadcast %cst_268 : f32 to vector<16x1xf32>
    %448 = arith.divf %446, %447 : vector<16x1xf32>
    %449 = vector.broadcast %448 : vector<16x1xf32> to vector<16x32xf32>
    %450 = arith.subf %442, %449 : vector<16x32xf32>
    %451 = arith.mulf %450, %450 : vector<16x32xf32>
    %cst_269 = arith.constant dense<0.000000e+00> : vector<16xf32>
    %452 = vector.multi_reduction <add>, %451, %cst_269 [1] : vector<16x32xf32> to vector<16xf32>
    %453 = vector.shape_cast %452 : vector<16xf32> to vector<16x1xf32>
    %cst_270 = arith.constant 3.200000e+01 : f32
    %454 = vector.broadcast %cst_270 : f32 to vector<16x1xf32>
    %455 = arith.divf %453, %454 : vector<16x1xf32>
    %456 = vector.broadcast %448 : vector<16x1xf32> to vector<16x32xf32>
    %457 = arith.subf %442, %456 : vector<16x32xf32>
    %cst_271 = arith.constant 9.99999974E-6 : f32
    %458 = vector.broadcast %cst_271 : f32 to vector<16x1xf32>
    %459 = arith.addf %455, %458 : vector<16x1xf32>
    %460 = math.rsqrt %459 : vector<16x1xf32>
    %461 = vector.broadcast %460 : vector<16x1xf32> to vector<16x32xf32>
    %462 = arith.mulf %457, %461 : vector<16x32xf32>
    %463 = vector.broadcast %443 : vector<1x32xf32> to vector<16x32xf32>
    %464 = arith.mulf %462, %463 : vector<16x32xf32>
    %465 = vector.broadcast %444 : vector<1x32xf32> to vector<16x32xf32>
    %466 = arith.addf %464, %465 : vector<16x32xf32>
    %467 = arith.truncf %466 : vector<16x32xf32> to vector<16x32xbf16>
    %c1_272 = arith.constant 1 : index
    %c0_273 = arith.constant 0 : index
    %c0_274 = arith.constant 0 : index
    %468 = vector.load %arg7[%c1_272, %c0_273, %c0_274] : memref<2x32x2048xbf16, #tpu.memory_space<vmem>>, vector<1x32x2048xbf16>
    %469 = vector.shape_cast %468 : vector<1x32x2048xbf16> to vector<32x2048xbf16>
    %cst_275 = arith.constant dense<0.000000e+00> : vector<16x2048xf32>
    %470 = tpu.matmul %467, %469, %cst_275 {dimension_numbers = #tpu.dot_dimension_numbers<[1], [0], [0], [1], [0, 0, 1, 1], [], []>} : vector<16x32xbf16>, vector<32x2048xbf16>, vector<16x2048xf32> -> vector<16x2048xf32>
    %c1_276 = arith.constant 1 : index
    %c0_277 = arith.constant 0 : index
    %c0_278 = arith.constant 0 : index
    %471 = vector.load %arg8[%c1_276, %c0_277, %c0_278] : memref<2x1x2048xf32, #tpu.memory_space<vmem>>, vector<1x1x2048xf32>
    %472 = vector.shape_cast %471 : vector<1x1x2048xf32> to vector<1x2048xf32>
    %473 = vector.broadcast %472 : vector<1x2048xf32> to vector<16x2048xf32>
    %474 = arith.addf %470, %473 : vector<16x2048xf32>
    %cst_279 = arith.constant 0.000000e+00 : f32
    %475 = vector.broadcast %cst_279 : f32 to vector<16x2048xf32>
    %476 = arith.maximumf %474, %475 : vector<16x2048xf32>
    %477 = arith.truncf %476 : vector<16x2048xf32> to vector<16x2048xbf16>
    %c1_280 = arith.constant 1 : index
    %c0_281 = arith.constant 0 : index
    %c0_282 = arith.constant 0 : index
    %478 = vector.load %arg9[%c1_280, %c0_281, %c0_282] : memref<2x2048x32xbf16, #tpu.memory_space<vmem>>, vector<1x2048x32xbf16>
    %479 = vector.shape_cast %478 : vector<1x2048x32xbf16> to vector<2048x32xbf16>
    %cst_283 = arith.constant dense<0.000000e+00> : vector<16x32xf32>
    %480 = tpu.matmul %477, %479, %cst_283 {dimension_numbers = #tpu.dot_dimension_numbers<[1], [0], [0], [1], [0, 0, 1, 1], [], []>} : vector<16x2048xbf16>, vector<2048x32xbf16>, vector<16x32xf32> -> vector<16x32xf32>
    %c18_284 = arith.constant 18 : index
    %c0_285 = arith.constant 0 : index
    %481 = vector.load %arg3[%c18_284, %c0_285] : memref<21x32xf32, #tpu.memory_space<vmem>>, vector<1x32xf32>
    %482 = vector.broadcast %481 : vector<1x32xf32> to vector<16x32xf32>
    %483 = arith.addf %480, %482 : vector<16x32xf32>
    %484 = arith.addf %466, %483 : vector<16x32xf32>
    %c19_286 = arith.constant 19 : index
    %c0_287 = arith.constant 0 : index
    %485 = vector.load %arg3[%c19_286, %c0_287] : memref<21x32xf32, #tpu.memory_space<vmem>>, vector<1x32xf32>
    %c20_288 = arith.constant 20 : index
    %c0_289 = arith.constant 0 : index
    %486 = vector.load %arg3[%c20_288, %c0_289] : memref<21x32xf32, #tpu.memory_space<vmem>>, vector<1x32xf32>
    %cst_290 = arith.constant dense<0.000000e+00> : vector<16xf32>
    %487 = vector.multi_reduction <add>, %484, %cst_290 [1] : vector<16x32xf32> to vector<16xf32>
    %488 = vector.shape_cast %487 : vector<16xf32> to vector<16x1xf32>
    %cst_291 = arith.constant 3.200000e+01 : f32
    %489 = vector.broadcast %cst_291 : f32 to vector<16x1xf32>
    %490 = arith.divf %488, %489 : vector<16x1xf32>
    %491 = vector.broadcast %490 : vector<16x1xf32> to vector<16x32xf32>
    %492 = arith.subf %484, %491 : vector<16x32xf32>
    %493 = arith.mulf %492, %492 : vector<16x32xf32>
    %cst_292 = arith.constant dense<0.000000e+00> : vector<16xf32>
    %494 = vector.multi_reduction <add>, %493, %cst_292 [1] : vector<16x32xf32> to vector<16xf32>
    %495 = vector.shape_cast %494 : vector<16xf32> to vector<16x1xf32>
    %cst_293 = arith.constant 3.200000e+01 : f32
    %496 = vector.broadcast %cst_293 : f32 to vector<16x1xf32>
    %497 = arith.divf %495, %496 : vector<16x1xf32>
    %498 = vector.broadcast %490 : vector<16x1xf32> to vector<16x32xf32>
    %499 = arith.subf %484, %498 : vector<16x32xf32>
    %cst_294 = arith.constant 9.99999974E-6 : f32
    %500 = vector.broadcast %cst_294 : f32 to vector<16x1xf32>
    %501 = arith.addf %497, %500 : vector<16x1xf32>
    %502 = math.rsqrt %501 : vector<16x1xf32>
    %503 = vector.broadcast %502 : vector<16x1xf32> to vector<16x32xf32>
    %504 = arith.mulf %499, %503 : vector<16x32xf32>
    %505 = vector.broadcast %485 : vector<1x32xf32> to vector<16x32xf32>
    %506 = arith.mulf %504, %505 : vector<16x32xf32>
    %507 = vector.broadcast %486 : vector<1x32xf32> to vector<16x32xf32>
    %508 = arith.addf %506, %507 : vector<16x32xf32>
    %509 = vector.shape_cast %508 : vector<16x32xf32> to vector<2x8x32xf32>
    %510 = vector.extract_strided_slice %509 {offsets = [0, 7, 0], sizes = [2, 1, 32], strides = [1, 1, 1]} : vector<2x8x32xf32> to vector<2x1x32xf32>
    %511 = vector.shape_cast %510 : vector<2x1x32xf32> to vector<2x32xf32>
    %c0_295 = arith.constant 0 : index
    %c0_296 = arith.constant 0 : index
    %512 = vector.load %arg10[%c0_295, %c0_296] : memref<32x128xf32, #tpu.memory_space<vmem>>, vector<32x128xf32>
    %cst_297 = arith.constant dense<0.000000e+00> : vector<2x128xf32>
    %513 = tpu.matmul %511, %512, %cst_297 {dimension_numbers = #tpu.dot_dimension_numbers<[1], [0], [0], [1], [0, 0, 1, 1], [], []>} : vector<2x32xf32>, vector<32x128xf32>, vector<2x128xf32> -> vector<2x128xf32>
    %c0_298 = arith.constant 0 : index
    %c0_299 = arith.constant 0 : index
    %514 = vector.load %arg11[%c0_298, %c0_299] : memref<1x128xf32, #tpu.memory_space<vmem>>, vector<1x128xf32>
    %515 = vector.broadcast %514 : vector<1x128xf32> to vector<2x128xf32>
    %516 = arith.addf %513, %515 : vector<2x128xf32>
    %c0_300 = arith.constant 0 : index
    %c0_301 = arith.constant 0 : index
    %c0_302 = arith.constant 0 : index
    %517 = vector.load %arg12[%c0_300, %c0_301, %c0_302] : memref<1x2x128xf32, #tpu.memory_space<vmem>>, vector<1x2x128xf32>
    %518 = vector.shape_cast %517 : vector<1x2x128xf32> to vector<2x128xf32>
    %519 = vector.shape_cast %516 : vector<2x128xf32> to vector<1x2x128xf32>
    tpu.vector_store %arg12[%c0_300, %c0_301, %c0_302], %519 {strides = array<i32>} : memref<1x2x128xf32, #tpu.memory_space<vmem>>, vector<1x2x128xf32>,
    return
  }
  func.func @transform_0(%arg0: i32) -> (i32, i32, i32) {
    %c0_i32 = arith.constant 0 : i32
    %c0_i32_0 = arith.constant 0 : i32
    %c0_i32_1 = arith.constant 0 : i32
    return %arg0, %c0_i32, %c0_i32_0 : i32, i32, i32
  }
  func.func @transform_1(%arg0: i32) -> (i32, i32) {
    %c0_i32 = arith.constant 0 : i32
    %c0_i32_0 = arith.constant 0 : i32
    %c0_i32_1 = arith.constant 0 : i32
    return %c0_i32, %c0_i32_0 : i32, i32
  }
  func.func @transform_2(%arg0: i32) -> (i32, i32) {
    %c0_i32 = arith.constant 0 : i32
    %c0_i32_0 = arith.constant 0 : i32
    %c0_i32_1 = arith.constant 0 : i32
    return %c0_i32, %c0_i32_0 : i32, i32
  }
  func.func @transform_3(%arg0: i32) -> (i32, i32, i32) {
    %c0_i32 = arith.constant 0 : i32
    %c0_i32_0 = arith.constant 0 : i32
    %c0_i32_1 = arith.constant 0 : i32
    %c0_i32_2 = arith.constant 0 : i32
    return %c0_i32, %c0_i32_0, %c0_i32_1 : i32, i32, i32
  }
  func.func @transform_4(%arg0: i32) -> (i32, i32, i32) {
    %c0_i32 = arith.constant 0 : i32
    %c0_i32_0 = arith.constant 0 : i32
    %c0_i32_1 = arith.constant 0 : i32
    %c0_i32_2 = arith.constant 0 : i32
    return %c0_i32, %c0_i32_0, %c0_i32_1 : i32, i32, i32
  }
  func.func @transform_5(%arg0: i32) -> (i32, i32, i32) {
    %c0_i32 = arith.constant 0 : i32
    %c0_i32_0 = arith.constant 0 : i32
    %c0_i32_1 = arith.constant 0 : i32
    %c0_i32_2 = arith.constant 0 : i32
    return %c0_i32, %c0_i32_0, %c0_i32_1 : i32, i32, i32
  }
  func.func @transform_6(%arg0: i32) -> (i32, i32, i32) {
    %c0_i32 = arith.constant 0 : i32
    %c0_i32_0 = arith.constant 0 : i32
    %c0_i32_1 = arith.constant 0 : i32
    %c0_i32_2 = arith.constant 0 : i32
    return %c0_i32, %c0_i32_0, %c0_i32_1 : i32, i32, i32
  }
  func.func @transform_7(%arg0: i32) -> (i32, i32, i32) {
    %c0_i32 = arith.constant 0 : i32
    %c0_i32_0 = arith.constant 0 : i32
    %c0_i32_1 = arith.constant 0 : i32
    %c0_i32_2 = arith.constant 0 : i32
    return %c0_i32, %c0_i32_0, %c0_i32_1 : i32, i32, i32
  }
  func.func @transform_8(%arg0: i32) -> (i32, i32, i32) {
    %c0_i32 = arith.constant 0 : i32
    %c0_i32_0 = arith.constant 0 : i32
    %c0_i32_1 = arith.constant 0 : i32
    %c0_i32_2 = arith.constant 0 : i32
    return %c0_i32, %c0_i32_0, %c0_i32_1 : i32, i32, i32
  }
  func.func @transform_9(%arg0: i32) -> (i32, i32) {
    %c0_i32 = arith.constant 0 : i32
    %c0_i32_0 = arith.constant 0 : i32
    %c0_i32_1 = arith.constant 0 : i32
    return %c0_i32, %c0_i32_0 : i32, i32
  }
  func.func @transform_10(%arg0: i32) -> (i32, i32) {
    %c0_i32 = arith.constant 0 : i32
    %c0_i32_0 = arith.constant 0 : i32
    %c0_i32_1 = arith.constant 0 : i32
    return %c0_i32, %c0_i32_0 : i32, i32
  }
  func.func @transform_11(%arg0: i32) -> (i32, i32, i32) {
    %c0_i32 = arith.constant 0 : i32
    %c0_i32_0 = arith.constant 0 : i32
    %c0_i32_1 = arith.constant 0 : i32
    return %arg0, %c0_i32, %c0_i32_0 : i32, i32, i32
  }
}

</mosaic_0001>

<bundles_post_ra>
// kernel: tpu_custom_call.1
= control target key start
LH: loop header
LB: loop body
LE: loop exit
PB: predicated region body
PF: predicated region fallthrough
CT: control target
= control target key end

     0   :  { %vm49_vm0 = vcmask 130048   ;;  %v11316_v6 = vmov 0.0   ;;  %vm11317_vm1 = vmmov 0   ;;  %vm158_vm2 = vcmask 261120   ;;  %s13359_s0 = inlined_call_operand.vmem [shape: f32[2,8,16], index: 0, kind: input, shape index: {}]   ;;  %s13360_s1 = inlined_call_operand.vmem [shape: f32[16,32], index: 1, kind: input, shape index: {}]   ;;  %s13361_s2 = inlined_call_operand.vmem [shape: f32[21,32], index: 2, kind: input, shape index: {}]   ;;  %s13362_s3 = inlined_call_operand.vmem [shape: bf16[24,32,8], index: 3, kind: input, shape index: {}]   ;;  %s13363_s4 = inlined_call_operand.vmem [shape: f32[24,1,8], index: 4, kind: input, shape index: {}]   ;;  %s13364_s5 = inlined_call_operand.vmem [shape: bf16[8,8,32], index: 5, kind: input, shape index: {}]   ;;  %s13365_s6 = inlined_call_operand.vmem [shape: bf16[2,32,2048], index: 6, kind: input, shape index: {}]   ;;  %s13366_s7 = inlined_call_operand.vmem [shape: f32[2,1,2048], index: 7, kind: input, shape index: {}]   ;;  %s13367_s8 = inlined_call_operand.vmem [shape: bf16[2,2048,32], index: 8, kind: input, shape index: {}]   ;;  %s13368_s9 = inlined_call_operand.vmem [shape: f32[32,128], index: 9, kind: input, shape index: {}]   ;;  %s13369_s10 = inlined_call_operand.vmem [shape: f32[1,128], index: 10, kind: input, shape index: {}]   ;;  %s13370_s11 = inlined_call_operand.hbm [shape: f32[1,2,128], index: 11, kind: output, shape index: {}]  }
   0x1   :  { %v43_v0 = vld [vmem:[%s13360_s1 + $0x8] sm:$0xff]  ;;  %v42_v1 = vld [vmem:[%s13360_s1] sm:$0xff]  ;;  %10495 = vmatprep.subr.bf16.mxu1 %v11316_v6  ;;  %10499 = vmatprep.mubr.msk.bf16.mxu1 %vm11317_vm1, %v11316_v6 }
   0x2   :  { %v40_v2 = vld [vmem:[%s13359_s0] sm:$0xff]  ;;  %10488 = vmatprep.subr.mxu0 %v43_v0  ;;  %v41_v3 = vld [vmem:[%s13359_s0 + $0x8] sm:$0xff] }
   0x3   :  { %10492 = vmatprep.mubr.msk.f32.mxu0 %vm49_vm0, %v40_v2  ;;  %10489 = vmatpush3.msra.mxu0 %v43_v0  ;;  %v10910_v4 = vld [vmem:[%s13362_s3 + $0x8] sm:$0xff]   ;;  %v10912_v7 = vld [vmem:[%s13362_s3] sm:$0xff]  }
   0x4   :  { %10490 = vmatprep.subr.mxu0 %v42_v1  ;;  %v10911_v5 = vld [vmem:[%s13362_s3 + $0x48] sm:$0xff]   ;;  %10496 = vmatpush3.bf16.msra.mxu1 %v10910_v4  ;;  %v10913_v8 = vld [vmem:[%s13362_s3 + $0x40] sm:$0xff]  }
   0x5   :  { %10491 = vmatpush3.msra.mxu0 %v42_v1  ;;  %10497 = vmatprep.subr.bf16.mxu1 %v11316_v6  ;;  %v9058_v9 = vld [vmem:[%s13361_s2] ss:$0 sm:$0xff]  ;;  %v131_v11 = vld [vmem:[%s13361_s2 + $0x1] sm:$0xff] }
   0x6   :  { %10493 = vmatmul.mubr.msk.f32.vlgmr.msra.gmra.mxu0 %vm49_vm0, %v41_v3  ;;  %10503 = vmatprep.subr.bf16.mxu0 %v11316_v6  ;;  %v10914_v15 = vld [vmem:[%s13362_s3 + $0x88] sm:$0xff]   ;;  %v10915_v19 = vld [vmem:[%s13362_s3 + $0x80] sm:$0xff]  }
   0x7   :  { %10504 = vmatpush3.bf16.msra.mxu0 %v10911_v5  ;;  %10507 = vmatprep.mubr.msk.bf16.mxu0 %vm11317_vm1, %v11316_v6 }
   0x8   :  { %10505 = vmatprep.subr.bf16.mxu0 %v11316_v6  ;;  %10498 = vmatpush3.bf16.msra.mxu1 %v10912_v7 }
   0x9   :  { %10511 = vmatprep.subr.bf16.mxu1 %v11316_v6 }
   0xb   :  { %10506 = vmatpush3.bf16.msra.mxu0 %v10913_v8 }
   0xc   :  { %10519 = vmatprep.subr.mxu0 %v11316_v6 }
  0xc6   :  { %v10494_v10 = vpop.f32.mrf.mxu0 }
  0xc7   :  { %v128_v12 = vadd.f32 %v10494_v10, %v9058_v9 }
  0xc8   :  { %v122_v13 = vpop.f32.mrf.mxu0 }
  0xc9   :  { %v123_v14 = vadd.f32 %v9058_v9, %v122_v13  ;;  %v11423_v16 = vadd.f32 %v131_v11, %v128_v12 }
  0xcb   :  { %v11425_v17 = vadd.f32 %v131_v11, %v123_v14 }
  0xcd   :  { %v11429_v18 = vpack.c.bf16 %v11423_v16, %v11425_v17 }
  0xcf   :  { %10500 = vmatmul.mubr.msk.bf16.vlgmr.msra.gmra.mxu1 %vm158_vm2, %v11429_v18  ;;  %10508 = vmatmul.mubr.msk.bf16.vlgmr.msra.gmra.mxu0 %vm158_vm2, %v11429_v18 }
  0xd0   :  { %10512 = vmatpush3.bf16.msra.mxu1 %v10914_v15  ;;  %10515 = vmatprep.mubr.msk.bf16.mxu1 %vm11317_vm1, %v11316_v6 }
  0xd1   :  { %16 = vsyncpa [#allocation3], 0  ;;  %10513 = vmatprep.subr.bf16.mxu1 %v11316_v6  ;;  %10521 = vmatprep.mubr.msk.f32.mxu0 %vm11317_vm1, %v11316_v6  ;;  %v9061_v20 = vld [vmem:[%s13363_s4] ss:$0 sm:$0xff]  ;;  %v9070_v21 = vld [vmem:[%s13363_s4 + $0x4] ss:$0 sm:$0xff] }
  0xd2   :  { %vm337_vm3 = vcmask 64512   ;;  %v9079_v35 = vld [vmem:[%s13363_s4 + $0x8] ss:$0 sm:$0xff]  ;;  %v10916_v62 = vld [vmem:[%s13362_s3 + $0x58] sm:$0xff]   ;;  %v10918_v2 = vld [vmem:[%s13362_s3 + $0x50] sm:$0xff]   ;;  %vm1186_vm4 = vcmask 1043456  }
  0xd3   :  { %v10917_v1 = vld [vmem:[%s13362_s3 + $0x18] sm:$0xff]   ;;  %v10919_v4 = vld [vmem:[%s13362_s3 + $0x10] sm:$0xff]   ;;  %v9103_v13 = vld [vmem:[%s13363_s4 + $0x5] ss:$0 sm:$0xff]  ;;  %vm8969_vm5 = vcmask 1041409   ;;  %s11319_s12 = smov [#allocation2]  }
  0xd4   :  { %10514 = vmatpush3.bf16.msra.mxu1 %v10915_v19  ;;  %v10920_v5 = vld [vmem:[%s13362_s3 + $0x98] sm:$0xff]   ;;  %v10921_v7 = vld [vmem:[%s13362_s3 + $0x90] sm:$0xff]   ;;  %s9050_s13 = sshll.u32 %s11319_s12, 4  ;;  %s9051_s13 = int_to_ptr.vmem [resolvable:$true] %s9050_s13 }
  0xd5   :  { %10529 = vmatprep.subr.mxu1 %v11316_v6  ;;  %p11299_p1 = scmp.lt.s32.totalorder %s9051_s13, %s9051_s13 }
  0xd7   :  { %10516 = vmatmul.mubr.msk.bf16.vlgmr.msra.gmra.mxu1 %vm158_vm2, %v11429_v18 }
  0xd8   :  { %10531 = vmatprep.mubr.msk.f32.mxu1 %vm11317_vm1, %v11316_v6 }
 0x18f   :  { %v196_v22 = vpop.f32.mrf.mxu1  ;;  %v264_v23 = vpop.f32.mrf.mxu0 }
 0x190   :  { %v197_v24 = vadd.f32 %v9061_v20, %v196_v22  ;;  %v265_v25 = vadd.f32 %v9070_v21, %v264_v23 }
 0x191   :  { %v10501_v26 = vpop.f32.mrf.mxu1  ;;  %v10509_v27 = vpop.f32.mrf.mxu0 }
 0x192   :  { %v203_v28 = vmul.f32 0.35355338, %v197_v24  ;;  %10520 = vmatpush3.xpose.msk.msra.mxu0 %vm337_vm3, %v265_v25 }
 0x193   :  { %v199_v29 = vpop.f32.mrf.mxu1  ;;  %v267_v30 = vpop.f32.mrf.mxu0  ;;  %10524 = vmatprep.subr.mxu0 %v11316_v6 }
 0x194   :  { %v200_v31 = vadd.f32 %v9061_v20, %v199_v29  ;;  %v268_v32 = vadd.f32 %v9070_v21, %v267_v30  ;;  %v9094_v20 = vld [vmem:[%s13363_s4 + $0x1] ss:$0 sm:$0xff] }
 0x195   :  { %v10502_v33 = vpop.f32.mrf.mxu1  ;;  %v10510_v34 = vpop.f32.mrf.mxu0  ;;  %10522 = vmatmul.mubr.msk.f32.vlgmr.msra.gmra.mxu0 %vm337_vm3, %v203_v28 }
 0x196   :  { %v204_v36 = vmul.f32 0.35355338, %v200_v31  ;;  %10525 = vmatpush3.xpose.msk.msra.mxu0 %vm337_vm3, %v268_v32  ;;  %10526 = vmatprep.mubr.msk.f32.mxu0 %vm11317_vm1, %v11316_v6  ;;  %v9112_v31 = vld [vmem:[%s13363_s4 + $0x9] ss:$0 sm:$0xff] }
 0x197   :  { %v330_v37 = vpop.f32.mrf.mxu1  ;;  %10534 = vmatprep.subr.mxu0 %v11316_v6 }
 0x198   :  { %v331_v38 = vadd.f32 %v9079_v35, %v330_v37 }
 0x199   :  { %v10517_v39 = vpop.f32.mrf.mxu1  ;;  %10527 = vmatmul.mubr.msk.f32.vlgmr.msra.gmra.mxu0 %vm337_vm3, %v204_v36 }
 0x19a   :  { %10530 = vmatpush3.msra.mxu1 %v331_v38  ;;  %10536 = vmatprep.mubr.msk.f32.mxu0 %vm11317_vm1, %v11316_v6 }
 0x19b   :  { %v333_v40 = vpop.f32.mrf.mxu1  ;;  %10539 = vmatprep.subr.bf16.mxu1 %v11316_v6 }
 0x19c   :  { %v334_v41 = vadd.f32 %v9079_v35, %v333_v40 }
 0x19d   :  { %v10518_v42 = vpop.f32.mrf.mxu1 }
 0x19e   :  { %10535 = vmatpush3.msra.mxu0 %v334_v41 }
 0x19f   :  { %10547 = vmatprep.subr.bf16.mxu0 %v11316_v6 }
 0x255   :  { %v410_v43 = vpop.f32.mrf.mxu0 }
 0x256   :  { %v490_v48 = vsel %vm337_vm3, %v410_v43, -inf }
 0x257   :  { %v10523_v44 = vpop.f32.mrf.mxu0 }
 0x259   :  { %v486_v45 = vpop.f32.mrf.mxu0 }
 0x25a   :  { %v493_v46 = vsel %vm337_vm3, %v486_v45, -inf }
 0x25b   :  { %494 = vmax.xlane.f32.xlu0 %v493_v46  ;;  %v10528_v47 = vpop.f32.mrf.mxu0 }
 0x25f   :  { %491 = vmax.xlane.f32.xlu0 %v490_v48 }
 0x2e4   :  { %v495_v49 = vpop.xlane.xlu0 %494 }
 0x2e5   :  { %v497_v50 = vsub.f32 %v486_v45, %v495_v49 }
 0x2e7   :  { %v500_v51 = vmul.f32 1.442695, %v497_v50 }
 0x2e8   :  { %v492_v52 = vpop.xlane.xlu0 %491 }
 0x2e9   :  { %11214 = vpow2.f32 %v500_v51  ;;  %v496_v53 = vsub.f32 %v410_v43, %v492_v52 }
 0x2eb   :  { %v498_v54 = vmul.f32 1.442695, %v496_v53 }
 0x2ed   :  { %11216 = vpow2.f32 %v498_v54 }
 0x2f6   :  { %v11215_v55 = vpop.eup %11214 }
 0x2f7   :  { %v505_v56 = vsel %vm337_vm3, %v11215_v55, 0.0 }
 0x2f8   :  { %506 = vadd.xlane.f32.xlu1 %v505_v56 }
 0x2fa   :  { %v11217_v57 = vpop.eup %11216 }
 0x2fb   :  { %v502_v58 = vsel %vm337_vm3, %v11217_v57, 0.0 }
 0x2fc   :  { %503 = vadd.xlane.f32.xlu1 %v502_v58 }
 0x381   :  { %v507_v59 = vpop.xlane.xlu1 %506 }
 0x382   :  { %11218 = vrcp.f32 %v507_v59  ;;  %v659_v59 = vld [vmem:[%s13364_s5] sm:$0xf] }
 0x385   :  { %v504_v60 = vpop.xlane.xlu1 %503 }
 0x386   :  { %11220 = vrcp.f32 %v504_v60 }
 0x38f   :  { %v11219_v61 = vpop.eup %11218 }
 0x390   :  { %v511_v63 = vmul.f32 %v11219_v61, %v11215_v55 }
 0x392   :  { %10537 = vmatmul.mubr.msk.f32.vlgmr.msra.gmra.mxu0 %vm337_vm3, %v511_v63  ;;  %v10922_v63 = vld [vmem:[%s13362_s3 + $0x68] sm:$0xff]  }
 0x393   :  { %v11221_v0 = vpop.eup %11220  ;;  %10548 = vmatpush3.bf16.msra.mxu0 %v10916_v62  ;;  %10551 = vmatprep.mubr.msk.bf16.mxu0 %vm11317_vm1, %v11316_v6  ;;  %v1235_v62 = vsel %vm1186_vm4, %v659_v59, 0 }
 0x394   :  { %10549 = vmatprep.subr.bf16.mxu0 %v11316_v6  ;;  %v510_v3 = vmul.f32 %v11221_v0, %v11217_v57  ;;  %v10923_v0 = vld [vmem:[%s13362_s3 + $0x60] sm:$0xff]  }
 0x396   :  { %10532 = vmatmul.mubr.msk.f32.vlgmr.msra.gmra.mxu1 %vm337_vm3, %v510_v3 }
 0x397   :  { %10540 = vmatpush3.bf16.msra.mxu1 %v10917_v1  ;;  %10550 = vmatpush3.bf16.msra.mxu0 %v10918_v2  ;;  %v9122_v1 = vld [vmem:[%s13364_s5 + $0x4] sm:$0xf] }
 0x398   :  { %10541 = vmatprep.subr.bf16.mxu1 %v11316_v6  ;;  %10543 = vmatprep.mubr.msk.bf16.mxu1 %vm11317_vm1, %v11316_v6  ;;  %v1188_v2 = vsel %vm1186_vm4, %v9122_v1, 0 }
 0x399   :  { %10563 = vmatprep.subr.mxu0 %v11316_v6 }
 0x39a   :  { %10552 = vmatmul.mubr.msk.bf16.vlgmr.msra.gmra.mxu0 %vm158_vm2, %v11429_v18 }
 0x39b   :  { %10542 = vmatpush3.bf16.msra.mxu1 %v10919_v4  ;;  %10565 = vmatprep.mubr.msk.f32.mxu0 %vm11317_vm1, %v11316_v6 }
 0x39c   :  { %10555 = vmatprep.subr.bf16.mxu1 %v11316_v6 }
 0x39e   :  { %10544 = vmatmul.mubr.msk.bf16.vlgmr.msra.gmra.mxu1 %vm158_vm2, %v11429_v18 }
 0x39f   :  { %10556 = vmatpush3.bf16.msra.mxu1 %v10920_v5  ;;  %10559 = vmatprep.mubr.msk.bf16.mxu1 %vm11317_vm1, %v11316_v6 }
 0x3a0   :  { %10557 = vmatprep.subr.bf16.mxu1 %v11316_v6 }
 0x3a3   :  { %10558 = vmatpush3.bf16.msra.mxu1 %v10921_v7  ;;  %v10924_v7 = vld [vmem:[%s13362_s3 + $0x28] sm:$0xff]  }
 0x3a4   :  { %10573 = vmatprep.subr.mxu1 %v11316_v6 }
 0x3a6   :  { %10560 = vmatmul.mubr.msk.bf16.vlgmr.msra.gmra.mxu1 %vm158_vm2, %v11429_v18 }
 0x3a7   :  { %10575 = vmatprep.mubr.msk.f32.mxu1 %vm11317_vm1, %v11316_v6 }
 0x452   :  { %v11515_v8 = vpop.f32.mrf.mxu0 }
 0x454   :  { %v10538_v9 = vpop.f32.mrf.mxu0 }
 0x456   :  { %v11517_v10 = vpop.f32.mrf.mxu1 }
 0x457   :  { %v658_v11 = vpack.c.bf16 %v11515_v8, %v11517_v10 }
 0x458   :  { %v10533_v12 = vpop.f32.mrf.mxu1 }
 0x45a   :  { %v787_v14 = vpop.f32.mrf.mxu0 }
 0x45b   :  { %v788_v15 = vadd.f32 %v9103_v13, %v787_v14  ;;  %v10926_v14 = vld [vmem:[%s13362_s3 + $0xa8] sm:$0xff]  }
 0x45c   :  { %v10553_v19 = vpop.f32.mrf.mxu0 }
 0x45d   :  { %10564 = vmatpush3.xpose.msk.msra.mxu0 %vm337_vm3, %v788_v15  ;;  %v9139_v19 = vld [vmem:[%s13363_s4 + $0x6] ss:$0 sm:$0xff] }
 0x45e   :  { %v719_v21 = vpop.f32.mrf.mxu1  ;;  %v790_v22 = vpop.f32.mrf.mxu0  ;;  %10568 = vmatprep.subr.mxu0 %v11316_v6 }
 0x45f   :  { %v720_v23 = vadd.f32 %v9094_v20, %v719_v21  ;;  %v791_v27 = vadd.f32 %v9103_v13, %v790_v22  ;;  %v10927_v21 = vld [vmem:[%s13362_s3 + $0xa0] sm:$0xff]  }
 0x460   :  { %v10545_v24 = vpop.f32.mrf.mxu1  ;;  %v10554_v25 = vpop.f32.mrf.mxu0 }
 0x461   :  { %v726_v26 = vmul.f32 0.35355338, %v720_v23 }
 0x462   :  { %v722_v28 = vpop.f32.mrf.mxu1 }
 0x463   :  { %v723_v29 = vadd.f32 %v9094_v20, %v722_v28  ;;  %10566 = vmatmul.mubr.msk.f32.vlgmr.msra.gmra.mxu0 %vm337_vm3, %v726_v26 }
 0x464   :  { %10569 = vmatpush3.xpose.msk.msra.mxu0 %vm337_vm3, %v791_v27  ;;  %v10546_v30 = vpop.f32.mrf.mxu1  ;;  %10570 = vmatprep.mubr.msk.f32.mxu0 %vm11317_vm1, %v11316_v6 }
 0x465   :  { %v727_v32 = vmul.f32 0.35355338, %v723_v29  ;;  %10578 = vmatprep.subr.mxu0 %v11316_v6 }
 0x466   :  { %v853_v33 = vpop.f32.mrf.mxu1 }
 0x467   :  { %v854_v34 = vadd.f32 %v9112_v31, %v853_v33  ;;  %10571 = vmatmul.mubr.msk.f32.vlgmr.msra.gmra.mxu0 %vm337_vm3, %v727_v32 }
 0x468   :  { %v10561_v35 = vpop.f32.mrf.mxu1  ;;  %10580 = vmatprep.mubr.msk.f32.mxu0 %vm11317_vm1, %v11316_v6 }
 0x469   :  { %10574 = vmatpush3.msra.mxu1 %v854_v34 }
 0x46a   :  { %v856_v36 = vpop.f32.mrf.mxu1  ;;  %10583 = vmatprep.subr.bf16.mxu1 %v11316_v6 }
 0x46b   :  { %v857_v37 = vadd.f32 %v9112_v31, %v856_v36  ;;  %v9130_v31 = vld [vmem:[%s13363_s4 + $0x2] ss:$0 sm:$0xff] }
 0x46c   :  { %v10562_v38 = vpop.f32.mrf.mxu1 }
 0x46d   :  { %10579 = vmatpush3.msra.mxu0 %v857_v37 }
 0x46e   :  { %10589 = vmatprep.subr.bf16.mxu0 %v11316_v6 }
 0x523   :  { %v932_v39 = vpop.f32.mrf.mxu0 }
 0x524   :  { %v1012_v40 = vsel %vm337_vm3, %v932_v39, -inf }
 0x525   :  { %1013 = vmax.xlane.f32.xlu0 %v1012_v40  ;;  %v10567_v41 = vpop.f32.mrf.mxu0 }
 0x527   :  { %v1008_v42 = vpop.f32.mrf.mxu0 }
 0x528   :  { %v1015_v43 = vsel %vm337_vm3, %v1008_v42, -inf }
 0x529   :  { %1016 = vmax.xlane.f32.xlu1 %v1015_v43  ;;  %v10572_v44 = vpop.f32.mrf.mxu0 }
 0x5ae   :  { %v1014_v45 = vpop.xlane.xlu0 %1013 }
 0x5af   :  { %v1018_v46 = vsub.f32 %v932_v39, %v1014_v45  ;;  %v9148_v39 = vld [vmem:[%s13363_s4 + $0xa] ss:$0 sm:$0xff] }
 0x5b1   :  { %v1020_v47 = vmul.f32 1.442695, %v1018_v46 }
 0x5b2   :  { %v1017_v48 = vpop.xlane.xlu1 %1016 }
 0x5b3   :  { %11222 = vpow2.f32 %v1020_v47  ;;  %v1019_v49 = vsub.f32 %v1008_v42, %v1017_v48 }
 0x5b5   :  { %v1022_v50 = vmul.f32 1.442695, %v1019_v49 }
 0x5b7   :  { %11224 = vpow2.f32 %v1022_v50 }
 0x5c0   :  { %v11223_v51 = vpop.eup %11222 }
 0x5c1   :  { %v1024_v52 = vsel %vm337_vm3, %v11223_v51, 0.0 }
 0x5c2   :  { %1025 = vadd.xlane.f32.xlu0 %v1024_v52 }
 0x5c4   :  { %v11225_v53 = vpop.eup %11224 }
 0x5c5   :  { %v1027_v54 = vsel %vm337_vm3, %v11225_v53, 0.0 }
 0x5c6   :  { %1028 = vadd.xlane.f32.xlu1 %v1027_v54 }
 0x64b   :  { %v1026_v55 = vpop.xlane.xlu0 %1025 }
 0x64c   :  { %11226 = vrcp.f32 %v1026_v55 }
 0x64f   :  { %v1029_v56 = vpop.xlane.xlu1 %1028 }
 0x650   :  { %11228 = vrcp.f32 %v1029_v56 }
 0x659   :  { %v11227_v57 = vpop.eup %11226 }
 0x65a   :  { %v1032_v58 = vmul.f32 %v11227_v57, %v11223_v51 }
 0x65c   :  { %10576 = vmatmul.mubr.msk.f32.vlgmr.msra.gmra.mxu1 %vm337_vm3, %v1032_v58 }
 0x65d   :  { %v11229_v60 = vpop.eup %11228  ;;  %10585 = vmatprep.mubr.msk.bf16.mxu1 %vm11317_vm1, %v11316_v6  ;;  %10584 = vmatpush3.bf16.msra.mxu1 %v1188_v2 }
 0x65e   :  { %v1033_v61 = vmul.f32 %v11229_v60, %v11225_v53  ;;  %10595 = vmatprep.subr.bf16.mxu1 %v11316_v6 }
 0x660   :  { %10581 = vmatmul.mubr.msk.f32.vlgmr.msra.gmra.mxu0 %vm337_vm3, %v1033_v61 }
 0x661   :  { %10590 = vmatpush3.bf16.msra.mxu0 %v1235_v62  ;;  %10591 = vmatprep.mubr.msk.bf16.mxu0 %vm11317_vm1, %v11316_v6 }
 0x662   :  { %10603 = vmatprep.subr.bf16.mxu0 %v11316_v6 }
 0x664   :  { %10592 = vmatmul.mubr.msk.bf16.vlgmr.msra.gmra.mxu0 %vm337_vm3, %v658_v11  ;;  %v10925_v11 = vld [vmem:[%s13362_s3 + $0x20] sm:$0xff]  }
 0x665   :  { %10604 = vmatpush3.bf16.msra.mxu0 %v10922_v63  ;;  %10607 = vmatprep.mubr.msk.bf16.mxu0 %vm11317_vm1, %v11316_v6 }
 0x666   :  { %10605 = vmatprep.subr.bf16.mxu0 %v11316_v6 }
 0x669   :  { %10606 = vmatpush3.bf16.msra.mxu0 %v10923_v0 }
 0x66a   :  { %10619 = vmatprep.subr.mxu0 %v11316_v6 }
 0x66c   :  { %10608 = vmatmul.mubr.msk.bf16.vlgmr.msra.gmra.mxu0 %vm158_vm2, %v11429_v18 }
 0x66d   :  { %10621 = vmatprep.mubr.msk.f32.mxu0 %vm11317_vm1, %v11316_v6 }
 0x71c   :  { %v1103_v3 = vpop.f32.mrf.mxu1 }
 0x71e   :  { %v10577_v4 = vpop.f32.mrf.mxu1 }
 0x71f   :  { %v10928_v4 = vld [vmem:[%s13362_s3 + $0x38] sm:$0xff]  }
 0x720   :  { %v1176_v5 = vpop.f32.mrf.mxu0 }
 0x721   :  { %v1180_v8 = vpack.c.bf16 %v1176_v5, %v1103_v3 }
 0x722   :  { %v10582_v9 = vpop.f32.mrf.mxu0 }
 0x723   :  { %10586 = vmatmul.mubr.msk.bf16.vlgmr.msra.gmra.mxu1 %vm337_vm3, %v1180_v8  ;;  %v10930_v8 = vld [vmem:[%s13362_s3 + $0xb8] sm:$0xff]   ;;  %v10931_v9 = vld [vmem:[%s13362_s3 + $0xb0] sm:$0xff]  }
 0x724   :  { %v11584_v10 = vpop.f32.mrf.mxu0  ;;  %10596 = vmatpush3.bf16.msra.mxu1 %v10924_v7  ;;  %10599 = vmatprep.mubr.msk.bf16.mxu1 %vm11317_vm1, %v11316_v6  ;;  %v10929_v7 = vld [vmem:[%s13362_s3 + $0x30] sm:$0xff]  }
 0x725   :  { %10597 = vmatprep.subr.bf16.mxu1 %v11316_v6 }
 0x726   :  { %v10593_v12 = vpop.f32.mrf.mxu0 }
 0x728   :  { %v11592_v13 = vpop.f32.mrf.mxu0  ;;  %10598 = vmatpush3.bf16.msra.mxu1 %v10925_v11  ;;  %v9158_v11 = vld [vmem:[%s13364_s5 + $0x8] sm:$0xf] }
 0x729   :  { %10611 = vmatprep.subr.bf16.mxu1 %v11316_v6  ;;  %v1805_v12 = vsel %vm1186_vm4, %v9158_v11, 0 }
 0x72a   :  { %v10594_v15 = vpop.f32.mrf.mxu0 }
 0x72b   :  { %10600 = vmatmul.mubr.msk.bf16.vlgmr.msra.gmra.mxu1 %vm158_vm2, %v11429_v18 }
 0x72c   :  { %v1405_v20 = vpop.f32.mrf.mxu0  ;;  %10612 = vmatpush3.bf16.msra.mxu1 %v10926_v14  ;;  %10615 = vmatprep.mubr.msk.bf16.mxu1 %vm11317_vm1, %v11316_v6 }
 0x72d   :  { %v1406_v22 = vadd.f32 %v9139_v19, %v1405_v20  ;;  %10613 = vmatprep.subr.bf16.mxu1 %v11316_v6  ;;  %v10932_v20 = vld [vmem:[%s13362_s3 + $0x78] sm:$0xff]  }
 0x72e   :  { %v10609_v23 = vpop.f32.mrf.mxu0 }
 0x72f   :  { %10620 = vmatpush3.xpose.msk.msra.mxu0 %vm337_vm3, %v1406_v22  ;;  %v10933_v23 = vld [vmem:[%s13362_s3 + $0x70] sm:$0xff]  }
 0x730   :  { %v1408_v24 = vpop.f32.mrf.mxu0  ;;  %10614 = vmatpush3.bf16.msra.mxu1 %v10927_v21  ;;  %10624 = vmatprep.subr.mxu0 %v11316_v6 }
 0x731   :  { %v1409_v25 = vadd.f32 %v9139_v19, %v1408_v24  ;;  %10629 = vmatprep.subr.mxu1 %v11316_v6 }
 0x732   :  { %v10610_v26 = vpop.f32.mrf.mxu0 }
 0x733   :  { %10616 = vmatmul.mubr.msk.bf16.vlgmr.msra.gmra.mxu1 %vm158_vm2, %v11429_v18 }
 0x734   :  { %10631 = vmatprep.mubr.msk.f32.mxu1 %vm11317_vm1, %v11316_v6 }
 0x7e3   :  { %v11616_v27 = vpop.f32.mrf.mxu1 }
 0x7e5   :  { %v10587_v28 = vpop.f32.mrf.mxu1 }
 0x7e7   :  { %v11618_v29 = vpop.f32.mrf.mxu1 }
 0x7e9   :  { %v10588_v30 = vpop.f32.mrf.mxu1 }
 0x7ea   :  { %v9183_v30 = vld [vmem:[%s13363_s4 + $0xb] ss:$0 sm:$0xff] }
 0x7eb   :  { %v1337_v32 = vpop.f32.mrf.mxu1 }
 0x7ec   :  { %v1338_v33 = vadd.f32 %v9130_v31, %v1337_v32 }
 0x7ed   :  { %v10601_v34 = vpop.f32.mrf.mxu1 }
 0x7ee   :  { %v1344_v35 = vmul.f32 0.35355338, %v1338_v33 }
 0x7ef   :  { %v1340_v36 = vpop.f32.mrf.mxu1 }
 0x7f0   :  { %v1341_v37 = vadd.f32 %v9130_v31, %v1340_v36  ;;  %10622 = vmatmul.mubr.msk.f32.vlgmr.msra.gmra.mxu0 %vm337_vm3, %v1344_v35 }
 0x7f1   :  { %10625 = vmatpush3.xpose.msk.msra.mxu0 %vm337_vm3, %v1409_v25  ;;  %v10602_v38 = vpop.f32.mrf.mxu1  ;;  %10626 = vmatprep.mubr.msk.f32.mxu0 %vm11317_vm1, %v11316_v6 }
 0x7f2   :  { %v1345_v40 = vmul.f32 0.35355338, %v1341_v37  ;;  %10634 = vmatprep.subr.mxu0 %v11316_v6 }
 0x7f3   :  { %v1471_v41 = vpop.f32.mrf.mxu1 }
 0x7f4   :  { %v1472_v42 = vadd.f32 %v9148_v39, %v1471_v41  ;;  %10627 = vmatmul.mubr.msk.f32.vlgmr.msra.gmra.mxu0 %vm337_vm3, %v1345_v40  ;;  %v1275_v40 = vadd.f32 %v11592_v13, %v11618_v29 }
 0x7f5   :  { %v10617_v43 = vpop.f32.mrf.mxu1  ;;  %10636 = vmatprep.mubr.msk.f32.mxu0 %vm11317_vm1, %v11316_v6 }
 0x7f6   :  { %10630 = vmatpush3.msra.mxu1 %v1472_v42  ;;  %v9165_v42 = vld [vmem:[%s13363_s4 + $0x3] ss:$0 sm:$0xff] }
 0x7f7   :  { %v1474_v44 = vpop.f32.mrf.mxu1  ;;  %10639 = vmatprep.subr.bf16.mxu1 %v11316_v6 }
 0x7f8   :  { %v1475_v45 = vadd.f32 %v9148_v39, %v1474_v44 }
 0x7f9   :  { %v10618_v46 = vpop.f32.mrf.mxu1 }
 0x7fa   :  { %10635 = vmatpush3.msra.mxu0 %v1475_v45  ;;  %v9174_v45 = vld [vmem:[%s13363_s4 + $0x7] ss:$0 sm:$0xff] }
 0x7fb   :  { %10645 = vmatprep.subr.bf16.mxu0 %v11316_v6 }
 0x8b0   :  { %v1550_v47 = vpop.f32.mrf.mxu0 }
 0x8b1   :  { %v1630_v48 = vsel %vm337_vm3, %v1550_v47, -inf }
 0x8b2   :  { %1631 = vmax.xlane.f32.xlu0 %v1630_v48  ;;  %v10623_v49 = vpop.f32.mrf.mxu0 }
 0x8b4   :  { %v1626_v50 = vpop.f32.mrf.mxu0 }
 0x8b5   :  { %v1633_v51 = vsel %vm337_vm3, %v1626_v50, -inf }
 0x8b6   :  { %1634 = vmax.xlane.f32.xlu1 %v1633_v51  ;;  %v10628_v52 = vpop.f32.mrf.mxu0 }
 0x93b   :  { %v1632_v53 = vpop.xlane.xlu0 %1631 }
 0x93c   :  { %v1636_v54 = vsub.f32 %v1550_v47, %v1632_v53 }
 0x93e   :  { %v1638_v55 = vmul.f32 1.442695, %v1636_v54 }
 0x93f   :  { %v1635_v56 = vpop.xlane.xlu1 %1634 }
 0x940   :  { %11230 = vpow2.f32 %v1638_v55  ;;  %v1637_v57 = vsub.f32 %v1626_v50, %v1635_v56 }
 0x942   :  { %v1640_v58 = vmul.f32 1.442695, %v1637_v57 }
 0x944   :  { %11232 = vpow2.f32 %v1640_v58 }
 0x94d   :  { %v11231_v59 = vpop.eup %11230 }
 0x94e   :  { %v1642_v60 = vsel %vm337_vm3, %v11231_v59, 0.0 }
 0x94f   :  { %1643 = vadd.xlane.f32.xlu0 %v1642_v60 }
 0x951   :  { %v11233_v61 = vpop.eup %11232 }
 0x952   :  { %v1645_v62 = vsel %vm337_vm3, %v11233_v61, 0.0 }
 0x953   :  { %1646 = vadd.xlane.f32.xlu1 %v1645_v62 }
 0x9d8   :  { %v1644_v63 = vpop.xlane.xlu0 %1643 }
 0x9d9   :  { %11234 = vrcp.f32 %v1644_v63 }
 0x9dc   :  { %v1647_v0 = vpop.xlane.xlu1 %1646 }
 0x9dd   :  { %11236 = vrcp.f32 %v1647_v0 }
 0x9e6   :  { %v11235_v1 = vpop.eup %11234 }
 0x9e7   :  { %v1650_v2 = vmul.f32 %v11235_v1, %v11231_v59 }
 0x9e9   :  { %10632 = vmatmul.mubr.msk.f32.vlgmr.msra.gmra.mxu1 %vm337_vm3, %v1650_v2 }
 0x9ea   :  { %v11237_v3 = vpop.eup %11236  ;;  %10641 = vmatprep.mubr.msk.bf16.mxu1 %vm11317_vm1, %v11316_v6  ;;  %10640 = vmatpush3.bf16.msra.mxu1 %v1805_v12  ;;  %v9193_v12 = vld [vmem:[%s13364_s5 + $0xc] sm:$0xf] }
 0x9eb   :  { %v1651_v5 = vmul.f32 %v11237_v3, %v11233_v61  ;;  %10653 = vmatprep.subr.bf16.mxu1 %v11316_v6 }
 0x9ed   :  { %10637 = vmatmul.mubr.msk.f32.vlgmr.msra.gmra.mxu0 %vm337_vm3, %v1651_v5 }
 0x9ee   :  { %10646 = vmatpush3.bf16.msra.mxu0 %v10928_v4  ;;  %10649 = vmatprep.mubr.msk.bf16.mxu0 %vm11317_vm1, %v11316_v6 }
 0x9ef   :  { %10647 = vmatprep.subr.bf16.mxu0 %v11316_v6 }
 0x9f2   :  { %10648 = vmatpush3.bf16.msra.mxu0 %v10929_v7 }
 0x9f3   :  { %10661 = vmatprep.subr.bf16.mxu0 %v11316_v6 }
 0x9f5   :  { %10650 = vmatmul.mubr.msk.bf16.vlgmr.msra.gmra.mxu0 %vm158_vm2, %v11429_v18 }
 0x9f6   :  { %10662 = vmatpush3.bf16.msra.mxu0 %v10930_v8  ;;  %10665 = vmatprep.mubr.msk.bf16.mxu0 %vm11317_vm1, %v11316_v6 }
 0x9f7   :  { %10663 = vmatprep.subr.bf16.mxu0 %v11316_v6 }
 0x9fa   :  { %10664 = vmatpush3.bf16.msra.mxu0 %v10931_v9 }
 0x9fb   :  { %10679 = vmatprep.subr.mxu0 %v11316_v6 }
 0x9fd   :  { %10666 = vmatmul.mubr.msk.bf16.vlgmr.msra.gmra.mxu0 %vm158_vm2, %v11429_v18 }
 0x9fe   :  { %10681 = vmatprep.mubr.msk.f32.mxu0 %vm11317_vm1, %v11316_v6 }
 0xaa9   :  { %v1721_v14 = vpop.f32.mrf.mxu1 }
 0xaab   :  { %v10633_v15 = vpop.f32.mrf.mxu1 }
 0xaad   :  { %v1794_v19 = vpop.f32.mrf.mxu0 }
 0xaae   :  { %v1798_v21 = vpack.c.bf16 %v1794_v19, %v1721_v14  ;;  %v2377_v14 = vsel %vm1186_vm4, %v9193_v12, 0  ;;  %v9196_v12 = vld [vmem:[%s13361_s2 + $0xa] ss:$0 sm:$0xff] }
 0xaaf   :  { %v10638_v22 = vpop.f32.mrf.mxu0 }
 0xab0   :  { %10642 = vmatmul.mubr.msk.bf16.vlgmr.msra.gmra.mxu1 %vm337_vm3, %v1798_v21 }
 0xab1   :  { %10654 = vmatpush3.bf16.msra.mxu1 %v10932_v20  ;;  %10657 = vmatprep.mubr.msk.bf16.mxu1 %vm11317_vm1, %v11316_v6 }
 0xab2   :  { %10655 = vmatprep.subr.bf16.mxu1 %v11316_v6 }
 0xab5   :  { %v1909_v24 = vpop.f32.mrf.mxu0  ;;  %10656 = vmatpush3.bf16.msra.mxu1 %v10933_v23 }
 0xab6   :  { %10669 = vmatprep.subr.mxu1 %v11316_v6 }
 0xab7   :  { %v10651_v25 = vpop.f32.mrf.mxu0 }
 0xab8   :  { %10658 = vmatmul.mubr.msk.bf16.vlgmr.msra.gmra.mxu1 %vm158_vm2, %v11429_v18  ;;  %v1272_v18 = vadd.f32 %v11584_v10, %v11616_v27  ;;  %v1910_v10 = vadd.f32 %v9165_v42, %v1909_v24  ;;  %v9195_v24 = vld [vmem:[%s13361_s2 + $0x9] ss:$0 sm:$0xff] }
 0xab9   :  { %v1912_v26 = vpop.f32.mrf.mxu0  ;;  %10671 = vmatprep.mubr.msk.f32.mxu1 %vm11317_vm1, %v11316_v6 }
 0xaba   :  { %v1916_v48 = vmul.f32 0.35355338, %v1910_v10  ;;  %v1913_v13 = vadd.f32 %v9165_v42, %v1912_v26  ;;  %v2497_v10 = vld [vmem:[%s13365_s6 + $0xc0] sm:$0xff] }
 0xabb   :  { %v10652_v28 = vpop.f32.mrf.mxu0 }
 0xabc   :  { %v1917_v51 = vmul.f32 0.35355338, %v1913_v13 }
 0xabd   :  { %v2043_v31 = vpop.f32.mrf.mxu0 }
 0xabe   :  { %v2044_v32 = vadd.f32 %v9183_v30, %v2043_v31 }
 0xabf   :  { %v10667_v33 = vpop.f32.mrf.mxu0 }
 0xac0   :  { %10680 = vmatpush3.msra.mxu0 %v2044_v32 }
 0xac1   :  { %v2046_v34 = vpop.f32.mrf.mxu0  ;;  %10689 = vmatprep.subr.bf16.mxu0 %v11316_v6 }
 0xac2   :  { %v2047_v35 = vadd.f32 %v9183_v30, %v2046_v34 }
 0xac3   :  { %v10668_v36 = vpop.f32.mrf.mxu0 }
 0xb70   :  { %v1841_v37 = vpop.f32.mrf.mxu1 }
 0xb71   :  { %v11696_v38 = vadd.f32 %v1841_v37, %v1272_v18 }
 0xb72   :  { %v10643_v39 = vpop.f32.mrf.mxu1 }
 0xb74   :  { %v1844_v41 = vpop.f32.mrf.mxu1 }
 0xb75   :  { %v11703_v43 = vadd.f32 %v1844_v41, %v1275_v40 }
 0xb76   :  { %v10644_v44 = vpop.f32.mrf.mxu1 }
 0xb78   :  { %v1977_v27 = vpop.f32.mrf.mxu1 }
 0xb79   :  { %v1978_v46 = vadd.f32 %v9174_v45, %v1977_v27  ;;  %v2490_v27 = vld [vmem:[%s13365_s6 + $0x88] sm:$0xff] }
 0xb7a   :  { %v10659_v47 = vpop.f32.mrf.mxu1 }
 0xb7b   :  { %10670 = vmatpush3.xpose.msk.msra.mxu1 %vm337_vm3, %v1978_v46  ;;  %v2498_v47 = vld [vmem:[%s13365_s6 + $0xc8] sm:$0xff] }
 0xb7c   :  { %v1980_v29 = vpop.f32.mrf.mxu1  ;;  %10674 = vmatprep.subr.mxu1 %v11316_v6  ;;  %v9216_v13 = vcombine.low %v2490_v27, %v2498_v47 }
 0xb7d   :  { %v1981_v49 = vadd.f32 %v9174_v45, %v1980_v29  ;;  %v9217_v29 = vcombine.high %v2490_v27, %v2498_v47  ;;  %v2503_v27 = vld [vmem:[%s13365_s6 + $0xf0] sm:$0xff]  ;;  %v2504_v47 = vld [vmem:[%s13365_s6 + $0xf8] sm:$0xff] }
 0xb7e   :  { %v10660_v50 = vpop.f32.mrf.mxu1  ;;  %10672 = vmatmul.mubr.msk.f32.vlgmr.msra.gmra.mxu1 %vm337_vm3, %v1916_v48 }
 0xb7f   :  { %10675 = vmatpush3.xpose.msk.msra.mxu1 %vm337_vm3, %v1981_v49  ;;  %10676 = vmatprep.mubr.msk.f32.mxu1 %vm11317_vm1, %v11316_v6  ;;  %v2473_v49 = vld [vmem:[%s13365_s6] sm:$0xff] }
 0xb80   :  { %10684 = vmatprep.subr.mxu1 %v11316_v6  ;;  %v2481_v50 = vld [vmem:[%s13365_s6 + $0x40] sm:$0xff] }
 0xb82   :  { %10677 = vmatmul.mubr.msk.f32.vlgmr.msra.gmra.mxu1 %vm337_vm3, %v1917_v51  ;;  %v2474_v51 = vld [vmem:[%s13365_s6 + $0x8] sm:$0xff] }
 0xb83   :  { %10685 = vmatpush3.msra.mxu1 %v2047_v35  ;;  %10686 = vmatprep.mubr.msk.f32.mxu1 %vm11317_vm1, %v11316_v6 }
 0xc3e   :  { %v2122_v52 = vpop.f32.mrf.mxu1 }
 0xc3f   :  { %v2202_v53 = vsel %vm337_vm3, %v2122_v52, -inf }
 0xc40   :  { %2203 = vmax.xlane.f32.xlu0 %v2202_v53  ;;  %v10673_v54 = vpop.f32.mrf.mxu1  ;;  %v2482_v53 = vld [vmem:[%s13365_s6 + $0x48] sm:$0xff] }
 0xc41   :  { %v9198_v54 = vcombine.low %v2473_v49, %v2481_v50 }
 0xc42   :  { %v2198_v55 = vpop.f32.mrf.mxu1 }
 0xc43   :  { %v2205_v56 = vsel %vm337_vm3, %v2198_v55, -inf }
 0xc44   :  { %2206 = vmax.xlane.f32.xlu1 %v2205_v56  ;;  %v10678_v57 = vpop.f32.mrf.mxu1  ;;  %v9201_v56 = vcombine.high %v2474_v51, %v2482_v53 }
 0xc45   :  { %v2491_v57 = vld [vmem:[%s13365_s6 + $0x90] sm:$0xff] }
 0xcc9   :  { %v2204_v58 = vpop.xlane.xlu0 %2203 }
 0xcca   :  { %v2208_v59 = vsub.f32 %v2122_v52, %v2204_v58  ;;  %v9199_v52 = vcombine.high %v2473_v49, %v2481_v50  ;;  %v2499_v58 = vld [vmem:[%s13365_s6 + $0xd0] sm:$0xff] }
 0xccb   :  { %v2479_v50 = vld [vmem:[%s13365_s6 + $0x30] sm:$0xff] }
 0xccc   :  { %v2210_v60 = vmul.f32 1.442695, %v2208_v59  ;;  %v2492_v59 = vld [vmem:[%s13365_s6 + $0x98] sm:$0xff] }
 0xccd   :  { %v2207_v61 = vpop.xlane.xlu1 %2206 }
 0xcce   :  { %11238 = vpow2.f32 %v2210_v60  ;;  %v2209_v62 = vsub.f32 %v2198_v55, %v2207_v61  ;;  %v9200_v55 = vcombine.low %v2474_v51, %v2482_v53  ;;  %v11318_v60 = vmov 0   ;;  %v2487_v51 = vld [vmem:[%s13365_s6 + $0x70] sm:$0xff]  ;;  %v2488_v53 = vld [vmem:[%s13365_s6 + $0x78] sm:$0xff] }
 0xccf   :  { %v9219_v61 = vcombine.high %v2491_v57, %v2499_v58 }
 0xcd0   :  { %v2212_v63 = vmul.f32 1.442695, %v2209_v62  ;;  %v2500_v62 = vld [vmem:[%s13365_s6 + $0xd8] sm:$0xff] }
 0xcd2   :  { %11240 = vpow2.f32 %v2212_v63  ;;  %v9218_v63 = vcombine.low %v2491_v57, %v2499_v58  ;;  %v9210_v58 = vcombine.low %v2479_v50, %v2487_v51 }
 0xcdb   :  { %v11239_v0 = vpop.eup %11238 }
 0xcdc   :  { %v2214_v1 = vsel %vm337_vm3, %v11239_v0, 0.0 }
 0xcdd   :  { %2215 = vadd.xlane.f32.xlu0 %v2214_v1  ;;  %v9221_v1 = vcombine.high %v2492_v59, %v2500_v62 }
 0xcdf   :  { %v11241_v2 = vpop.eup %11240 }
 0xce0   :  { %v2217_v3 = vsel %vm337_vm3, %v11241_v2, 0.0 }
 0xce1   :  { %2218 = vadd.xlane.f32.xlu1 %v2217_v3 }
 0xd66   :  { %v2216_v4 = vpop.xlane.xlu0 %2215 }
 0xd67   :  { %11242 = vrcp.f32 %v2216_v4 }
 0xd6a   :  { %v2219_v5 = vpop.xlane.xlu1 %2218 }
 0xd6b   :  { %11244 = vrcp.f32 %v2219_v5 }
 0xd74   :  { %v11243_v7 = vpop.eup %11242 }
 0xd75   :  { %v2222_v8 = vmul.f32 %v11243_v7, %v11239_v0  ;;  %v9220_v0 = vcombine.low %v2492_v59, %v2500_v62  ;;  %v10935_v62 = vld [vmem:[%s13367_s8 + $0xf8] sm:$0xff]  }
 0xd77   :  { %10682 = vmatmul.mubr.msk.f32.vlgmr.msra.gmra.mxu0 %vm337_vm3, %v2222_v8 }
 0xd78   :  { %v11245_v9 = vpop.eup %11244  ;;  %10691 = vmatprep.mubr.msk.bf16.mxu0 %vm11317_vm1, %v11316_v6  ;;  %10690 = vmatpush3.bf16.msra.mxu0 %v2377_v14 }
 0xd79   :  { %v2223_v11 = vmul.f32 %v11245_v9, %v11241_v2  ;;  %2807 = vmatprep.subr.bf16.mxu0 %v9217_v29 }
 0xd7b   :  { %10687 = vmatmul.mubr.msk.f32.vlgmr.msra.gmra.mxu1 %vm337_vm3, %v2223_v11 }
 0xd7c   :  { %2784 = vmatprep.mubr.bf16.mxu1 %v11318_v60 }
 0xe37   :  { %v2293_v15 = vpop.f32.mrf.mxu0 }
 0xe39   :  { %v10683_v19 = vpop.f32.mrf.mxu0 }
 0xe3b   :  { %v2366_v20 = vpop.f32.mrf.mxu1 }
 0xe3c   :  { %v2370_v21 = vpack.c.bf16 %v2366_v20, %v2293_v15  ;;  %v9197_v20 = vld [vmem:[%s13361_s2 + $0xb] ss:$0 sm:$0xff] }
 0xe3d   :  { %v10688_v22 = vpop.f32.mrf.mxu1 }
 0xe3e   :  { %10692 = vmatmul.mubr.msk.bf16.vlgmr.msra.gmra.mxu0 %vm337_vm3, %v2370_v21  ;;  %v2475_v22 = vld [vmem:[%s13365_s6 + $0x10] sm:$0xff] }
 0xe3f   :  { %2808 = vmatpush1.bf16.msra.mxu0 %v9216_v13  ;;  %2827 = vmatprep.mubr.bf16.mxu0 %v11318_v60 }
 0xe40   :  { %2809 = vmatprep.subr.bf16.mxu0 %v9201_v56  ;;  %v9211_v56 = vcombine.high %v2479_v50, %v2487_v51 }
 0xe43   :  { %2810 = vmatpush1.bf16.msra.mxu0 %v9200_v55 }
 0xe44   :  { %2893 = vmatprep.subr.bf16.mxu0 %v9221_v1  ;;  %v10938_v1 = vld [vmem:[%s13367_s8 + $0x70] sm:$0xff]  }
 0xefe   :  { %v2413_v23 = vpop.f32.mrf.mxu0 }
 0xeff   :  { %v2420_v25 = vadd.f32 %v2413_v23, %v11696_v38  ;;  %v2483_v23 = vld [vmem:[%s13365_s6 + $0x50] sm:$0xff] }
 0xf00   :  { %v10693_v26 = vpop.f32.mrf.mxu0 }
 0xf01   :  { %v2427_v28 = vadd.f32 %v9195_v24, %v2420_v25  ;;  %v2484_v25 = vld [vmem:[%s13365_s6 + $0x58] sm:$0xff] }
 0xf02   :  { %v2416_v30 = vpop.f32.mrf.mxu0 }
 0xf03   :  { %v2421_v31 = vadd.f32 %v2416_v30, %v11703_v43  ;;  %v2429_v32 = vadd.f32 %v2427_v28, %v11425_v17 }
 0xf04   :  { %v10694_v33 = vpop.f32.mrf.mxu0 }
 0xf05   :  { %v2428_v34 = vadd.f32 %v9195_v24, %v2421_v31  ;;  %v2433_v35 = vsel %vm158_vm2, %v2429_v32, 0.0  ;;  %v2476_v24 = vld [vmem:[%s13365_s6 + $0x18] sm:$0xff]  ;;  %v9203_v31 = vcombine.high %v2475_v22, %v2483_v23  ;;  %v2493_v33 = vld [vmem:[%s13365_s6 + $0xa0] sm:$0xff] }
 0xf06   :  { %2434 = vadd.xlane.f32.xlu0 %v2433_v35  ;;  %v2494_v35 = vld [vmem:[%s13365_s6 + $0xa8] sm:$0xff] }
 0xf07   :  { %v2430_v36 = vadd.f32 %v2428_v34, %v11423_v16  ;;  %v2489_v16 = vld [vmem:[%s13365_s6 + $0x80] sm:$0xff] }
 0xf08   :  { %v9215_v46 = vcombine.high %v2489_v16, %v2497_v10  ;;  %v9214_v48 = vcombine.low %v2489_v16, %v2497_v10  ;;  %v2501_v34 = vld [vmem:[%s13365_s6 + $0xe0] sm:$0xff]  ;;  %v2495_v10 = vld [vmem:[%s13365_s6 + $0xb0] sm:$0xff] }
 0xf09   :  { %v2436_v18 = vsel %vm158_vm2, %v2430_v36, 0.0  ;;  %v9227_v29 = vcombine.high %v2495_v10, %v2503_v27 }
 0xf0a   :  { %2437 = vadd.xlane.f32.xlu1 %v2436_v18  ;;  %2764 = vmatprep.subr.bf16.mxu1 %v9215_v46  ;;  %v9202_v18 = vcombine.low %v2475_v22, %v2483_v23  ;;  %v2496_v46 = vld [vmem:[%s13365_s6 + $0xb8] sm:$0xff]  ;;  %v10954_v23 = vld [vmem:[%s13367_s8 + $0x50] sm:$0xff]  }
 0xf0b   :  { %2765 = vmatpush1.bf16.msra.mxu1 %v9214_v48  ;;  %v9229_v49 = vcombine.high %v2496_v46, %v2504_v47  ;;  %v9228_v55 = vcombine.low %v2496_v46, %v2504_v47  ;;  %v10953_v22 = vld [vmem:[%s13367_s8 + $0x98] sm:$0xff]  }
 0xf0c   :  { %2766 = vmatprep.subr.bf16.mxu1 %v9199_v52  ;;  %v2480_v52 = vld [vmem:[%s13365_s6 + $0x38] sm:$0xff] }
 0xf0d   :  { %v9213_v57 = vcombine.high %v2480_v52, %v2488_v53  ;;  %v9212_v59 = vcombine.low %v2480_v52, %v2488_v53 }
 0xf0f   :  { %2767 = vmatpush1.bf16.msra.mxu1 %v9198_v54  ;;  %v9226_v54 = vcombine.low %v2495_v10, %v2503_v27 }
 0xf10   :  { %2850 = vmatprep.subr.bf16.mxu1 %v9219_v61  ;;  %v10934_v61 = vld [vmem:[%s13367_s8 + $0x78] sm:$0xff]  }
 0xf8f   :  { %v2435_v37 = vpop.xlane.xlu0 %2434 }
 0xf90   :  { %v2440_v39 = vmul.f32 0.03125, %v2435_v37  ;;  %v9204_v37 = vcombine.low %v2476_v24, %v2484_v25 }
 0xf92   :  { %v2442_v38 = vsub.f32 %v2429_v32, %v2440_v39  ;;  %v9205_v32 = vcombine.high %v2476_v24, %v2484_v25  ;;  %v9223_v39 = vcombine.high %v2493_v33, %v2501_v34  ;;  %v10955_v24 = vld [vmem:[%s13367_s8 + $0xd0] sm:$0xff]  }
 0xf93   :  { %v2438_v40 = vpop.xlane.xlu1 %2437  ;;  %v10956_v25 = vld [vmem:[%s13367_s8 + $0x10] sm:$0xff]  }
 0xf94   :  { %v2441_v41 = vmul.f32 0.03125, %v2438_v40  ;;  %v2444_v42 = vmul.f32 %v2442_v38, %v2442_v38  ;;  %v2477_v40 = vld [vmem:[%s13365_s6 + $0x20] sm:$0xff] }
 0xf96   :  { %v2443_v44 = vsub.f32 %v2430_v36, %v2441_v41  ;;  %v2446_v43 = vsel %vm158_vm2, %v2444_v42, 0.0  ;;  %v2502_v36 = vld [vmem:[%s13365_s6 + $0xe8] sm:$0xff]  ;;  %v2485_v41 = vld [vmem:[%s13365_s6 + $0x60] sm:$0xff] }
 0xf97   :  { %2447 = vadd.xlane.f32.xlu0 %v2446_v43  ;;  %v2478_v42 = vld [vmem:[%s13365_s6 + $0x28] sm:$0xff]  ;;  %v9222_v43 = vcombine.low %v2493_v33, %v2501_v34  ;;  %v9206_v48 = vcombine.low %v2477_v40, %v2485_v41 }
 0xf98   :  { %v2445_v17 = vmul.f32 %v2443_v44, %v2443_v44  ;;  %v10960_v33 = vld [vmem:[%s13367_s8 + $0x8] sm:$0xff]  }
 0xf99   :  { %v10961_v34 = vld [vmem:[%s13367_s8 + $0x88] sm:$0xff]  }
 0xf9a   :  { %v2449_v45 = vsel %vm158_vm2, %v2445_v17, 0.0  ;;  %v9224_v17 = vcombine.low %v2494_v35, %v2502_v36 }
 0xf9b   :  { %2450 = vadd.xlane.f32.xlu1 %v2449_v45  ;;  %v9207_v45 = vcombine.high %v2477_v40, %v2485_v41  ;;  %v2509_v40 = vlaneseq }
 0xf9d   :  { %v11978_v41 = vshrl.u32 %v2509_v40, 7  ;;  %v10973_v40 = vld [vmem:[%s13367_s8 + $0x1b0] sm:$0xff]  }
 0xf9f   :  { %v12006_v51 = vsub.s32 5, %v11978_v41  ;;  %v12009_v52 = vsub.s32 7, %v11978_v41 }
0x1020   :  { %v2448_v2 = vpop.xlane.xlu0 %2447 }
0x1021   :  { %v2452_v3 = vmul.f32 0.03125, %v2448_v2  ;;  %v10939_v2 = vld [vmem:[%s13367_s8 + $0xf0] sm:$0xff]  }
0x1023   :  { %v2454_v4 = vadd.f32 1e-05, %v2452_v3  ;;  %v10940_v3 = vld [vmem:[%s13367_s8 + $0x30] sm:$0xff]  }
0x1024   :  { %v2451_v5 = vpop.xlane.xlu1 %2450 }
0x1025   :  { %11246 = vrsqrt.f32 %v2454_v4  ;;  %v2453_v7 = vmul.f32 0.03125, %v2451_v5  ;;  %v10941_v4 = vld [vmem:[%s13367_s8 + $0xb0] sm:$0xff]   ;;  %v10942_v5 = vld [vmem:[%s13367_s8 + $0x68] sm:$0xff]  }
0x1027   :  { %v2455_v8 = vadd.f32 1e-05, %v2453_v7  ;;  %v10943_v7 = vld [vmem:[%s13367_s8 + $0xe8] sm:$0xff]  }
0x1029   :  { %11248 = vrsqrt.f32 %v2455_v8  ;;  %v10944_v8 = vld [vmem:[%s13367_s8 + $0x28] sm:$0xff]  }
0x1032   :  { %v11247_v9 = vpop.eup %11246 }
0x1033   :  { %v2458_v11 = vmul.f32 %v11247_v9, %v2442_v38  ;;  %v9225_v38 = vcombine.high %v2494_v35, %v2502_v36  ;;  %v10945_v9 = vld [vmem:[%s13367_s8 + $0xa8] sm:$0xff]   ;;  %v10962_v35 = vld [vmem:[%s13367_s8 + $0x40] sm:$0xff]  }
0x1034   :  { %v10963_v36 = vld [vmem:[%s13367_s8 + $0xc0] sm:$0xff]  }
0x1035   :  { %v2464_v15 = vmul.f32 %v9196_v12, %v2458_v11  ;;  %v10946_v11 = vld [vmem:[%s13367_s8 + $0x60] sm:$0xff]  }
0x1036   :  { %v11249_v14 = vpop.eup %11248 }
0x1037   :  { %v2459_v19 = vmul.f32 %v11249_v14, %v2443_v44  ;;  %v11798_v26 = vadd.f32 %v9197_v20, %v2464_v15  ;;  %v2486_v44 = vld [vmem:[%s13365_s6 + $0x68] sm:$0xff]  ;;  %v10948_v14 = vld [vmem:[%s13367_s8 + $0x20] sm:$0xff]  }
0x1038   :  { %v9209_v16 = vcombine.high %v2478_v42, %v2486_v44  ;;  %v9208_v13 = vcombine.low %v2478_v42, %v2486_v44  ;;  %v10949_v15 = vld [vmem:[%s13367_s8 + $0xa0] sm:$0xff]   ;;  %v11981_v42 = vsub.s32 1, %v11978_v41  ;;  %v11984_v44 = vsub.s32 3, %v11978_v41 }
0x1039   :  { %v2465_v21 = vmul.f32 %v9196_v12, %v2459_v19  ;;  %v10947_v12 = vld [vmem:[%s13367_s8 + $0xe0] sm:$0xff]   ;;  %v10950_v19 = vld [vmem:[%s13367_s8 + $0x58] sm:$0xff]  }
0x103b   :  { %v11800_v28 = vadd.f32 %v9197_v20, %v2465_v21  ;;  %v10951_v20 = vld [vmem:[%s13367_s8 + $0xd8] sm:$0xff]  }
0x103c   :  { %v10952_v21 = vld [vmem:[%s13367_s8 + $0x18] sm:$0xff]  }
0x103d   :  { %v11804_v30 = vpack.c.bf16 %v11800_v28, %v11798_v26 }
0x103f   :  { %9230 = vmatmul.mubr.msk.bf16.vlgmr.msra.gmra.mxu1 %vm158_vm2, %v11804_v30  ;;  %9231 = vmatmul.mubr.msk.bf16.vlgmr.msra.gmra.mxu0 %vm158_vm2, %v11804_v30 }
0x1040   :  { %2851 = vmatpush1.bf16.msra.mxu1 %v9218_v63  ;;  %2894 = vmatpush1.bf16.msra.mxu0 %v9220_v0  ;;  %v10936_v63 = vld [vmem:[%s13367_s8 + $0x38] sm:$0xff]  }
0x1041   :  { %2852 = vmatprep.subr.bf16.mxu1 %v9203_v31  ;;  %2895 = vmatprep.subr.bf16.mxu0 %v9205_v32  ;;  %v10937_v0 = vld [vmem:[%s13367_s8 + $0xb8] sm:$0xff]   ;;  %v10958_v31 = vld [vmem:[%s13367_s8 + $0x48] sm:$0xff]  }
0x1042   :  { %2870 = vmatprep.mubr.bf16.mxu1 %v11318_v60  ;;  %2913 = vmatprep.mubr.bf16.mxu0 %v11318_v60  ;;  %v10959_v32 = vld [vmem:[%s13367_s8 + $0xc8] sm:$0xff]  }
0x1044   :  { %2853 = vmatpush1.bf16.msra.mxu1 %v9202_v18  ;;  %2896 = vmatpush1.bf16.msra.mxu0 %v9204_v37  ;;  %v10964_v18 = vld [vmem:[%s13367_s8] sm:$0xff]  }
0x1045   :  { %2936 = vmatprep.subr.bf16.mxu1 %v9223_v39  ;;  %2979 = vmatprep.subr.bf16.mxu0 %v9225_v38  ;;  %v10965_v37 = vld [vmem:[%s13367_s8 + $0x80] sm:$0xff]   ;;  %v10966_v39 = vld [vmem:[%s13367_s8 + $0x178] sm:$0xff]  }
0x1046   :  { %v10967_v38 = vld [vmem:[%s13367_s8 + $0x1f8] sm:$0xff]  }
0x1047   :  { %9232 = vmatmul.mubr.msk.bf16.vlgmr.msra.gmra.mxu1 %vm158_vm2, %v11804_v30  ;;  %9233 = vmatmul.mubr.msk.bf16.vlgmr.msra.gmra.mxu0 %vm158_vm2, %v11804_v30 }
0x1048   :  { %2937 = vmatpush1.bf16.msra.mxu1 %v9222_v43  ;;  %2980 = vmatpush1.bf16.msra.mxu0 %v9224_v17  ;;  %v11987_v43 = vsub.s32 0, %v11978_v41  ;;  %v11990_v17 = vsub.s32 2, %v11978_v41 }
0x1049   :  { %2938 = vmatprep.subr.bf16.mxu1 %v9207_v45  ;;  %2981 = vmatprep.subr.bf16.mxu0 %v9209_v16  ;;  %v11995_v45 = vld [vmem:[%s13366_s7] sm:$0xff] }
0x104a   :  { %2956 = vmatprep.mubr.bf16.mxu1 %v11318_v60  ;;  %2999 = vmatprep.mubr.bf16.mxu0 %v11318_v60  ;;  %v2516_v27 = vrot.slane %v11995_v45, %v11981_v42  ;;  %v2524_v46 = vrot.slane %v11995_v45, %v11984_v44  ;;  %v2512_v47 = vrot.slane %v11995_v45, %v11987_v43 }
0x104c   :  { %2939 = vmatpush1.bf16.msra.mxu1 %v9206_v48  ;;  %2982 = vmatpush1.bf16.msra.mxu0 %v9208_v13  ;;  %v2520_v48 = vrot.slane %v11995_v45, %v11990_v17 }
0x104d   :  { %3022 = vmatprep.subr.bf16.mxu1 %v9227_v29  ;;  %3065 = vmatprep.subr.bf16.mxu0 %v9229_v49 }
0x104f   :  { %9234 = vmatmul.mubr.msk.bf16.vlgmr.msra.gmra.mxu1 %vm158_vm2, %v11804_v30  ;;  %9235 = vmatmul.mubr.msk.bf16.vlgmr.msra.gmra.mxu0 %vm158_vm2, %v11804_v30 }
0x1050   :  { %3023 = vmatpush1.bf16.msra.mxu1 %v9226_v54  ;;  %3066 = vmatpush1.bf16.msra.mxu0 %v9228_v55 }
0x1051   :  { %3024 = vmatprep.subr.bf16.mxu1 %v9211_v56  ;;  %3067 = vmatprep.subr.bf16.mxu0 %v9213_v57 }
0x1052   :  { %3042 = vmatprep.mubr.bf16.mxu1 %v11318_v60  ;;  %3085 = vmatprep.mubr.bf16.mxu0 %v11318_v60 }
0x1054   :  { %3025 = vmatpush1.bf16.msra.mxu1 %v9210_v58  ;;  %3068 = vmatpush1.bf16.msra.mxu0 %v9212_v59 }
0x1055   :  { %10055 = vmatprep.subr.bf16.mxu1 %v10934_v61  ;;  %10077 = vmatprep.subr.bf16.mxu0 %v10935_v62 }
0x1057   :  { %9236 = vmatmul.mubr.msk.bf16.vlgmr.msra.gmra.mxu1 %vm158_vm2, %v11804_v30  ;;  %9237 = vmatmul.mubr.msk.bf16.vlgmr.msra.gmra.mxu0 %vm158_vm2, %v11804_v30  ;;  %v10957_v30 = vld [vmem:[%s13367_s8 + $0x90] sm:$0xff]  }
0x1058   :  { %10056 = vmatpush3.bf16.msra.mxu1 %v10936_v63  ;;  %10078 = vmatpush3.bf16.msra.mxu0 %v10937_v0 }
0x1059   :  { %10057 = vmatprep.subr.bf16.mxu1 %v10938_v1  ;;  %10079 = vmatprep.subr.bf16.mxu0 %v10939_v2 }
0x105c   :  { %10058 = vmatpush3.bf16.msra.mxu1 %v10940_v3  ;;  %10080 = vmatpush3.bf16.msra.mxu0 %v10941_v4  ;;  %v2532_v4 = vrot.slane %v11995_v45, %v12006_v51 }
0x105d   :  { %10059 = vmatprep.subr.bf16.mxu1 %v10942_v5  ;;  %10081 = vmatprep.subr.bf16.mxu0 %v10943_v7  ;;  %v2540_v5 = vrot.slane %v11995_v45, %v12009_v52 }
0x1060   :  { %10060 = vmatpush3.bf16.msra.mxu1 %v10944_v8  ;;  %10082 = vmatpush3.bf16.msra.mxu0 %v10945_v9 }
0x1061   :  { %10061 = vmatprep.subr.bf16.mxu1 %v10946_v11  ;;  %10083 = vmatprep.subr.bf16.mxu0 %v10947_v12 }
0x1064   :  { %10062 = vmatpush3.bf16.msra.mxu1 %v10948_v14  ;;  %10084 = vmatpush3.bf16.msra.mxu0 %v10949_v15 }
0x1065   :  { %10063 = vmatprep.subr.bf16.mxu1 %v10950_v19  ;;  %10085 = vmatprep.subr.bf16.mxu0 %v10951_v20 }
0x1068   :  { %10064 = vmatpush3.bf16.msra.mxu1 %v10952_v21  ;;  %10086 = vmatpush3.bf16.msra.mxu0 %v10953_v22  ;;  %v10968_v22 = vld [vmem:[%s13367_s8 + $0x138] sm:$0xff]  }
0x1069   :  { %10065 = vmatprep.subr.bf16.mxu1 %v10954_v23  ;;  %10087 = vmatprep.subr.bf16.mxu0 %v10955_v24  ;;  %v10969_v23 = vld [vmem:[%s13367_s8 + $0x1b8] sm:$0xff]  }
0x106c   :  { %10066 = vmatpush3.bf16.msra.mxu1 %v10956_v25  ;;  %10088 = vmatpush3.bf16.msra.mxu0 %v10957_v30 }
0x106d   :  { %10067 = vmatprep.subr.bf16.mxu1 %v10958_v31  ;;  %10089 = vmatprep.subr.bf16.mxu0 %v10959_v32  ;;  %v10970_v32 = vld [vmem:[%s13367_s8 + $0x170] sm:$0xff]  }
0x1070   :  { %10068 = vmatpush3.bf16.msra.mxu1 %v10960_v33  ;;  %10090 = vmatpush3.bf16.msra.mxu0 %v10961_v34  ;;  %v10971_v33 = vld [vmem:[%s13367_s8 + $0x1f0] sm:$0xff]  }
0x1071   :  { %10069 = vmatprep.subr.bf16.mxu1 %v10962_v35  ;;  %10091 = vmatprep.subr.bf16.mxu0 %v10963_v36 }
0x1074   :  { %10070 = vmatpush3.bf16.msra.mxu1 %v10964_v18  ;;  %10092 = vmatpush3.bf16.msra.mxu0 %v10965_v37 }
0x1075   :  { %10099 = vmatprep.subr.bf16.mxu1 %v10966_v39  ;;  %10121 = vmatprep.subr.bf16.mxu0 %v10967_v38  ;;  %v10972_v38 = vld [vmem:[%s13367_s8 + $0x130] sm:$0xff]  }
0x10ff   :  { %v2786_v16 = vpop.f32.mrf.mxu1  ;;  %v2829_v10 = vpop.f32.mrf.mxu0 }
0x1100   :  { %v2787_v57 = vadd.f32 %v2786_v16, %v2512_v47  ;;  %v2830_v58 = vadd.f32 %v2829_v10, %v2520_v48  ;;  %v10974_v16 = vld [vmem:[%s13367_s8 + $0x168] sm:$0xff]  }
0x1101   :  { %v2788_v13 = vpop.f32.mrf.mxu1  ;;  %v2831_v29 = vpop.f32.mrf.mxu0 }
0x1102   :  { %v2789_v53 = vadd.f32 %v2788_v13, %v2516_v27  ;;  %v2832_v54 = vadd.f32 %v2831_v29, %v2524_v46  ;;  %v3096_v12 = vmax.f32 %v2787_v57, 0.0  ;;  %v3098_v14 = vmax.f32 %v2830_v58, 0.0  ;;  %v10981_v58 = vld [vmem:[%s13367_s8 + $0x1a0] sm:$0xff]  }
0x1103   :  { %v2790_v49 = vpop.f32.mrf.mxu1  ;;  %v2833_v50 = vpop.f32.mrf.mxu0 }
0x1104   :  { %v2791_v55 = vadd.f32 %v2790_v49, %v2512_v47  ;;  %v2834_v56 = vadd.f32 %v2833_v50, %v2520_v48  ;;  %v3097_v7 = vmax.f32 %v2789_v53, 0.0  ;;  %v3099_v8 = vmax.f32 %v2832_v54, 0.0  ;;  %v10975_v48 = vld [vmem:[%s13367_s8 + $0x1e8] sm:$0xff]   ;;  %v10978_v53 = vld [vmem:[%s13367_s8 + $0x160] sm:$0xff]  }
0x1105   :  { %v2792_v59 = vpop.f32.mrf.mxu1  ;;  %v2835_v61 = vpop.f32.mrf.mxu0  ;;  %v10976_v49 = vld [vmem:[%s13367_s8 + $0x128] sm:$0xff]   ;;  %v10979_v54 = vld [vmem:[%s13367_s8 + $0x1e0] sm:$0xff]  }
0x1106   :  { %v2793_v62 = vadd.f32 %v2792_v59, %v2516_v27  ;;  %v2836_v63 = vadd.f32 %v2835_v61, %v2524_v46  ;;  %v3112_v0 = vmax.f32 %v2791_v55, 0.0  ;;  %v3114_v1 = vmax.f32 %v2834_v56, 0.0  ;;  %v10977_v50 = vld [vmem:[%s13367_s8 + $0x1a8] sm:$0xff]   ;;  %v10980_v56 = vld [vmem:[%s13367_s8 + $0x120] sm:$0xff]   ;;  %v10982_v59 = vld [vmem:[%s13367_s8 + $0x158] sm:$0xff]  }
0x1107   :  { %v12011_v2 = vpop.f32.mrf.mxu1  ;;  %v12013_v3 = vpop.f32.mrf.mxu0  ;;  %v10983_v61 = vld [vmem:[%s13367_s8 + $0x1d8] sm:$0xff]  }
0x1108   :  { %v3113_v9 = vmax.f32 %v2793_v62, 0.0  ;;  %v3115_v11 = vmax.f32 %v2836_v63, 0.0  ;;  %v3128_v24 = vpack.c.bf16 %v3112_v0, %v3096_v12  ;;  %v3130_v25 = vpack.c.bf16 %v3114_v1, %v3098_v14  ;;  %v10984_v63 = vld [vmem:[%s13367_s8 + $0x118] sm:$0xff]   ;;  %v10989_v14 = vld [vmem:[%s13367_s8 + $0x190] sm:$0xff]  }
0x1109   :  { %v2874_v15 = vpop.f32.mrf.mxu1  ;;  %v2917_v19 = vpop.f32.mrf.mxu0  ;;  %v10985_v1 = vld [vmem:[%s13367_s8 + $0x198] sm:$0xff]  }
0x110a   :  { %v3129_v20 = vpack.c.bf16 %v3113_v9, %v3097_v7  ;;  %v3131_v21 = vpack.c.bf16 %v3115_v11, %v3099_v8  ;;  %v2875_v34 = vadd.f32 %v2874_v15, %v2532_v4  ;;  %v2918_v35 = vadd.f32 %v2917_v19, %v2540_v5  ;;  %v10988_v11 = vld [vmem:[%s13367_s8 + $0x110] sm:$0xff]   ;;  %v10991_v15 = vld [vmem:[%s13367_s8 + $0x1c8] sm:$0xff]  }
0x110b   :  { %v12025_v30 = vpop.f32.mrf.mxu1  ;;  %v12027_v31 = vpop.f32.mrf.mxu0  ;;  %v12088_v7 = vsub.s32 4, %v11978_v41  ;;  %v12091_v8 = vsub.s32 6, %v11978_v41  ;;  %v10990_v41 = vld [vmem:[%s13367_s8 + $0x148] sm:$0xff]  }
0x110c   :  { %4205 = vmatprep.mubr.bf16.mxu1 %v3129_v20  ;;  %4246 = vmatprep.mubr.bf16.mxu0 %v3131_v21  ;;  %v3101_v10 = vmax.f32 %v2875_v34, 0.0  ;;  %v3103_v27 = vmax.f32 %v2918_v35, 0.0  ;;  %v12116_v21 = vld [vmem:[%s13366_s7 + $0x8] sm:$0xff] }
0x110d   :  { %v2878_v36 = vpop.f32.mrf.mxu1  ;;  %v2921_v18 = vpop.f32.mrf.mxu0  ;;  %4206 = vmatmul.mubr.bf16.vlgmr.msra.gmra.mxu1 %v3128_v24  ;;  %4247 = vmatmul.mubr.bf16.vlgmr.msra.gmra.mxu0 %v3130_v25  ;;  %v2528_v19 = vrot.slane %v11995_v45, %v12088_v7  ;;  %v2536_v20 = vrot.slane %v11995_v45, %v12091_v8  ;;  %v2548_v25 = vrot.slane %v12116_v21, %v11981_v42  ;;  %v10993_v45 = vld [vmem:[%s13367_s8 + $0x188] sm:$0xff]  }
0x110e   :  { %v2879_v37 = vadd.f32 %v2878_v36, %v2532_v4  ;;  %v2922_v39 = vadd.f32 %v2921_v18, %v2540_v5  ;;  %10100 = vmatpush3.bf16.msra.mxu1 %v10968_v22  ;;  %10122 = vmatpush3.bf16.msra.mxu0 %v10969_v23  ;;  %v10986_v4 = vld [vmem:[%s13367_s8 + $0x150] sm:$0xff]   ;;  %v10992_v23 = vld [vmem:[%s13367_s8 + $0x108] sm:$0xff]   ;;  %v2556_v35 = vrot.slane %v12116_v21, %v11984_v44 }
0x110f   :  { %10101 = vmatprep.subr.bf16.mxu1 %v10970_v32  ;;  %10123 = vmatprep.subr.bf16.mxu0 %v10971_v33  ;;  %v12059_v55 = vpop.f32.mrf.mxu1  ;;  %v12064_v57 = vpop.f32.mrf.mxu0  ;;  %v10987_v5 = vld [vmem:[%s13367_s8 + $0x1d0] sm:$0xff]   ;;  %v2877_v24 = vadd.f32 %v12025_v30, %v2528_v19  ;;  %v10994_v33 = vld [vmem:[%s13367_s8 + $0x140] sm:$0xff]   ;;  %v2920_v34 = vadd.f32 %v12027_v31, %v2536_v20  ;;  %v2873_v36 = vadd.f32 %v12011_v2, %v2528_v19  ;;  %v10998_v2 = vld [vmem:[%s13367_s8 + $0x278] sm:$0xff]  }
0x1110   :  { %v3117_v46 = vmax.f32 %v2879_v37, 0.0  ;;  %v3119_v47 = vmax.f32 %v2922_v39, 0.0  ;;  %v10995_v30 = vld [vmem:[%s13367_s8 + $0x1c0] sm:$0xff]   ;;  %v2916_v37 = vadd.f32 %v12013_v3, %v2536_v20 }
0x1111   :  { %v2960_v62 = vpop.f32.mrf.mxu1  ;;  %v3003_v0 = vpop.f32.mrf.mxu0  ;;  %v3116_v31 = vmax.f32 %v2877_v24, 0.0  ;;  %v11012_v19 = vld [vmem:[%s13367_s8 + $0x220] sm:$0xff]   ;;  %v11015_v24 = vld [vmem:[%s13367_s8 + $0x2d8] sm:$0xff]  }
0x1112   :  { %v3133_v13 = vpack.c.bf16 %v3117_v46, %v3101_v10  ;;  %v3135_v29 = vpack.c.bf16 %v3119_v47, %v3103_v27  ;;  %10102 = vmatpush3.bf16.msra.mxu1 %v10972_v38  ;;  %10124 = vmatpush3.bf16.msra.mxu0 %v10973_v40  ;;  %v10996_v38 = vld [vmem:[%s13367_s8 + $0x100] sm:$0xff]   ;;  %v2961_v40 = vadd.f32 %v2960_v62, %v2548_v25  ;;  %v3118_v10 = vmax.f32 %v2920_v34, 0.0  ;;  %v10999_v27 = vld [vmem:[%s13367_s8 + $0x2f8] sm:$0xff]   ;;  %v11018_v34 = vld [vmem:[%s13367_s8 + $0x250] sm:$0xff]  }
0x1113   :  { %10103 = vmatprep.subr.bf16.mxu1 %v10974_v16  ;;  %10125 = vmatprep.subr.bf16.mxu0 %v10975_v48  ;;  %v12093_v9 = vpop.f32.mrf.mxu1  ;;  %v12098_v12 = vpop.f32.mrf.mxu0  ;;  %v10997_v16 = vld [vmem:[%s13367_s8 + $0x180] sm:$0xff]   ;;  %v3004_v3 = vadd.f32 %v3003_v0, %v2556_v35  ;;  %v3100_v46 = vmax.f32 %v2873_v36, 0.0  ;;  %v3102_v48 = vmax.f32 %v2916_v37, 0.0  ;;  %v11005_v0 = vld [vmem:[%s13367_s8 + $0x2b0] sm:$0xff]  }
0x1114   :  { %4287 = vmatprep.mubr.bf16.mxu1 %v3133_v13  ;;  %4328 = vmatprep.mubr.bf16.mxu0 %v3135_v29  ;;  %v11000_v29 = vld [vmem:[%s13367_s8 + $0x238] sm:$0xff]   ;;  %v11020_v36 = vld [vmem:[%s13367_s8 + $0x210] sm:$0xff]  }
0x1115   :  { %v2964_v22 = vpop.f32.mrf.mxu1  ;;  %v3007_v32 = vpop.f32.mrf.mxu0  ;;  %v11021_v37 = vld [vmem:[%s13367_s8 + $0x290] sm:$0xff]  }
0x1116   :  { %10104 = vmatpush3.bf16.msra.mxu1 %v10976_v49  ;;  %10126 = vmatpush3.bf16.msra.mxu0 %v10977_v50  ;;  %v2965_v18 = vadd.f32 %v2964_v22, %v2548_v25  ;;  %v3008_v39 = vadd.f32 %v3007_v32, %v2556_v35  ;;  %v3132_v49 = vpack.c.bf16 %v3116_v31, %v3100_v46  ;;  %v3105_v50 = vmax.f32 %v2961_v40, 0.0  ;;  %v11013_v22 = vld [vmem:[%s13367_s8 + $0x2a0] sm:$0xff]   ;;  %v11016_v32 = vld [vmem:[%s13367_s8 + $0x218] sm:$0xff]   ;;  %v11019_v35 = vld [vmem:[%s13367_s8 + $0x2d0] sm:$0xff]  }
0x1117   :  { %10105 = vmatprep.subr.bf16.mxu1 %v10978_v53  ;;  %10127 = vmatprep.subr.bf16.mxu0 %v10979_v54  ;;  %v11001_v53 = vld [vmem:[%s13367_s8 + $0x2b8] sm:$0xff]   ;;  %v3134_v54 = vpack.c.bf16 %v3118_v10, %v3102_v48  ;;  %v12191_v20 = vpop.f32.mrf.mxu0  ;;  %v2544_v31 = vrot.slane %v12116_v21, %v11987_v43  ;;  %v2552_v40 = vrot.slane %v12116_v21, %v11990_v17  ;;  %v11025_v46 = vld [vmem:[%s13367_s8 + $0x288] sm:$0xff]  }
0x1118   :  { %v3121_v47 = vmax.f32 %v2965_v18, 0.0  ;;  %v3123_v13 = vmax.f32 %v3008_v39, 0.0  ;;  %v11022_v39 = vld [vmem:[%s13367_s8 + $0x248] sm:$0xff]  }
0x1119   :  { %v2963_v10 = vadd.f32 %v12093_v9, %v2544_v31  ;;  %v3006_v48 = vadd.f32 %v12098_v12, %v2552_v40  ;;  %v11027_v9 = vld [vmem:[%s13367_s8 + $0x2c0] sm:$0xff]  }
0x111a   :  { %10106 = vmatpush3.bf16.msra.mxu1 %v10980_v56  ;;  %10128 = vmatpush3.bf16.msra.mxu0 %v10981_v58  ;;  %v3107_v56 = vmax.f32 %v3004_v3, 0.0  ;;  %v11002_v58 = vld [vmem:[%s13367_s8 + $0x270] sm:$0xff]   ;;  %v2564_v3 = vrot.slane %v12116_v21, %v12006_v51 }
0x111b   :  { %10107 = vmatprep.subr.bf16.mxu1 %v10982_v59  ;;  %10129 = vmatprep.subr.bf16.mxu0 %v10983_v61  ;;  %v3137_v59 = vpack.c.bf16 %v3121_v47, %v3105_v50  ;;  %v11003_v61 = vld [vmem:[%s13367_s8 + $0x2f0] sm:$0xff]   ;;  %v11026_v47 = vld [vmem:[%s13367_s8 + $0x240] sm:$0xff]   ;;  %v3002_v50 = vadd.f32 %v12064_v57, %v2552_v40  ;;  %v3120_v12 = vmax.f32 %v2963_v10, 0.0  ;;  %v11046_v40 = vld [vmem:[%s13367_s8 + $0x358] sm:$0xff]  }
0x111c   :  { %v3139_v62 = vpack.c.bf16 %v3123_v13, %v3107_v56  ;;  %v2572_v13 = vrot.slane %v12116_v21, %v12009_v52  ;;  %v11049_v10 = vld [vmem:[%s13367_s8 + $0x398] sm:$0xff]  }
0x111e   :  { %10108 = vmatpush3.bf16.msra.mxu1 %v10984_v63  ;;  %10130 = vmatpush3.bf16.msra.mxu0 %v10985_v1  ;;  %v11004_v63 = vld [vmem:[%s13367_s8 + $0x230] sm:$0xff]   ;;  %v11006_v1 = vld [vmem:[%s13367_s8 + $0x268] sm:$0xff]  }
0x111f   :  { %10109 = vmatprep.subr.bf16.mxu1 %v10986_v4  ;;  %10131 = vmatprep.subr.bf16.mxu0 %v10987_v5  ;;  %v11007_v4 = vld [vmem:[%s13367_s8 + $0x2e8] sm:$0xff]  }
0x1120   :  { %v11008_v5 = vld [vmem:[%s13367_s8 + $0x228] sm:$0xff]  }
0x1122   :  { %10110 = vmatpush3.bf16.msra.mxu1 %v10988_v11  ;;  %10132 = vmatpush3.bf16.msra.mxu0 %v10989_v14  ;;  %v11009_v11 = vld [vmem:[%s13367_s8 + $0x2a8] sm:$0xff]   ;;  %v11010_v14 = vld [vmem:[%s13367_s8 + $0x260] sm:$0xff]  }
0x1123   :  { %10111 = vmatprep.subr.bf16.mxu1 %v10990_v41  ;;  %10133 = vmatprep.subr.bf16.mxu0 %v10991_v15  ;;  %v11011_v41 = vld [vmem:[%s13367_s8 + $0x2e0] sm:$0xff]   ;;  %v12186_v15 = vpop.f32.mrf.mxu1 }
0x1125   :  { %v3046_v25 = vpop.f32.mrf.mxu1 }
0x1126   :  { %10112 = vmatpush3.bf16.msra.mxu1 %v10992_v23  ;;  %10134 = vmatpush3.bf16.msra.mxu0 %v10993_v45  ;;  %v11014_v23 = vld [vmem:[%s13367_s8 + $0x258] sm:$0xff]   ;;  %v3089_v45 = vpop.f32.mrf.mxu0  ;;  %v3047_v56 = vadd.f32 %v3046_v25, %v2564_v3 }
0x1127   :  { %10113 = vmatprep.subr.bf16.mxu1 %v10994_v33  ;;  %10135 = vmatprep.subr.bf16.mxu0 %v10995_v30  ;;  %v11017_v33 = vld [vmem:[%s13367_s8 + $0x298] sm:$0xff]   ;;  %v12214_v30 = vpop.f32.mrf.mxu1  ;;  %v3090_v57 = vadd.f32 %v3089_v45, %v2572_v13  ;;  %v11037_v45 = vld [vmem:[%s13367_s8 + $0x3b0] sm:$0xff]  }
0x1128   :  { %v12219_v18 = vpop.f32.mrf.mxu0 }
0x112a   :  { %10114 = vmatpush3.bf16.msra.mxu1 %v10996_v38  ;;  %10136 = vmatpush3.bf16.msra.mxu0 %v10997_v16  ;;  %v11023_v38 = vld [vmem:[%s13367_s8 + $0x2c8] sm:$0xff]   ;;  %v3050_v16 = vpop.f32.mrf.mxu1 }
0x112b   :  { %10143 = vmatprep.subr.bf16.mxu1 %v10998_v2  ;;  %10165 = vmatprep.subr.bf16.mxu0 %v10999_v27  ;;  %v11024_v2 = vld [vmem:[%s13367_s8 + $0x208] sm:$0xff]   ;;  %v3093_v27 = vpop.f32.mrf.mxu0 }
0x112d   :  { %4288 = vmatmul.mubr.bf16.vlgmr.msra.gmra.mxu1 %v3132_v49  ;;  %4329 = vmatmul.mubr.bf16.vlgmr.msra.gmra.mxu0 %v3134_v54  ;;  %v3051_v49 = vadd.f32 %v3050_v16, %v2564_v3  ;;  %v11028_v54 = vld [vmem:[%s13367_s8 + $0x200] sm:$0xff]   ;;  %v11047_v16 = vld [vmem:[%s13367_s8 + $0x3d8] sm:$0xff]   ;;  %v11050_v3 = vld [vmem:[%s13367_s8 + $0x350] sm:$0xff]  }
0x112e   :  { %10144 = vmatpush3.bf16.msra.mxu1 %v11000_v29  ;;  %4369 = vmatprep.mubr.bf16.mxu1 %v3137_v59  ;;  %v2959_v29 = vadd.f32 %v12059_v55, %v2544_v31  ;;  %v11030_v55 = vld [vmem:[%s13367_s8 + $0x378] sm:$0xff]   ;;  %v3122_v59 = vmax.f32 %v3006_v48, 0.0  ;;  %v11045_v31 = vld [vmem:[%s13367_s8 + $0x3a0] sm:$0xff]   ;;  %v11054_v48 = vld [vmem:[%s13367_s8 + $0x348] sm:$0xff]  }
0x112f   :  { %10166 = vmatpush3.bf16.msra.mxu0 %v11001_v53  ;;  %4410 = vmatprep.mubr.bf16.mxu0 %v3139_v62  ;;  %v3094_v53 = vadd.f32 %v3093_v27, %v2572_v13  ;;  %v11051_v27 = vld [vmem:[%s13367_s8 + $0x3d0] sm:$0xff]   ;;  %v11055_v13 = vld [vmem:[%s13367_s8 + $0x3c8] sm:$0xff]  }
0x1130   :  { %10145 = vmatprep.subr.bf16.mxu1 %v11002_v58  ;;  %10167 = vmatprep.subr.bf16.mxu0 %v11003_v61  ;;  %v11029_v58 = vld [vmem:[%s13367_s8 + $0x280] sm:$0xff]   ;;  %v11031_v61 = vld [vmem:[%s13367_s8 + $0x3f8] sm:$0xff]   ;;  %v3104_v62 = vmax.f32 %v2959_v29, 0.0  ;;  %v2568_v29 = vrot.slane %v12116_v21, %v12091_v8 }
0x1132   :  { %10146 = vmatpush3.bf16.msra.mxu1 %v11004_v63  ;;  %v3125_v63 = vmax.f32 %v3051_v49, 0.0  ;;  %v11056_v49 = vld [vmem:[%s13367_s8 + $0x308] sm:$0xff]  }
0x1133   :  { %10168 = vmatpush3.bf16.msra.mxu0 %v11005_v0  ;;  %10147 = vmatprep.subr.bf16.mxu1 %v11006_v1  ;;  %v3106_v0 = vmax.f32 %v3002_v50, 0.0  ;;  %v3127_v1 = vmax.f32 %v3094_v53, 0.0  ;;  %v11057_v53 = vld [vmem:[%s13367_s8 + $0x388] sm:$0xff]  }
0x1134   :  { %10169 = vmatprep.subr.bf16.mxu0 %v11007_v4  ;;  %v11032_v4 = vld [vmem:[%s13367_s8 + $0x338] sm:$0xff]  }
0x1136   :  { %10148 = vmatpush3.bf16.msra.mxu1 %v11008_v5  ;;  %v3136_v5 = vpack.c.bf16 %v3120_v12, %v3104_v62  ;;  %v3092_v12 = vadd.f32 %v12219_v18, %v2568_v29  ;;  %v11061_v18 = vld [vmem:[%s13367_s8 + $0x380] sm:$0xff]  }
0x1137   :  { %10170 = vmatpush3.bf16.msra.mxu0 %v11009_v11  ;;  %10149 = vmatprep.subr.bf16.mxu1 %v11010_v14  ;;  %v3109_v11 = vmax.f32 %v3047_v56, 0.0  ;;  %v11033_v14 = vld [vmem:[%s13367_s8 + $0x3b8] sm:$0xff]  }
0x1138   :  { %10171 = vmatprep.subr.bf16.mxu0 %v11011_v41  ;;  %v3138_v41 = vpack.c.bf16 %v3122_v59, %v3106_v0  ;;  %v3126_v59 = vmax.f32 %v3092_v12, 0.0 }
0x113a   :  { %10150 = vmatpush3.bf16.msra.mxu1 %v11012_v19  ;;  %v3111_v19 = vmax.f32 %v3090_v57, 0.0 }
0x113b   :  { %10172 = vmatpush3.bf16.msra.mxu0 %v11013_v22  ;;  %10151 = vmatprep.subr.bf16.mxu1 %v11014_v23  ;;  %v11034_v22 = vld [vmem:[%s13367_s8 + $0x370] sm:$0xff]   ;;  %v3141_v23 = vpack.c.bf16 %v3125_v63, %v3109_v11 }
0x113c   :  { %10173 = vmatprep.subr.bf16.mxu0 %v11015_v24  ;;  %v11035_v24 = vld [vmem:[%s13367_s8 + $0x3f0] sm:$0xff]   ;;  %v3143_v25 = vpack.c.bf16 %v3127_v1, %v3111_v19 }
0x113e   :  { %10152 = vmatpush3.bf16.msra.mxu1 %v11016_v32  ;;  %v11036_v32 = vld [vmem:[%s13367_s8 + $0x330] sm:$0xff]  }
0x113f   :  { %10174 = vmatpush3.bf16.msra.mxu0 %v11017_v33  ;;  %10153 = vmatprep.subr.bf16.mxu1 %v11018_v34  ;;  %v11038_v33 = vld [vmem:[%s13367_s8 + $0x368] sm:$0xff]  }
0x1140   :  { %10175 = vmatprep.subr.bf16.mxu0 %v11019_v35  ;;  %v11039_v34 = vld [vmem:[%s13367_s8 + $0x3e8] sm:$0xff]  }
0x1141   :  { %v11040_v35 = vld [vmem:[%s13367_s8 + $0x328] sm:$0xff]  }
0x1142   :  { %10154 = vmatpush3.bf16.msra.mxu1 %v11020_v36  ;;  %v11041_v36 = vld [vmem:[%s13367_s8 + $0x3a8] sm:$0xff]  }
0x1143   :  { %10176 = vmatpush3.bf16.msra.mxu0 %v11021_v37  ;;  %10155 = vmatprep.subr.bf16.mxu1 %v11022_v39  ;;  %v11042_v37 = vld [vmem:[%s13367_s8 + $0x360] sm:$0xff]  }
0x1144   :  { %10177 = vmatprep.subr.bf16.mxu0 %v11023_v38  ;;  %v11043_v39 = vld [vmem:[%s13367_s8 + $0x3e0] sm:$0xff]  }
0x1145   :  { %v11044_v38 = vld [vmem:[%s13367_s8 + $0x320] sm:$0xff]  }
0x1146   :  { %10156 = vmatpush3.bf16.msra.mxu1 %v11024_v2  ;;  %v11048_v2 = vld [vmem:[%s13367_s8 + $0x318] sm:$0xff]  }
0x1147   :  { %10178 = vmatpush3.bf16.msra.mxu0 %v11025_v46  ;;  %10157 = vmatprep.subr.bf16.mxu1 %v11026_v47  ;;  %v11052_v46 = vld [vmem:[%s13367_s8 + $0x310] sm:$0xff]  }
0x1148   :  { %10179 = vmatprep.subr.bf16.mxu0 %v11027_v9  ;;  %v11053_v47 = vld [vmem:[%s13367_s8 + $0x390] sm:$0xff]   ;;  %v2560_v9 = vrot.slane %v12116_v21, %v12088_v7  ;;  %v11059_v21 = vld [vmem:[%s13367_s8 + $0x3c0] sm:$0xff]  }
0x114a   :  { %10158 = vmatpush3.bf16.msra.mxu1 %v11028_v54  ;;  %v3049_v50 = vadd.f32 %v12214_v30, %v2560_v9  ;;  %v11058_v54 = vld [vmem:[%s13367_s8 + $0x340] sm:$0xff]   ;;  %v3045_v56 = vadd.f32 %v12186_v15, %v2560_v9  ;;  %v3088_v30 = vadd.f32 %v12191_v20, %v2568_v29 }
0x114b   :  { %10180 = vmatpush3.bf16.msra.mxu0 %v11029_v58  ;;  %10187 = vmatprep.subr.bf16.mxu1 %v11030_v55  ;;  %v11060_v58 = vld [vmem:[%s13367_s8 + $0x300] sm:$0xff]  }
0x114c   :  { %10209 = vmatprep.subr.bf16.mxu0 %v11031_v61  ;;  %v3124_v55 = vmax.f32 %v3049_v50, 0.0  ;;  %v3108_v57 = vmax.f32 %v3045_v56, 0.0  ;;  %v3110_v61 = vmax.f32 %v3088_v30, 0.0 }
0x114d   :  { %4370 = vmatmul.mubr.bf16.vlgmr.msra.gmra.mxu1 %v3136_v5 }
0x114e   :  { %4411 = vmatmul.mubr.bf16.vlgmr.msra.gmra.mxu0 %v3138_v41  ;;  %10188 = vmatpush3.bf16.msra.mxu1 %v11032_v4  ;;  %v3140_v15 = vpack.c.bf16 %v3124_v55, %v3108_v57  ;;  %v3142_v20 = vpack.c.bf16 %v3126_v59, %v3110_v61 }
0x114f   :  { %4451 = vmatprep.mubr.bf16.mxu1 %v3141_v23  ;;  %10210 = vmatpush3.bf16.msra.mxu0 %v11033_v14 }
0x1150   :  { %4492 = vmatprep.mubr.bf16.mxu0 %v3143_v25  ;;  %10189 = vmatprep.subr.bf16.mxu1 %v11034_v22 }
0x1151   :  { %10211 = vmatprep.subr.bf16.mxu0 %v11035_v24 }
0x1152   :  { %10190 = vmatpush3.bf16.msra.mxu1 %v11036_v32 }
0x1153   :  { %10212 = vmatpush3.bf16.msra.mxu0 %v11037_v45  ;;  %10191 = vmatprep.subr.bf16.mxu1 %v11038_v33  ;;  %v9238_v33 = vld [vmem:[%s13361_s2 + $0xc] ss:$0 sm:$0xff] }
0x1154   :  { %10213 = vmatprep.subr.bf16.mxu0 %v11039_v34 }
0x1156   :  { %10192 = vmatpush3.bf16.msra.mxu1 %v11040_v35 }
0x1157   :  { %10214 = vmatpush3.bf16.msra.mxu0 %v11041_v36  ;;  %10193 = vmatprep.subr.bf16.mxu1 %v11042_v37 }
0x1158   :  { %10215 = vmatprep.subr.bf16.mxu0 %v11043_v39 }
0x115a   :  { %10194 = vmatpush3.bf16.msra.mxu1 %v11044_v38 }
0x115b   :  { %10216 = vmatpush3.bf16.msra.mxu0 %v11045_v31  ;;  %10195 = vmatprep.subr.bf16.mxu1 %v11046_v40 }
0x115c   :  { %10217 = vmatprep.subr.bf16.mxu0 %v11047_v16 }
0x115e   :  { %10196 = vmatpush3.bf16.msra.mxu1 %v11048_v2 }
0x115f   :  { %10218 = vmatpush3.bf16.msra.mxu0 %v11049_v10  ;;  %10197 = vmatprep.subr.bf16.mxu1 %v11050_v3 }
0x1160   :  { %10219 = vmatprep.subr.bf16.mxu0 %v11051_v27 }
0x1162   :  { %10198 = vmatpush3.bf16.msra.mxu1 %v11052_v46 }
0x1163   :  { %10220 = vmatpush3.bf16.msra.mxu0 %v11053_v47  ;;  %10199 = vmatprep.subr.bf16.mxu1 %v11054_v48 }
0x1164   :  { %10221 = vmatprep.subr.bf16.mxu0 %v11055_v13 }
0x1166   :  { %10200 = vmatpush3.bf16.msra.mxu1 %v11056_v49 }
0x1167   :  { %10222 = vmatpush3.bf16.msra.mxu0 %v11057_v53  ;;  %10201 = vmatprep.subr.bf16.mxu1 %v11058_v54 }
0x1168   :  { %10223 = vmatprep.subr.bf16.mxu0 %v11059_v21 }
0x116a   :  { %10202 = vmatpush3.bf16.msra.mxu1 %v11060_v58 }
0x116b   :  { %10224 = vmatpush3.bf16.msra.mxu0 %v11061_v18  ;;  %10695 = vmatprep.subr.bf16.mxu1 %v11316_v6 }
0x116c   :  { %10703 = vmatprep.subr.bf16.mxu0 %v11316_v6 }
0x116d   :  { %4452 = vmatmul.mubr.bf16.vlgmr.msra.gmra.mxu1 %v3140_v15 }
0x116e   :  { %4493 = vmatmul.mubr.bf16.vlgmr.msra.gmra.mxu0 %v3142_v20  ;;  %10699 = vmatprep.mubr.msk.bf16.mxu1 %vm11317_vm1, %v11316_v6 }
0x116f   :  { %10707 = vmatprep.mubr.msk.bf16.mxu0 %vm11317_vm1, %v11316_v6 }
0x11cd   :  { %v10071_v62 = vpop.f32.mrf.mxu1  ;;  %v10093_v63 = vpop.f32.mrf.mxu0 }
0x11cf   :  { %v10072_v0 = vpop.f32.mrf.mxu1  ;;  %v10094_v1 = vpop.f32.mrf.mxu0 }
0x11d0   :  { %v10073_v45 = vadd.f32 %v10072_v0, %v10071_v62  ;;  %v10095_v31 = vadd.f32 %v10094_v1, %v10093_v63 }
0x11d1   :  { %v10074_v4 = vpop.f32.mrf.mxu1  ;;  %v10096_v5 = vpop.f32.mrf.mxu0 }
0x11d2   :  { %v4208_v36 = vadd.f32 %v10073_v45, %v9238_v33 }
0x11d3   :  { %v10075_v11 = vpop.f32.mrf.mxu1  ;;  %v10097_v41 = vpop.f32.mrf.mxu0 }
0x11d4   :  { %v10076_v37 = vadd.f32 %v10075_v11, %v10074_v4  ;;  %v4249_v16 = vadd.f32 %v10095_v31, %v4208_v36  ;;  %v10098_v27 = vadd.f32 %v10097_v41, %v10096_v5 }
0x11d6   :  { %v4211_v2 = vadd.f32 %v10076_v37, %v9238_v33 }
0x11d8   :  { %v4252_v48 = vadd.f32 %v10098_v27, %v4211_v2  ;;  %v11063_v2 = vld [vmem:[%s13362_s3 + $0x108] sm:$0xff]  }
0x11d9   :  { %10704 = vmatpush3.bf16.msra.mxu0 %v11063_v2 }
0x11da   :  { %10705 = vmatprep.subr.bf16.mxu0 %v11316_v6 }
0x11ed   :  { %v10115_v14 = vpop.f32.mrf.mxu1  ;;  %v10137_v19 = vpop.f32.mrf.mxu0 }
0x11ef   :  { %v10116_v22 = vpop.f32.mrf.mxu1  ;;  %v10138_v23 = vpop.f32.mrf.mxu0 }
0x11f0   :  { %v10117_v40 = vadd.f32 %v10116_v22, %v10115_v14  ;;  %v10139_v13 = vadd.f32 %v10138_v23, %v10137_v19 }
0x11f1   :  { %v10118_v24 = vpop.f32.mrf.mxu1  ;;  %v10140_v25 = vpop.f32.mrf.mxu0 }
0x11f2   :  { %v4290_v46 = vadd.f32 %v10117_v40, %v4249_v16 }
0x11f3   :  { %v10119_v32 = vpop.f32.mrf.mxu1  ;;  %v10141_v35 = vpop.f32.mrf.mxu0 }
0x11f4   :  { %v10120_v47 = vadd.f32 %v10119_v32, %v10118_v24  ;;  %v4331_v50 = vadd.f32 %v10139_v13, %v4290_v46  ;;  %v10142_v54 = vadd.f32 %v10141_v35, %v10140_v25 }
0x11f6   :  { %v4293_v53 = vadd.f32 %v10120_v47, %v4252_v48 }
0x11f8   :  { %v4334_v58 = vadd.f32 %v10142_v54, %v4293_v53 }
0x120d   :  { %v10159_v34 = vpop.f32.mrf.mxu1 }
0x120e   :  { %v10181_v39 = vpop.f32.mrf.mxu0 }
0x120f   :  { %v10160_v38 = vpop.f32.mrf.mxu1 }
0x1210   :  { %v10182_v10 = vpop.f32.mrf.mxu0  ;;  %v10161_v9 = vadd.f32 %v10160_v38, %v10159_v34 }
0x1211   :  { %v10162_v3 = vpop.f32.mrf.mxu1  ;;  %v10183_v55 = vadd.f32 %v10182_v10, %v10181_v39  ;;  %v11064_v10 = vld [vmem:[%s13362_s3 + $0xc0] sm:$0xff]  }
0x1212   :  { %v10184_v29 = vpop.f32.mrf.mxu0  ;;  %v4372_v12 = vadd.f32 %v10161_v9, %v4331_v50  ;;  %v9367_v50 = vld [vmem:[%s13361_s2 + $0xd] ss:$0 sm:$0xff] }
0x1213   :  { %v10163_v49 = vpop.f32.mrf.mxu1 }
0x1214   :  { %v10164_v21 = vadd.f32 %v10163_v49, %v10162_v3  ;;  %v10185_v56 = vpop.f32.mrf.mxu0  ;;  %v4413_v57 = vadd.f32 %v10183_v55, %v4372_v12  ;;  %v11065_v3 = vld [vmem:[%s13362_s3 + $0x100] sm:$0xff]   ;;  %v11066_v55 = vld [vmem:[%s13362_s3 + $0x148] sm:$0xff]  }
0x1215   :  { %v10186_v63 = vadd.f32 %v10185_v56, %v10184_v29  ;;  %10706 = vmatpush3.bf16.msra.mxu0 %v11065_v3 }
0x1216   :  { %v4375_v61 = vadd.f32 %v10164_v21, %v4334_v58  ;;  %10719 = vmatprep.subr.mxu0 %v11316_v6  ;;  %v9368_v21 = vld [vmem:[%s13361_s2 + $0xe] ss:$0 sm:$0xff] }
0x1218   :  { %v4416_v11 = vadd.f32 %v10186_v63, %v4375_v61  ;;  %v9383_v61 = vld [vmem:[%s13363_s4 + $0x10] ss:$0 sm:$0xff] }
0x122d   :  { %v10203_v30 = vpop.f32.mrf.mxu1 }
0x122e   :  { %v10225_v18 = vpop.f32.mrf.mxu0 }
0x122f   :  { %v10204_v59 = vpop.f32.mrf.mxu1 }
0x1230   :  { %v10205_v15 = vadd.f32 %v10204_v59, %v10203_v30  ;;  %v10226_v20 = vpop.f32.mrf.mxu0  ;;  %v11067_v59 = vld [vmem:[%s13362_s3 + $0x140] sm:$0xff]  }
0x1231   :  { %v10206_v62 = vpop.f32.mrf.mxu1  ;;  %v10227_v1 = vadd.f32 %v10226_v20, %v10225_v18 }
0x1232   :  { %v4454_v0 = vadd.f32 %v10205_v15, %v4413_v57  ;;  %v10228_v4 = vpop.f32.mrf.mxu0  ;;  %v9374_v57 = vld [vmem:[%s13363_s4 + $0xc] ss:$0 sm:$0xff] }
0x1233   :  { %v10207_v5 = vpop.f32.mrf.mxu1 }
0x1234   :  { %v4495_v14 = vadd.f32 %v10227_v1, %v4454_v0  ;;  %v10208_v41 = vadd.f32 %v10207_v5, %v10206_v62  ;;  %v10229_v19 = vpop.f32.mrf.mxu0 }
0x1235   :  { %v10230_v23 = vadd.f32 %v10229_v19, %v10228_v4 }
0x1236   :  { %v4457_v22 = vadd.f32 %v10208_v41, %v4416_v11  ;;  %v4501_v24 = vadd.f32 %v4495_v14, %v11798_v26 }
0x1238   :  { %v4498_v25 = vadd.f32 %v10230_v23, %v4457_v22  ;;  %v4505_v32 = vsel %vm158_vm2, %v4501_v24, 0.0  ;;  %v9392_v23 = vld [vmem:[%s13363_s4 + $0x14] ss:$0 sm:$0xff] }
0x1239   :  { %4506 = vadd.xlane.f32.xlu0 %v4505_v32 }
0x123a   :  { %v4502_v45 = vadd.f32 %v4498_v25, %v11800_v28  ;;  %v11062_v28 = vld [vmem:[%s13362_s3 + $0xc8] sm:$0xff]  }
0x123b   :  { %10696 = vmatpush3.bf16.msra.mxu1 %v11062_v28 }
0x123c   :  { %v4508_v33 = vsel %vm158_vm2, %v4502_v45, 0.0  ;;  %10697 = vmatprep.subr.bf16.mxu1 %v11316_v6 }
0x123d   :  { %4509 = vadd.xlane.f32.xlu1 %v4508_v33 }
0x123f   :  { %10698 = vmatpush3.bf16.msra.mxu1 %v11064_v10 }
0x1240   :  { %10711 = vmatprep.subr.bf16.mxu1 %v11316_v6 }
0x12c2   :  { %v4507_v34 = vpop.xlane.xlu0 %4506 }
0x12c3   :  { %v4511_v35 = vmul.f32 0.03125, %v4507_v34 }
0x12c5   :  { %v4513_v36 = vsub.f32 %v4501_v24, %v4511_v35 }
0x12c6   :  { %v4510_v37 = vpop.xlane.xlu1 %4509 }
0x12c7   :  { %v4512_v39 = vmul.f32 0.03125, %v4510_v37  ;;  %v4515_v38 = vmul.f32 %v4513_v36, %v4513_v36 }
0x12c9   :  { %v4514_v31 = vsub.f32 %v4502_v45, %v4512_v39  ;;  %v4517_v40 = vsel %vm158_vm2, %v4515_v38, 0.0 }
0x12ca   :  { %4518 = vadd.xlane.f32.xlu0 %v4517_v40 }
0x12cb   :  { %v4516_v26 = vmul.f32 %v4514_v31, %v4514_v31 }
0x12cd   :  { %v4520_v16 = vsel %vm158_vm2, %v4516_v26, 0.0 }
0x12ce   :  { %4521 = vadd.xlane.f32.xlu1 %v4520_v16 }
0x1353   :  { %v4519_v27 = vpop.xlane.xlu0 %4518 }
0x1354   :  { %v4523_v46 = vmul.f32 0.03125, %v4519_v27 }
0x1356   :  { %v4525_v47 = vadd.f32 1e-05, %v4523_v46 }
0x1357   :  { %v4522_v48 = vpop.xlane.xlu1 %4521 }
0x1358   :  { %11250 = vrsqrt.f32 %v4525_v47  ;;  %v4524_v13 = vmul.f32 0.03125, %v4522_v48 }
0x135a   :  { %v4526_v9 = vadd.f32 1e-05, %v4524_v13 }
0x135c   :  { %11252 = vrsqrt.f32 %v4526_v9 }
0x1365   :  { %v11251_v29 = vpop.eup %11250 }
0x1366   :  { %v4529_v49 = vmul.f32 %v11251_v29, %v4513_v36 }
0x1368   :  { %v4535_v54 = vmul.f32 %v9367_v50, %v4529_v49  ;;  %v11068_v49 = vld [vmem:[%s13362_s3 + $0xd8] sm:$0xff]  }
0x1369   :  { %v11253_v53 = vpop.eup %11252 }
0x136a   :  { %v4530_v12 = vmul.f32 %v11253_v53, %v4514_v31  ;;  %v12401_v30 = vadd.f32 %v9368_v21, %v4535_v54  ;;  %v11069_v54 = vld [vmem:[%s13362_s3 + $0xd0] sm:$0xff]  }
0x136c   :  { %v4536_v56 = vmul.f32 %v9367_v50, %v4530_v12  ;;  %v11070_v12 = vld [vmem:[%s13362_s3 + $0x118] sm:$0xff]  }
0x136e   :  { %v12403_v58 = vadd.f32 %v9368_v21, %v4536_v56  ;;  %v11071_v56 = vld [vmem:[%s13362_s3 + $0x110] sm:$0xff]  }
0x1370   :  { %v12410_v18 = vpack.c.bf16 %v12403_v58, %v12401_v30 }
0x1372   :  { %10700 = vmatmul.mubr.msk.bf16.vlgmr.msra.gmra.mxu1 %vm158_vm2, %v12410_v18  ;;  %10708 = vmatmul.mubr.msk.bf16.vlgmr.msra.gmra.mxu0 %vm158_vm2, %v12410_v18 }
0x1373   :  { %10712 = vmatpush3.bf16.msra.mxu1 %v11066_v55  ;;  %10715 = vmatprep.mubr.msk.bf16.mxu1 %vm11317_vm1, %v11316_v6  ;;  %v11072_v55 = vld [vmem:[%s13362_s3 + $0x158] sm:$0xff]  }
0x1374   :  { %10713 = vmatprep.subr.bf16.mxu1 %v11316_v6  ;;  %10721 = vmatprep.mubr.msk.f32.mxu0 %vm11317_vm1, %v11316_v6 }
0x1377   :  { %10714 = vmatpush3.bf16.msra.mxu1 %v11067_v59  ;;  %v11073_v59 = vld [vmem:[%s13362_s3 + $0x150] sm:$0xff]  }
0x1378   :  { %10729 = vmatprep.subr.mxu1 %v11316_v6 }
0x137a   :  { %10716 = vmatmul.mubr.msk.bf16.vlgmr.msra.gmra.mxu1 %vm158_vm2, %v12410_v18 }
0x137b   :  { %10731 = vmatprep.mubr.msk.f32.mxu1 %vm11317_vm1, %v11316_v6 }
0x1432   :  { %v4606_v15 = vpop.f32.mrf.mxu1  ;;  %v4674_v20 = vpop.f32.mrf.mxu0 }
0x1433   :  { %v4607_v62 = vadd.f32 %v9374_v57, %v4606_v15  ;;  %v4675_v63 = vadd.f32 %v9383_v61, %v4674_v20 }
0x1434   :  { %v10701_v0 = vpop.f32.mrf.mxu1  ;;  %v10709_v1 = vpop.f32.mrf.mxu0 }
0x1435   :  { %v4613_v4 = vmul.f32 0.35355338, %v4607_v62  ;;  %10720 = vmatpush3.xpose.msk.msra.mxu0 %vm337_vm3, %v4675_v63  ;;  %v9408_v0 = vld [vmem:[%s13363_s4 + $0xd] ss:$0 sm:$0xff] }
0x1436   :  { %v4609_v5 = vpop.f32.mrf.mxu1  ;;  %v4677_v11 = vpop.f32.mrf.mxu0  ;;  %10724 = vmatprep.subr.mxu0 %v11316_v6 }
0x1437   :  { %v4610_v14 = vadd.f32 %v9374_v57, %v4609_v5  ;;  %v4678_v41 = vadd.f32 %v9383_v61, %v4677_v11 }
0x1438   :  { %v10702_v19 = vpop.f32.mrf.mxu1  ;;  %v10710_v22 = vpop.f32.mrf.mxu0  ;;  %10722 = vmatmul.mubr.msk.f32.vlgmr.msra.gmra.mxu0 %vm337_vm3, %v4613_v4  ;;  %v9417_v4 = vld [vmem:[%s13363_s4 + $0x11] ss:$0 sm:$0xff] }
0x1439   :  { %v4614_v24 = vmul.f32 0.35355338, %v4610_v14  ;;  %10725 = vmatpush3.xpose.msk.msra.mxu0 %vm337_vm3, %v4678_v41  ;;  %10726 = vmatprep.mubr.msk.f32.mxu0 %vm11317_vm1, %v11316_v6 }
0x143a   :  { %v4740_v25 = vpop.f32.mrf.mxu1  ;;  %10734 = vmatprep.subr.mxu0 %v11316_v6 }
0x143b   :  { %v4741_v32 = vadd.f32 %v9392_v23, %v4740_v25 }
0x143c   :  { %v10717_v45 = vpop.f32.mrf.mxu1  ;;  %10727 = vmatmul.mubr.msk.f32.vlgmr.msra.gmra.mxu0 %vm337_vm3, %v4614_v24 }
0x143d   :  { %10730 = vmatpush3.msra.mxu1 %v4741_v32  ;;  %10736 = vmatprep.mubr.msk.f32.mxu0 %vm11317_vm1, %v11316_v6 }
0x143e   :  { %v4743_v33 = vpop.f32.mrf.mxu1  ;;  %10739 = vmatprep.subr.bf16.mxu1 %v11316_v6 }
0x143f   :  { %v4744_v34 = vadd.f32 %v9392_v23, %v4743_v33  ;;  %v9426_v23 = vld [vmem:[%s13363_s4 + $0x15] ss:$0 sm:$0xff] }
0x1440   :  { %v10718_v35 = vpop.f32.mrf.mxu1 }
0x1441   :  { %10735 = vmatpush3.msra.mxu0 %v4744_v34 }
0x1442   :  { %10747 = vmatprep.subr.bf16.mxu0 %v11316_v6 }
0x14f8   :  { %v4819_v36 = vpop.f32.mrf.mxu0 }
0x14f9   :  { %v4899_v37 = vsel %vm337_vm3, %v4819_v36, -inf }
0x14fa   :  { %4900 = vmax.xlane.f32.xlu1 %v4899_v37  ;;  %v10723_v39 = vpop.f32.mrf.mxu0 }
0x14fc   :  { %v4895_v38 = vpop.f32.mrf.mxu0 }
0x14fd   :  { %v4902_v31 = vsel %vm337_vm3, %v4895_v38, -inf }
0x14fe   :  { %4903 = vmax.xlane.f32.xlu0 %v4902_v31  ;;  %v10728_v40 = vpop.f32.mrf.mxu0 }
0x1583   :  { %v4901_v26 = vpop.xlane.xlu1 %4900 }
0x1584   :  { %v4905_v16 = vsub.f32 %v4819_v36, %v4901_v26 }
0x1586   :  { %v4907_v28 = vmul.f32 1.442695, %v4905_v16 }
0x1587   :  { %v4904_v2 = vpop.xlane.xlu0 %4903 }
0x1588   :  { %11254 = vpow2.f32 %v4907_v28  ;;  %v4906_v10 = vsub.f32 %v4895_v38, %v4904_v2 }
0x158a   :  { %v4909_v3 = vmul.f32 1.442695, %v4906_v10 }
0x158c   :  { %11256 = vpow2.f32 %v4909_v3 }
0x1595   :  { %v11255_v27 = vpop.eup %11254 }
0x1596   :  { %v4911_v46 = vsel %vm337_vm3, %v11255_v27, 0.0 }
0x1597   :  { %4912 = vadd.xlane.f32.xlu1 %v4911_v46 }
0x1599   :  { %v11257_v47 = vpop.eup %11256 }
0x159a   :  { %v4914_v48 = vsel %vm337_vm3, %v11257_v47, 0.0 }
0x159b   :  { %4915 = vadd.xlane.f32.xlu0 %v4914_v48 }
0x1620   :  { %v4913_v13 = vpop.xlane.xlu1 %4912 }
0x1621   :  { %11258 = vrcp.f32 %v4913_v13 }
0x1624   :  { %v4916_v9 = vpop.xlane.xlu0 %4915 }
0x1625   :  { %11260 = vrcp.f32 %v4916_v9 }
0x162e   :  { %v11259_v29 = vpop.eup %11258 }
0x162f   :  { %v4919_v50 = vmul.f32 %v11259_v29, %v11255_v27 }
0x1631   :  { %10732 = vmatmul.mubr.msk.f32.vlgmr.msra.gmra.mxu1 %vm337_vm3, %v4919_v50 }
0x1632   :  { %v11261_v53 = vpop.eup %11260  ;;  %10740 = vmatpush3.bf16.msra.mxu1 %v11068_v49  ;;  %10743 = vmatprep.mubr.msk.bf16.mxu1 %vm11317_vm1, %v11316_v6 }
0x1633   :  { %10741 = vmatprep.subr.bf16.mxu1 %v11316_v6  ;;  %v4920_v21 = vmul.f32 %v11261_v53, %v11257_v47 }
0x1635   :  { %10737 = vmatmul.mubr.msk.f32.vlgmr.msra.gmra.mxu0 %vm337_vm3, %v4920_v21 }
0x1636   :  { %10742 = vmatpush3.bf16.msra.mxu1 %v11069_v54  ;;  %10748 = vmatpush3.bf16.msra.mxu0 %v11070_v12 }
0x1637   :  { %10749 = vmatprep.subr.bf16.mxu0 %v11316_v6  ;;  %10755 = vmatprep.subr.bf16.mxu1 %v11316_v6 }
0x1638   :  { %10751 = vmatprep.mubr.msk.bf16.mxu0 %vm11317_vm1, %v11316_v6 }
0x1639   :  { %10744 = vmatmul.mubr.msk.bf16.vlgmr.msra.gmra.mxu1 %vm158_vm2, %v12410_v18 }
0x163a   :  { %10750 = vmatpush3.bf16.msra.mxu0 %v11071_v56  ;;  %10756 = vmatpush3.bf16.msra.mxu1 %v11072_v55  ;;  %v9402_v56 = vld [vmem:[%s13364_s5 + $0x10] sm:$0xf] }
0x163b   :  { %10757 = vmatprep.subr.bf16.mxu1 %v11316_v6  ;;  %10759 = vmatprep.mubr.msk.bf16.mxu1 %vm11317_vm1, %v11316_v6 }
0x163c   :  { %10763 = vmatprep.subr.mxu0 %v11316_v6 }
0x163d   :  { %10752 = vmatmul.mubr.msk.bf16.vlgmr.msra.gmra.mxu0 %vm158_vm2, %v12410_v18 }
0x163e   :  { %10758 = vmatpush3.bf16.msra.mxu1 %v11073_v59  ;;  %10765 = vmatprep.mubr.msk.f32.mxu0 %vm11317_vm1, %v11316_v6 }
0x163f   :  { %10773 = vmatprep.subr.mxu1 %v11316_v6 }
0x1641   :  { %10760 = vmatmul.mubr.msk.bf16.vlgmr.msra.gmra.mxu1 %vm158_vm2, %v12410_v18 }
0x1642   :  { %10775 = vmatprep.mubr.msk.f32.mxu1 %vm11317_vm1, %v11316_v6 }
0x16f1   :  { %v12496_v57 = vpop.f32.mrf.mxu1 }
0x16f3   :  { %v10733_v61 = vpop.f32.mrf.mxu1 }
0x16f4   :  { %v5644_v61 = vsel %vm1186_vm4, %v9402_v56, 0 }
0x16f5   :  { %v12498_v15 = vpop.f32.mrf.mxu0 }
0x16f6   :  { %v5067_v20 = vpack.c.bf16 %v12498_v15, %v12496_v57  ;;  %v9436_v57 = vld [vmem:[%s13364_s5 + $0x14] sm:$0xf] }
0x16f7   :  { %v10738_v62 = vpop.f32.mrf.mxu0  ;;  %v5597_v15 = vsel %vm1186_vm4, %v9436_v57, 0 }
0x16f8   :  { %v11074_v62 = vld [vmem:[%s13362_s3 + $0x128] sm:$0xff]  }
0x16f9   :  { %v5129_v63 = vpop.f32.mrf.mxu1 }
0x16fa   :  { %v5130_v5 = vadd.f32 %v9408_v0, %v5129_v63  ;;  %v11075_v63 = vld [vmem:[%s13362_s3 + $0x120] sm:$0xff]  }
0x16fb   :  { %v10745_v1 = vpop.f32.mrf.mxu1 }
0x16fc   :  { %v5136_v24 = vmul.f32 0.35355338, %v5130_v5 }
0x16fd   :  { %v5132_v11 = vpop.f32.mrf.mxu1  ;;  %v5197_v14 = vpop.f32.mrf.mxu0 }
0x16fe   :  { %v5198_v41 = vadd.f32 %v9417_v4, %v5197_v14  ;;  %v5133_v25 = vadd.f32 %v9408_v0, %v5132_v11 }
0x16ff   :  { %v10746_v19 = vpop.f32.mrf.mxu1  ;;  %v10753_v22 = vpop.f32.mrf.mxu0 }
0x1700   :  { %10764 = vmatpush3.xpose.msk.msra.mxu0 %vm337_vm3, %v5198_v41  ;;  %v5137_v37 = vmul.f32 0.35355338, %v5133_v25  ;;  %v11077_v41 = vld [vmem:[%s13362_s3 + $0xe0] sm:$0xff]   ;;  %v9453_v25 = vld [vmem:[%s13363_s4 + $0x12] ss:$0 sm:$0xff] }
0x1701   :  { %v5200_v32 = vpop.f32.mrf.mxu0  ;;  %v5263_v45 = vpop.f32.mrf.mxu1  ;;  %10768 = vmatprep.subr.mxu0 %v11316_v6 }
0x1702   :  { %v5201_v33 = vadd.f32 %v9417_v4, %v5200_v32  ;;  %v5264_v34 = vadd.f32 %v9426_v23, %v5263_v45  ;;  %v11076_v4 = vld [vmem:[%s13362_s3 + $0xe8] sm:$0xff]   ;;  %v11079_v45 = vld [vmem:[%s13362_s3 + $0x160] sm:$0xff]  }
0x1703   :  { %v10754_v35 = vpop.f32.mrf.mxu0  ;;  %v10761_v36 = vpop.f32.mrf.mxu1  ;;  %10766 = vmatmul.mubr.msk.f32.vlgmr.msra.gmra.mxu0 %vm337_vm3, %v5136_v24 }
0x1704   :  { %10769 = vmatpush3.xpose.msk.msra.mxu0 %vm337_vm3, %v5201_v33  ;;  %10774 = vmatpush3.msra.mxu1 %v5264_v34 }
0x1705   :  { %v5266_v39 = vpop.f32.mrf.mxu1  ;;  %10770 = vmatprep.mubr.msk.f32.mxu0 %vm11317_vm1, %v11316_v6  ;;  %10778 = vmatprep.subr.mxu0 %v11316_v6 }
0x1706   :  { %v5267_v38 = vadd.f32 %v9426_v23, %v5266_v39  ;;  %10783 = vmatprep.subr.bf16.mxu1 %v11316_v6  ;;  %v11078_v23 = vld [vmem:[%s13362_s3 + $0x168] sm:$0xff]  }
0x1707   :  { %v10762_v31 = vpop.f32.mrf.mxu1  ;;  %10771 = vmatmul.mubr.msk.f32.vlgmr.msra.gmra.mxu0 %vm337_vm3, %v5137_v37 }
0x1708   :  { %10779 = vmatpush3.msra.mxu0 %v5267_v38  ;;  %10780 = vmatprep.mubr.msk.f32.mxu0 %vm11317_vm1, %v11316_v6 }
0x1709   :  { %10789 = vmatprep.subr.bf16.mxu0 %v11316_v6 }
0x17c3   :  { %v5342_v40 = vpop.f32.mrf.mxu0 }
0x17c4   :  { %v5422_v26 = vsel %vm337_vm3, %v5342_v40, -inf }
0x17c5   :  { %5423 = vmax.xlane.f32.xlu0 %v5422_v26  ;;  %v10767_v16 = vpop.f32.mrf.mxu0  ;;  %v9444_v26 = vld [vmem:[%s13363_s4 + $0xe] ss:$0 sm:$0xff] }
0x17c7   :  { %v5418_v28 = vpop.f32.mrf.mxu0 }
0x17c8   :  { %v5425_v2 = vsel %vm337_vm3, %v5418_v28, -inf }
0x17c9   :  { %5426 = vmax.xlane.f32.xlu1 %v5425_v2  ;;  %v10772_v10 = vpop.f32.mrf.mxu0 }
0x184e   :  { %v5424_v3 = vpop.xlane.xlu0 %5423 }
0x184f   :  { %v5428_v27 = vsub.f32 %v5342_v40, %v5424_v3 }
0x1851   :  { %v5430_v46 = vmul.f32 1.442695, %v5428_v27 }
0x1852   :  { %v5427_v47 = vpop.xlane.xlu1 %5426 }
0x1853   :  { %11262 = vpow2.f32 %v5430_v46  ;;  %v5429_v48 = vsub.f32 %v5418_v28, %v5427_v47  ;;  %v9462_v47 = vld [vmem:[%s13363_s4 + $0x16] ss:$0 sm:$0xff] }
0x1855   :  { %v5432_v13 = vmul.f32 1.442695, %v5429_v48 }
0x1857   :  { %11264 = vpow2.f32 %v5432_v13 }
0x1860   :  { %v11263_v9 = vpop.eup %11262 }
0x1861   :  { %v5434_v29 = vsel %vm337_vm3, %v11263_v9, 0.0 }
0x1862   :  { %5435 = vadd.xlane.f32.xlu0 %v5434_v29 }
0x1864   :  { %v11265_v49 = vpop.eup %11264 }
0x1865   :  { %v5437_v50 = vsel %vm337_vm3, %v11265_v49, 0.0 }
0x1866   :  { %5438 = vadd.xlane.f32.xlu1 %v5437_v50 }
0x18eb   :  { %v5436_v53 = vpop.xlane.xlu0 %5435 }
0x18ec   :  { %11266 = vrcp.f32 %v5436_v53 }
0x18ef   :  { %v5439_v54 = vpop.xlane.xlu1 %5438 }
0x18f0   :  { %11268 = vrcp.f32 %v5439_v54 }
0x18f9   :  { %v11267_v12 = vpop.eup %11266 }
0x18fa   :  { %v5442_v21 = vmul.f32 %v11267_v12, %v11263_v9 }
0x18fc   :  { %10776 = vmatmul.mubr.msk.f32.vlgmr.msra.gmra.mxu1 %vm337_vm3, %v5442_v21 }
0x18fd   :  { %v11269_v55 = vpop.eup %11268  ;;  %10785 = vmatprep.mubr.msk.bf16.mxu1 %vm11317_vm1, %v11316_v6  ;;  %10784 = vmatpush3.bf16.msra.mxu1 %v5597_v15 }
0x18fe   :  { %v5443_v59 = vmul.f32 %v11269_v55, %v11265_v49  ;;  %10795 = vmatprep.subr.bf16.mxu1 %v11316_v6 }
0x1900   :  { %10781 = vmatmul.mubr.msk.f32.vlgmr.msra.gmra.mxu0 %vm337_vm3, %v5443_v59 }
0x1901   :  { %10790 = vmatpush3.bf16.msra.mxu0 %v5644_v61  ;;  %10791 = vmatprep.mubr.msk.bf16.mxu0 %vm11317_vm1, %v11316_v6 }
0x1902   :  { %10803 = vmatprep.subr.bf16.mxu0 %v11316_v6 }
0x1904   :  { %10792 = vmatmul.mubr.msk.bf16.vlgmr.msra.gmra.mxu0 %vm337_vm3, %v5067_v20 }
0x1905   :  { %10804 = vmatpush3.bf16.msra.mxu0 %v11074_v62  ;;  %10807 = vmatprep.mubr.msk.bf16.mxu0 %vm11317_vm1, %v11316_v6 }
0x1906   :  { %10805 = vmatprep.subr.bf16.mxu0 %v11316_v6 }
0x1909   :  { %10806 = vmatpush3.bf16.msra.mxu0 %v11075_v63 }
0x190a   :  { %10819 = vmatprep.subr.mxu0 %v11316_v6 }
0x190c   :  { %10808 = vmatmul.mubr.msk.bf16.vlgmr.msra.gmra.mxu0 %vm158_vm2, %v12410_v18 }
0x190d   :  { %10821 = vmatprep.mubr.msk.f32.mxu0 %vm11317_vm1, %v11316_v6 }
0x19bc   :  { %v5513_v20 = vpop.f32.mrf.mxu1 }
0x19be   :  { %v10777_v0 = vpop.f32.mrf.mxu1 }
0x19c0   :  { %v5586_v1 = vpop.f32.mrf.mxu0 }
0x19c1   :  { %v5590_v5 = vpack.c.bf16 %v5586_v1, %v5513_v20 }
0x19c2   :  { %v10782_v11 = vpop.f32.mrf.mxu0 }
0x19c3   :  { %10786 = vmatmul.mubr.msk.bf16.vlgmr.msra.gmra.mxu1 %vm337_vm3, %v5590_v5 }
0x19c4   :  { %v12565_v14 = vpop.f32.mrf.mxu0  ;;  %10796 = vmatpush3.bf16.msra.mxu1 %v11076_v4  ;;  %10799 = vmatprep.mubr.msk.bf16.mxu1 %vm11317_vm1, %v11316_v6 }
0x19c5   :  { %10797 = vmatprep.subr.bf16.mxu1 %v11316_v6 }
0x19c6   :  { %v10793_v19 = vpop.f32.mrf.mxu0 }
0x19c8   :  { %v12573_v22 = vpop.f32.mrf.mxu0  ;;  %10798 = vmatpush3.bf16.msra.mxu1 %v11077_v41 }
0x19c9   :  { %10811 = vmatprep.subr.bf16.mxu1 %v11316_v6 }
0x19ca   :  { %v10794_v24 = vpop.f32.mrf.mxu0 }
0x19cb   :  { %10800 = vmatmul.mubr.msk.bf16.vlgmr.msra.gmra.mxu1 %vm158_vm2, %v12410_v18 }
0x19cc   :  { %v5814_v32 = vpop.f32.mrf.mxu0  ;;  %10812 = vmatpush3.bf16.msra.mxu1 %v11078_v23  ;;  %10815 = vmatprep.mubr.msk.bf16.mxu1 %vm11317_vm1, %v11316_v6 }
0x19cd   :  { %v5815_v33 = vadd.f32 %v9453_v25, %v5814_v32  ;;  %10813 = vmatprep.subr.bf16.mxu1 %v11316_v6 }
0x19ce   :  { %v10809_v34 = vpop.f32.mrf.mxu0 }
0x19cf   :  { %10820 = vmatpush3.xpose.msk.msra.mxu0 %vm337_vm3, %v5815_v33  ;;  %v11082_v33 = vld [vmem:[%s13362_s3 + $0x178] sm:$0xff]   ;;  %v11083_v34 = vld [vmem:[%s13362_s3 + $0x170] sm:$0xff]  }
0x19d0   :  { %v5817_v35 = vpop.f32.mrf.mxu0  ;;  %10814 = vmatpush3.bf16.msra.mxu1 %v11079_v45  ;;  %10824 = vmatprep.subr.mxu0 %v11316_v6  ;;  %v11081_v45 = vld [vmem:[%s13362_s3 + $0xf0] sm:$0xff]  }
0x19d1   :  { %v5818_v36 = vadd.f32 %v9453_v25, %v5817_v35  ;;  %10829 = vmatprep.subr.mxu1 %v11316_v6  ;;  %v11080_v25 = vld [vmem:[%s13362_s3 + $0xf8] sm:$0xff]  }
0x19d2   :  { %v10810_v37 = vpop.f32.mrf.mxu0  ;;  %v9472_v35 = vld [vmem:[%s13364_s5 + $0x18] sm:$0xf] }
0x19d3   :  { %10816 = vmatmul.mubr.msk.bf16.vlgmr.msra.gmra.mxu1 %vm158_vm2, %v12410_v18 }
0x19d4   :  { %10831 = vmatprep.mubr.msk.f32.mxu1 %vm11317_vm1, %v11316_v6 }
0x1a83   :  { %v12597_v39 = vpop.f32.mrf.mxu1 }
0x1a85   :  { %v10787_v38 = vpop.f32.mrf.mxu1 }
0x1a87   :  { %v12599_v31 = vpop.f32.mrf.mxu1 }
0x1a89   :  { %v10788_v40 = vpop.f32.mrf.mxu1 }
0x1a8b   :  { %v5746_v16 = vpop.f32.mrf.mxu1 }
0x1a8c   :  { %v5747_v28 = vadd.f32 %v9444_v26, %v5746_v16 }
0x1a8d   :  { %v10801_v2 = vpop.f32.mrf.mxu1 }
0x1a8e   :  { %v5753_v10 = vmul.f32 0.35355338, %v5747_v28  ;;  %v11085_v2 = vld [vmem:[%s13362_s3 + $0x130] sm:$0xff]  }
0x1a8f   :  { %v5749_v3 = vpop.f32.mrf.mxu1 }
0x1a90   :  { %v5750_v27 = vadd.f32 %v9444_v26, %v5749_v3  ;;  %10822 = vmatmul.mubr.msk.f32.vlgmr.msra.gmra.mxu0 %vm337_vm3, %v5753_v10  ;;  %v11084_v26 = vld [vmem:[%s13362_s3 + $0x138] sm:$0xff]  }
0x1a91   :  { %10825 = vmatpush3.xpose.msk.msra.mxu0 %vm337_vm3, %v5818_v36  ;;  %v10802_v46 = vpop.f32.mrf.mxu1  ;;  %10826 = vmatprep.mubr.msk.f32.mxu0 %vm11317_vm1, %v11316_v6  ;;  %v6214_v36 = vsel %vm1186_vm4, %v9472_v35, 0 }
0x1a92   :  { %v5754_v48 = vmul.f32 0.35355338, %v5750_v27  ;;  %10834 = vmatprep.subr.mxu0 %v11316_v6 }
0x1a93   :  { %v5880_v13 = vpop.f32.mrf.mxu1 }
0x1a94   :  { %v5881_v9 = vadd.f32 %v9462_v47, %v5880_v13  ;;  %10827 = vmatmul.mubr.msk.f32.vlgmr.msra.gmra.mxu0 %vm337_vm3, %v5754_v48 }
0x1a95   :  { %v10817_v29 = vpop.f32.mrf.mxu1  ;;  %10836 = vmatprep.mubr.msk.f32.mxu0 %vm11317_vm1, %v11316_v6 }
0x1a96   :  { %10830 = vmatpush3.msra.mxu1 %v5881_v9 }
0x1a97   :  { %v5883_v49 = vpop.f32.mrf.mxu1  ;;  %10839 = vmatprep.subr.bf16.mxu1 %v11316_v6 }
0x1a98   :  { %v5884_v50 = vadd.f32 %v9462_v47, %v5883_v49  ;;  %v9497_v47 = vld [vmem:[%s13363_s4 + $0x17] ss:$0 sm:$0xff] }
0x1a99   :  { %v10818_v53 = vpop.f32.mrf.mxu1 }
0x1a9a   :  { %10835 = vmatpush3.msra.mxu0 %v5884_v50 }
0x1a9b   :  { %10845 = vmatprep.subr.bf16.mxu0 %v11316_v6 }
0x1b50   :  { %v5959_v54 = vpop.f32.mrf.mxu0 }
0x1b51   :  { %v6039_v12 = vsel %vm337_vm3, %v5959_v54, -inf }
0x1b52   :  { %6040 = vmax.xlane.f32.xlu0 %v6039_v12  ;;  %v10823_v21 = vpop.f32.mrf.mxu0 }
0x1b53   :  { %v5684_v21 = vadd.f32 %v12573_v22, %v12599_v31 }
0x1b54   :  { %v6035_v56 = vpop.f32.mrf.mxu0 }
0x1b55   :  { %v6042_v55 = vsel %vm337_vm3, %v6035_v56, -inf }
0x1b56   :  { %6043 = vmax.xlane.f32.xlu1 %v6042_v55  ;;  %v10828_v59 = vpop.f32.mrf.mxu0  ;;  %v9479_v55 = vld [vmem:[%s13363_s4 + $0xf] ss:$0 sm:$0xff] }
0x1bdb   :  { %v6041_v61 = vpop.xlane.xlu0 %6040 }
0x1bdc   :  { %v6045_v62 = vsub.f32 %v5959_v54, %v6041_v61 }
0x1bde   :  { %v6047_v63 = vmul.f32 1.442695, %v6045_v62  ;;  %v9488_v62 = vld [vmem:[%s13363_s4 + $0x13] ss:$0 sm:$0xff] }
0x1bdf   :  { %v6044_v57 = vpop.xlane.xlu1 %6043 }
0x1be0   :  { %11270 = vpow2.f32 %v6047_v63  ;;  %v6046_v15 = vsub.f32 %v6035_v56, %v6044_v57 }
0x1be2   :  { %v6049_v20 = vmul.f32 1.442695, %v6046_v15 }
0x1be4   :  { %11272 = vpow2.f32 %v6049_v20 }
0x1bed   :  { %v11271_v0 = vpop.eup %11270 }
0x1bee   :  { %v6051_v1 = vsel %vm337_vm3, %v11271_v0, 0.0 }
0x1bef   :  { %6052 = vadd.xlane.f32.xlu0 %v6051_v1 }
0x1bf1   :  { %v11273_v4 = vpop.eup %11272 }
0x1bf2   :  { %v6054_v5 = vsel %vm337_vm3, %v11273_v4, 0.0 }
0x1bf3   :  { %6055 = vadd.xlane.f32.xlu1 %v6054_v5 }
0x1c78   :  { %v6053_v11 = vpop.xlane.xlu0 %6052 }
0x1c79   :  { %11274 = vrcp.f32 %v6053_v11 }
0x1c7c   :  { %v6056_v41 = vpop.xlane.xlu1 %6055 }
0x1c7d   :  { %11276 = vrcp.f32 %v6056_v41 }
0x1c86   :  { %v11275_v19 = vpop.eup %11274 }
0x1c87   :  { %v6059_v23 = vmul.f32 %v11275_v19, %v11271_v0 }
0x1c89   :  { %10832 = vmatmul.mubr.msk.f32.vlgmr.msra.gmra.mxu1 %vm337_vm3, %v6059_v23 }
0x1c8a   :  { %v11277_v24 = vpop.eup %11276  ;;  %10841 = vmatprep.mubr.msk.bf16.mxu1 %vm11317_vm1, %v11316_v6  ;;  %10840 = vmatpush3.bf16.msra.mxu1 %v6214_v36 }
0x1c8b   :  { %v6060_v32 = vmul.f32 %v11277_v24, %v11273_v4  ;;  %10853 = vmatprep.subr.bf16.mxu1 %v11316_v6 }
0x1c8d   :  { %10837 = vmatmul.mubr.msk.f32.vlgmr.msra.gmra.mxu0 %vm337_vm3, %v6060_v32 }
0x1c8e   :  { %10846 = vmatpush3.bf16.msra.mxu0 %v11080_v25  ;;  %10849 = vmatprep.mubr.msk.bf16.mxu0 %vm11317_vm1, %v11316_v6 }
0x1c8f   :  { %10847 = vmatprep.subr.bf16.mxu0 %v11316_v6 }
0x1c92   :  { %10848 = vmatpush3.bf16.msra.mxu0 %v11081_v45 }
0x1c93   :  { %10861 = vmatprep.subr.bf16.mxu0 %v11316_v6 }
0x1c95   :  { %10850 = vmatmul.mubr.msk.bf16.vlgmr.msra.gmra.mxu0 %vm158_vm2, %v12410_v18 }
0x1c96   :  { %10862 = vmatpush3.bf16.msra.mxu0 %v11082_v33  ;;  %10865 = vmatprep.mubr.msk.bf16.mxu0 %vm11317_vm1, %v11316_v6 }
0x1c97   :  { %10863 = vmatprep.subr.bf16.mxu0 %v11316_v6 }
0x1c9a   :  { %10864 = vmatpush3.bf16.msra.mxu0 %v11083_v34 }
0x1c9b   :  { %10879 = vmatprep.subr.mxu0 %v11316_v6 }
0x1c9d   :  { %10866 = vmatmul.mubr.msk.bf16.vlgmr.msra.gmra.mxu0 %vm158_vm2, %v12410_v18 }
0x1c9e   :  { %10881 = vmatprep.mubr.msk.f32.mxu0 %vm11317_vm1, %v11316_v6 }
0x1d49   :  { %v6130_v37 = vpop.f32.mrf.mxu1 }
0x1d4b   :  { %v10833_v38 = vpop.f32.mrf.mxu1 }
0x1d4d   :  { %v6203_v40 = vpop.f32.mrf.mxu0 }
0x1d4e   :  { %v6207_v16 = vpack.c.bf16 %v6203_v40, %v6130_v37 }
0x1d4f   :  { %v10838_v28 = vpop.f32.mrf.mxu0 }
0x1d50   :  { %10842 = vmatmul.mubr.msk.bf16.vlgmr.msra.gmra.mxu1 %vm337_vm3, %v6207_v16 }
0x1d51   :  { %10854 = vmatpush3.bf16.msra.mxu1 %v11084_v26  ;;  %10857 = vmatprep.mubr.msk.bf16.mxu1 %vm11317_vm1, %v11316_v6 }
0x1d52   :  { %10855 = vmatprep.subr.bf16.mxu1 %v11316_v6 }
0x1d55   :  { %v6318_v10 = vpop.f32.mrf.mxu0  ;;  %10856 = vmatpush3.bf16.msra.mxu1 %v11085_v2 }
0x1d56   :  { %10869 = vmatprep.subr.mxu1 %v11316_v6 }
0x1d57   :  { %v10851_v3 = vpop.f32.mrf.mxu0 }
0x1d58   :  { %10858 = vmatmul.mubr.msk.bf16.vlgmr.msra.gmra.mxu1 %vm158_vm2, %v12410_v18  ;;  %v5681_v18 = vadd.f32 %v12565_v14, %v12597_v39  ;;  %v6319_v14 = vadd.f32 %v9479_v55, %v6318_v10  ;;  %v9507_v3 = vld [vmem:[%s13364_s5 + $0x1c] sm:$0xf] }
0x1d59   :  { %v6321_v27 = vpop.f32.mrf.mxu0  ;;  %10871 = vmatprep.mubr.msk.f32.mxu1 %vm11317_vm1, %v11316_v6 }
0x1d5a   :  { %v6325_v15 = vmul.f32 0.35355338, %v6319_v14  ;;  %v6322_v22 = vadd.f32 %v9479_v55, %v6321_v27  ;;  %v6786_v27 = vsel %vm1186_vm4, %v9507_v3, 0 }
0x1d5b   :  { %v10852_v46 = vpop.f32.mrf.mxu0 }
0x1d5c   :  { %v6326_v1 = vmul.f32 0.35355338, %v6322_v22 }
0x1d5d   :  { %v6452_v48 = vpop.f32.mrf.mxu0 }
0x1d5e   :  { %v6453_v13 = vadd.f32 %v9497_v47, %v6452_v48 }
0x1d5f   :  { %v10867_v9 = vpop.f32.mrf.mxu0 }
0x1d60   :  { %10880 = vmatpush3.msra.mxu0 %v6453_v13 }
0x1d61   :  { %v6455_v29 = vpop.f32.mrf.mxu0  ;;  %10889 = vmatprep.subr.bf16.mxu0 %v11316_v6 }
0x1d62   :  { %v6456_v49 = vadd.f32 %v9497_v47, %v6455_v29 }
0x1d63   :  { %v10868_v50 = vpop.f32.mrf.mxu0 }
0x1e10   :  { %v6250_v53 = vpop.f32.mrf.mxu1 }
0x1e11   :  { %v12677_v54 = vadd.f32 %v6250_v53, %v5681_v18 }
0x1e12   :  { %v10843_v12 = vpop.f32.mrf.mxu1 }
0x1e14   :  { %v6253_v56 = vpop.f32.mrf.mxu1 }
0x1e15   :  { %v12684_v59 = vadd.f32 %v6253_v56, %v5684_v21 }
0x1e16   :  { %v10844_v61 = vpop.f32.mrf.mxu1 }
0x1e18   :  { %v6386_v39 = vpop.f32.mrf.mxu1 }
0x1e19   :  { %v6387_v63 = vadd.f32 %v9488_v62, %v6386_v39 }
0x1e1a   :  { %v10859_v57 = vpop.f32.mrf.mxu1 }
0x1e1b   :  { %10870 = vmatpush3.xpose.msk.msra.mxu1 %vm337_vm3, %v6387_v63 }
0x1e1c   :  { %v6389_v31 = vpop.f32.mrf.mxu1  ;;  %10874 = vmatprep.subr.mxu1 %v11316_v6 }
0x1e1d   :  { %v6390_v20 = vadd.f32 %v9488_v62, %v6389_v31 }
0x1e1e   :  { %v10860_v0 = vpop.f32.mrf.mxu1  ;;  %10872 = vmatmul.mubr.msk.f32.vlgmr.msra.gmra.mxu1 %vm337_vm3, %v6325_v15 }
0x1e1f   :  { %10875 = vmatpush3.xpose.msk.msra.mxu1 %vm337_vm3, %v6390_v20  ;;  %10876 = vmatprep.mubr.msk.f32.mxu1 %vm11317_vm1, %v11316_v6 }
0x1e20   :  { %10884 = vmatprep.subr.mxu1 %v11316_v6 }
0x1e22   :  { %10877 = vmatmul.mubr.msk.f32.vlgmr.msra.gmra.mxu1 %vm337_vm3, %v6326_v1  ;;  %v9536_v1 = vld [vmem:[%s13365_s6 + $0x1c0] sm:$0xff] }
0x1e23   :  { %10885 = vmatpush3.msra.mxu1 %v6456_v49  ;;  %10886 = vmatprep.mubr.msk.f32.mxu1 %vm11317_vm1, %v11316_v6  ;;  %v9509_v49 = vld [vmem:[%s13361_s2 + $0xf] ss:$0 sm:$0xff] }
0x1ede   :  { %v6531_v4 = vpop.f32.mrf.mxu1 }
0x1edf   :  { %v6611_v5 = vsel %vm337_vm3, %v6531_v4, -inf }
0x1ee0   :  { %6612 = vmax.xlane.f32.xlu0 %v6611_v5  ;;  %v10873_v11 = vpop.f32.mrf.mxu1 }
0x1ee1   :  { %v9537_v11 = vld [vmem:[%s13365_s6 + $0x1c8] sm:$0xff] }
0x1ee2   :  { %v6607_v41 = vpop.f32.mrf.mxu1 }
0x1ee3   :  { %v6614_v19 = vsel %vm337_vm3, %v6607_v41, -inf }
0x1ee4   :  { %6615 = vmax.xlane.f32.xlu1 %v6614_v19  ;;  %v10878_v23 = vpop.f32.mrf.mxu1 }
0x1f69   :  { %v6613_v24 = vpop.xlane.xlu0 %6612 }
0x1f6a   :  { %v6617_v25 = vsub.f32 %v6531_v4, %v6613_v24  ;;  %v9529_v4 = vld [vmem:[%s13365_s6 + $0x188] sm:$0xff]  ;;  %v9512_v24 = vld [vmem:[%s13365_s6 + $0x100] sm:$0xff] }
0x1f6b   :  { %v9564_v19 = vcombine.low %v9529_v4, %v9537_v11  ;;  %v9565_v23 = vcombine.high %v9529_v4, %v9537_v11  ;;  %v9524_v4 = vld [vmem:[%s13365_s6 + $0x160] sm:$0xff]  ;;  %v9525_v11 = vld [vmem:[%s13365_s6 + $0x168] sm:$0xff] }
0x1f6c   :  { %v6619_v32 = vmul.f32 1.442695, %v6617_v25  ;;  %v9520_v25 = vld [vmem:[%s13365_s6 + $0x140] sm:$0xff] }
0x1f6d   :  { %v6616_v45 = vpop.xlane.xlu1 %6615 }
0x1f6e   :  { %11278 = vpow2.f32 %v6619_v32  ;;  %v6618_v33 = vsub.f32 %v6607_v41, %v6616_v45  ;;  %v9513_v32 = vld [vmem:[%s13365_s6 + $0x108] sm:$0xff]  ;;  %v9547_v45 = vcombine.high %v9512_v24, %v9520_v25 }
0x1f70   :  { %v6621_v34 = vmul.f32 1.442695, %v6618_v33  ;;  %v9521_v33 = vld [vmem:[%s13365_s6 + $0x148] sm:$0xff] }
0x1f72   :  { %11280 = vpow2.f32 %v6621_v34  ;;  %v9546_v34 = vcombine.low %v9512_v24, %v9520_v25  ;;  %v9534_v25 = vld [vmem:[%s13365_s6 + $0x1b0] sm:$0xff] }
0x1f7b   :  { %v11279_v35 = vpop.eup %11278 }
0x1f7c   :  { %v6623_v36 = vsel %vm337_vm3, %v11279_v35, 0.0 }
0x1f7d   :  { %6624 = vadd.xlane.f32.xlu0 %v6623_v36  ;;  %v9549_v36 = vcombine.high %v9513_v32, %v9521_v33 }
0x1f7f   :  { %v11281_v37 = vpop.eup %11280 }
0x1f80   :  { %v6626_v38 = vsel %vm337_vm3, %v11281_v37, 0.0 }
0x1f81   :  { %6627 = vadd.xlane.f32.xlu1 %v6626_v38  ;;  %v9538_v38 = vld [vmem:[%s13365_s6 + $0x1d0] sm:$0xff] }
0x2006   :  { %v6625_v40 = vpop.xlane.xlu0 %6624 }
0x2007   :  { %11282 = vrcp.f32 %v6625_v40  ;;  %v9531_v40 = vld [vmem:[%s13365_s6 + $0x198] sm:$0xff] }
0x200a   :  { %v6628_v26 = vpop.xlane.xlu1 %6627 }
0x200b   :  { %11284 = vrcp.f32 %v6628_v26 }
0x2014   :  { %v11283_v16 = vpop.eup %11282 }
0x2015   :  { %v6631_v28 = vmul.f32 %v11283_v16, %v11279_v35  ;;  %v9548_v35 = vcombine.low %v9513_v32, %v9521_v33  ;;  %v9539_v16 = vld [vmem:[%s13365_s6 + $0x1d8] sm:$0xff]  ;;  %v9542_v32 = vld [vmem:[%s13365_s6 + $0x1f0] sm:$0xff] }
0x2016   :  { %v9543_v33 = vld [vmem:[%s13365_s6 + $0x1f8] sm:$0xff] }
0x2017   :  { %10882 = vmatmul.mubr.msk.f32.vlgmr.msra.gmra.mxu0 %vm337_vm3, %v6631_v28 }
0x2018   :  { %v11285_v2 = vpop.eup %11284  ;;  %10891 = vmatprep.mubr.msk.bf16.mxu0 %vm11317_vm1, %v11316_v6  ;;  %10890 = vmatpush3.bf16.msra.mxu0 %v6786_v27 }
0x2019   :  { %v6632_v10 = vmul.f32 %v11285_v2, %v11281_v37  ;;  %7217 = vmatprep.subr.bf16.mxu0 %v9565_v23  ;;  %v9530_v37 = vld [vmem:[%s13365_s6 + $0x190] sm:$0xff]  ;;  %v9568_v2 = vcombine.low %v9531_v40, %v9539_v16 }
0x201a   :  { %v9567_v26 = vcombine.high %v9530_v37, %v9538_v38  ;;  %v9566_v28 = vcombine.low %v9530_v37, %v9538_v38  ;;  %v9518_v38 = vld [vmem:[%s13365_s6 + $0x130] sm:$0xff] }
0x201b   :  { %10887 = vmatmul.mubr.msk.f32.vlgmr.msra.gmra.mxu1 %vm337_vm3, %v6632_v10  ;;  %v9569_v10 = vcombine.high %v9531_v40, %v9539_v16  ;;  %v9526_v40 = vld [vmem:[%s13365_s6 + $0x170] sm:$0xff]  ;;  %v9527_v16 = vld [vmem:[%s13365_s6 + $0x178] sm:$0xff] }
0x201c   :  { %7194 = vmatprep.mubr.bf16.mxu1 %v11318_v60 }
0x20d7   :  { %v6702_v46 = vpop.f32.mrf.mxu0 }
0x20d9   :  { %v10883_v47 = vpop.f32.mrf.mxu0 }
0x20db   :  { %v6775_v48 = vpop.f32.mrf.mxu1 }
0x20dc   :  { %v6779_v13 = vpack.c.bf16 %v6775_v48, %v6702_v46 }
0x20dd   :  { %v10888_v9 = vpop.f32.mrf.mxu1 }
0x20de   :  { %10892 = vmatmul.mubr.msk.bf16.vlgmr.msra.gmra.mxu0 %vm337_vm3, %v6779_v13 }
0x20df   :  { %7237 = vmatprep.mubr.bf16.mxu0 %v11318_v60  ;;  %7218 = vmatpush1.bf16.msra.mxu0 %v9564_v19 }
0x20e0   :  { %7219 = vmatprep.subr.bf16.mxu0 %v9549_v36  ;;  %v9575_v36 = vcombine.high %v9534_v25, %v9542_v32 }
0x20e3   :  { %7220 = vmatpush1.bf16.msra.mxu0 %v9548_v35 }
0x20e4   :  { %7303 = vmatprep.subr.bf16.mxu0 %v9569_v10  ;;  %v9559_v10 = vcombine.high %v9518_v38, %v9526_v40 }
0x219e   :  { %v6822_v29 = vpop.f32.mrf.mxu0 }
0x219f   :  { %v6829_v50 = vadd.f32 %v6822_v29, %v12677_v54 }
0x21a0   :  { %v10893_v18 = vpop.f32.mrf.mxu0 }
0x21a1   :  { %v6836_v53 = vadd.f32 %v9509_v49, %v6829_v50 }
0x21a2   :  { %v6825_v12 = vpop.f32.mrf.mxu0 }
0x21a3   :  { %v6830_v21 = vadd.f32 %v6825_v12, %v12684_v59  ;;  %v6838_v56 = vadd.f32 %v6836_v53, %v12401_v30  ;;  %v9511_v12 = vld [vmem:[%s13361_s2 + $0x11] ss:$0 sm:$0xff] }
0x21a4   :  { %v10894_v55 = vpop.f32.mrf.mxu0 }
0x21a5   :  { %v6837_v61 = vadd.f32 %v9509_v49, %v6830_v21  ;;  %v6842_v62 = vsel %vm158_vm2, %v6838_v56, 0.0  ;;  %v9510_v49 = vld [vmem:[%s13361_s2 + $0x10] ss:$0 sm:$0xff] }
0x21a6   :  { %6843 = vadd.xlane.f32.xlu0 %v6842_v62  ;;  %v9522_v55 = vld [vmem:[%s13365_s6 + $0x150] sm:$0xff]  ;;  %v9523_v62 = vld [vmem:[%s13365_s6 + $0x158] sm:$0xff] }
0x21a7   :  { %v6839_v14 = vadd.f32 %v6837_v61, %v12403_v58  ;;  %v9528_v58 = vld [vmem:[%s13365_s6 + $0x180] sm:$0xff]  ;;  %v9515_v61 = vld [vmem:[%s13365_s6 + $0x118] sm:$0xff] }
0x21a8   :  { %v9563_v5 = vcombine.high %v9528_v58, %v9536_v1  ;;  %v9562_v41 = vcombine.low %v9528_v58, %v9536_v1  ;;  %v9516_v1 = vld [vmem:[%s13365_s6 + $0x120] sm:$0xff] }
0x21a9   :  { %v6845_v39 = vsel %vm158_vm2, %v6839_v14, 0.0  ;;  %v9555_v23 = vcombine.high %v9516_v1, %v9524_v4 }
0x21aa   :  { %6846 = vadd.xlane.f32.xlu1 %v6845_v39  ;;  %7174 = vmatprep.subr.bf16.mxu1 %v9563_v5  ;;  %v9517_v5 = vld [vmem:[%s13365_s6 + $0x128] sm:$0xff] }
0x21ab   :  { %7175 = vmatpush1.bf16.msra.mxu1 %v9562_v41  ;;  %v9557_v24 = vcombine.high %v9517_v5, %v9525_v11  ;;  %v9556_v35 = vcombine.low %v9517_v5, %v9525_v11  ;;  %v11115_v5 = vld [vmem:[%s13367_s8 + $0x4c0] sm:$0xff]  }
0x21ac   :  { %7176 = vmatprep.subr.bf16.mxu1 %v9547_v45  ;;  %v9535_v45 = vld [vmem:[%s13365_s6 + $0x1b8] sm:$0xff]  ;;  %v11116_v11 = vld [vmem:[%s13367_s8 + $0x400] sm:$0xff]  }
0x21ad   :  { %v9577_v37 = vcombine.high %v9535_v45, %v9543_v33 }
0x21af   :  { %7177 = vmatpush1.bf16.msra.mxu1 %v9546_v34  ;;  %v9554_v34 = vcombine.low %v9516_v1, %v9524_v4  ;;  %v11113_v1 = vld [vmem:[%s13367_s8 + $0x488] sm:$0xff]   ;;  %v11114_v4 = vld [vmem:[%s13367_s8 + $0x440] sm:$0xff]  }
0x21b0   :  { %7260 = vmatprep.subr.bf16.mxu1 %v9567_v26  ;;  %v9519_v26 = vld [vmem:[%s13365_s6 + $0x138] sm:$0xff] }
0x222f   :  { %v6844_v63 = vpop.xlane.xlu0 %6843 }
0x2230   :  { %v6848_v57 = vmul.f32 0.03125, %v6844_v63 }
0x2232   :  { %v6850_v54 = vsub.f32 %v6838_v56, %v6848_v57  ;;  %v9514_v56 = vld [vmem:[%s13365_s6 + $0x110] sm:$0xff] }
0x2233   :  { %v6847_v15 = vpop.xlane.xlu1 %6846  ;;  %v9551_v57 = vcombine.high %v9514_v56, %v9522_v55 }
0x2234   :  { %v6849_v22 = vmul.f32 0.03125, %v6847_v15  ;;  %v6852_v31 = vmul.f32 %v6850_v54, %v6850_v54  ;;  %v9532_v15 = vld [vmem:[%s13365_s6 + $0x1a0] sm:$0xff] }
0x2236   :  { %v6851_v20 = vsub.f32 %v6839_v14, %v6849_v22  ;;  %v6854_v59 = vsel %vm158_vm2, %v6852_v31, 0.0  ;;  %v9540_v22 = vld [vmem:[%s13365_s6 + $0x1e0] sm:$0xff]  ;;  %v9533_v31 = vld [vmem:[%s13365_s6 + $0x1a8] sm:$0xff] }
0x2237   :  { %6855 = vadd.xlane.f32.xlu0 %v6854_v59  ;;  %v9550_v59 = vcombine.low %v9514_v56, %v9522_v55  ;;  %v9570_v41 = vcombine.low %v9532_v15, %v9540_v22  ;;  %v11098_v56 = vld [vmem:[%s13367_s8 + $0x460] sm:$0xff]  }
0x2238   :  { %v6853_v30 = vmul.f32 %v6851_v20, %v6851_v20  ;;  %v11099_v55 = vld [vmem:[%s13367_s8 + $0x4e0] sm:$0xff]  }
0x223a   :  { %v6857_v0 = vsel %vm158_vm2, %v6853_v30, 0.0  ;;  %v9552_v30 = vcombine.low %v9515_v61, %v9523_v62 }
0x223b   :  { %6858 = vadd.xlane.f32.xlu1 %v6857_v0  ;;  %v9571_v0 = vcombine.high %v9532_v15, %v9540_v22  ;;  %v11105_v15 = vld [vmem:[%s13367_s8 + $0x498] sm:$0xff]   ;;  %v11106_v22 = vld [vmem:[%s13367_s8 + $0x450] sm:$0xff]  }
0x22c0   :  { %v6856_v3 = vpop.xlane.xlu0 %6855 }
0x22c1   :  { %v6860_v27 = vmul.f32 0.03125, %v6856_v3  ;;  %v9561_v3 = vcombine.high %v9519_v26, %v9527_v16 }
0x22c3   :  { %v6862_v46 = vadd.f32 1e-05, %v6860_v27  ;;  %v9558_v27 = vcombine.low %v9518_v38, %v9526_v40 }
0x22c4   :  { %v6859_v47 = vpop.xlane.xlu1 %6858 }
0x22c5   :  { %11286 = vrsqrt.f32 %v6862_v46  ;;  %v6861_v48 = vmul.f32 0.03125, %v6859_v47  ;;  %v9560_v46 = vcombine.low %v9519_v26, %v9527_v16  ;;  %v11086_v47 = vld [vmem:[%s13367_s8 + $0x478] sm:$0xff]  }
0x22c7   :  { %v6863_v13 = vadd.f32 1e-05, %v6861_v48  ;;  %v11087_v48 = vld [vmem:[%s13367_s8 + $0x4f8] sm:$0xff]  }
0x22c9   :  { %11288 = vrsqrt.f32 %v6863_v13  ;;  %v11088_v13 = vld [vmem:[%s13367_s8 + $0x438] sm:$0xff]  }
0x22d2   :  { %v11287_v9 = vpop.eup %11286 }
0x22d3   :  { %v6866_v29 = vmul.f32 %v11287_v9, %v6850_v54  ;;  %v9553_v54 = vcombine.high %v9515_v61, %v9523_v62  ;;  %v11089_v9 = vld [vmem:[%s13367_s8 + $0x4b8] sm:$0xff]   ;;  %v11100_v61 = vld [vmem:[%s13367_s8 + $0x420] sm:$0xff]  }
0x22d4   :  { %v11101_v62 = vld [vmem:[%s13367_s8 + $0x4a0] sm:$0xff]  }
0x22d5   :  { %v6872_v18 = vmul.f32 %v9510_v49, %v6866_v29  ;;  %v11090_v29 = vld [vmem:[%s13367_s8 + $0x470] sm:$0xff]  }
0x22d6   :  { %v11289_v50 = vpop.eup %11288 }
0x22d7   :  { %v6867_v53 = vmul.f32 %v11289_v50, %v6851_v20  ;;  %v12779_v14 = vadd.f32 %v9511_v12, %v6872_v18  ;;  %v9541_v20 = vld [vmem:[%s13365_s6 + $0x1e8] sm:$0xff]  ;;  %v11093_v50 = vld [vmem:[%s13367_s8 + $0x4b0] sm:$0xff]  }
0x22d8   :  { %v9573_v58 = vcombine.high %v9533_v31, %v9541_v20  ;;  %v9572_v19 = vcombine.low %v9533_v31, %v9541_v20  ;;  %v11094_v18 = vld [vmem:[%s13367_s8 + $0x468] sm:$0xff]   ;;  %v11107_v31 = vld [vmem:[%s13367_s8 + $0x4d0] sm:$0xff]  }
0x22d9   :  { %v6873_v21 = vmul.f32 %v9510_v49, %v6867_v53  ;;  %v11092_v49 = vld [vmem:[%s13367_s8 + $0x430] sm:$0xff]   ;;  %v11095_v53 = vld [vmem:[%s13367_s8 + $0x4e8] sm:$0xff]  }
0x22da   :  { %v11108_v20 = vld [vmem:[%s13367_s8 + $0x410] sm:$0xff]  }
0x22db   :  { %v12781_v39 = vadd.f32 %v9511_v12, %v6873_v21  ;;  %v11096_v12 = vld [vmem:[%s13367_s8 + $0x428] sm:$0xff]  }
0x22dc   :  { %v11097_v21 = vld [vmem:[%s13367_s8 + $0x4a8] sm:$0xff]  }
0x22dd   :  { %v12785_v63 = vpack.c.bf16 %v12781_v39, %v12779_v14 }
0x22df   :  { %9578 = vmatmul.mubr.msk.bf16.vlgmr.msra.gmra.mxu1 %vm158_vm2, %v12785_v63  ;;  %9579 = vmatmul.mubr.msk.bf16.vlgmr.msra.gmra.mxu0 %vm158_vm2, %v12785_v63 }
0x22e0   :  { %7261 = vmatpush1.bf16.msra.mxu1 %v9566_v28  ;;  %7304 = vmatpush1.bf16.msra.mxu0 %v9568_v2  ;;  %v9574_v28 = vcombine.low %v9534_v25, %v9542_v32  ;;  %v9576_v2 = vcombine.low %v9535_v45, %v9543_v33 }
0x22e1   :  { %7262 = vmatprep.subr.bf16.mxu1 %v9551_v57  ;;  %7305 = vmatprep.subr.bf16.mxu0 %v9553_v54  ;;  %v11103_v57 = vld [vmem:[%s13367_s8 + $0x4d8] sm:$0xff]  }
0x22e2   :  { %7280 = vmatprep.mubr.bf16.mxu1 %v11318_v60  ;;  %7323 = vmatprep.mubr.bf16.mxu0 %v11318_v60  ;;  %v11104_v54 = vld [vmem:[%s13367_s8 + $0x418] sm:$0xff]  }
0x22e4   :  { %7263 = vmatpush1.bf16.msra.mxu1 %v9550_v59  ;;  %7306 = vmatpush1.bf16.msra.mxu0 %v9552_v30  ;;  %v11109_v59 = vld [vmem:[%s13367_s8 + $0x490] sm:$0xff]   ;;  %v11110_v30 = vld [vmem:[%s13367_s8 + $0x448] sm:$0xff]  }
0x22e5   :  { %7346 = vmatprep.subr.bf16.mxu1 %v9571_v0  ;;  %7389 = vmatprep.subr.bf16.mxu0 %v9573_v58  ;;  %v11111_v0 = vld [vmem:[%s13367_s8 + $0x4c8] sm:$0xff]  }
0x22e6   :  { %v11112_v58 = vld [vmem:[%s13367_s8 + $0x408] sm:$0xff]  }
0x22e7   :  { %9580 = vmatmul.mubr.msk.bf16.vlgmr.msra.gmra.mxu1 %vm158_vm2, %v12785_v63  ;;  %9581 = vmatmul.mubr.msk.bf16.vlgmr.msra.gmra.mxu0 %vm158_vm2, %v12785_v63 }
0x22e8   :  { %7347 = vmatpush1.bf16.msra.mxu1 %v9570_v41  ;;  %7390 = vmatpush1.bf16.msra.mxu0 %v9572_v19  ;;  %v11117_v41 = vld [vmem:[%s13367_s8 + $0x480] sm:$0xff]   ;;  %v11118_v19 = vld [vmem:[%s13367_s8 + $0x578] sm:$0xff]  }
0x22e9   :  { %7348 = vmatprep.subr.bf16.mxu1 %v9555_v23  ;;  %7391 = vmatprep.subr.bf16.mxu0 %v9557_v24  ;;  %v11119_v23 = vld [vmem:[%s13367_s8 + $0x5f8] sm:$0xff]   ;;  %v12962_v24 = vld [vmem:[%s13366_s7 + $0x10] sm:$0xff] }
0x22ea   :  { %7366 = vmatprep.mubr.bf16.mxu1 %v11318_v60  ;;  %7409 = vmatprep.mubr.bf16.mxu0 %v11318_v60  ;;  %v6926_v45 = vrot.slane %v12962_v24, %v11981_v42  ;;  %v6934_v33 = vrot.slane %v12962_v24, %v11984_v44 }
0x22ec   :  { %7349 = vmatpush1.bf16.msra.mxu1 %v9554_v34  ;;  %7392 = vmatpush1.bf16.msra.mxu0 %v9556_v35  ;;  %v6922_v34 = vrot.slane %v12962_v24, %v11987_v43  ;;  %v6930_v35 = vrot.slane %v12962_v24, %v11990_v17 }
0x22ed   :  { %7432 = vmatprep.subr.bf16.mxu1 %v9575_v36  ;;  %7475 = vmatprep.subr.bf16.mxu0 %v9577_v37 }
0x22ef   :  { %9582 = vmatmul.mubr.msk.bf16.vlgmr.msra.gmra.mxu1 %vm158_vm2, %v12785_v63  ;;  %9583 = vmatmul.mubr.msk.bf16.vlgmr.msra.gmra.mxu0 %vm158_vm2, %v12785_v63 }
0x22f0   :  { %7433 = vmatpush1.bf16.msra.mxu1 %v9574_v28  ;;  %7476 = vmatpush1.bf16.msra.mxu0 %v9576_v2 }
0x22f1   :  { %7434 = vmatprep.subr.bf16.mxu1 %v9559_v10  ;;  %7477 = vmatprep.subr.bf16.mxu0 %v9561_v3 }
0x22f2   :  { %7452 = vmatprep.mubr.bf16.mxu1 %v11318_v60  ;;  %7495 = vmatprep.mubr.bf16.mxu0 %v11318_v60  ;;  %v11091_v60 = vld [vmem:[%s13367_s8 + $0x4f0] sm:$0xff]  }
0x22f4   :  { %7435 = vmatpush1.bf16.msra.mxu1 %v9558_v27  ;;  %7478 = vmatpush1.bf16.msra.mxu0 %v9560_v46 }
0x22f5   :  { %10307 = vmatprep.subr.bf16.mxu1 %v11086_v47  ;;  %10329 = vmatprep.subr.bf16.mxu0 %v11087_v48 }
0x22f7   :  { %9584 = vmatmul.mubr.msk.bf16.vlgmr.msra.gmra.mxu1 %vm158_vm2, %v12785_v63  ;;  %9585 = vmatmul.mubr.msk.bf16.vlgmr.msra.gmra.mxu0 %vm158_vm2, %v12785_v63  ;;  %v11102_v63 = vld [vmem:[%s13367_s8 + $0x458] sm:$0xff]  }
0x22f8   :  { %10308 = vmatpush3.bf16.msra.mxu1 %v11088_v13  ;;  %10330 = vmatpush3.bf16.msra.mxu0 %v11089_v9 }
0x22f9   :  { %10309 = vmatprep.subr.bf16.mxu1 %v11090_v29  ;;  %10331 = vmatprep.subr.bf16.mxu0 %v11091_v60 }
0x22fc   :  { %10310 = vmatpush3.bf16.msra.mxu1 %v11092_v49  ;;  %10332 = vmatpush3.bf16.msra.mxu0 %v11093_v50  ;;  %v6942_v49 = vrot.slane %v12962_v24, %v12006_v51  ;;  %v6950_v50 = vrot.slane %v12962_v24, %v12009_v52 }
0x22fd   :  { %10311 = vmatprep.subr.bf16.mxu1 %v11094_v18  ;;  %10333 = vmatprep.subr.bf16.mxu0 %v11095_v53 }
0x2300   :  { %10312 = vmatpush3.bf16.msra.mxu1 %v11096_v12  ;;  %10334 = vmatpush3.bf16.msra.mxu0 %v11097_v21 }
0x2301   :  { %10313 = vmatprep.subr.bf16.mxu1 %v11098_v56  ;;  %10335 = vmatprep.subr.bf16.mxu0 %v11099_v55 }
0x2304   :  { %10314 = vmatpush3.bf16.msra.mxu1 %v11100_v61  ;;  %10336 = vmatpush3.bf16.msra.mxu0 %v11101_v62 }
0x2305   :  { %10315 = vmatprep.subr.bf16.mxu1 %v11102_v63  ;;  %10337 = vmatprep.subr.bf16.mxu0 %v11103_v57 }
0x2308   :  { %10316 = vmatpush3.bf16.msra.mxu1 %v11104_v54  ;;  %10338 = vmatpush3.bf16.msra.mxu0 %v11105_v15  ;;  %v11120_v54 = vld [vmem:[%s13367_s8 + $0x538] sm:$0xff]  }
0x2309   :  { %10317 = vmatprep.subr.bf16.mxu1 %v11106_v22  ;;  %10339 = vmatprep.subr.bf16.mxu0 %v11107_v31  ;;  %v11121_v15 = vld [vmem:[%s13367_s8 + $0x5b8] sm:$0xff]  }
0x230c   :  { %10318 = vmatpush3.bf16.msra.mxu1 %v11108_v20  ;;  %10340 = vmatpush3.bf16.msra.mxu0 %v11109_v59 }
0x230d   :  { %10319 = vmatprep.subr.bf16.mxu1 %v11110_v30  ;;  %10341 = vmatprep.subr.bf16.mxu0 %v11111_v0  ;;  %v11122_v30 = vld [vmem:[%s13367_s8 + $0x570] sm:$0xff]  }
0x230e   :  { %v11123_v0 = vld [vmem:[%s13367_s8 + $0x5f0] sm:$0xff]  }
0x2310   :  { %10320 = vmatpush3.bf16.msra.mxu1 %v11112_v58  ;;  %10342 = vmatpush3.bf16.msra.mxu0 %v11113_v1 }
0x2311   :  { %10321 = vmatprep.subr.bf16.mxu1 %v11114_v4  ;;  %10343 = vmatprep.subr.bf16.mxu0 %v11115_v5 }
0x2314   :  { %10322 = vmatpush3.bf16.msra.mxu1 %v11116_v11  ;;  %10344 = vmatpush3.bf16.msra.mxu0 %v11117_v41 }
0x2315   :  { %10351 = vmatprep.subr.bf16.mxu1 %v11118_v19  ;;  %10373 = vmatprep.subr.bf16.mxu0 %v11119_v23  ;;  %v11124_v19 = vld [vmem:[%s13367_s8 + $0x530] sm:$0xff]  }
0x2316   :  { %v11125_v23 = vld [vmem:[%s13367_s8 + $0x5b0] sm:$0xff]  }
0x239f   :  { %v7196_v25 = vpop.f32.mrf.mxu1  ;;  %v7239_v32 = vpop.f32.mrf.mxu0 }
0x23a0   :  { %v7197_v10 = vadd.f32 %v7196_v25, %v6922_v34  ;;  %v7240_v3 = vadd.f32 %v7239_v32, %v6930_v35  ;;  %v11126_v25 = vld [vmem:[%s13367_s8 + $0x568] sm:$0xff]  }
0x23a1   :  { %v7198_v36 = vpop.f32.mrf.mxu1  ;;  %v7241_v37 = vpop.f32.mrf.mxu0 }
0x23a2   :  { %v7199_v26 = vadd.f32 %v7198_v36, %v6926_v45  ;;  %v7242_v16 = vadd.f32 %v7241_v37, %v6934_v33  ;;  %v7506_v56 = vmax.f32 %v7197_v10, 0.0  ;;  %v7508_v55 = vmax.f32 %v7240_v3, 0.0  ;;  %v11133_v3 = vld [vmem:[%s13367_s8 + $0x5a0] sm:$0xff]  }
0x23a3   :  { %v7200_v38 = vpop.f32.mrf.mxu1  ;;  %v7243_v40 = vpop.f32.mrf.mxu0 }
0x23a4   :  { %v7201_v28 = vadd.f32 %v7200_v38, %v6922_v34  ;;  %v7244_v2 = vadd.f32 %v7243_v40, %v6930_v35  ;;  %v7507_v18 = vmax.f32 %v7199_v26, 0.0  ;;  %v7509_v53 = vmax.f32 %v7242_v16, 0.0  ;;  %v11127_v35 = vld [vmem:[%s13367_s8 + $0x5e8] sm:$0xff]   ;;  %v11130_v26 = vld [vmem:[%s13367_s8 + $0x560] sm:$0xff]  }
0x23a5   :  { %v7202_v27 = vpop.f32.mrf.mxu1  ;;  %v7245_v46 = vpop.f32.mrf.mxu0  ;;  %v11128_v38 = vld [vmem:[%s13367_s8 + $0x528] sm:$0xff]   ;;  %v11131_v16 = vld [vmem:[%s13367_s8 + $0x5e0] sm:$0xff]  }
0x23a6   :  { %v7203_v47 = vadd.f32 %v7202_v27, %v6926_v45  ;;  %v7246_v48 = vadd.f32 %v7245_v46, %v6934_v33  ;;  %v7522_v13 = vmax.f32 %v7201_v28, 0.0  ;;  %v7524_v9 = vmax.f32 %v7244_v2, 0.0  ;;  %v11129_v40 = vld [vmem:[%s13367_s8 + $0x5a8] sm:$0xff]   ;;  %v11132_v2 = vld [vmem:[%s13367_s8 + $0x520] sm:$0xff]   ;;  %v11134_v27 = vld [vmem:[%s13367_s8 + $0x558] sm:$0xff]  }
0x23a7   :  { %v12972_v29 = vpop.f32.mrf.mxu1  ;;  %v12974_v60 = vpop.f32.mrf.mxu0  ;;  %v11135_v46 = vld [vmem:[%s13367_s8 + $0x5d8] sm:$0xff]  }
0x23a8   :  { %v7523_v12 = vmax.f32 %v7203_v47, 0.0  ;;  %v7525_v21 = vmax.f32 %v7246_v48, 0.0  ;;  %v7538_v22 = vpack.c.bf16 %v7522_v13, %v7506_v56  ;;  %v7540_v31 = vpack.c.bf16 %v7524_v9, %v7508_v55  ;;  %v11136_v48 = vld [vmem:[%s13367_s8 + $0x518] sm:$0xff]   ;;  %v11142_v56 = vld [vmem:[%s13367_s8 + $0x548] sm:$0xff]  }
0x23a9   :  { %v7284_v61 = vpop.f32.mrf.mxu1  ;;  %v7327_v62 = vpop.f32.mrf.mxu0  ;;  %v11137_v9 = vld [vmem:[%s13367_s8 + $0x598] sm:$0xff]   ;;  %v11143_v55 = vld [vmem:[%s13367_s8 + $0x5c8] sm:$0xff]  }
0x23aa   :  { %v7539_v63 = vpack.c.bf16 %v7523_v12, %v7507_v18  ;;  %v7541_v57 = vpack.c.bf16 %v7525_v21, %v7509_v53  ;;  %v7285_v58 = vadd.f32 %v7284_v61, %v6942_v49  ;;  %v7328_v1 = vadd.f32 %v7327_v62, %v6950_v50  ;;  %v11140_v53 = vld [vmem:[%s13367_s8 + $0x510] sm:$0xff]  }
0x23ab   :  { %v12986_v20 = vpop.f32.mrf.mxu1  ;;  %v12988_v59 = vpop.f32.mrf.mxu0  ;;  %v11141_v21 = vld [vmem:[%s13367_s8 + $0x590] sm:$0xff]   ;;  %v6938_v61 = vrot.slane %v12962_v24, %v12088_v7  ;;  %v6946_v62 = vrot.slane %v12962_v24, %v12091_v8  ;;  %v11145_v24 = vld [vmem:[%s13367_s8 + $0x588] sm:$0xff]  }
0x23ac   :  { %8616 = vmatprep.mubr.bf16.mxu1 %v7539_v63  ;;  %8657 = vmatprep.mubr.bf16.mxu0 %v7541_v57  ;;  %v7511_v32 = vmax.f32 %v7285_v58, 0.0  ;;  %v7513_v45 = vmax.f32 %v7328_v1, 0.0  ;;  %v13071_v63 = vld [vmem:[%s13366_s7 + $0x18] sm:$0xff] }
0x23ad   :  { %v7288_v4 = vpop.f32.mrf.mxu1  ;;  %v7331_v5 = vpop.f32.mrf.mxu0  ;;  %8617 = vmatmul.mubr.bf16.vlgmr.msra.gmra.mxu1 %v7538_v22  ;;  %8658 = vmatmul.mubr.bf16.vlgmr.msra.gmra.mxu0 %v7540_v31  ;;  %v6958_v22 = vrot.slane %v13071_v63, %v11981_v42  ;;  %v6966_v58 = vrot.slane %v13071_v63, %v11984_v44  ;;  %v11147_v42 = vld [vmem:[%s13367_s8 + $0x5c0] sm:$0xff]  }
0x23ae   :  { %v7289_v11 = vadd.f32 %v7288_v4, %v6942_v49  ;;  %v7332_v41 = vadd.f32 %v7331_v5, %v6950_v50  ;;  %10352 = vmatpush3.bf16.msra.mxu1 %v11120_v54  ;;  %10374 = vmatpush3.bf16.msra.mxu0 %v11121_v15  ;;  %v11138_v49 = vld [vmem:[%s13367_s8 + $0x550] sm:$0xff]   ;;  %v11144_v54 = vld [vmem:[%s13367_s8 + $0x508] sm:$0xff]   ;;  %v7287_v15 = vadd.f32 %v12986_v20, %v6938_v61  ;;  %v11149_v44 = vld [vmem:[%s13367_s8 + $0x580] sm:$0xff]  }
0x23af   :  { %10353 = vmatprep.subr.bf16.mxu1 %v11122_v30  ;;  %10375 = vmatprep.subr.bf16.mxu0 %v11123_v0  ;;  %v13020_v28 = vpop.f32.mrf.mxu1  ;;  %v13025_v10 = vpop.f32.mrf.mxu0  ;;  %v11139_v50 = vld [vmem:[%s13367_s8 + $0x5d0] sm:$0xff]   ;;  %v11146_v30 = vld [vmem:[%s13367_s8 + $0x540] sm:$0xff]   ;;  %v7330_v0 = vadd.f32 %v12988_v59, %v6946_v62  ;;  %v7283_v20 = vadd.f32 %v12972_v29, %v6938_v61  ;;  %v7326_v4 = vadd.f32 %v12974_v60, %v6946_v62  ;;  %v11150_v29 = vld [vmem:[%s13367_s8 + $0x678] sm:$0xff]  }
0x23b0   :  { %v7527_v33 = vmax.f32 %v7289_v11, 0.0  ;;  %v7529_v34 = vmax.f32 %v7332_v41, 0.0  ;;  %v11148_v11 = vld [vmem:[%s13367_s8 + $0x500] sm:$0xff]   ;;  %v7526_v59 = vmax.f32 %v7287_v15, 0.0  ;;  %v11166_v61 = vld [vmem:[%s13367_s8 + $0x658] sm:$0xff]  }
0x23b1   :  { %v7370_v47 = vpop.f32.mrf.mxu1  ;;  %v7413_v13 = vpop.f32.mrf.mxu0  ;;  %v11167_v62 = vld [vmem:[%s13367_s8 + $0x6d8] sm:$0xff]  }
0x23b2   :  { %v7543_v36 = vpack.c.bf16 %v7527_v33, %v7511_v32  ;;  %v7545_v37 = vpack.c.bf16 %v7529_v34, %v7513_v45  ;;  %10354 = vmatpush3.bf16.msra.mxu1 %v11124_v19  ;;  %10376 = vmatpush3.bf16.msra.mxu0 %v11125_v23  ;;  %v7371_v41 = vadd.f32 %v7370_v47, %v6958_v22  ;;  %v7528_v19 = vmax.f32 %v7330_v0, 0.0  ;;  %v11151_v23 = vld [vmem:[%s13367_s8 + $0x6f8] sm:$0xff]   ;;  %v11158_v47 = vld [vmem:[%s13367_s8 + $0x668] sm:$0xff]   ;;  %v11172_v0 = vld [vmem:[%s13367_s8 + $0x610] sm:$0xff]  }
0x23b3   :  { %10355 = vmatprep.subr.bf16.mxu1 %v11126_v25  ;;  %10377 = vmatprep.subr.bf16.mxu0 %v11127_v35  ;;  %v13048_v18 = vpop.f32.mrf.mxu1  ;;  %v13053_v12 = vpop.f32.mrf.mxu0  ;;  %v7414_v60 = vadd.f32 %v7413_v13, %v6966_v58  ;;  %v7510_v25 = vmax.f32 %v7283_v20, 0.0  ;;  %v7512_v45 = vmax.f32 %v7326_v4, 0.0  ;;  %v11152_v34 = vld [vmem:[%s13367_s8 + $0x638] sm:$0xff]   ;;  %v11160_v13 = vld [vmem:[%s13367_s8 + $0x628] sm:$0xff]   ;;  %v6954_v4 = vrot.slane %v13071_v63, %v11987_v43 }
0x23b4   :  { %8698 = vmatprep.mubr.bf16.mxu1 %v7543_v36  ;;  %8739 = vmatprep.mubr.bf16.mxu0 %v7545_v37  ;;  %v7515_v36 = vmax.f32 %v7371_v41, 0.0  ;;  %v11153_v37 = vld [vmem:[%s13367_s8 + $0x6b8] sm:$0xff]   ;;  %v11174_v20 = vld [vmem:[%s13367_s8 + $0x648] sm:$0xff]  }
0x23b5   :  { %v7374_v57 = vpop.f32.mrf.mxu1  ;;  %v7417_v31 = vpop.f32.mrf.mxu0  ;;  %v7542_v35 = vpack.c.bf16 %v7526_v59, %v7510_v25  ;;  %v11176_v59 = vld [vmem:[%s13367_s8 + $0x608] sm:$0xff]   ;;  %v7373_v41 = vadd.f32 %v13048_v18, %v6954_v4  ;;  %v7369_v18 = vadd.f32 %v13020_v28, %v6954_v4  ;;  %v11182_v28 = vld [vmem:[%s13367_s8 + $0x778] sm:$0xff]   ;;  %v11204_v4 = vld [vmem:[%s13367_s8 + $0x710] sm:$0xff]  }
0x23b6   :  { %10356 = vmatpush3.bf16.msra.mxu1 %v11128_v38  ;;  %10378 = vmatpush3.bf16.msra.mxu0 %v11129_v40  ;;  %v7375_v1 = vadd.f32 %v7374_v57, %v6958_v22  ;;  %v7418_v5 = vadd.f32 %v7417_v31, %v6966_v58  ;;  %v7544_v38 = vpack.c.bf16 %v7528_v19, %v7512_v45  ;;  %v7517_v40 = vmax.f32 %v7414_v60, 0.0  ;;  %v11169_v22 = vld [vmem:[%s13367_s8 + $0x698] sm:$0xff]   ;;  %v11170_v31 = vld [vmem:[%s13367_s8 + $0x650] sm:$0xff]   ;;  %v11177_v43 = vld [vmem:[%s13367_s8 + $0x688] sm:$0xff]  }
0x23b7   :  { %10357 = vmatprep.subr.bf16.mxu1 %v11130_v26  ;;  %10379 = vmatprep.subr.bf16.mxu0 %v11131_v16  ;;  %v11154_v26 = vld [vmem:[%s13367_s8 + $0x670] sm:$0xff]   ;;  %v6982_v60 = vrot.slane %v13071_v63, %v12009_v52  ;;  %v11180_v45 = vld [vmem:[%s13367_s8 + $0x600] sm:$0xff]  }
0x23b8   :  { %v7531_v32 = vmax.f32 %v7375_v1, 0.0  ;;  %v7533_v33 = vmax.f32 %v7418_v5, 0.0  ;;  %v11175_v1 = vld [vmem:[%s13367_s8 + $0x6c8] sm:$0xff]   ;;  %v6962_v5 = vrot.slane %v13071_v63, %v11990_v17  ;;  %v11178_v17 = vld [vmem:[%s13367_s8 + $0x640] sm:$0xff]  }
0x23b9   :  { %v11181_v52 = vld [vmem:[%s13367_s8 + $0x680] sm:$0xff]  }
0x23ba   :  { %10358 = vmatpush3.bf16.msra.mxu1 %v11132_v2  ;;  %10380 = vmatpush3.bf16.msra.mxu0 %v11133_v3  ;;  %v7547_v16 = vpack.c.bf16 %v7531_v32, %v7515_v36  ;;  %v11155_v2 = vld [vmem:[%s13367_s8 + $0x6f0] sm:$0xff]   ;;  %v7549_v3 = vpack.c.bf16 %v7533_v33, %v7517_v40  ;;  %v7416_v19 = vadd.f32 %v13053_v12, %v6962_v5  ;;  %v7530_v12 = vmax.f32 %v7373_v41, 0.0 }
0x23bb   :  { %10359 = vmatprep.subr.bf16.mxu1 %v11134_v27  ;;  %10381 = vmatprep.subr.bf16.mxu0 %v11135_v46  ;;  %v11156_v27 = vld [vmem:[%s13367_s8 + $0x630] sm:$0xff]   ;;  %v7412_v25 = vadd.f32 %v13025_v10, %v6962_v5  ;;  %v7514_v36 = vmax.f32 %v7369_v18, 0.0  ;;  %v6970_v41 = vrot.slane %v13071_v63, %v12088_v7  ;;  %v11210_v7 = vld [vmem:[%s13367_s8 + $0x740] sm:$0xff]  }
0x23bc   :  { %v11157_v46 = vld [vmem:[%s13367_s8 + $0x6b0] sm:$0xff]  }
0x23bd   :  { %v11205_v5 = vld [vmem:[%s13367_s8 + $0x790] sm:$0xff]  }
0x23be   :  { %10360 = vmatpush3.bf16.msra.mxu1 %v11136_v48  ;;  %10382 = vmatpush3.bf16.msra.mxu0 %v11137_v9  ;;  %v11159_v48 = vld [vmem:[%s13367_s8 + $0x6e8] sm:$0xff]  }
0x23bf   :  { %10361 = vmatprep.subr.bf16.mxu1 %v11138_v49  ;;  %10383 = vmatprep.subr.bf16.mxu0 %v11139_v50  ;;  %v11161_v9 = vld [vmem:[%s13367_s8 + $0x6a8] sm:$0xff]   ;;  %v11162_v49 = vld [vmem:[%s13367_s8 + $0x660] sm:$0xff]  }
0x23c0   :  { %v11163_v50 = vld [vmem:[%s13367_s8 + $0x6e0] sm:$0xff]  }
0x23c2   :  { %10362 = vmatpush3.bf16.msra.mxu1 %v11140_v53  ;;  %10384 = vmatpush3.bf16.msra.mxu0 %v11141_v21  ;;  %v13141_v53 = vpop.f32.mrf.mxu1  ;;  %v11164_v21 = vld [vmem:[%s13367_s8 + $0x620] sm:$0xff]  }
0x23c3   :  { %10363 = vmatprep.subr.bf16.mxu1 %v11142_v56  ;;  %10385 = vmatprep.subr.bf16.mxu0 %v11143_v55  ;;  %v13146_v56 = vpop.f32.mrf.mxu0  ;;  %v11165_v55 = vld [vmem:[%s13367_s8 + $0x6a0] sm:$0xff]  }
0x23c4   :  { %v7456_v57 = vpop.f32.mrf.mxu1 }
0x23c5   :  { %v7499_v15 = vpop.f32.mrf.mxu0 }
0x23c6   :  { %10364 = vmatpush3.bf16.msra.mxu1 %v11144_v54  ;;  %10386 = vmatpush3.bf16.msra.mxu0 %v11145_v24  ;;  %v11168_v54 = vld [vmem:[%s13367_s8 + $0x618] sm:$0xff]   ;;  %v11171_v24 = vld [vmem:[%s13367_s8 + $0x6d0] sm:$0xff]   ;;  %v7500_v10 = vadd.f32 %v7499_v15, %v6982_v60  ;;  %v11196_v15 = vld [vmem:[%s13367_s8 + $0x720] sm:$0xff]  }
0x23c7   :  { %10365 = vmatprep.subr.bf16.mxu1 %v11146_v30  ;;  %10387 = vmatprep.subr.bf16.mxu0 %v11147_v42  ;;  %v13169_v30 = vpop.f32.mrf.mxu1  ;;  %v13174_v58 = vpop.f32.mrf.mxu0  ;;  %v11173_v42 = vld [vmem:[%s13367_s8 + $0x690] sm:$0xff]  }
0x23ca   :  { %10366 = vmatpush3.bf16.msra.mxu1 %v11148_v11  ;;  %10388 = vmatpush3.bf16.msra.mxu0 %v11149_v44  ;;  %v7460_v11 = vpop.f32.mrf.mxu1  ;;  %v6974_v44 = vrot.slane %v13071_v63, %v12006_v51  ;;  %v11179_v51 = vld [vmem:[%s13367_s8 + $0x6c0] sm:$0xff]  }
0x23cb   :  { %10395 = vmatprep.subr.bf16.mxu1 %v11150_v29  ;;  %10417 = vmatprep.subr.bf16.mxu0 %v11151_v23  ;;  %v7503_v29 = vpop.f32.mrf.mxu0 }
0x23cc   :  { %v7461_v23 = vadd.f32 %v7460_v11, %v6974_v44  ;;  %v7504_v32 = vadd.f32 %v7503_v29, %v6982_v60  ;;  %v7457_v33 = vadd.f32 %v7456_v57, %v6974_v44  ;;  %v11194_v57 = vld [vmem:[%s13367_s8 + $0x760] sm:$0xff]   ;;  %v11206_v11 = vld [vmem:[%s13367_s8 + $0x748] sm:$0xff]   ;;  %v6978_v44 = vrot.slane %v13071_v63, %v12091_v8 }
0x23cd   :  { %8699 = vmatmul.mubr.bf16.vlgmr.msra.gmra.mxu1 %v7542_v35  ;;  %8740 = vmatmul.mubr.bf16.vlgmr.msra.gmra.mxu0 %v7544_v38  ;;  %v11183_v35 = vld [vmem:[%s13367_s8 + $0x7f8] sm:$0xff]   ;;  %v7516_v38 = vmax.f32 %v7412_v25, 0.0  ;;  %v11208_v29 = vld [vmem:[%s13367_s8 + $0x708] sm:$0xff]   ;;  %v11211_v8 = vld [vmem:[%s13367_s8 + $0x7c0] sm:$0xff]   ;;  %v7455_v63 = vadd.f32 %v13141_v53, %v6970_v41 }
0x23ce   :  { %10396 = vmatpush3.bf16.msra.mxu1 %v11152_v34  ;;  %8780 = vmatprep.mubr.bf16.mxu1 %v7547_v16  ;;  %v7532_v34 = vmax.f32 %v7416_v19, 0.0  ;;  %v7537_v40 = vmax.f32 %v7504_v32, 0.0  ;;  %v7546_v16 = vpack.c.bf16 %v7530_v12, %v7514_v36  ;;  %v7502_v19 = vadd.f32 %v13174_v58, %v6978_v44  ;;  %v11212_v60 = vld [vmem:[%s13367_s8 + $0x700] sm:$0xff]  }
0x23cf   :  { %10418 = vmatpush3.bf16.msra.mxu0 %v11153_v37  ;;  %8821 = vmatprep.mubr.bf16.mxu0 %v7549_v3  ;;  %v7535_v37 = vmax.f32 %v7461_v23, 0.0  ;;  %v11185_v3 = vld [vmem:[%s13367_s8 + $0x7b8] sm:$0xff]   ;;  %v11213_v58 = vld [vmem:[%s13367_s8 + $0x780] sm:$0xff]   ;;  %v7518_v23 = vmax.f32 %v7455_v63, 0.0 }
0x23d0   :  { %10397 = vmatprep.subr.bf16.mxu1 %v11154_v26  ;;  %10419 = vmatprep.subr.bf16.mxu0 %v11155_v2  ;;  %v11184_v26 = vld [vmem:[%s13367_s8 + $0x738] sm:$0xff]   ;;  %v7519_v2 = vmax.f32 %v7457_v33, 0.0  ;;  %v7536_v18 = vmax.f32 %v7502_v19, 0.0 }
0x23d2   :  { %10398 = vmatpush3.bf16.msra.mxu1 %v11156_v27  ;;  %v7548_v27 = vpack.c.bf16 %v7532_v34, %v7516_v38 }
0x23d3   :  { %10420 = vmatpush3.bf16.msra.mxu0 %v11157_v46  ;;  %10399 = vmatprep.subr.bf16.mxu1 %v11158_v47  ;;  %v7521_v46 = vmax.f32 %v7500_v10, 0.0  ;;  %v11186_v47 = vld [vmem:[%s13367_s8 + $0x770] sm:$0xff]  }
0x23d4   :  { %10421 = vmatprep.subr.bf16.mxu0 %v11159_v48  ;;  %v7551_v48 = vpack.c.bf16 %v7535_v37, %v7519_v2 }
0x23d6   :  { %10400 = vmatpush3.bf16.msra.mxu1 %v11160_v13  ;;  %v11187_v13 = vld [vmem:[%s13367_s8 + $0x7f0] sm:$0xff]  }
0x23d7   :  { %10422 = vmatpush3.bf16.msra.mxu0 %v11161_v9  ;;  %10401 = vmatprep.subr.bf16.mxu1 %v11162_v49  ;;  %v7553_v9 = vpack.c.bf16 %v7537_v40, %v7521_v46  ;;  %v11188_v49 = vld [vmem:[%s13367_s8 + $0x730] sm:$0xff]  }
0x23d8   :  { %10423 = vmatprep.subr.bf16.mxu0 %v11163_v50  ;;  %v11189_v50 = vld [vmem:[%s13367_s8 + $0x7b0] sm:$0xff]  }
0x23da   :  { %10402 = vmatpush3.bf16.msra.mxu1 %v11164_v21  ;;  %v11190_v21 = vld [vmem:[%s13367_s8 + $0x768] sm:$0xff]  }
0x23db   :  { %10424 = vmatpush3.bf16.msra.mxu0 %v11165_v55  ;;  %10403 = vmatprep.subr.bf16.mxu1 %v11166_v61  ;;  %v11191_v55 = vld [vmem:[%s13367_s8 + $0x7e8] sm:$0xff]  }
0x23dc   :  { %10425 = vmatprep.subr.bf16.mxu0 %v11167_v62  ;;  %v11192_v61 = vld [vmem:[%s13367_s8 + $0x728] sm:$0xff]  }
0x23dd   :  { %v11193_v62 = vld [vmem:[%s13367_s8 + $0x7a8] sm:$0xff]  }
0x23de   :  { %10404 = vmatpush3.bf16.msra.mxu1 %v11168_v54  ;;  %v11195_v54 = vld [vmem:[%s13367_s8 + $0x7e0] sm:$0xff]  }
0x23df   :  { %10426 = vmatpush3.bf16.msra.mxu0 %v11169_v22  ;;  %10405 = vmatprep.subr.bf16.mxu1 %v11170_v31  ;;  %v11197_v22 = vld [vmem:[%s13367_s8 + $0x7a0] sm:$0xff]   ;;  %v11198_v31 = vld [vmem:[%s13367_s8 + $0x758] sm:$0xff]  }
0x23e0   :  { %10427 = vmatprep.subr.bf16.mxu0 %v11171_v24  ;;  %v11199_v24 = vld [vmem:[%s13367_s8 + $0x7d8] sm:$0xff]  }
0x23e2   :  { %10406 = vmatpush3.bf16.msra.mxu1 %v11172_v0  ;;  %v11200_v0 = vld [vmem:[%s13367_s8 + $0x718] sm:$0xff]  }
0x23e3   :  { %10428 = vmatpush3.bf16.msra.mxu0 %v11173_v42  ;;  %10407 = vmatprep.subr.bf16.mxu1 %v11174_v20  ;;  %v11201_v42 = vld [vmem:[%s13367_s8 + $0x798] sm:$0xff]   ;;  %v11202_v20 = vld [vmem:[%s13367_s8 + $0x750] sm:$0xff]  }
0x23e4   :  { %10429 = vmatprep.subr.bf16.mxu0 %v11175_v1  ;;  %v11203_v1 = vld [vmem:[%s13367_s8 + $0x7d0] sm:$0xff]  }
0x23e6   :  { %10408 = vmatpush3.bf16.msra.mxu1 %v11176_v59  ;;  %v11207_v59 = vld [vmem:[%s13367_s8 + $0x7c8] sm:$0xff]  }
0x23e7   :  { %10430 = vmatpush3.bf16.msra.mxu0 %v11177_v43  ;;  %10409 = vmatprep.subr.bf16.mxu1 %v11178_v17  ;;  %v7459_v43 = vadd.f32 %v13169_v30, %v6970_v41  ;;  %v11209_v17 = vld [vmem:[%s13367_s8 + $0x788] sm:$0xff]   ;;  %v7498_v30 = vadd.f32 %v13146_v56, %v6978_v44 }
0x23e8   :  { %10431 = vmatprep.subr.bf16.mxu0 %v11179_v51 }
0x23e9   :  { %v7534_v51 = vmax.f32 %v7459_v43, 0.0  ;;  %v7520_v25 = vmax.f32 %v7498_v30, 0.0 }
0x23ea   :  { %10410 = vmatpush3.bf16.msra.mxu1 %v11180_v45 }
0x23eb   :  { %10432 = vmatpush3.bf16.msra.mxu0 %v11181_v52  ;;  %10439 = vmatprep.subr.bf16.mxu1 %v11182_v28  ;;  %v7550_v53 = vpack.c.bf16 %v7534_v51, %v7518_v23  ;;  %v7552_v56 = vpack.c.bf16 %v7536_v18, %v7520_v25 }
0x23ec   :  { %10461 = vmatprep.subr.bf16.mxu0 %v11183_v35 }
0x23ed   :  { %8781 = vmatmul.mubr.bf16.vlgmr.msra.gmra.mxu1 %v7546_v16 }
0x23ee   :  { %8822 = vmatmul.mubr.bf16.vlgmr.msra.gmra.mxu0 %v7548_v27  ;;  %10440 = vmatpush3.bf16.msra.mxu1 %v11184_v26 }
0x23ef   :  { %8862 = vmatprep.mubr.bf16.mxu1 %v7551_v48  ;;  %10462 = vmatpush3.bf16.msra.mxu0 %v11185_v3  ;;  %v9842_v3 = vld [vmem:[%s13361_s2 + $0x12] ss:$0 sm:$0xff] }
0x23f0   :  { %8903 = vmatprep.mubr.bf16.mxu0 %v7553_v9  ;;  %10441 = vmatprep.subr.bf16.mxu1 %v11186_v47 }
0x23f1   :  { %10463 = vmatprep.subr.bf16.mxu0 %v11187_v13 }
0x23f2   :  { %10442 = vmatpush3.bf16.msra.mxu1 %v11188_v49 }
0x23f3   :  { %10464 = vmatpush3.bf16.msra.mxu0 %v11189_v50  ;;  %10443 = vmatprep.subr.bf16.mxu1 %v11190_v21 }
0x23f4   :  { %10465 = vmatprep.subr.bf16.mxu0 %v11191_v55 }
0x23f6   :  { %10444 = vmatpush3.bf16.msra.mxu1 %v11192_v61 }
0x23f7   :  { %10466 = vmatpush3.bf16.msra.mxu0 %v11193_v62  ;;  %10445 = vmatprep.subr.bf16.mxu1 %v11194_v57 }
0x23f8   :  { %10467 = vmatprep.subr.bf16.mxu0 %v11195_v54 }
0x23fa   :  { %10446 = vmatpush3.bf16.msra.mxu1 %v11196_v15 }
0x23fb   :  { %10468 = vmatpush3.bf16.msra.mxu0 %v11197_v22  ;;  %10447 = vmatprep.subr.bf16.mxu1 %v11198_v31 }
0x23fc   :  { %10469 = vmatprep.subr.bf16.mxu0 %v11199_v24 }
0x23fe   :  { %10448 = vmatpush3.bf16.msra.mxu1 %v11200_v0 }
0x23ff   :  { %10470 = vmatpush3.bf16.msra.mxu0 %v11201_v42  ;;  %10449 = vmatprep.subr.bf16.mxu1 %v11202_v20 }
0x2400   :  { %10471 = vmatprep.subr.bf16.mxu0 %v11203_v1 }
0x2402   :  { %10450 = vmatpush3.bf16.msra.mxu1 %v11204_v4 }
0x2403   :  { %10472 = vmatpush3.bf16.msra.mxu0 %v11205_v5  ;;  %10451 = vmatprep.subr.bf16.mxu1 %v11206_v11 }
0x2404   :  { %10473 = vmatprep.subr.bf16.mxu0 %v11207_v59 }
0x2406   :  { %10452 = vmatpush3.bf16.msra.mxu1 %v11208_v29 }
0x2407   :  { %10474 = vmatpush3.bf16.msra.mxu0 %v11209_v17  ;;  %10453 = vmatprep.subr.bf16.mxu1 %v11210_v7 }
0x2408   :  { %10475 = vmatprep.subr.bf16.mxu0 %v11211_v8 }
0x240a   :  { %10454 = vmatpush3.bf16.msra.mxu1 %v11212_v60 }
0x240b   :  { %10476 = vmatpush3.bf16.msra.mxu0 %v11213_v58  ;;  %10895 = vmatprep.subr.mxu1 %v11316_v6 }
0x240d   :  { %8863 = vmatmul.mubr.bf16.vlgmr.msra.gmra.mxu1 %v7550_v53 }
0x240e   :  { %8904 = vmatmul.mubr.bf16.vlgmr.msra.gmra.mxu0 %v7552_v56  ;;  %10903 = vmatprep.mubr.msk.f32.mxu1 %vm11317_vm1, %v11316_v6 }
0x246d   :  { %v10323_v32 = vpop.f32.mrf.mxu1  ;;  %v10345_v45 = vpop.f32.mrf.mxu0 }
0x246f   :  { %v10324_v12 = vpop.f32.mrf.mxu1  ;;  %v10346_v33 = vpop.f32.mrf.mxu0 }
0x2470   :  { %v10325_v2 = vadd.f32 %v10324_v12, %v10323_v32  ;;  %v10347_v49 = vadd.f32 %v10346_v33, %v10345_v45 }
0x2471   :  { %v10326_v52 = vpop.f32.mrf.mxu1  ;;  %v10348_v28 = vpop.f32.mrf.mxu0 }
0x2472   :  { %v8619_v47 = vadd.f32 %v10325_v2, %v9842_v3 }
0x2473   :  { %v10327_v34 = vpop.f32.mrf.mxu1  ;;  %v10349_v35 = vpop.f32.mrf.mxu0 }
0x2474   :  { %v10328_v48 = vadd.f32 %v10327_v34, %v10326_v52  ;;  %v8660_v21 = vadd.f32 %v10347_v49, %v8619_v47  ;;  %v10350_v57 = vadd.f32 %v10349_v35, %v10348_v28  ;;  %v8954_v47 = vld [vmem:[%s13368_s9] sm:$0xff] }
0x2476   :  { %v8622_v55 = vadd.f32 %v10328_v48, %v9842_v3 }
0x2478   :  { %v8663_v22 = vadd.f32 %v10350_v57, %v8622_v55 }
0x248d   :  { %v10367_v10 = vpop.f32.mrf.mxu1  ;;  %v10389_v36 = vpop.f32.mrf.mxu0 }
0x248f   :  { %v10368_v37 = vpop.f32.mrf.mxu1  ;;  %v10390_v38 = vpop.f32.mrf.mxu0 }
0x2490   :  { %v10369_v50 = vadd.f32 %v10368_v37, %v10367_v10  ;;  %v10391_v31 = vadd.f32 %v10390_v38, %v10389_v36 }
0x2491   :  { %v10370_v40 = vpop.f32.mrf.mxu1  ;;  %v10392_v26 = vpop.f32.mrf.mxu0 }
0x2492   :  { %v8701_v54 = vadd.f32 %v10369_v50, %v8660_v21 }
0x2493   :  { %v10371_v16 = vpop.f32.mrf.mxu1  ;;  %v10393_v46 = vpop.f32.mrf.mxu0 }
0x2494   :  { %v10372_v15 = vadd.f32 %v10371_v16, %v10370_v40  ;;  %v8742_v20 = vadd.f32 %v10391_v31, %v8701_v54  ;;  %v10394_v4 = vadd.f32 %v10393_v46, %v10392_v26  ;;  %v8955_v46 = vld [vmem:[%s13368_s9 + $0x8] sm:$0xff] }
0x2496   :  { %v8704_v1 = vadd.f32 %v10372_v15, %v8663_v22 }
0x2498   :  { %v8745_v44 = vadd.f32 %v10394_v4, %v8704_v1  ;;  %v9973_v1 = vld [vmem:[%s13369_s10] ss:$0 sm:$0xff] }
0x24ad   :  { %v10411_v27 = vpop.f32.mrf.mxu1 }
0x24ae   :  { %v10433_v13 = vpop.f32.mrf.mxu0 }
0x24af   :  { %v10412_v9 = vpop.f32.mrf.mxu1 }
0x24b0   :  { %v10434_v61 = vpop.f32.mrf.mxu0  ;;  %v10413_v24 = vadd.f32 %v10412_v9, %v10411_v27  ;;  %v8956_v27 = vld [vmem:[%s13368_s9 + $0x10] sm:$0xff] }
0x24b1   :  { %v10414_v62 = vpop.f32.mrf.mxu1  ;;  %v10435_v29 = vadd.f32 %v10434_v61, %v10433_v13  ;;  %v9971_v61 = vld [vmem:[%s13361_s2 + $0x13] ss:$0 sm:$0xff] }
0x24b2   :  { %v10436_v0 = vpop.f32.mrf.mxu0  ;;  %v8783_v5 = vadd.f32 %v10413_v24, %v8742_v20 }
0x24b3   :  { %v10415_v42 = vpop.f32.mrf.mxu1 }
0x24b4   :  { %v10416_v11 = vadd.f32 %v10415_v42, %v10414_v62  ;;  %v10437_v59 = vpop.f32.mrf.mxu0  ;;  %v8824_v7 = vadd.f32 %v10435_v29, %v8783_v5 }
0x24b5   :  { %v10438_v60 = vadd.f32 %v10437_v59, %v10436_v0 }
0x24b6   :  { %v8786_v19 = vadd.f32 %v10416_v11, %v8745_v44 }
0x24b8   :  { %v8827_v25 = vadd.f32 %v10438_v60, %v8786_v19 }
0x24cd   :  { %v10455_v41 = vpop.f32.mrf.mxu1 }
0x24ce   :  { %v10477_v43 = vpop.f32.mrf.mxu0 }
0x24cf   :  { %v10456_v17 = vpop.f32.mrf.mxu1 }
0x24d0   :  { %v10457_v8 = vadd.f32 %v10456_v17, %v10455_v41  ;;  %v10478_v63 = vpop.f32.mrf.mxu0 }
0x24d1   :  { %v10458_v30 = vpop.f32.mrf.mxu1  ;;  %v10479_v58 = vadd.f32 %v10478_v63, %v10477_v43 }
0x24d2   :  { %v8865_v51 = vadd.f32 %v10457_v8, %v8824_v7  ;;  %v10480_v18 = vpop.f32.mrf.mxu0 }
0x24d3   :  { %v10459_v23 = vpop.f32.mrf.mxu1 }
0x24d4   :  { %v8906_v53 = vadd.f32 %v10479_v58, %v8865_v51  ;;  %v10460_v56 = vadd.f32 %v10459_v23, %v10458_v30  ;;  %v10481_v32 = vpop.f32.mrf.mxu0 }
0x24d5   :  { %v10482_v12 = vadd.f32 %v10481_v32, %v10480_v18 }
0x24d6   :  { %v8868_v45 = vadd.f32 %v10460_v56, %v8827_v25  ;;  %v8912_v33 = vadd.f32 %v8906_v53, %v12779_v14 }
0x24d8   :  { %v8909_v52 = vadd.f32 %v10482_v12, %v8868_v45  ;;  %v8916_v28 = vsel %vm158_vm2, %v8912_v33, 0.0 }
0x24d9   :  { %8917 = vadd.xlane.f32.xlu0 %v8916_v28 }
0x24da   :  { %v8913_v34 = vadd.f32 %v8909_v52, %v12781_v39  ;;  %v8957_v39 = vld [vmem:[%s13368_s9 + $0x18] sm:$0xff] }
0x24db   :  { %10896 = vmatpush3.msra.mxu1 %v8957_v39 }
0x24dc   :  { %v8919_v10 = vsel %vm158_vm2, %v8913_v34, 0.0  ;;  %10897 = vmatprep.subr.mxu1 %v11316_v6 }
0x24dd   :  { %8920 = vadd.xlane.f32.xlu1 %v8919_v10  ;;  %10898 = vmatpush3.msra.mxu1 %v8956_v27 }
0x24de   :  { %10899 = vmatprep.subr.mxu1 %v11316_v6 }
0x24df   :  { %10900 = vmatpush3.msra.mxu1 %v8955_v46 }
0x24e0   :  { %10901 = vmatprep.subr.mxu1 %v11316_v6  ;;  %v9972_v6 = vld [vmem:[%s13361_s2 + $0x14] ss:$0 sm:$0xff]  ;;  %s11294_s2 = scalar_lea.vmem %s9051_s13, 32 }
0x24e1   :  { %10902 = vmatpush3.msra.mxu1 %v8954_v47  ;;  %p11295_p0 = scmp.ne.s32.totalorder %s9051_s13, %s11294_s2  ;;  %p11300_p2 = scmp.lt.s32.totalorder %s11294_s2, %s11294_s2 }
0x24e3   :  { %p11301_p3 = por %p11300_p2, %p11299_p1 }
0x24e5   :  { %p11302_p4 = pnand %p11301_p3, %p11295_p0 }
0x2562   :  { %v8918_v35 = vpop.xlane.xlu0 %8917 }
0x2563   :  { %v8922_v36 = vmul.f32 0.03125, %v8918_v35 }
0x2565   :  { %v8924_v37 = vsub.f32 %v8912_v33, %v8922_v36 }
0x2566   :  { %v8921_v38 = vpop.xlane.xlu1 %8920 }
0x2567   :  { %v8923_v40 = vmul.f32 0.03125, %v8921_v38  ;;  %v8926_v26 = vmul.f32 %v8924_v37, %v8924_v37 }
0x2569   :  { %v8925_v16 = vsub.f32 %v8913_v34, %v8923_v40  ;;  %v8928_v2 = vsel %vm158_vm2, %v8926_v26, 0.0 }
0x256a   :  { %8929 = vadd.xlane.f32.xlu0 %v8928_v2 }
0x256b   :  { %v8927_v14 = vmul.f32 %v8925_v16, %v8925_v16 }
0x256d   :  { %v8931_v3 = vsel %vm158_vm2, %v8927_v14, 0.0 }
0x256e   :  { %8932 = vadd.xlane.f32.xlu1 %v8931_v3 }
0x25f3   :  { %v8930_v48 = vpop.xlane.xlu0 %8929 }
0x25f4   :  { %v8934_v13 = vmul.f32 0.03125, %v8930_v48 }
0x25f6   :  { %v8936_v9 = vadd.f32 1e-05, %v8934_v13 }
0x25f7   :  { %v8933_v49 = vpop.xlane.xlu1 %8932 }
0x25f8   :  { %11290 = vrsqrt.f32 %v8936_v9  ;;  %v8935_v50 = vmul.f32 0.03125, %v8933_v49 }
0x25fa   :  { %v8937_v21 = vadd.f32 1e-05, %v8935_v50 }
0x25fc   :  { %11292 = vrsqrt.f32 %v8937_v21 }
0x2605   :  { %v11291_v55 = vpop.eup %11290 }
0x2606   :  { %v8940_v62 = vmul.f32 %v11291_v55, %v8924_v37 }
0x2608   :  { %v8946_v57 = vmul.f32 %v9971_v61, %v8940_v62 }
0x2609   :  { %v11293_v54 = vpop.eup %11292 }
0x260a   :  { %v8941_v15 = vmul.f32 %v11293_v54, %v8925_v16  ;;  %v8952_v31 = vadd.f32 %v9972_v6, %v8946_v57 }
0x260c   :  { %v8947_v22 = vmul.f32 %v9971_v61, %v8941_v15  ;;  %v8967_v0 = vrot.slane %v8952_v31, 7 }
0x260e   :  { %v8953_v24 = vadd.f32 %v9972_v6, %v8947_v22 }
0x2610   :  { %v8968_v42 = vrot.slane %v8953_v24, 6 }
0x2612   :  { %v8970_v20 = vsel %vm8969_vm5, %v8968_v42, %v8967_v0 }
0x2613   :  { %10904 = vmatmul.mubr.msk.f32.vlgmr.msra.gmra.mxu1 %vm158_vm2, %v8970_v20 }
0x26d3   :  { %v9039_v4 = vpop.f32.mrf.mxu1 }
0x26d4   :  { %v9040_v5 = vadd.f32 %v9973_v1, %v9039_v4 }
0x26d5   :  { %v10905_v11 = vpop.f32.mrf.mxu1 }
0x26d6   :  { %9043 = vst [vmem:[#allocation2] sm:$0x3] %v9040_v5 }
0x26d7   :  { %11305 = shalt.err (!%p11302_p4)
}
0x26d8   :  { %9053 = dma.vmem_to_hbm [thread:$0]  %s9051_s13, 32, %s13370_s11, [#allocation3]  }
0x26d9   :  { %11314 = dma.done.wait [#allocation3], 32  }
0x26da   :  { %11315 = vsyncadd [#allocation3], 4294967264 }
0x26db   :  { %9057 = vsyncpa [#allocation3], 1 }

// kernel: tpu_custom_call.1
= control target key start
LH: loop header
LB: loop body
LE: loop exit
PB: predicated region body
PF: predicated region fallthrough
CT: control target
= control target key end

     0   :  { %vm49_vm0 = vcmask 130048   ;;  %v11316_v6 = vmov 0.0   ;;  %vm11317_vm1 = vmmov 0   ;;  %vm158_vm2 = vcmask 261120   ;;  %s13359_s0 = inlined_call_operand.vmem [shape: f32[2,8,16], index: 0, kind: input, shape index: {}]   ;;  %s13360_s1 = inlined_call_operand.vmem [shape: f32[16,32], index: 1, kind: input, shape index: {}]   ;;  %s13361_s2 = inlined_call_operand.vmem [shape: f32[21,32], index: 2, kind: input, shape index: {}]   ;;  %s13362_s3 = inlined_call_operand.vmem [shape: bf16[24,32,8], index: 3, kind: input, shape index: {}]   ;;  %s13363_s4 = inlined_call_operand.vmem [shape: f32[24,1,8], index: 4, kind: input, shape index: {}]   ;;  %s13364_s5 = inlined_call_operand.vmem [shape: bf16[8,8,32], index: 5, kind: input, shape index: {}]   ;;  %s13365_s6 = inlined_call_operand.vmem [shape: bf16[2,32,2048], index: 6, kind: input, shape index: {}]   ;;  %s13366_s7 = inlined_call_operand.vmem [shape: f32[2,1,2048], index: 7, kind: input, shape index: {}]   ;;  %s13367_s8 = inlined_call_operand.vmem [shape: bf16[2,2048,32], index: 8, kind: input, shape index: {}]   ;;  %s13368_s9 = inlined_call_operand.vmem [shape: f32[32,128], index: 9, kind: input, shape index: {}]   ;;  %s13369_s10 = inlined_call_operand.vmem [shape: f32[1,128], index: 10, kind: input, shape index: {}]   ;;  %s13370_s11 = inlined_call_operand.hbm [shape: f32[1,2,128], index: 11, kind: output, shape index: {}]  }
   0x1   :  { %v43_v0 = vld [vmem:[%s13360_s1 + $0x8] sm:$0xff]  ;;  %v42_v1 = vld [vmem:[%s13360_s1] sm:$0xff]  ;;  %10495 = vmatprep.subr.bf16.mxu1 %v11316_v6  ;;  %10499 = vmatprep.mubr.msk.bf16.mxu1 %vm11317_vm1, %v11316_v6 }
   0x2   :  { %v40_v2 = vld [vmem:[%s13359_s0] sm:$0xff]  ;;  %10488 = vmatprep.subr.mxu0 %v43_v0  ;;  %v41_v3 = vld [vmem:[%s13359_s0 + $0x8] sm:$0xff] }
   0x3   :  { %10492 = vmatprep.mubr.msk.f32.mxu0 %vm49_vm0, %v40_v2  ;;  %10489 = vmatpush3.msra.mxu0 %v43_v0  ;;  %v10910_v4 = vld [vmem:[%s13362_s3 + $0x8] sm:$0xff]   ;;  %v10912_v7 = vld [vmem:[%s13362_s3] sm:$0xff]  }
   0x4   :  { %10490 = vmatprep.subr.mxu0 %v42_v1  ;;  %v10911_v5 = vld [vmem:[%s13362_s3 + $0x48] sm:$0xff]   ;;  %10496 = vmatpush3.bf16.msra.mxu1 %v10910_v4  ;;  %v10913_v8 = vld [vmem:[%s13362_s3 + $0x40] sm:$0xff]  }
   0x5   :  { %10491 = vmatpush3.msra.mxu0 %v42_v1  ;;  %10497 = vmatprep.subr.bf16.mxu1 %v11316_v6  ;;  %v9058_v9 = vld [vmem:[%s13361_s2] ss:$0 sm:$0xff]  ;;  %v131_v11 = vld [vmem:[%s13361_s2 + $0x1] sm:$0xff] }
   0x6   :  { %10493 = vmatmul.mubr.msk.f32.vlgmr.msra.gmra.mxu0 %vm49_vm0, %v41_v3  ;;  %10503 = vmatprep.subr.bf16.mxu0 %v11316_v6  ;;  %v10914_v15 = vld [vmem:[%s13362_s3 + $0x88] sm:$0xff]   ;;  %v10915_v19 = vld [vmem:[%s13362_s3 + $0x80] sm:$0xff]  }
   0x7   :  { %10504 = vmatpush3.bf16.msra.mxu0 %v10911_v5  ;;  %10507 = vmatprep.mubr.msk.bf16.mxu0 %vm11317_vm1, %v11316_v6 }
   0x8   :  { %10505 = vmatprep.subr.bf16.mxu0 %v11316_v6  ;;  %10498 = vmatpush3.bf16.msra.mxu1 %v10912_v7 }
   0x9   :  { %10511 = vmatprep.subr.bf16.mxu1 %v11316_v6 }
   0xb   :  { %10506 = vmatpush3.bf16.msra.mxu0 %v10913_v8 }
   0xc   :  { %10519 = vmatprep.subr.mxu0 %v11316_v6 }
  0xc6   :  { %v10494_v10 = vpop.f32.mrf.mxu0 }
  0xc7   :  { %v128_v12 = vadd.f32 %v10494_v10, %v9058_v9 }
  0xc8   :  { %v122_v13 = vpop.f32.mrf.mxu0 }
  0xc9   :  { %v123_v14 = vadd.f32 %v9058_v9, %v122_v13  ;;  %v11423_v16 = vadd.f32 %v131_v11, %v128_v12 }
  0xcb   :  { %v11425_v17 = vadd.f32 %v131_v11, %v123_v14 }
  0xcd   :  { %v11429_v18 = vpack.c.bf16 %v11423_v16, %v11425_v17 }
  0xcf   :  { %10500 = vmatmul.mubr.msk.bf16.vlgmr.msra.gmra.mxu1 %vm158_vm2, %v11429_v18  ;;  %10508 = vmatmul.mubr.msk.bf16.vlgmr.msra.gmra.mxu0 %vm158_vm2, %v11429_v18 }
  0xd0   :  { %10512 = vmatpush3.bf16.msra.mxu1 %v10914_v15  ;;  %10515 = vmatprep.mubr.msk.bf16.mxu1 %vm11317_vm1, %v11316_v6 }
  0xd1   :  { %16 = vsyncpa [#allocation3], 0  ;;  %10513 = vmatprep.subr.bf16.mxu1 %v11316_v6  ;;  %10521 = vmatprep.mubr.msk.f32.mxu0 %vm11317_vm1, %v11316_v6  ;;  %v9061_v20 = vld [vmem:[%s13363_s4] ss:$0 sm:$0xff]  ;;  %v9070_v21 = vld [vmem:[%s13363_s4 + $0x4] ss:$0 sm:$0xff] }
  0xd2   :  { %vm337_vm3 = vcmask 64512   ;;  %v9079_v35 = vld [vmem:[%s13363_s4 + $0x8] ss:$0 sm:$0xff]  ;;  %v10916_v62 = vld [vmem:[%s13362_s3 + $0x58] sm:$0xff]   ;;  %v10918_v2 = vld [vmem:[%s13362_s3 + $0x50] sm:$0xff]   ;;  %vm1186_vm4 = vcmask 1043456  }
  0xd3   :  { %v10917_v1 = vld [vmem:[%s13362_s3 + $0x18] sm:$0xff]   ;;  %v10919_v4 = vld [vmem:[%s13362_s3 + $0x10] sm:$0xff]   ;;  %v9103_v13 = vld [vmem:[%s13363_s4 + $0x5] ss:$0 sm:$0xff]  ;;  %vm8969_vm5 = vcmask 1041409   ;;  %s11319_s12 = smov [#allocation2]  }
  0xd4   :  { %10514 = vmatpush3.bf16.msra.mxu1 %v10915_v19  ;;  %v10920_v5 = vld [vmem:[%s13362_s3 + $0x98] sm:$0xff]   ;;  %v10921_v7 = vld [vmem:[%s13362_s3 + $0x90] sm:$0xff]   ;;  %s9050_s13 = sshll.u32 %s11319_s12, 4  ;;  %s9051_s13 = int_to_ptr.vmem [resolvable:$true] %s9050_s13 }
  0xd5   :  { %10529 = vmatprep.subr.mxu1 %v11316_v6  ;;  %p11299_p1 = scmp.lt.s32.totalorder %s9051_s13, %s9051_s13 }
  0xd7   :  { %10516 = vmatmul.mubr.msk.bf16.vlgmr.msra.gmra.mxu1 %vm158_vm2, %v11429_v18 }
  0xd8   :  { %10531 = vmatprep.mubr.msk.f32.mxu1 %vm11317_vm1, %v11316_v6 }
 0x18f   :  { %v196_v22 = vpop.f32.mrf.mxu1  ;;  %v264_v23 = vpop.f32.mrf.mxu0 }
 0x190   :  { %v197_v24 = vadd.f32 %v9061_v20, %v196_v22  ;;  %v265_v25 = vadd.f32 %v9070_v21, %v264_v23 }
 0x191   :  { %v10501_v26 = vpop.f32.mrf.mxu1  ;;  %v10509_v27 = vpop.f32.mrf.mxu0 }
 0x192   :  { %v203_v28 = vmul.f32 0.35355338, %v197_v24  ;;  %10520 = vmatpush3.xpose.msk.msra.mxu0 %vm337_vm3, %v265_v25 }
 0x193   :  { %v199_v29 = vpop.f32.mrf.mxu1  ;;  %v267_v30 = vpop.f32.mrf.mxu0  ;;  %10524 = vmatprep.subr.mxu0 %v11316_v6 }
 0x194   :  { %v200_v31 = vadd.f32 %v9061_v20, %v199_v29  ;;  %v268_v32 = vadd.f32 %v9070_v21, %v267_v30  ;;  %v9094_v20 = vld [vmem:[%s13363_s4 + $0x1] ss:$0 sm:$0xff] }
 0x195   :  { %v10502_v33 = vpop.f32.mrf.mxu1  ;;  %v10510_v34 = vpop.f32.mrf.mxu0  ;;  %10522 = vmatmul.mubr.msk.f32.vlgmr.msra.gmra.mxu0 %vm337_vm3, %v203_v28 }
 0x196   :  { %v204_v36 = vmul.f32 0.35355338, %v200_v31  ;;  %10525 = vmatpush3.xpose.msk.msra.mxu0 %vm337_vm3, %v268_v32  ;;  %10526 = vmatprep.mubr.msk.f32.mxu0 %vm11317_vm1, %v11316_v6  ;;  %v9112_v31 = vld [vmem:[%s13363_s4 + $0x9] ss:$0 sm:$0xff] }
 0x197   :  { %v330_v37 = vpop.f32.mrf.mxu1  ;;  %10534 = vmatprep.subr.mxu0 %v11316_v6 }
 0x198   :  { %v331_v38 = vadd.f32 %v9079_v35, %v330_v37 }
 0x199   :  { %v10517_v39 = vpop.f32.mrf.mxu1  ;;  %10527 = vmatmul.mubr.msk.f32.vlgmr.msra.gmra.mxu0 %vm337_vm3, %v204_v36 }
 0x19a   :  { %10530 = vmatpush3.msra.mxu1 %v331_v38  ;;  %10536 = vmatprep.mubr.msk.f32.mxu0 %vm11317_vm1, %v11316_v6 }
 0x19b   :  { %v333_v40 = vpop.f32.mrf.mxu1  ;;  %10539 = vmatprep.subr.bf16.mxu1 %v11316_v6 }
 0x19c   :  { %v334_v41 = vadd.f32 %v9079_v35, %v333_v40 }
 0x19d   :  { %v10518_v42 = vpop.f32.mrf.mxu1 }
 0x19e   :  { %10535 = vmatpush3.msra.mxu0 %v334_v41 }
 0x19f   :  { %10547 = vmatprep.subr.bf16.mxu0 %v11316_v6 }
 0x255   :  { %v410_v43 = vpop.f32.mrf.mxu0 }
 0x256   :  { %v490_v48 = vsel %vm337_vm3, %v410_v43, -inf }
 0x257   :  { %v10523_v44 = vpop.f32.mrf.mxu0 }
 0x259   :  { %v486_v45 = vpop.f32.mrf.mxu0 }
 0x25a   :  { %v493_v46 = vsel %vm337_vm3, %v486_v45, -inf }
 0x25b   :  { %494 = vmax.xlane.f32.xlu0 %v493_v46  ;;  %v10528_v47 = vpop.f32.mrf.mxu0 }
 0x25f   :  { %491 = vmax.xlane.f32.xlu0 %v490_v48 }
 0x2e4   :  { %v495_v49 = vpop.xlane.xlu0 %494 }
 0x2e5   :  { %v497_v50 = vsub.f32 %v486_v45, %v495_v49 }
 0x2e7   :  { %v500_v51 = vmul.f32 1.442695, %v497_v50 }
 0x2e8   :  { %v492_v52 = vpop.xlane.xlu0 %491 }
 0x2e9   :  { %11214 = vpow2.f32 %v500_v51  ;;  %v496_v53 = vsub.f32 %v410_v43, %v492_v52 }
 0x2eb   :  { %v498_v54 = vmul.f32 1.442695, %v496_v53 }
 0x2ed   :  { %11216 = vpow2.f32 %v498_v54 }
 0x2f6   :  { %v11215_v55 = vpop.eup %11214 }
 0x2f7   :  { %v505_v56 = vsel %vm337_vm3, %v11215_v55, 0.0 }
 0x2f8   :  { %506 = vadd.xlane.f32.xlu1 %v505_v56 }
 0x2fa   :  { %v11217_v57 = vpop.eup %11216 }
 0x2fb   :  { %v502_v58 = vsel %vm337_vm3, %v11217_v57, 0.0 }
 0x2fc   :  { %503 = vadd.xlane.f32.xlu1 %v502_v58 }
 0x381   :  { %v507_v59 = vpop.xlane.xlu1 %506 }
 0x382   :  { %11218 = vrcp.f32 %v507_v59  ;;  %v659_v59 = vld [vmem:[%s13364_s5] sm:$0xf] }
 0x385   :  { %v504_v60 = vpop.xlane.xlu1 %503 }
 0x386   :  { %11220 = vrcp.f32 %v504_v60 }
 0x38f   :  { %v11219_v61 = vpop.eup %11218 }
 0x390   :  { %v511_v63 = vmul.f32 %v11219_v61, %v11215_v55 }
 0x392   :  { %10537 = vmatmul.mubr.msk.f32.vlgmr.msra.gmra.mxu0 %vm337_vm3, %v511_v63  ;;  %v10922_v63 = vld [vmem:[%s13362_s3 + $0x68] sm:$0xff]  }
 0x393   :  { %v11221_v0 = vpop.eup %11220  ;;  %10548 = vmatpush3.bf16.msra.mxu0 %v10916_v62  ;;  %10551 = vmatprep.mubr.msk.bf16.mxu0 %vm11317_vm1, %v11316_v6  ;;  %v1235_v62 = vsel %vm1186_vm4, %v659_v59, 0 }
 0x394   :  { %10549 = vmatprep.subr.bf16.mxu0 %v11316_v6  ;;  %v510_v3 = vmul.f32 %v11221_v0, %v11217_v57  ;;  %v10923_v0 = vld [vmem:[%s13362_s3 + $0x60] sm:$0xff]  }
 0x396   :  { %10532 = vmatmul.mubr.msk.f32.vlgmr.msra.gmra.mxu1 %vm337_vm3, %v510_v3 }
 0x397   :  { %10540 = vmatpush3.bf16.msra.mxu1 %v10917_v1  ;;  %10550 = vmatpush3.bf16.msra.mxu0 %v10918_v2  ;;  %v9122_v1 = vld [vmem:[%s13364_s5 + $0x4] sm:$0xf] }
 0x398   :  { %10541 = vmatprep.subr.bf16.mxu1 %v11316_v6  ;;  %10543 = vmatprep.mubr.msk.bf16.mxu1 %vm11317_vm1, %v11316_v6  ;;  %v1188_v2 = vsel %vm1186_vm4, %v9122_v1, 0 }
 0x399   :  { %10563 = vmatprep.subr.mxu0 %v11316_v6 }
 0x39a   :  { %10552 = vmatmul.mubr.msk.bf16.vlgmr.msra.gmra.mxu0 %vm158_vm2, %v11429_v18 }
 0x39b   :  { %10542 = vmatpush3.bf16.msra.mxu1 %v10919_v4  ;;  %10565 = vmatprep.mubr.msk.f32.mxu0 %vm11317_vm1, %v11316_v6 }
 0x39c   :  { %10555 = vmatprep.subr.bf16.mxu1 %v11316_v6 }
 0x39e   :  { %10544 = vmatmul.mubr.msk.bf16.vlgmr.msra.gmra.mxu1 %vm158_vm2, %v11429_v18 }
 0x39f   :  { %10556 = vmatpush3.bf16.msra.mxu1 %v10920_v5  ;;  %10559 = vmatprep.mubr.msk.bf16.mxu1 %vm11317_vm1, %v11316_v6 }
 0x3a0   :  { %10557 = vmatprep.subr.bf16.mxu1 %v11316_v6 }
 0x3a3   :  { %10558 = vmatpush3.bf16.msra.mxu1 %v10921_v7  ;;  %v10924_v7 = vld [vmem:[%s13362_s3 + $0x28] sm:$0xff]  }
 0x3a4   :  { %10573 = vmatprep.subr.mxu1 %v11316_v6 }
 0x3a6   :  { %10560 = vmatmul.mubr.msk.bf16.vlgmr.msra.gmra.mxu1 %vm158_vm2, %v11429_v18 }
 0x3a7   :  { %10575 = vmatprep.mubr.msk.f32.mxu1 %vm11317_vm1, %v11316_v6 }
 0x452   :  { %v11515_v8 = vpop.f32.mrf.mxu0 }
 0x454   :  { %v10538_v9 = vpop.f32.mrf.mxu0 }
 0x456   :  { %v11517_v10 = vpop.f32.mrf.mxu1 }
 0x457   :  { %v658_v11 = vpack.c.bf16 %v11515_v8, %v11517_v10 }
 0x458   :  { %v10533_v12 = vpop.f32.mrf.mxu1 }
 0x45a   :  { %v787_v14 = vpop.f32.mrf.mxu0 }
 0x45b   :  { %v788_v15 = vadd.f32 %v9103_v13, %v787_v14  ;;  %v10926_v14 = vld [vmem:[%s13362_s3 + $0xa8] sm:$0xff]  }
 0x45c   :  { %v10553_v19 = vpop.f32.mrf.mxu0 }
 0x45d   :  { %10564 = vmatpush3.xpose.msk.msra.mxu0 %vm337_vm3, %v788_v15  ;;  %v9139_v19 = vld [vmem:[%s13363_s4 + $0x6] ss:$0 sm:$0xff] }
 0x45e   :  { %v719_v21 = vpop.f32.mrf.mxu1  ;;  %v790_v22 = vpop.f32.mrf.mxu0  ;;  %10568 = vmatprep.subr.mxu0 %v11316_v6 }
 0x45f   :  { %v720_v23 = vadd.f32 %v9094_v20, %v719_v21  ;;  %v791_v27 = vadd.f32 %v9103_v13, %v790_v22  ;;  %v10927_v21 = vld [vmem:[%s13362_s3 + $0xa0] sm:$0xff]  }
 0x460   :  { %v10545_v24 = vpop.f32.mrf.mxu1  ;;  %v10554_v25 = vpop.f32.mrf.mxu0 }
 0x461   :  { %v726_v26 = vmul.f32 0.35355338, %v720_v23 }
 0x462   :  { %v722_v28 = vpop.f32.mrf.mxu1 }
 0x463   :  { %v723_v29 = vadd.f32 %v9094_v20, %v722_v28  ;;  %10566 = vmatmul.mubr.msk.f32.vlgmr.msra.gmra.mxu0 %vm337_vm3, %v726_v26 }
 0x464   :  { %10569 = vmatpush3.xpose.msk.msra.mxu0 %vm337_vm3, %v791_v27  ;;  %v10546_v30 = vpop.f32.mrf.mxu1  ;;  %10570 = vmatprep.mubr.msk.f32.mxu0 %vm11317_vm1, %v11316_v6 }
 0x465   :  { %v727_v32 = vmul.f32 0.35355338, %v723_v29  ;;  %10578 = vmatprep.subr.mxu0 %v11316_v6 }
 0x466   :  { %v853_v33 = vpop.f32.mrf.mxu1 }
 0x467   :  { %v854_v34 = vadd.f32 %v9112_v31, %v853_v33  ;;  %10571 = vmatmul.mubr.msk.f32.vlgmr.msra.gmra.mxu0 %vm337_vm3, %v727_v32 }
 0x468   :  { %v10561_v35 = vpop.f32.mrf.mxu1  ;;  %10580 = vmatprep.mubr.msk.f32.mxu0 %vm11317_vm1, %v11316_v6 }
 0x469   :  { %10574 = vmatpush3.msra.mxu1 %v854_v34 }
 0x46a   :  { %v856_v36 = vpop.f32.mrf.mxu1  ;;  %10583 = vmatprep.subr.bf16.mxu1 %v11316_v6 }
 0x46b   :  { %v857_v37 = vadd.f32 %v9112_v31, %v856_v36  ;;  %v9130_v31 = vld [vmem:[%s13363_s4 + $0x2] ss:$0 sm:$0xff] }
 0x46c   :  { %v10562_v38 = vpop.f32.mrf.mxu1 }
 0x46d   :  { %10579 = vmatpush3.msra.mxu0 %v857_v37 }
 0x46e   :  { %10589 = vmatprep.subr.bf16.mxu0 %v11316_v6 }
 0x523   :  { %v932_v39 = vpop.f32.mrf.mxu0 }
 0x524   :  { %v1012_v40 = vsel %vm337_vm3, %v932_v39, -inf }
 0x525   :  { %1013 = vmax.xlane.f32.xlu0 %v1012_v40  ;;  %v10567_v41 = vpop.f32.mrf.mxu0 }
 0x527   :  { %v1008_v42 = vpop.f32.mrf.mxu0 }
 0x528   :  { %v1015_v43 = vsel %vm337_vm3, %v1008_v42, -inf }
 0x529   :  { %1016 = vmax.xlane.f32.xlu1 %v1015_v43  ;;  %v10572_v44 = vpop.f32.mrf.mxu0 }
 0x5ae   :  { %v1014_v45 = vpop.xlane.xlu0 %1013 }
 0x5af   :  { %v1018_v46 = vsub.f32 %v932_v39, %v1014_v45  ;;  %v9148_v39 = vld [vmem:[%s13363_s4 + $0xa] ss:$0 sm:$0xff] }
 0x5b1   :  { %v1020_v47 = vmul.f32 1.442695, %v1018_v46 }
 0x5b2   :  { %v1017_v48 = vpop.xlane.xlu1 %1016 }
 0x5b3   :  { %11222 = vpow2.f32 %v1020_v47  ;;  %v1019_v49 = vsub.f32 %v1008_v42, %v1017_v48 }
 0x5b5   :  { %v1022_v50 = vmul.f32 1.442695, %v1019_v49 }
 0x5b7   :  { %11224 = vpow2.f32 %v1022_v50 }
 0x5c0   :  { %v11223_v51 = vpop.eup %11222 }
 0x5c1   :  { %v1024_v52 = vsel %vm337_vm3, %v11223_v51, 0.0 }
 0x5c2   :  { %1025 = vadd.xlane.f32.xlu0 %v1024_v52 }
 0x5c4   :  { %v11225_v53 = vpop.eup %11224 }
 0x5c5   :  { %v1027_v54 = vsel %vm337_vm3, %v11225_v53, 0.0 }
 0x5c6   :  { %1028 = vadd.xlane.f32.xlu1 %v1027_v54 }
 0x64b   :  { %v1026_v55 = vpop.xlane.xlu0 %1025 }
 0x64c   :  { %11226 = vrcp.f32 %v1026_v55 }
 0x64f   :  { %v1029_v56 = vpop.xlane.xlu1 %1028 }
 0x650   :  { %11228 = vrcp.f32 %v1029_v56 }
 0x659   :  { %v11227_v57 = vpop.eup %11226 }
 0x65a   :  { %v1032_v58 = vmul.f32 %v11227_v57, %v11223_v51 }
 0x65c   :  { %10576 = vmatmul.mubr.msk.f32.vlgmr.msra.gmra.mxu1 %vm337_vm3, %v1032_v58 }
 0x65d   :  { %v11229_v60 = vpop.eup %11228  ;;  %10585 = vmatprep.mubr.msk.bf16.mxu1 %vm11317_vm1, %v11316_v6  ;;  %10584 = vmatpush3.bf16.msra.mxu1 %v1188_v2 }
 0x65e   :  { %v1033_v61 = vmul.f32 %v11229_v60, %v11225_v53  ;;  %10595 = vmatprep.subr.bf16.mxu1 %v11316_v6 }
 0x660   :  { %10581 = vmatmul.mubr.msk.f32.vlgmr.msra.gmra.mxu0 %vm337_vm3, %v1033_v61 }
 0x661   :  { %10590 = vmatpush3.bf16.msra.mxu0 %v1235_v62  ;;  %10591 = vmatprep.mubr.msk.bf16.mxu0 %vm11317_vm1, %v11316_v6 }
 0x662   :  { %10603 = vmatprep.subr.bf16.mxu0 %v11316_v6 }
 0x664   :  { %10592 = vmatmul.mubr.msk.bf16.vlgmr.msra.gmra.mxu0 %vm337_vm3, %v658_v11  ;;  %v10925_v11 = vld [vmem:[%s13362_s3 + $0x20] sm:$0xff]  }
 0x665   :  { %10604 = vmatpush3.bf16.msra.mxu0 %v10922_v63  ;;  %10607 = vmatprep.mubr.msk.bf16.mxu0 %vm11317_vm1, %v11316_v6 }
 0x666   :  { %10605 = vmatprep.subr.bf16.mxu0 %v11316_v6 }
 0x669   :  { %10606 = vmatpush3.bf16.msra.mxu0 %v10923_v0 }
 0x66a   :  { %10619 = vmatprep.subr.mxu0 %v11316_v6 }
 0x66c   :  { %10608 = vmatmul.mubr.msk.bf16.vlgmr.msra.gmra.mxu0 %vm158_vm2, %v11429_v18 }
 0x66d   :  { %10621 = vmatprep.mubr.msk.f32.mxu0 %vm11317_vm1, %v11316_v6 }
 0x71c   :  { %v1103_v3 = vpop.f32.mrf.mxu1 }
 0x71e   :  { %v10577_v4 = vpop.f32.mrf.mxu1 }
 0x71f   :  { %v10928_v4 = vld [vmem:[%s13362_s3 + $0x38] sm:$0xff]  }
 0x720   :  { %v1176_v5 = vpop.f32.mrf.mxu0 }
 0x721   :  { %v1180_v8 = vpack.c.bf16 %v1176_v5, %v1103_v3 }
 0x722   :  { %v10582_v9 = vpop.f32.mrf.mxu0 }
 0x723   :  { %10586 = vmatmul.mubr.msk.bf16.vlgmr.msra.gmra.mxu1 %vm337_vm3, %v1180_v8  ;;  %v10930_v8 = vld [vmem:[%s13362_s3 + $0xb8] sm:$0xff]   ;;  %v10931_v9 = vld [vmem:[%s13362_s3 + $0xb0] sm:$0xff]  }
 0x724   :  { %v11584_v10 = vpop.f32.mrf.mxu0  ;;  %10596 = vmatpush3.bf16.msra.mxu1 %v10924_v7  ;;  %10599 = vmatprep.mubr.msk.bf16.mxu1 %vm11317_vm1, %v11316_v6  ;;  %v10929_v7 = vld [vmem:[%s13362_s3 + $0x30] sm:$0xff]  }
 0x725   :  { %10597 = vmatprep.subr.bf16.mxu1 %v11316_v6 }
 0x726   :  { %v10593_v12 = vpop.f32.mrf.mxu0 }
 0x728   :  { %v11592_v13 = vpop.f32.mrf.mxu0  ;;  %10598 = vmatpush3.bf16.msra.mxu1 %v10925_v11  ;;  %v9158_v11 = vld [vmem:[%s13364_s5 + $0x8] sm:$0xf] }
 0x729   :  { %10611 = vmatprep.subr.bf16.mxu1 %v11316_v6  ;;  %v1805_v12 = vsel %vm1186_vm4, %v9158_v11, 0 }
 0x72a   :  { %v10594_v15 = vpop.f32.mrf.mxu0 }
 0x72b   :  { %10600 = vmatmul.mubr.msk.bf16.vlgmr.msra.gmra.mxu1 %vm158_vm2, %v11429_v18 }
 0x72c   :  { %v1405_v20 = vpop.f32.mrf.mxu0  ;;  %10612 = vmatpush3.bf16.msra.mxu1 %v10926_v14  ;;  %10615 = vmatprep.mubr.msk.bf16.mxu1 %vm11317_vm1, %v11316_v6 }
 0x72d   :  { %v1406_v22 = vadd.f32 %v9139_v19, %v1405_v20  ;;  %10613 = vmatprep.subr.bf16.mxu1 %v11316_v6  ;;  %v10932_v20 = vld [vmem:[%s13362_s3 + $0x78] sm:$0xff]  }
 0x72e   :  { %v10609_v23 = vpop.f32.mrf.mxu0 }
 0x72f   :  { %10620 = vmatpush3.xpose.msk.msra.mxu0 %vm337_vm3, %v1406_v22  ;;  %v10933_v23 = vld [vmem:[%s13362_s3 + $0x70] sm:$0xff]  }
 0x730   :  { %v1408_v24 = vpop.f32.mrf.mxu0  ;;  %10614 = vmatpush3.bf16.msra.mxu1 %v10927_v21  ;;  %10624 = vmatprep.subr.mxu0 %v11316_v6 }
 0x731   :  { %v1409_v25 = vadd.f32 %v9139_v19, %v1408_v24  ;;  %10629 = vmatprep.subr.mxu1 %v11316_v6 }
 0x732   :  { %v10610_v26 = vpop.f32.mrf.mxu0 }
 0x733   :  { %10616 = vmatmul.mubr.msk.bf16.vlgmr.msra.gmra.mxu1 %vm158_vm2, %v11429_v18 }
 0x734   :  { %10631 = vmatprep.mubr.msk.f32.mxu1 %vm11317_vm1, %v11316_v6 }
 0x7e3   :  { %v11616_v27 = vpop.f32.mrf.mxu1 }
 0x7e5   :  { %v10587_v28 = vpop.f32.mrf.mxu1 }
 0x7e7   :  { %v11618_v29 = vpop.f32.mrf.mxu1 }
 0x7e9   :  { %v10588_v30 = vpop.f32.mrf.mxu1 }
 0x7ea   :  { %v9183_v30 = vld [vmem:[%s13363_s4 + $0xb] ss:$0 sm:$0xff] }
 0x7eb   :  { %v1337_v32 = vpop.f32.mrf.mxu1 }
 0x7ec   :  { %v1338_v33 = vadd.f32 %v9130_v31, %v1337_v32 }
 0x7ed   :  { %v10601_v34 = vpop.f32.mrf.mxu1 }
 0x7ee   :  { %v1344_v35 = vmul.f32 0.35355338, %v1338_v33 }
 0x7ef   :  { %v1340_v36 = vpop.f32.mrf.mxu1 }
 0x7f0   :  { %v1341_v37 = vadd.f32 %v9130_v31, %v1340_v36  ;;  %10622 = vmatmul.mubr.msk.f32.vlgmr.msra.gmra.mxu0 %vm337_vm3, %v1344_v35 }
 0x7f1   :  { %10625 = vmatpush3.xpose.msk.msra.mxu0 %vm337_vm3, %v1409_v25  ;;  %v10602_v38 = vpop.f32.mrf.mxu1  ;;  %10626 = vmatprep.mubr.msk.f32.mxu0 %vm11317_vm1, %v11316_v6 }
 0x7f2   :  { %v1345_v40 = vmul.f32 0.35355338, %v1341_v37  ;;  %10634 = vmatprep.subr.mxu0 %v11316_v6 }
 0x7f3   :  { %v1471_v41 = vpop.f32.mrf.mxu1 }
 0x7f4   :  { %v1472_v42 = vadd.f32 %v9148_v39, %v1471_v41  ;;  %10627 = vmatmul.mubr.msk.f32.vlgmr.msra.gmra.mxu0 %vm337_vm3, %v1345_v40  ;;  %v1275_v40 = vadd.f32 %v11592_v13, %v11618_v29 }
 0x7f5   :  { %v10617_v43 = vpop.f32.mrf.mxu1  ;;  %10636 = vmatprep.mubr.msk.f32.mxu0 %vm11317_vm1, %v11316_v6 }
 0x7f6   :  { %10630 = vmatpush3.msra.mxu1 %v1472_v42  ;;  %v9165_v42 = vld [vmem:[%s13363_s4 + $0x3] ss:$0 sm:$0xff] }
 0x7f7   :  { %v1474_v44 = vpop.f32.mrf.mxu1  ;;  %10639 = vmatprep.subr.bf16.mxu1 %v11316_v6 }
 0x7f8   :  { %v1475_v45 = vadd.f32 %v9148_v39, %v1474_v44 }
 0x7f9   :  { %v10618_v46 = vpop.f32.mrf.mxu1 }
 0x7fa   :  { %10635 = vmatpush3.msra.mxu0 %v1475_v45  ;;  %v9174_v45 = vld [vmem:[%s13363_s4 + $0x7] ss:$0 sm:$0xff] }
 0x7fb   :  { %10645 = vmatprep.subr.bf16.mxu0 %v11316_v6 }
 0x8b0   :  { %v1550_v47 = vpop.f32.mrf.mxu0 }
 0x8b1   :  { %v1630_v48 = vsel %vm337_vm3, %v1550_v47, -inf }
 0x8b2   :  { %1631 = vmax.xlane.f32.xlu0 %v1630_v48  ;;  %v10623_v49 = vpop.f32.mrf.mxu0 }
 0x8b4   :  { %v1626_v50 = vpop.f32.mrf.mxu0 }
 0x8b5   :  { %v1633_v51 = vsel %vm337_vm3, %v1626_v50, -inf }
 0x8b6   :  { %1634 = vmax.xlane.f32.xlu1 %v1633_v51  ;;  %v10628_v52 = vpop.f32.mrf.mxu0 }
 0x93b   :  { %v1632_v53 = vpop.xlane.xlu0 %1631 }
 0x93c   :  { %v1636_v54 = vsub.f32 %v1550_v47, %v1632_v53 }
 0x93e   :  { %v1638_v55 = vmul.f32 1.442695, %v1636_v54 }
 0x93f   :  { %v1635_v56 = vpop.xlane.xlu1 %1634 }
 0x940   :  { %11230 = vpow2.f32 %v1638_v55  ;;  %v1637_v57 = vsub.f32 %v1626_v50, %v1635_v56 }
 0x942   :  { %v1640_v58 = vmul.f32 1.442695, %v1637_v57 }
 0x944   :  { %11232 = vpow2.f32 %v1640_v58 }
 0x94d   :  { %v11231_v59 = vpop.eup %11230 }
 0x94e   :  { %v1642_v60 = vsel %vm337_vm3, %v11231_v59, 0.0 }
 0x94f   :  { %1643 = vadd.xlane.f32.xlu0 %v1642_v60 }
 0x951   :  { %v11233_v61 = vpop.eup %11232 }
 0x952   :  { %v1645_v62 = vsel %vm337_vm3, %v11233_v61, 0.0 }
 0x953   :  { %1646 = vadd.xlane.f32.xlu1 %v1645_v62 }
 0x9d8   :  { %v1644_v63 = vpop.xlane.xlu0 %1643 }
 0x9d9   :  { %11234 = vrcp.f32 %v1644_v63 }
 0x9dc   :  { %v1647_v0 = vpop.xlane.xlu1 %1646 }
 0x9dd   :  { %11236 = vrcp.f32 %v1647_v0 }
 0x9e6   :  { %v11235_v1 = vpop.eup %11234 }
 0x9e7   :  { %v1650_v2 = vmul.f32 %v11235_v1, %v11231_v59 }
 0x9e9   :  { %10632 = vmatmul.mubr.msk.f32.vlgmr.msra.gmra.mxu1 %vm337_vm3, %v1650_v2 }
 0x9ea   :  { %v11237_v3 = vpop.eup %11236  ;;  %10641 = vmatprep.mubr.msk.bf16.mxu1 %vm11317_vm1, %v11316_v6  ;;  %10640 = vmatpush3.bf16.msra.mxu1 %v1805_v12  ;;  %v9193_v12 = vld [vmem:[%s13364_s5 + $0xc] sm:$0xf] }
 0x9eb   :  { %v1651_v5 = vmul.f32 %v11237_v3, %v11233_v61  ;;  %10653 = vmatprep.subr.bf16.mxu1 %v11316_v6 }
 0x9ed   :  { %10637 = vmatmul.mubr.msk.f32.vlgmr.msra.gmra.mxu0 %vm337_vm3, %v1651_v5 }
 0x9ee   :  { %10646 = vmatpush3.bf16.msra.mxu0 %v10928_v4  ;;  %10649 = vmatprep.mubr.msk.bf16.mxu0 %vm11317_vm1, %v11316_v6 }
 0x9ef   :  { %10647 = vmatprep.subr.bf16.mxu0 %v11316_v6 }
 0x9f2   :  { %10648 = vmatpush3.bf16.msra.mxu0 %v10929_v7 }
 0x9f3   :  { %10661 = vmatprep.subr.bf16.mxu0 %v11316_v6 }
 0x9f5   :  { %10650 = vmatmul.mubr.msk.bf16.vlgmr.msra.gmra.mxu0 %vm158_vm2, %v11429_v18 }
 0x9f6   :  { %10662 = vmatpush3.bf16.msra.mxu0 %v10930_v8  ;;  %10665 = vmatprep.mubr.msk.bf16.mxu0 %vm11317_vm1, %v11316_v6 }
 0x9f7   :  { %10663 = vmatprep.subr.bf16.mxu0 %v11316_v6 }
 0x9fa   :  { %10664 = vmatpush3.bf16.msra.mxu0 %v10931_v9 }
 0x9fb   :  { %10679 = vmatprep.subr.mxu0 %v11316_v6 }
 0x9fd   :  { %10666 = vmatmul.mubr.msk.bf16.vlgmr.msra.gmra.mxu0 %vm158_vm2, %v11429_v18 }
 0x9fe   :  { %10681 = vmatprep.mubr.msk.f32.mxu0 %vm11317_vm1, %v11316_v6 }
 0xaa9   :  { %v1721_v14 = vpop.f32.mrf.mxu1 }
 0xaab   :  { %v10633_v15 = vpop.f32.mrf.mxu1 }
 0xaad   :  { %v1794_v19 = vpop.f32.mrf.mxu0 }
 0xaae   :  { %v1798_v21 = vpack.c.bf16 %v1794_v19, %v1721_v14  ;;  %v2377_v14 = vsel %vm1186_vm4, %v9193_v12, 0  ;;  %v9196_v12 = vld [vmem:[%s13361_s2 + $0xa] ss:$0 sm:$0xff] }
 0xaaf   :  { %v10638_v22 = vpop.f32.mrf.mxu0 }
 0xab0   :  { %10642 = vmatmul.mubr.msk.bf16.vlgmr.msra.gmra.mxu1 %vm337_vm3, %v1798_v21 }
 0xab1   :  { %10654 = vmatpush3.bf16.msra.mxu1 %v10932_v20  ;;  %10657 = vmatprep.mubr.msk.bf16.mxu1 %vm11317_vm1, %v11316_v6 }
 0xab2   :  { %10655 = vmatprep.subr.bf16.mxu1 %v11316_v6 }
 0xab5   :  { %v1909_v24 = vpop.f32.mrf.mxu0  ;;  %10656 = vmatpush3.bf16.msra.mxu1 %v10933_v23 }
 0xab6   :  { %10669 = vmatprep.subr.mxu1 %v11316_v6 }
 0xab7   :  { %v10651_v25 = vpop.f32.mrf.mxu0 }
 0xab8   :  { %10658 = vmatmul.mubr.msk.bf16.vlgmr.msra.gmra.mxu1 %vm158_vm2, %v11429_v18  ;;  %v1272_v18 = vadd.f32 %v11584_v10, %v11616_v27  ;;  %v1910_v10 = vadd.f32 %v9165_v42, %v1909_v24  ;;  %v9195_v24 = vld [vmem:[%s13361_s2 + $0x9] ss:$0 sm:$0xff] }
 0xab9   :  { %v1912_v26 = vpop.f32.mrf.mxu0  ;;  %10671 = vmatprep.mubr.msk.f32.mxu1 %vm11317_vm1, %v11316_v6 }
 0xaba   :  { %v1916_v48 = vmul.f32 0.35355338, %v1910_v10  ;;  %v1913_v13 = vadd.f32 %v9165_v42, %v1912_v26  ;;  %v2497_v10 = vld [vmem:[%s13365_s6 + $0xc0] sm:$0xff] }
 0xabb   :  { %v10652_v28 = vpop.f32.mrf.mxu0 }
 0xabc   :  { %v1917_v51 = vmul.f32 0.35355338, %v1913_v13 }
 0xabd   :  { %v2043_v31 = vpop.f32.mrf.mxu0 }
 0xabe   :  { %v2044_v32 = vadd.f32 %v9183_v30, %v2043_v31 }
 0xabf   :  { %v10667_v33 = vpop.f32.mrf.mxu0 }
 0xac0   :  { %10680 = vmatpush3.msra.mxu0 %v2044_v32 }
 0xac1   :  { %v2046_v34 = vpop.f32.mrf.mxu0  ;;  %10689 = vmatprep.subr.bf16.mxu0 %v11316_v6 }
 0xac2   :  { %v2047_v35 = vadd.f32 %v9183_v30, %v2046_v34 }
 0xac3   :  { %v10668_v36 = vpop.f32.mrf.mxu0 }
 0xb70   :  { %v1841_v37 = vpop.f32.mrf.mxu1 }
 0xb71   :  { %v11696_v38 = vadd.f32 %v1841_v37, %v1272_v18 }
 0xb72   :  { %v10643_v39 = vpop.f32.mrf.mxu1 }
 0xb74   :  { %v1844_v41 = vpop.f32.mrf.mxu1 }
 0xb75   :  { %v11703_v43 = vadd.f32 %v1844_v41, %v1275_v40 }
 0xb76   :  { %v10644_v44 = vpop.f32.mrf.mxu1 }
 0xb78   :  { %v1977_v27 = vpop.f32.mrf.mxu1 }
 0xb79   :  { %v1978_v46 = vadd.f32 %v9174_v45, %v1977_v27  ;;  %v2490_v27 = vld [vmem:[%s13365_s6 + $0x88] sm:$0xff] }
 0xb7a   :  { %v10659_v47 = vpop.f32.mrf.mxu1 }
 0xb7b   :  { %10670 = vmatpush3.xpose.msk.msra.mxu1 %vm337_vm3, %v1978_v46  ;;  %v2498_v47 = vld [vmem:[%s13365_s6 + $0xc8] sm:$0xff] }
 0xb7c   :  { %v1980_v29 = vpop.f32.mrf.mxu1  ;;  %10674 = vmatprep.subr.mxu1 %v11316_v6  ;;  %v9216_v13 = vcombine.low %v2490_v27, %v2498_v47 }
 0xb7d   :  { %v1981_v49 = vadd.f32 %v9174_v45, %v1980_v29  ;;  %v9217_v29 = vcombine.high %v2490_v27, %v2498_v47  ;;  %v2503_v27 = vld [vmem:[%s13365_s6 + $0xf0] sm:$0xff]  ;;  %v2504_v47 = vld [vmem:[%s13365_s6 + $0xf8] sm:$0xff] }
 0xb7e   :  { %v10660_v50 = vpop.f32.mrf.mxu1  ;;  %10672 = vmatmul.mubr.msk.f32.vlgmr.msra.gmra.mxu1 %vm337_vm3, %v1916_v48 }
 0xb7f   :  { %10675 = vmatpush3.xpose.msk.msra.mxu1 %vm337_vm3, %v1981_v49  ;;  %10676 = vmatprep.mubr.msk.f32.mxu1 %vm11317_vm1, %v11316_v6  ;;  %v2473_v49 = vld [vmem:[%s13365_s6] sm:$0xff] }
 0xb80   :  { %10684 = vmatprep.subr.mxu1 %v11316_v6  ;;  %v2481_v50 = vld [vmem:[%s13365_s6 + $0x40] sm:$0xff] }
 0xb82   :  { %10677 = vmatmul.mubr.msk.f32.vlgmr.msra.gmra.mxu1 %vm337_vm3, %v1917_v51  ;;  %v2474_v51 = vld [vmem:[%s13365_s6 + $0x8] sm:$0xff] }
 0xb83   :  { %10685 = vmatpush3.msra.mxu1 %v2047_v35  ;;  %10686 = vmatprep.mubr.msk.f32.mxu1 %vm11317_vm1, %v11316_v6 }
 0xc3e   :  { %v2122_v52 = vpop.f32.mrf.mxu1 }
 0xc3f   :  { %v2202_v53 = vsel %vm337_vm3, %v2122_v52, -inf }
 0xc40   :  { %2203 = vmax.xlane.f32.xlu0 %v2202_v53  ;;  %v10673_v54 = vpop.f32.mrf.mxu1  ;;  %v2482_v53 = vld [vmem:[%s13365_s6 + $0x48] sm:$0xff] }
 0xc41   :  { %v9198_v54 = vcombine.low %v2473_v49, %v2481_v50 }
 0xc42   :  { %v2198_v55 = vpop.f32.mrf.mxu1 }
 0xc43   :  { %v2205_v56 = vsel %vm337_vm3, %v2198_v55, -inf }
 0xc44   :  { %2206 = vmax.xlane.f32.xlu1 %v2205_v56  ;;  %v10678_v57 = vpop.f32.mrf.mxu1  ;;  %v9201_v56 = vcombine.high %v2474_v51, %v2482_v53 }
 0xc45   :  { %v2491_v57 = vld [vmem:[%s13365_s6 + $0x90] sm:$0xff] }
 0xcc9   :  { %v2204_v58 = vpop.xlane.xlu0 %2203 }
 0xcca   :  { %v2208_v59 = vsub.f32 %v2122_v52, %v2204_v58  ;;  %v9199_v52 = vcombine.high %v2473_v49, %v2481_v50  ;;  %v2499_v58 = vld [vmem:[%s13365_s6 + $0xd0] sm:$0xff] }
 0xccb   :  { %v2479_v50 = vld [vmem:[%s13365_s6 + $0x30] sm:$0xff] }
 0xccc   :  { %v2210_v60 = vmul.f32 1.442695, %v2208_v59  ;;  %v2492_v59 = vld [vmem:[%s13365_s6 + $0x98] sm:$0xff] }
 0xccd   :  { %v2207_v61 = vpop.xlane.xlu1 %2206 }
 0xcce   :  { %11238 = vpow2.f32 %v2210_v60  ;;  %v2209_v62 = vsub.f32 %v2198_v55, %v2207_v61  ;;  %v9200_v55 = vcombine.low %v2474_v51, %v2482_v53  ;;  %v11318_v60 = vmov 0   ;;  %v2487_v51 = vld [vmem:[%s13365_s6 + $0x70] sm:$0xff]  ;;  %v2488_v53 = vld [vmem:[%s13365_s6 + $0x78] sm:$0xff] }
 0xccf   :  { %v9219_v61 = vcombine.high %v2491_v57, %v2499_v58 }
 0xcd0   :  { %v2212_v63 = vmul.f32 1.442695, %v2209_v62  ;;  %v2500_v62 = vld [vmem:[%s13365_s6 + $0xd8] sm:$0xff] }
 0xcd2   :  { %11240 = vpow2.f32 %v2212_v63  ;;  %v9218_v63 = vcombine.low %v2491_v57, %v2499_v58  ;;  %v9210_v58 = vcombine.low %v2479_v50, %v2487_v51 }
 0xcdb   :  { %v11239_v0 = vpop.eup %11238 }
 0xcdc   :  { %v2214_v1 = vsel %vm337_vm3, %v11239_v0, 0.0 }
 0xcdd   :  { %2215 = vadd.xlane.f32.xlu0 %v2214_v1  ;;  %v9221_v1 = vcombine.high %v2492_v59, %v2500_v62 }
 0xcdf   :  { %v11241_v2 = vpop.eup %11240 }
 0xce0   :  { %v2217_v3 = vsel %vm337_vm3, %v11241_v2, 0.0 }
 0xce1   :  { %2218 = vadd.xlane.f32.xlu1 %v2217_v3 }
 0xd66   :  { %v2216_v4 = vpop.xlane.xlu0 %2215 }
 0xd67   :  { %11242 = vrcp.f32 %v2216_v4 }
 0xd6a   :  { %v2219_v5 = vpop.xlane.xlu1 %2218 }
 0xd6b   :  { %11244 = vrcp.f32 %v2219_v5 }
 0xd74   :  { %v11243_v7 = vpop.eup %11242 }
 0xd75   :  { %v2222_v8 = vmul.f32 %v11243_v7, %v11239_v0  ;;  %v9220_v0 = vcombine.low %v2492_v59, %v2500_v62  ;;  %v10935_v62 = vld [vmem:[%s13367_s8 + $0xf8] sm:$0xff]  }
 0xd77   :  { %10682 = vmatmul.mubr.msk.f32.vlgmr.msra.gmra.mxu0 %vm337_vm3, %v2222_v8 }
 0xd78   :  { %v11245_v9 = vpop.eup %11244  ;;  %10691 = vmatprep.mubr.msk.bf16.mxu0 %vm11317_vm1, %v11316_v6  ;;  %10690 = vmatpush3.bf16.msra.mxu0 %v2377_v14 }
 0xd79   :  { %v2223_v11 = vmul.f32 %v11245_v9, %v11241_v2  ;;  %2807 = vmatprep.subr.bf16.mxu0 %v9217_v29 }
 0xd7b   :  { %10687 = vmatmul.mubr.msk.f32.vlgmr.msra.gmra.mxu1 %vm337_vm3, %v2223_v11 }
 0xd7c   :  { %2784 = vmatprep.mubr.bf16.mxu1 %v11318_v60 }
 0xe37   :  { %v2293_v15 = vpop.f32.mrf.mxu0 }
 0xe39   :  { %v10683_v19 = vpop.f32.mrf.mxu0 }
 0xe3b   :  { %v2366_v20 = vpop.f32.mrf.mxu1 }
 0xe3c   :  { %v2370_v21 = vpack.c.bf16 %v2366_v20, %v2293_v15  ;;  %v9197_v20 = vld [vmem:[%s13361_s2 + $0xb] ss:$0 sm:$0xff] }
 0xe3d   :  { %v10688_v22 = vpop.f32.mrf.mxu1 }
 0xe3e   :  { %10692 = vmatmul.mubr.msk.bf16.vlgmr.msra.gmra.mxu0 %vm337_vm3, %v2370_v21  ;;  %v2475_v22 = vld [vmem:[%s13365_s6 + $0x10] sm:$0xff] }
 0xe3f   :  { %2808 = vmatpush1.bf16.msra.mxu0 %v9216_v13  ;;  %2827 = vmatprep.mubr.bf16.mxu0 %v11318_v60 }
 0xe40   :  { %2809 = vmatprep.subr.bf16.mxu0 %v9201_v56  ;;  %v9211_v56 = vcombine.high %v2479_v50, %v2487_v51 }
 0xe43   :  { %2810 = vmatpush1.bf16.msra.mxu0 %v9200_v55 }
 0xe44   :  { %2893 = vmatprep.subr.bf16.mxu0 %v9221_v1  ;;  %v10938_v1 = vld [vmem:[%s13367_s8 + $0x70] sm:$0xff]  }
 0xefe   :  { %v2413_v23 = vpop.f32.mrf.mxu0 }
 0xeff   :  { %v2420_v25 = vadd.f32 %v2413_v23, %v11696_v38  ;;  %v2483_v23 = vld [vmem:[%s13365_s6 + $0x50] sm:$0xff] }
 0xf00   :  { %v10693_v26 = vpop.f32.mrf.mxu0 }
 0xf01   :  { %v2427_v28 = vadd.f32 %v9195_v24, %v2420_v25  ;;  %v2484_v25 = vld [vmem:[%s13365_s6 + $0x58] sm:$0xff] }
 0xf02   :  { %v2416_v30 = vpop.f32.mrf.mxu0 }
 0xf03   :  { %v2421_v31 = vadd.f32 %v2416_v30, %v11703_v43  ;;  %v2429_v32 = vadd.f32 %v2427_v28, %v11425_v17 }
 0xf04   :  { %v10694_v33 = vpop.f32.mrf.mxu0 }
 0xf05   :  { %v2428_v34 = vadd.f32 %v9195_v24, %v2421_v31  ;;  %v2433_v35 = vsel %vm158_vm2, %v2429_v32, 0.0  ;;  %v2476_v24 = vld [vmem:[%s13365_s6 + $0x18] sm:$0xff]  ;;  %v9203_v31 = vcombine.high %v2475_v22, %v2483_v23  ;;  %v2493_v33 = vld [vmem:[%s13365_s6 + $0xa0] sm:$0xff] }
 0xf06   :  { %2434 = vadd.xlane.f32.xlu0 %v2433_v35  ;;  %v2494_v35 = vld [vmem:[%s13365_s6 + $0xa8] sm:$0xff] }
 0xf07   :  { %v2430_v36 = vadd.f32 %v2428_v34, %v11423_v16  ;;  %v2489_v16 = vld [vmem:[%s13365_s6 + $0x80] sm:$0xff] }
 0xf08   :  { %v9215_v46 = vcombine.high %v2489_v16, %v2497_v10  ;;  %v9214_v48 = vcombine.low %v2489_v16, %v2497_v10  ;;  %v2501_v34 = vld [vmem:[%s13365_s6 + $0xe0] sm:$0xff]  ;;  %v2495_v10 = vld [vmem:[%s13365_s6 + $0xb0] sm:$0xff] }
 0xf09   :  { %v2436_v18 = vsel %vm158_vm2, %v2430_v36, 0.0  ;;  %v9227_v29 = vcombine.high %v2495_v10, %v2503_v27 }
 0xf0a   :  { %2437 = vadd.xlane.f32.xlu1 %v2436_v18  ;;  %2764 = vmatprep.subr.bf16.mxu1 %v9215_v46  ;;  %v9202_v18 = vcombine.low %v2475_v22, %v2483_v23  ;;  %v2496_v46 = vld [vmem:[%s13365_s6 + $0xb8] sm:$0xff]  ;;  %v10954_v23 = vld [vmem:[%s13367_s8 + $0x50] sm:$0xff]  }
 0xf0b   :  { %2765 = vmatpush1.bf16.msra.mxu1 %v9214_v48  ;;  %v9229_v49 = vcombine.high %v2496_v46, %v2504_v47  ;;  %v9228_v55 = vcombine.low %v2496_v46, %v2504_v47  ;;  %v10953_v22 = vld [vmem:[%s13367_s8 + $0x98] sm:$0xff]  }
 0xf0c   :  { %2766 = vmatprep.subr.bf16.mxu1 %v9199_v52  ;;  %v2480_v52 = vld [vmem:[%s13365_s6 + $0x38] sm:$0xff] }
 0xf0d   :  { %v9213_v57 = vcombine.high %v2480_v52, %v2488_v53  ;;  %v9212_v59 = vcombine.low %v2480_v52, %v2488_v53 }
 0xf0f   :  { %2767 = vmatpush1.bf16.msra.mxu1 %v9198_v54  ;;  %v9226_v54 = vcombine.low %v2495_v10, %v2503_v27 }
 0xf10   :  { %2850 = vmatprep.subr.bf16.mxu1 %v9219_v61  ;;  %v10934_v61 = vld [vmem:[%s13367_s8 + $0x78] sm:$0xff]  }
 0xf8f   :  { %v2435_v37 = vpop.xlane.xlu0 %2434 }
 0xf90   :  { %v2440_v39 = vmul.f32 0.03125, %v2435_v37  ;;  %v9204_v37 = vcombine.low %v2476_v24, %v2484_v25 }
 0xf92   :  { %v2442_v38 = vsub.f32 %v2429_v32, %v2440_v39  ;;  %v9205_v32 = vcombine.high %v2476_v24, %v2484_v25  ;;  %v9223_v39 = vcombine.high %v2493_v33, %v2501_v34  ;;  %v10955_v24 = vld [vmem:[%s13367_s8 + $0xd0] sm:$0xff]  }
 0xf93   :  { %v2438_v40 = vpop.xlane.xlu1 %2437  ;;  %v10956_v25 = vld [vmem:[%s13367_s8 + $0x10] sm:$0xff]  }
 0xf94   :  { %v2441_v41 = vmul.f32 0.03125, %v2438_v40  ;;  %v2444_v42 = vmul.f32 %v2442_v38, %v2442_v38  ;;  %v2477_v40 = vld [vmem:[%s13365_s6 + $0x20] sm:$0xff] }
 0xf96   :  { %v2443_v44 = vsub.f32 %v2430_v36, %v2441_v41  ;;  %v2446_v43 = vsel %vm158_vm2, %v2444_v42, 0.0  ;;  %v2502_v36 = vld [vmem:[%s13365_s6 + $0xe8] sm:$0xff]  ;;  %v2485_v41 = vld [vmem:[%s13365_s6 + $0x60] sm:$0xff] }
 0xf97   :  { %2447 = vadd.xlane.f32.xlu0 %v2446_v43  ;;  %v2478_v42 = vld [vmem:[%s13365_s6 + $0x28] sm:$0xff]  ;;  %v9222_v43 = vcombine.low %v2493_v33, %v2501_v34  ;;  %v9206_v48 = vcombine.low %v2477_v40, %v2485_v41 }
 0xf98   :  { %v2445_v17 = vmul.f32 %v2443_v44, %v2443_v44  ;;  %v10960_v33 = vld [vmem:[%s13367_s8 + $0x8] sm:$0xff]  }
 0xf99   :  { %v10961_v34 = vld [vmem:[%s13367_s8 + $0x88] sm:$0xff]  }
 0xf9a   :  { %v2449_v45 = vsel %vm158_vm2, %v2445_v17, 0.0  ;;  %v9224_v17 = vcombine.low %v2494_v35, %v2502_v36 }
 0xf9b   :  { %2450 = vadd.xlane.f32.xlu1 %v2449_v45  ;;  %v9207_v45 = vcombine.high %v2477_v40, %v2485_v41  ;;  %v2509_v40 = vlaneseq }
 0xf9d   :  { %v11978_v41 = vshrl.u32 %v2509_v40, 7  ;;  %v10973_v40 = vld [vmem:[%s13367_s8 + $0x1b0] sm:$0xff]  }
 0xf9f   :  { %v12006_v51 = vsub.s32 5, %v11978_v41  ;;  %v12009_v52 = vsub.s32 7, %v11978_v41 }
0x1020   :  { %v2448_v2 = vpop.xlane.xlu0 %2447 }
0x1021   :  { %v2452_v3 = vmul.f32 0.03125, %v2448_v2  ;;  %v10939_v2 = vld [vmem:[%s13367_s8 + $0xf0] sm:$0xff]  }
0x1023   :  { %v2454_v4 = vadd.f32 1e-05, %v2452_v3  ;;  %v10940_v3 = vld [vmem:[%s13367_s8 + $0x30] sm:$0xff]  }
0x1024   :  { %v2451_v5 = vpop.xlane.xlu1 %2450 }
0x1025   :  { %11246 = vrsqrt.f32 %v2454_v4  ;;  %v2453_v7 = vmul.f32 0.03125, %v2451_v5  ;;  %v10941_v4 = vld [vmem:[%s13367_s8 + $0xb0] sm:$0xff]   ;;  %v10942_v5 = vld [vmem:[%s13367_s8 + $0x68] sm:$0xff]  }
0x1027   :  { %v2455_v8 = vadd.f32 1e-05, %v2453_v7  ;;  %v10943_v7 = vld [vmem:[%s13367_s8 + $0xe8] sm:$0xff]  }
0x1029   :  { %11248 = vrsqrt.f32 %v2455_v8  ;;  %v10944_v8 = vld [vmem:[%s13367_s8 + $0x28] sm:$0xff]  }
0x1032   :  { %v11247_v9 = vpop.eup %11246 }
0x1033   :  { %v2458_v11 = vmul.f32 %v11247_v9, %v2442_v38  ;;  %v9225_v38 = vcombine.high %v2494_v35, %v2502_v36  ;;  %v10945_v9 = vld [vmem:[%s13367_s8 + $0xa8] sm:$0xff]   ;;  %v10962_v35 = vld [vmem:[%s13367_s8 + $0x40] sm:$0xff]  }
0x1034   :  { %v10963_v36 = vld [vmem:[%s13367_s8 + $0xc0] sm:$0xff]  }
0x1035   :  { %v2464_v15 = vmul.f32 %v9196_v12, %v2458_v11  ;;  %v10946_v11 = vld [vmem:[%s13367_s8 + $0x60] sm:$0xff]  }
0x1036   :  { %v11249_v14 = vpop.eup %11248 }
0x1037   :  { %v2459_v19 = vmul.f32 %v11249_v14, %v2443_v44  ;;  %v11798_v26 = vadd.f32 %v9197_v20, %v2464_v15  ;;  %v2486_v44 = vld [vmem:[%s13365_s6 + $0x68] sm:$0xff]  ;;  %v10948_v14 = vld [vmem:[%s13367_s8 + $0x20] sm:$0xff]  }
0x1038   :  { %v9209_v16 = vcombine.high %v2478_v42, %v2486_v44  ;;  %v9208_v13 = vcombine.low %v2478_v42, %v2486_v44  ;;  %v10949_v15 = vld [vmem:[%s13367_s8 + $0xa0] sm:$0xff]   ;;  %v11981_v42 = vsub.s32 1, %v11978_v41  ;;  %v11984_v44 = vsub.s32 3, %v11978_v41 }
0x1039   :  { %v2465_v21 = vmul.f32 %v9196_v12, %v2459_v19  ;;  %v10947_v12 = vld [vmem:[%s13367_s8 + $0xe0] sm:$0xff]   ;;  %v10950_v19 = vld [vmem:[%s13367_s8 + $0x58] sm:$0xff]  }
0x103b   :  { %v11800_v28 = vadd.f32 %v9197_v20, %v2465_v21  ;;  %v10951_v20 = vld [vmem:[%s13367_s8 + $0xd8] sm:$0xff]  }
0x103c   :  { %v10952_v21 = vld [vmem:[%s13367_s8 + $0x18] sm:$0xff]  }
0x103d   :  { %v11804_v30 = vpack.c.bf16 %v11800_v28, %v11798_v26 }
0x103f   :  { %9230 = vmatmul.mubr.msk.bf16.vlgmr.msra.gmra.mxu1 %vm158_vm2, %v11804_v30  ;;  %9231 = vmatmul.mubr.msk.bf16.vlgmr.msra.gmra.mxu0 %vm158_vm2, %v11804_v30 }
0x1040   :  { %2851 = vmatpush1.bf16.msra.mxu1 %v9218_v63  ;;  %2894 = vmatpush1.bf16.msra.mxu0 %v9220_v0  ;;  %v10936_v63 = vld [vmem:[%s13367_s8 + $0x38] sm:$0xff]  }
0x1041   :  { %2852 = vmatprep.subr.bf16.mxu1 %v9203_v31  ;;  %2895 = vmatprep.subr.bf16.mxu0 %v9205_v32  ;;  %v10937_v0 = vld [vmem:[%s13367_s8 + $0xb8] sm:$0xff]   ;;  %v10958_v31 = vld [vmem:[%s13367_s8 + $0x48] sm:$0xff]  }
0x1042   :  { %2870 = vmatprep.mubr.bf16.mxu1 %v11318_v60  ;;  %2913 = vmatprep.mubr.bf16.mxu0 %v11318_v60  ;;  %v10959_v32 = vld [vmem:[%s13367_s8 + $0xc8] sm:$0xff]  }
0x1044   :  { %2853 = vmatpush1.bf16.msra.mxu1 %v9202_v18  ;;  %2896 = vmatpush1.bf16.msra.mxu0 %v9204_v37  ;;  %v10964_v18 = vld [vmem:[%s13367_s8] sm:$0xff]  }
0x1045   :  { %2936 = vmatprep.subr.bf16.mxu1 %v9223_v39  ;;  %2979 = vmatprep.subr.bf16.mxu0 %v9225_v38  ;;  %v10965_v37 = vld [vmem:[%s13367_s8 + $0x80] sm:$0xff]   ;;  %v10966_v39 = vld [vmem:[%s13367_s8 + $0x178] sm:$0xff]  }
0x1046   :  { %v10967_v38 = vld [vmem:[%s13367_s8 + $0x1f8] sm:$0xff]  }
0x1047   :  { %9232 = vmatmul.mubr.msk.bf16.vlgmr.msra.gmra.mxu1 %vm158_vm2, %v11804_v30  ;;  %9233 = vmatmul.mubr.msk.bf16.vlgmr.msra.gmra.mxu0 %vm158_vm2, %v11804_v30 }
0x1048   :  { %2937 = vmatpush1.bf16.msra.mxu1 %v9222_v43  ;;  %2980 = vmatpush1.bf16.msra.mxu0 %v9224_v17  ;;  %v11987_v43 = vsub.s32 0, %v11978_v41  ;;  %v11990_v17 = vsub.s32 2, %v11978_v41 }
0x1049   :  { %2938 = vmatprep.subr.bf16.mxu1 %v9207_v45  ;;  %2981 = vmatprep.subr.bf16.mxu0 %v9209_v16  ;;  %v11995_v45 = vld [vmem:[%s13366_s7] sm:$0xff] }
0x104a   :  { %2956 = vmatprep.mubr.bf16.mxu1 %v11318_v60  ;;  %2999 = vmatprep.mubr.bf16.mxu0 %v11318_v60  ;;  %v2516_v27 = vrot.slane %v11995_v45, %v11981_v42  ;;  %v2524_v46 = vrot.slane %v11995_v45, %v11984_v44  ;;  %v2512_v47 = vrot.slane %v11995_v45, %v11987_v43 }
0x104c   :  { %2939 = vmatpush1.bf16.msra.mxu1 %v9206_v48  ;;  %2982 = vmatpush1.bf16.msra.mxu0 %v9208_v13  ;;  %v2520_v48 = vrot.slane %v11995_v45, %v11990_v17 }
0x104d   :  { %3022 = vmatprep.subr.bf16.mxu1 %v9227_v29  ;;  %3065 = vmatprep.subr.bf16.mxu0 %v9229_v49 }
0x104f   :  { %9234 = vmatmul.mubr.msk.bf16.vlgmr.msra.gmra.mxu1 %vm158_vm2, %v11804_v30  ;;  %9235 = vmatmul.mubr.msk.bf16.vlgmr.msra.gmra.mxu0 %vm158_vm2, %v11804_v30 }
0x1050   :  { %3023 = vmatpush1.bf16.msra.mxu1 %v9226_v54  ;;  %3066 = vmatpush1.bf16.msra.mxu0 %v9228_v55 }
0x1051   :  { %3024 = vmatprep.subr.bf16.mxu1 %v9211_v56  ;;  %3067 = vmatprep.subr.bf16.mxu0 %v9213_v57 }
0x1052   :  { %3042 = vmatprep.mubr.bf16.mxu1 %v11318_v60  ;;  %3085 = vmatprep.mubr.bf16.mxu0 %v11318_v60 }
0x1054   :  { %3025 = vmatpush1.bf16.msra.mxu1 %v9210_v58  ;;  %3068 = vmatpush1.bf16.msra.mxu0 %v9212_v59 }
0x1055   :  { %10055 = vmatprep.subr.bf16.mxu1 %v10934_v61  ;;  %10077 = vmatprep.subr.bf16.mxu0 %v10935_v62 }
0x1057   :  { %9236 = vmatmul.mubr.msk.bf16.vlgmr.msra.gmra.mxu1 %vm158_vm2, %v11804_v30  ;;  %9237 = vmatmul.mubr.msk.bf16.vlgmr.msra.gmra.mxu0 %vm158_vm2, %v11804_v30  ;;  %v10957_v30 = vld [vmem:[%s13367_s8 + $0x90] sm:$0xff]  }
0x1058   :  { %10056 = vmatpush3.bf16.msra.mxu1 %v10936_v63  ;;  %10078 = vmatpush3.bf16.msra.mxu0 %v10937_v0 }
0x1059   :  { %10057 = vmatprep.subr.bf16.mxu1 %v10938_v1  ;;  %10079 = vmatprep.subr.bf16.mxu0 %v10939_v2 }
0x105c   :  { %10058 = vmatpush3.bf16.msra.mxu1 %v10940_v3  ;;  %10080 = vmatpush3.bf16.msra.mxu0 %v10941_v4  ;;  %v2532_v4 = vrot.slane %v11995_v45, %v12006_v51 }
0x105d   :  { %10059 = vmatprep.subr.bf16.mxu1 %v10942_v5  ;;  %10081 = vmatprep.subr.bf16.mxu0 %v10943_v7  ;;  %v2540_v5 = vrot.slane %v11995_v45, %v12009_v52 }
0x1060   :  { %10060 = vmatpush3.bf16.msra.mxu1 %v10944_v8  ;;  %10082 = vmatpush3.bf16.msra.mxu0 %v10945_v9 }
0x1061   :  { %10061 = vmatprep.subr.bf16.mxu1 %v10946_v11  ;;  %10083 = vmatprep.subr.bf16.mxu0 %v10947_v12 }
0x1064   :  { %10062 = vmatpush3.bf16.msra.mxu1 %v10948_v14  ;;  %10084 = vmatpush3.bf16.msra.mxu0 %v10949_v15 }
0x1065   :  { %10063 = vmatprep.subr.bf16.mxu1 %v10950_v19  ;;  %10085 = vmatprep.subr.bf16.mxu0 %v10951_v20 }
0x1068   :  { %10064 = vmatpush3.bf16.msra.mxu1 %v10952_v21  ;;  %10086 = vmatpush3.bf16.msra.mxu0 %v10953_v22  ;;  %v10968_v22 = vld [vmem:[%s13367_s8 + $0x138] sm:$0xff]  }
0x1069   :  { %10065 = vmatprep.subr.bf16.mxu1 %v10954_v23  ;;  %10087 = vmatprep.subr.bf16.mxu0 %v10955_v24  ;;  %v10969_v23 = vld [vmem:[%s13367_s8 + $0x1b8] sm:$0xff]  }
0x106c   :  { %10066 = vmatpush3.bf16.msra.mxu1 %v10956_v25  ;;  %10088 = vmatpush3.bf16.msra.mxu0 %v10957_v30 }
0x106d   :  { %10067 = vmatprep.subr.bf16.mxu1 %v10958_v31  ;;  %10089 = vmatprep.subr.bf16.mxu0 %v10959_v32  ;;  %v10970_v32 = vld [vmem:[%s13367_s8 + $0x170] sm:$0xff]  }
0x1070   :  { %10068 = vmatpush3.bf16.msra.mxu1 %v10960_v33  ;;  %10090 = vmatpush3.bf16.msra.mxu0 %v10961_v34  ;;  %v10971_v33 = vld [vmem:[%s13367_s8 + $0x1f0] sm:$0xff]  }
0x1071   :  { %10069 = vmatprep.subr.bf16.mxu1 %v10962_v35  ;;  %10091 = vmatprep.subr.bf16.mxu0 %v10963_v36 }
0x1074   :  { %10070 = vmatpush3.bf16.msra.mxu1 %v10964_v18  ;;  %10092 = vmatpush3.bf16.msra.mxu0 %v10965_v37 }
0x1075   :  { %10099 = vmatprep.subr.bf16.mxu1 %v10966_v39  ;;  %10121 = vmatprep.subr.bf16.mxu0 %v10967_v38  ;;  %v10972_v38 = vld [vmem:[%s13367_s8 + $0x130] sm:$0xff]  }
0x10ff   :  { %v2786_v16 = vpop.f32.mrf.mxu1  ;;  %v2829_v10 = vpop.f32.mrf.mxu0 }
0x1100   :  { %v2787_v57 = vadd.f32 %v2786_v16, %v2512_v47  ;;  %v2830_v58 = vadd.f32 %v2829_v10, %v2520_v48  ;;  %v10974_v16 = vld [vmem:[%s13367_s8 + $0x168] sm:$0xff]  }
0x1101   :  { %v2788_v13 = vpop.f32.mrf.mxu1  ;;  %v2831_v29 = vpop.f32.mrf.mxu0 }
0x1102   :  { %v2789_v53 = vadd.f32 %v2788_v13, %v2516_v27  ;;  %v2832_v54 = vadd.f32 %v2831_v29, %v2524_v46  ;;  %v3096_v12 = vmax.f32 %v2787_v57, 0.0  ;;  %v3098_v14 = vmax.f32 %v2830_v58, 0.0  ;;  %v10981_v58 = vld [vmem:[%s13367_s8 + $0x1a0] sm:$0xff]  }
0x1103   :  { %v2790_v49 = vpop.f32.mrf.mxu1  ;;  %v2833_v50 = vpop.f32.mrf.mxu0 }
0x1104   :  { %v2791_v55 = vadd.f32 %v2790_v49, %v2512_v47  ;;  %v2834_v56 = vadd.f32 %v2833_v50, %v2520_v48  ;;  %v3097_v7 = vmax.f32 %v2789_v53, 0.0  ;;  %v3099_v8 = vmax.f32 %v2832_v54, 0.0  ;;  %v10975_v48 = vld [vmem:[%s13367_s8 + $0x1e8] sm:$0xff]   ;;  %v10978_v53 = vld [vmem:[%s13367_s8 + $0x160] sm:$0xff]  }
0x1105   :  { %v2792_v59 = vpop.f32.mrf.mxu1  ;;  %v2835_v61 = vpop.f32.mrf.mxu0  ;;  %v10976_v49 = vld [vmem:[%s13367_s8 + $0x128] sm:$0xff]   ;;  %v10979_v54 = vld [vmem:[%s13367_s8 + $0x1e0] sm:$0xff]  }
0x1106   :  { %v2793_v62 = vadd.f32 %v2792_v59, %v2516_v27  ;;  %v2836_v63 = vadd.f32 %v2835_v61, %v2524_v46  ;;  %v3112_v0 = vmax.f32 %v2791_v55, 0.0  ;;  %v3114_v1 = vmax.f32 %v2834_v56, 0.0  ;;  %v10977_v50 = vld [vmem:[%s13367_s8 + $0x1a8] sm:$0xff]   ;;  %v10980_v56 = vld [vmem:[%s13367_s8 + $0x120] sm:$0xff]   ;;  %v10982_v59 = vld [vmem:[%s13367_s8 + $0x158] sm:$0xff]  }
0x1107   :  { %v12011_v2 = vpop.f32.mrf.mxu1  ;;  %v12013_v3 = vpop.f32.mrf.mxu0  ;;  %v10983_v61 = vld [vmem:[%s13367_s8 + $0x1d8] sm:$0xff]  }
0x1108   :  { %v3113_v9 = vmax.f32 %v2793_v62, 0.0  ;;  %v3115_v11 = vmax.f32 %v2836_v63, 0.0  ;;  %v3128_v24 = vpack.c.bf16 %v3112_v0, %v3096_v12  ;;  %v3130_v25 = vpack.c.bf16 %v3114_v1, %v3098_v14  ;;  %v10984_v63 = vld [vmem:[%s13367_s8 + $0x118] sm:$0xff]   ;;  %v10989_v14 = vld [vmem:[%s13367_s8 + $0x190] sm:$0xff]  }
0x1109   :  { %v2874_v15 = vpop.f32.mrf.mxu1  ;;  %v2917_v19 = vpop.f32.mrf.mxu0  ;;  %v10985_v1 = vld [vmem:[%s13367_s8 + $0x198] sm:$0xff]  }
0x110a   :  { %v3129_v20 = vpack.c.bf16 %v3113_v9, %v3097_v7  ;;  %v3131_v21 = vpack.c.bf16 %v3115_v11, %v3099_v8  ;;  %v2875_v34 = vadd.f32 %v2874_v15, %v2532_v4  ;;  %v2918_v35 = vadd.f32 %v2917_v19, %v2540_v5  ;;  %v10988_v11 = vld [vmem:[%s13367_s8 + $0x110] sm:$0xff]   ;;  %v10991_v15 = vld [vmem:[%s13367_s8 + $0x1c8] sm:$0xff]  }
0x110b   :  { %v12025_v30 = vpop.f32.mrf.mxu1  ;;  %v12027_v31 = vpop.f32.mrf.mxu0  ;;  %v12088_v7 = vsub.s32 4, %v11978_v41  ;;  %v12091_v8 = vsub.s32 6, %v11978_v41  ;;  %v10990_v41 = vld [vmem:[%s13367_s8 + $0x148] sm:$0xff]  }
0x110c   :  { %4205 = vmatprep.mubr.bf16.mxu1 %v3129_v20  ;;  %4246 = vmatprep.mubr.bf16.mxu0 %v3131_v21  ;;  %v3101_v10 = vmax.f32 %v2875_v34, 0.0  ;;  %v3103_v27 = vmax.f32 %v2918_v35, 0.0  ;;  %v12116_v21 = vld [vmem:[%s13366_s7 + $0x8] sm:$0xff] }
0x110d   :  { %v2878_v36 = vpop.f32.mrf.mxu1  ;;  %v2921_v18 = vpop.f32.mrf.mxu0  ;;  %4206 = vmatmul.mubr.bf16.vlgmr.msra.gmra.mxu1 %v3128_v24  ;;  %4247 = vmatmul.mubr.bf16.vlgmr.msra.gmra.mxu0 %v3130_v25  ;;  %v2528_v19 = vrot.slane %v11995_v45, %v12088_v7  ;;  %v2536_v20 = vrot.slane %v11995_v45, %v12091_v8  ;;  %v2548_v25 = vrot.slane %v12116_v21, %v11981_v42  ;;  %v10993_v45 = vld [vmem:[%s13367_s8 + $0x188] sm:$0xff]  }
0x110e   :  { %v2879_v37 = vadd.f32 %v2878_v36, %v2532_v4  ;;  %v2922_v39 = vadd.f32 %v2921_v18, %v2540_v5  ;;  %10100 = vmatpush3.bf16.msra.mxu1 %v10968_v22  ;;  %10122 = vmatpush3.bf16.msra.mxu0 %v10969_v23  ;;  %v10986_v4 = vld [vmem:[%s13367_s8 + $0x150] sm:$0xff]   ;;  %v10992_v23 = vld [vmem:[%s13367_s8 + $0x108] sm:$0xff]   ;;  %v2556_v35 = vrot.slane %v12116_v21, %v11984_v44 }
0x110f   :  { %10101 = vmatprep.subr.bf16.mxu1 %v10970_v32  ;;  %10123 = vmatprep.subr.bf16.mxu0 %v10971_v33  ;;  %v12059_v55 = vpop.f32.mrf.mxu1  ;;  %v12064_v57 = vpop.f32.mrf.mxu0  ;;  %v10987_v5 = vld [vmem:[%s13367_s8 + $0x1d0] sm:$0xff]   ;;  %v2877_v24 = vadd.f32 %v12025_v30, %v2528_v19  ;;  %v10994_v33 = vld [vmem:[%s13367_s8 + $0x140] sm:$0xff]   ;;  %v2920_v34 = vadd.f32 %v12027_v31, %v2536_v20  ;;  %v2873_v36 = vadd.f32 %v12011_v2, %v2528_v19  ;;  %v10998_v2 = vld [vmem:[%s13367_s8 + $0x278] sm:$0xff]  }
0x1110   :  { %v3117_v46 = vmax.f32 %v2879_v37, 0.0  ;;  %v3119_v47 = vmax.f32 %v2922_v39, 0.0  ;;  %v10995_v30 = vld [vmem:[%s13367_s8 + $0x1c0] sm:$0xff]   ;;  %v2916_v37 = vadd.f32 %v12013_v3, %v2536_v20 }
0x1111   :  { %v2960_v62 = vpop.f32.mrf.mxu1  ;;  %v3003_v0 = vpop.f32.mrf.mxu0  ;;  %v3116_v31 = vmax.f32 %v2877_v24, 0.0  ;;  %v11012_v19 = vld [vmem:[%s13367_s8 + $0x220] sm:$0xff]   ;;  %v11015_v24 = vld [vmem:[%s13367_s8 + $0x2d8] sm:$0xff]  }
0x1112   :  { %v3133_v13 = vpack.c.bf16 %v3117_v46, %v3101_v10  ;;  %v3135_v29 = vpack.c.bf16 %v3119_v47, %v3103_v27  ;;  %10102 = vmatpush3.bf16.msra.mxu1 %v10972_v38  ;;  %10124 = vmatpush3.bf16.msra.mxu0 %v10973_v40  ;;  %v10996_v38 = vld [vmem:[%s13367_s8 + $0x100] sm:$0xff]   ;;  %v2961_v40 = vadd.f32 %v2960_v62, %v2548_v25  ;;  %v3118_v10 = vmax.f32 %v2920_v34, 0.0  ;;  %v10999_v27 = vld [vmem:[%s13367_s8 + $0x2f8] sm:$0xff]   ;;  %v11018_v34 = vld [vmem:[%s13367_s8 + $0x250] sm:$0xff]  }
0x1113   :  { %10103 = vmatprep.subr.bf16.mxu1 %v10974_v16  ;;  %10125 = vmatprep.subr.bf16.mxu0 %v10975_v48  ;;  %v12093_v9 = vpop.f32.mrf.mxu1  ;;  %v12098_v12 = vpop.f32.mrf.mxu0  ;;  %v10997_v16 = vld [vmem:[%s13367_s8 + $0x180] sm:$0xff]   ;;  %v3004_v3 = vadd.f32 %v3003_v0, %v2556_v35  ;;  %v3100_v46 = vmax.f32 %v2873_v36, 0.0  ;;  %v3102_v48 = vmax.f32 %v2916_v37, 0.0  ;;  %v11005_v0 = vld [vmem:[%s13367_s8 + $0x2b0] sm:$0xff]  }
0x1114   :  { %4287 = vmatprep.mubr.bf16.mxu1 %v3133_v13  ;;  %4328 = vmatprep.mubr.bf16.mxu0 %v3135_v29  ;;  %v11000_v29 = vld [vmem:[%s13367_s8 + $0x238] sm:$0xff]   ;;  %v11020_v36 = vld [vmem:[%s13367_s8 + $0x210] sm:$0xff]  }
0x1115   :  { %v2964_v22 = vpop.f32.mrf.mxu1  ;;  %v3007_v32 = vpop.f32.mrf.mxu0  ;;  %v11021_v37 = vld [vmem:[%s13367_s8 + $0x290] sm:$0xff]  }
0x1116   :  { %10104 = vmatpush3.bf16.msra.mxu1 %v10976_v49  ;;  %10126 = vmatpush3.bf16.msra.mxu0 %v10977_v50  ;;  %v2965_v18 = vadd.f32 %v2964_v22, %v2548_v25  ;;  %v3008_v39 = vadd.f32 %v3007_v32, %v2556_v35  ;;  %v3132_v49 = vpack.c.bf16 %v3116_v31, %v3100_v46  ;;  %v3105_v50 = vmax.f32 %v2961_v40, 0.0  ;;  %v11013_v22 = vld [vmem:[%s13367_s8 + $0x2a0] sm:$0xff]   ;;  %v11016_v32 = vld [vmem:[%s13367_s8 + $0x218] sm:$0xff]   ;;  %v11019_v35 = vld [vmem:[%s13367_s8 + $0x2d0] sm:$0xff]  }
0x1117   :  { %10105 = vmatprep.subr.bf16.mxu1 %v10978_v53  ;;  %10127 = vmatprep.subr.bf16.mxu0 %v10979_v54  ;;  %v11001_v53 = vld [vmem:[%s13367_s8 + $0x2b8] sm:$0xff]   ;;  %v3134_v54 = vpack.c.bf16 %v3118_v10, %v3102_v48  ;;  %v12191_v20 = vpop.f32.mrf.mxu0  ;;  %v2544_v31 = vrot.slane %v12116_v21, %v11987_v43  ;;  %v2552_v40 = vrot.slane %v12116_v21, %v11990_v17  ;;  %v11025_v46 = vld [vmem:[%s13367_s8 + $0x288] sm:$0xff]  }
0x1118   :  { %v3121_v47 = vmax.f32 %v2965_v18, 0.0  ;;  %v3123_v13 = vmax.f32 %v3008_v39, 0.0  ;;  %v11022_v39 = vld [vmem:[%s13367_s8 + $0x248] sm:$0xff]  }
0x1119   :  { %v2963_v10 = vadd.f32 %v12093_v9, %v2544_v31  ;;  %v3006_v48 = vadd.f32 %v12098_v12, %v2552_v40  ;;  %v11027_v9 = vld [vmem:[%s13367_s8 + $0x2c0] sm:$0xff]  }
0x111a   :  { %10106 = vmatpush3.bf16.msra.mxu1 %v10980_v56  ;;  %10128 = vmatpush3.bf16.msra.mxu0 %v10981_v58  ;;  %v3107_v56 = vmax.f32 %v3004_v3, 0.0  ;;  %v11002_v58 = vld [vmem:[%s13367_s8 + $0x270] sm:$0xff]   ;;  %v2564_v3 = vrot.slane %v12116_v21, %v12006_v51 }
0x111b   :  { %10107 = vmatprep.subr.bf16.mxu1 %v10982_v59  ;;  %10129 = vmatprep.subr.bf16.mxu0 %v10983_v61  ;;  %v3137_v59 = vpack.c.bf16 %v3121_v47, %v3105_v50  ;;  %v11003_v61 = vld [vmem:[%s13367_s8 + $0x2f0] sm:$0xff]   ;;  %v11026_v47 = vld [vmem:[%s13367_s8 + $0x240] sm:$0xff]   ;;  %v3002_v50 = vadd.f32 %v12064_v57, %v2552_v40  ;;  %v3120_v12 = vmax.f32 %v2963_v10, 0.0  ;;  %v11046_v40 = vld [vmem:[%s13367_s8 + $0x358] sm:$0xff]  }
0x111c   :  { %v3139_v62 = vpack.c.bf16 %v3123_v13, %v3107_v56  ;;  %v2572_v13 = vrot.slane %v12116_v21, %v12009_v52  ;;  %v11049_v10 = vld [vmem:[%s13367_s8 + $0x398] sm:$0xff]  }
0x111e   :  { %10108 = vmatpush3.bf16.msra.mxu1 %v10984_v63  ;;  %10130 = vmatpush3.bf16.msra.mxu0 %v10985_v1  ;;  %v11004_v63 = vld [vmem:[%s13367_s8 + $0x230] sm:$0xff]   ;;  %v11006_v1 = vld [vmem:[%s13367_s8 + $0x268] sm:$0xff]  }
0x111f   :  { %10109 = vmatprep.subr.bf16.mxu1 %v10986_v4  ;;  %10131 = vmatprep.subr.bf16.mxu0 %v10987_v5  ;;  %v11007_v4 = vld [vmem:[%s13367_s8 + $0x2e8] sm:$0xff]  }
0x1120   :  { %v11008_v5 = vld [vmem:[%s13367_s8 + $0x228] sm:$0xff]  }
0x1122   :  { %10110 = vmatpush3.bf16.msra.mxu1 %v10988_v11  ;;  %10132 = vmatpush3.bf16.msra.mxu0 %v10989_v14  ;;  %v11009_v11 = vld [vmem:[%s13367_s8 + $0x2a8] sm:$0xff]   ;;  %v11010_v14 = vld [vmem:[%s13367_s8 + $0x260] sm:$0xff]  }
0x1123   :  { %10111 = vmatprep.subr.bf16.mxu1 %v10990_v41  ;;  %10133 = vmatprep.subr.bf16.mxu0 %v10991_v15  ;;  %v11011_v41 = vld [vmem:[%s13367_s8 + $0x2e0] sm:$0xff]   ;;  %v12186_v15 = vpop.f32.mrf.mxu1 }
0x1125   :  { %v3046_v25 = vpop.f32.mrf.mxu1 }
0x1126   :  { %10112 = vmatpush3.bf16.msra.mxu1 %v10992_v23  ;;  %10134 = vmatpush3.bf16.msra.mxu0 %v10993_v45  ;;  %v11014_v23 = vld [vmem:[%s13367_s8 + $0x258] sm:$0xff]   ;;  %v3089_v45 = vpop.f32.mrf.mxu0  ;;  %v3047_v56 = vadd.f32 %v3046_v25, %v2564_v3 }
0x1127   :  { %10113 = vmatprep.subr.bf16.mxu1 %v10994_v33  ;;  %10135 = vmatprep.subr.bf16.mxu0 %v10995_v30  ;;  %v11017_v33 = vld [vmem:[%s13367_s8 + $0x298] sm:$0xff]   ;;  %v12214_v30 = vpop.f32.mrf.mxu1  ;;  %v3090_v57 = vadd.f32 %v3089_v45, %v2572_v13  ;;  %v11037_v45 = vld [vmem:[%s13367_s8 + $0x3b0] sm:$0xff]  }
0x1128   :  { %v12219_v18 = vpop.f32.mrf.mxu0 }
0x112a   :  { %10114 = vmatpush3.bf16.msra.mxu1 %v10996_v38  ;;  %10136 = vmatpush3.bf16.msra.mxu0 %v10997_v16  ;;  %v11023_v38 = vld [vmem:[%s13367_s8 + $0x2c8] sm:$0xff]   ;;  %v3050_v16 = vpop.f32.mrf.mxu1 }
0x112b   :  { %10143 = vmatprep.subr.bf16.mxu1 %v10998_v2  ;;  %10165 = vmatprep.subr.bf16.mxu0 %v10999_v27  ;;  %v11024_v2 = vld [vmem:[%s13367_s8 + $0x208] sm:$0xff]   ;;  %v3093_v27 = vpop.f32.mrf.mxu0 }
0x112d   :  { %4288 = vmatmul.mubr.bf16.vlgmr.msra.gmra.mxu1 %v3132_v49  ;;  %4329 = vmatmul.mubr.bf16.vlgmr.msra.gmra.mxu0 %v3134_v54  ;;  %v3051_v49 = vadd.f32 %v3050_v16, %v2564_v3  ;;  %v11028_v54 = vld [vmem:[%s13367_s8 + $0x200] sm:$0xff]   ;;  %v11047_v16 = vld [vmem:[%s13367_s8 + $0x3d8] sm:$0xff]   ;;  %v11050_v3 = vld [vmem:[%s13367_s8 + $0x350] sm:$0xff]  }
0x112e   :  { %10144 = vmatpush3.bf16.msra.mxu1 %v11000_v29  ;;  %4369 = vmatprep.mubr.bf16.mxu1 %v3137_v59  ;;  %v2959_v29 = vadd.f32 %v12059_v55, %v2544_v31  ;;  %v11030_v55 = vld [vmem:[%s13367_s8 + $0x378] sm:$0xff]   ;;  %v3122_v59 = vmax.f32 %v3006_v48, 0.0  ;;  %v11045_v31 = vld [vmem:[%s13367_s8 + $0x3a0] sm:$0xff]   ;;  %v11054_v48 = vld [vmem:[%s13367_s8 + $0x348] sm:$0xff]  }
0x112f   :  { %10166 = vmatpush3.bf16.msra.mxu0 %v11001_v53  ;;  %4410 = vmatprep.mubr.bf16.mxu0 %v3139_v62  ;;  %v3094_v53 = vadd.f32 %v3093_v27, %v2572_v13  ;;  %v11051_v27 = vld [vmem:[%s13367_s8 + $0x3d0] sm:$0xff]   ;;  %v11055_v13 = vld [vmem:[%s13367_s8 + $0x3c8] sm:$0xff]  }
0x1130   :  { %10145 = vmatprep.subr.bf16.mxu1 %v11002_v58  ;;  %10167 = vmatprep.subr.bf16.mxu0 %v11003_v61  ;;  %v11029_v58 = vld [vmem:[%s13367_s8 + $0x280] sm:$0xff]   ;;  %v11031_v61 = vld [vmem:[%s13367_s8 + $0x3f8] sm:$0xff]   ;;  %v3104_v62 = vmax.f32 %v2959_v29, 0.0  ;;  %v2568_v29 = vrot.slane %v12116_v21, %v12091_v8 }
0x1132   :  { %10146 = vmatpush3.bf16.msra.mxu1 %v11004_v63  ;;  %v3125_v63 = vmax.f32 %v3051_v49, 0.0  ;;  %v11056_v49 = vld [vmem:[%s13367_s8 + $0x308] sm:$0xff]  }
0x1133   :  { %10168 = vmatpush3.bf16.msra.mxu0 %v11005_v0  ;;  %10147 = vmatprep.subr.bf16.mxu1 %v11006_v1  ;;  %v3106_v0 = vmax.f32 %v3002_v50, 0.0  ;;  %v3127_v1 = vmax.f32 %v3094_v53, 0.0  ;;  %v11057_v53 = vld [vmem:[%s13367_s8 + $0x388] sm:$0xff]  }
0x1134   :  { %10169 = vmatprep.subr.bf16.mxu0 %v11007_v4  ;;  %v11032_v4 = vld [vmem:[%s13367_s8 + $0x338] sm:$0xff]  }
0x1136   :  { %10148 = vmatpush3.bf16.msra.mxu1 %v11008_v5  ;;  %v3136_v5 = vpack.c.bf16 %v3120_v12, %v3104_v62  ;;  %v3092_v12 = vadd.f32 %v12219_v18, %v2568_v29  ;;  %v11061_v18 = vld [vmem:[%s13367_s8 + $0x380] sm:$0xff]  }
0x1137   :  { %10170 = vmatpush3.bf16.msra.mxu0 %v11009_v11  ;;  %10149 = vmatprep.subr.bf16.mxu1 %v11010_v14  ;;  %v3109_v11 = vmax.f32 %v3047_v56, 0.0  ;;  %v11033_v14 = vld [vmem:[%s13367_s8 + $0x3b8] sm:$0xff]  }
0x1138   :  { %10171 = vmatprep.subr.bf16.mxu0 %v11011_v41  ;;  %v3138_v41 = vpack.c.bf16 %v3122_v59, %v3106_v0  ;;  %v3126_v59 = vmax.f32 %v3092_v12, 0.0 }
0x113a   :  { %10150 = vmatpush3.bf16.msra.mxu1 %v11012_v19  ;;  %v3111_v19 = vmax.f32 %v3090_v57, 0.0 }
0x113b   :  { %10172 = vmatpush3.bf16.msra.mxu0 %v11013_v22  ;;  %10151 = vmatprep.subr.bf16.mxu1 %v11014_v23  ;;  %v11034_v22 = vld [vmem:[%s13367_s8 + $0x370] sm:$0xff]   ;;  %v3141_v23 = vpack.c.bf16 %v3125_v63, %v3109_v11 }
0x113c   :  { %10173 = vmatprep.subr.bf16.mxu0 %v11015_v24  ;;  %v11035_v24 = vld [vmem:[%s13367_s8 + $0x3f0] sm:$0xff]   ;;  %v3143_v25 = vpack.c.bf16 %v3127_v1, %v3111_v19 }
0x113e   :  { %10152 = vmatpush3.bf16.msra.mxu1 %v11016_v32  ;;  %v11036_v32 = vld [vmem:[%s13367_s8 + $0x330] sm:$0xff]  }
0x113f   :  { %10174 = vmatpush3.bf16.msra.mxu0 %v11017_v33  ;;  %10153 = vmatprep.subr.bf16.mxu1 %v11018_v34  ;;  %v11038_v33 = vld [vmem:[%s13367_s8 + $0x368] sm:$0xff]  }
0x1140   :  { %10175 = vmatprep.subr.bf16.mxu0 %v11019_v35  ;;  %v11039_v34 = vld [vmem:[%s13367_s8 + $0x3e8] sm:$0xff]  }
0x1141   :  { %v11040_v35 = vld [vmem:[%s13367_s8 + $0x328] sm:$0xff]  }
0x1142   :  { %10154 = vmatpush3.bf16.msra.mxu1 %v11020_v36  ;;  %v11041_v36 = vld [vmem:[%s13367_s8 + $0x3a8] sm:$0xff]  }
0x1143   :  { %10176 = vmatpush3.bf16.msra.mxu0 %v11021_v37  ;;  %10155 = vmatprep.subr.bf16.mxu1 %v11022_v39  ;;  %v11042_v37 = vld [vmem:[%s13367_s8 + $0x360] sm:$0xff]  }
0x1144   :  { %10177 = vmatprep.subr.bf16.mxu0 %v11023_v38  ;;  %v11043_v39 = vld [vmem:[%s13367_s8 + $0x3e0] sm:$0xff]  }
0x1145   :  { %v11044_v38 = vld [vmem:[%s13367_s8 + $0x320] sm:$0xff]  }
0x1146   :  { %10156 = vmatpush3.bf16.msra.mxu1 %v11024_v2  ;;  %v11048_v2 = vld [vmem:[%s13367_s8 + $0x318] sm:$0xff]  }
0x1147   :  { %10178 = vmatpush3.bf16.msra.mxu0 %v11025_v46  ;;  %10157 = vmatprep.subr.bf16.mxu1 %v11026_v47  ;;  %v11052_v46 = vld [vmem:[%s13367_s8 + $0x310] sm:$0xff]  }
0x1148   :  { %10179 = vmatprep.subr.bf16.mxu0 %v11027_v9  ;;  %v11053_v47 = vld [vmem:[%s13367_s8 + $0x390] sm:$0xff]   ;;  %v2560_v9 = vrot.slane %v12116_v21, %v12088_v7  ;;  %v11059_v21 = vld [vmem:[%s13367_s8 + $0x3c0] sm:$0xff]  }
0x114a   :  { %10158 = vmatpush3.bf16.msra.mxu1 %v11028_v54  ;;  %v3049_v50 = vadd.f32 %v12214_v30, %v2560_v9  ;;  %v11058_v54 = vld [vmem:[%s13367_s8 + $0x340] sm:$0xff]   ;;  %v3045_v56 = vadd.f32 %v12186_v15, %v2560_v9  ;;  %v3088_v30 = vadd.f32 %v12191_v20, %v2568_v29 }
0x114b   :  { %10180 = vmatpush3.bf16.msra.mxu0 %v11029_v58  ;;  %10187 = vmatprep.subr.bf16.mxu1 %v11030_v55  ;;  %v11060_v58 = vld [vmem:[%s13367_s8 + $0x300] sm:$0xff]  }
0x114c   :  { %10209 = vmatprep.subr.bf16.mxu0 %v11031_v61  ;;  %v3124_v55 = vmax.f32 %v3049_v50, 0.0  ;;  %v3108_v57 = vmax.f32 %v3045_v56, 0.0  ;;  %v3110_v61 = vmax.f32 %v3088_v30, 0.0 }
0x114d   :  { %4370 = vmatmul.mubr.bf16.vlgmr.msra.gmra.mxu1 %v3136_v5 }
0x114e   :  { %4411 = vmatmul.mubr.bf16.vlgmr.msra.gmra.mxu0 %v3138_v41  ;;  %10188 = vmatpush3.bf16.msra.mxu1 %v11032_v4  ;;  %v3140_v15 = vpack.c.bf16 %v3124_v55, %v3108_v57  ;;  %v3142_v20 = vpack.c.bf16 %v3126_v59, %v3110_v61 }
0x114f   :  { %4451 = vmatprep.mubr.bf16.mxu1 %v3141_v23  ;;  %10210 = vmatpush3.bf16.msra.mxu0 %v11033_v14 }
0x1150   :  { %4492 = vmatprep.mubr.bf16.mxu0 %v3143_v25  ;;  %10189 = vmatprep.subr.bf16.mxu1 %v11034_v22 }
0x1151   :  { %10211 = vmatprep.subr.bf16.mxu0 %v11035_v24 }
0x1152   :  { %10190 = vmatpush3.bf16.msra.mxu1 %v11036_v32 }
0x1153   :  { %10212 = vmatpush3.bf16.msra.mxu0 %v11037_v45  ;;  %10191 = vmatprep.subr.bf16.mxu1 %v11038_v33  ;;  %v9238_v33 = vld [vmem:[%s13361_s2 + $0xc] ss:$0 sm:$0xff] }
0x1154   :  { %10213 = vmatprep.subr.bf16.mxu0 %v11039_v34 }
0x1156   :  { %10192 = vmatpush3.bf16.msra.mxu1 %v11040_v35 }
0x1157   :  { %10214 = vmatpush3.bf16.msra.mxu0 %v11041_v36  ;;  %10193 = vmatprep.subr.bf16.mxu1 %v11042_v37 }
0x1158   :  { %10215 = vmatprep.subr.bf16.mxu0 %v11043_v39 }
0x115a   :  { %10194 = vmatpush3.bf16.msra.mxu1 %v11044_v38 }
0x115b   :  { %10216 = vmatpush3.bf16.msra.mxu0 %v11045_v31  ;;  %10195 = vmatprep.subr.bf16.mxu1 %v11046_v40 }
0x115c   :  { %10217 = vmatprep.subr.bf16.mxu0 %v11047_v16 }
0x115e   :  { %10196 = vmatpush3.bf16.msra.mxu1 %v11048_v2 }
0x115f   :  { %10218 = vmatpush3.bf16.msra.mxu0 %v11049_v10  ;;  %10197 = vmatprep.subr.bf16.mxu1 %v11050_v3 }
0x1160   :  { %10219 = vmatprep.subr.bf16.mxu0 %v11051_v27 }
0x1162   :  { %10198 = vmatpush3.bf16.msra.mxu1 %v11052_v46 }
0x1163   :  { %10220 = vmatpush3.bf16.msra.mxu0 %v11053_v47  ;;  %10199 = vmatprep.subr.bf16.mxu1 %v11054_v48 }
0x1164   :  { %10221 = vmatprep.subr.bf16.mxu0 %v11055_v13 }
0x1166   :  { %10200 = vmatpush3.bf16.msra.mxu1 %v11056_v49 }
0x1167   :  { %10222 = vmatpush3.bf16.msra.mxu0 %v11057_v53  ;;  %10201 = vmatprep.subr.bf16.mxu1 %v11058_v54 }
0x1168   :  { %10223 = vmatprep.subr.bf16.mxu0 %v11059_v21 }
0x116a   :  { %10202 = vmatpush3.bf16.msra.mxu1 %v11060_v58 }
0x116b   :  { %10224 = vmatpush3.bf16.msra.mxu0 %v11061_v18  ;;  %10695 = vmatprep.subr.bf16.mxu1 %v11316_v6 }
0x116c   :  { %10703 = vmatprep.subr.bf16.mxu0 %v11316_v6 }
0x116d   :  { %4452 = vmatmul.mubr.bf16.vlgmr.msra.gmra.mxu1 %v3140_v15 }
0x116e   :  { %4493 = vmatmul.mubr.bf16.vlgmr.msra.gmra.mxu0 %v3142_v20  ;;  %10699 = vmatprep.mubr.msk.bf16.mxu1 %vm11317_vm1, %v11316_v6 }
0x116f   :  { %10707 = vmatprep.mubr.msk.bf16.mxu0 %vm11317_vm1, %v11316_v6 }
0x11cd   :  { %v10071_v62 = vpop.f32.mrf.mxu1  ;;  %v10093_v63 = vpop.f32.mrf.mxu0 }
0x11cf   :  { %v10072_v0 = vpop.f32.mrf.mxu1  ;;  %v10094_v1 = vpop.f32.mrf.mxu0 }
0x11d0   :  { %v10073_v45 = vadd.f32 %v10072_v0, %v10071_v62  ;;  %v10095_v31 = vadd.f32 %v10094_v1, %v10093_v63 }
0x11d1   :  { %v10074_v4 = vpop.f32.mrf.mxu1  ;;  %v10096_v5 = vpop.f32.mrf.mxu0 }
0x11d2   :  { %v4208_v36 = vadd.f32 %v10073_v45, %v9238_v33 }
0x11d3   :  { %v10075_v11 = vpop.f32.mrf.mxu1  ;;  %v10097_v41 = vpop.f32.mrf.mxu0 }
0x11d4   :  { %v10076_v37 = vadd.f32 %v10075_v11, %v10074_v4  ;;  %v4249_v16 = vadd.f32 %v10095_v31, %v4208_v36  ;;  %v10098_v27 = vadd.f32 %v10097_v41, %v10096_v5 }
0x11d6   :  { %v4211_v2 = vadd.f32 %v10076_v37, %v9238_v33 }
0x11d8   :  { %v4252_v48 = vadd.f32 %v10098_v27, %v4211_v2  ;;  %v11063_v2 = vld [vmem:[%s13362_s3 + $0x108] sm:$0xff]  }
0x11d9   :  { %10704 = vmatpush3.bf16.msra.mxu0 %v11063_v2 }
0x11da   :  { %10705 = vmatprep.subr.bf16.mxu0 %v11316_v6 }
0x11ed   :  { %v10115_v14 = vpop.f32.mrf.mxu1  ;;  %v10137_v19 = vpop.f32.mrf.mxu0 }
0x11ef   :  { %v10116_v22 = vpop.f32.mrf.mxu1  ;;  %v10138_v23 = vpop.f32.mrf.mxu0 }
0x11f0   :  { %v10117_v40 = vadd.f32 %v10116_v22, %v10115_v14  ;;  %v10139_v13 = vadd.f32 %v10138_v23, %v10137_v19 }
0x11f1   :  { %v10118_v24 = vpop.f32.mrf.mxu1  ;;  %v10140_v25 = vpop.f32.mrf.mxu0 }
0x11f2   :  { %v4290_v46 = vadd.f32 %v10117_v40, %v4249_v16 }
0x11f3   :  { %v10119_v32 = vpop.f32.mrf.mxu1  ;;  %v10141_v35 = vpop.f32.mrf.mxu0 }
0x11f4   :  { %v10120_v47 = vadd.f32 %v10119_v32, %v10118_v24  ;;  %v4331_v50 = vadd.f32 %v10139_v13, %v4290_v46  ;;  %v10142_v54 = vadd.f32 %v10141_v35, %v10140_v25 }
0x11f6   :  { %v4293_v53 = vadd.f32 %v10120_v47, %v4252_v48 }
0x11f8   :  { %v4334_v58 = vadd.f32 %v10142_v54, %v4293_v53 }
0x120d   :  { %v10159_v34 = vpop.f32.mrf.mxu1 }
0x120e   :  { %v10181_v39 = vpop.f32.mrf.mxu0 }
0x120f   :  { %v10160_v38 = vpop.f32.mrf.mxu1 }
0x1210   :  { %v10182_v10 = vpop.f32.mrf.mxu0  ;;  %v10161_v9 = vadd.f32 %v10160_v38, %v10159_v34 }
0x1211   :  { %v10162_v3 = vpop.f32.mrf.mxu1  ;;  %v10183_v55 = vadd.f32 %v10182_v10, %v10181_v39  ;;  %v11064_v10 = vld [vmem:[%s13362_s3 + $0xc0] sm:$0xff]  }
0x1212   :  { %v10184_v29 = vpop.f32.mrf.mxu0  ;;  %v4372_v12 = vadd.f32 %v10161_v9, %v4331_v50  ;;  %v9367_v50 = vld [vmem:[%s13361_s2 + $0xd] ss:$0 sm:$0xff] }
0x1213   :  { %v10163_v49 = vpop.f32.mrf.mxu1 }
0x1214   :  { %v10164_v21 = vadd.f32 %v10163_v49, %v10162_v3  ;;  %v10185_v56 = vpop.f32.mrf.mxu0  ;;  %v4413_v57 = vadd.f32 %v10183_v55, %v4372_v12  ;;  %v11065_v3 = vld [vmem:[%s13362_s3 + $0x100] sm:$0xff]   ;;  %v11066_v55 = vld [vmem:[%s13362_s3 + $0x148] sm:$0xff]  }
0x1215   :  { %v10186_v63 = vadd.f32 %v10185_v56, %v10184_v29  ;;  %10706 = vmatpush3.bf16.msra.mxu0 %v11065_v3 }
0x1216   :  { %v4375_v61 = vadd.f32 %v10164_v21, %v4334_v58  ;;  %10719 = vmatprep.subr.mxu0 %v11316_v6  ;;  %v9368_v21 = vld [vmem:[%s13361_s2 + $0xe] ss:$0 sm:$0xff] }
0x1218   :  { %v4416_v11 = vadd.f32 %v10186_v63, %v4375_v61  ;;  %v9383_v61 = vld [vmem:[%s13363_s4 + $0x10] ss:$0 sm:$0xff] }
0x122d   :  { %v10203_v30 = vpop.f32.mrf.mxu1 }
0x122e   :  { %v10225_v18 = vpop.f32.mrf.mxu0 }
0x122f   :  { %v10204_v59 = vpop.f32.mrf.mxu1 }
0x1230   :  { %v10205_v15 = vadd.f32 %v10204_v59, %v10203_v30  ;;  %v10226_v20 = vpop.f32.mrf.mxu0  ;;  %v11067_v59 = vld [vmem:[%s13362_s3 + $0x140] sm:$0xff]  }
0x1231   :  { %v10206_v62 = vpop.f32.mrf.mxu1  ;;  %v10227_v1 = vadd.f32 %v10226_v20, %v10225_v18 }
0x1232   :  { %v4454_v0 = vadd.f32 %v10205_v15, %v4413_v57  ;;  %v10228_v4 = vpop.f32.mrf.mxu0  ;;  %v9374_v57 = vld [vmem:[%s13363_s4 + $0xc] ss:$0 sm:$0xff] }
0x1233   :  { %v10207_v5 = vpop.f32.mrf.mxu1 }
0x1234   :  { %v4495_v14 = vadd.f32 %v10227_v1, %v4454_v0  ;;  %v10208_v41 = vadd.f32 %v10207_v5, %v10206_v62  ;;  %v10229_v19 = vpop.f32.mrf.mxu0 }
0x1235   :  { %v10230_v23 = vadd.f32 %v10229_v19, %v10228_v4 }
0x1236   :  { %v4457_v22 = vadd.f32 %v10208_v41, %v4416_v11  ;;  %v4501_v24 = vadd.f32 %v4495_v14, %v11798_v26 }
0x1238   :  { %v4498_v25 = vadd.f32 %v10230_v23, %v4457_v22  ;;  %v4505_v32 = vsel %vm158_vm2, %v4501_v24, 0.0  ;;  %v9392_v23 = vld [vmem:[%s13363_s4 + $0x14] ss:$0 sm:$0xff] }
0x1239   :  { %4506 = vadd.xlane.f32.xlu0 %v4505_v32 }
0x123a   :  { %v4502_v45 = vadd.f32 %v4498_v25, %v11800_v28  ;;  %v11062_v28 = vld [vmem:[%s13362_s3 + $0xc8] sm:$0xff]  }
0x123b   :  { %10696 = vmatpush3.bf16.msra.mxu1 %v11062_v28 }
0x123c   :  { %v4508_v33 = vsel %vm158_vm2, %v4502_v45, 0.0  ;;  %10697 = vmatprep.subr.bf16.mxu1 %v11316_v6 }
0x123d   :  { %4509 = vadd.xlane.f32.xlu1 %v4508_v33 }
0x123f   :  { %10698 = vmatpush3.bf16.msra.mxu1 %v11064_v10 }
0x1240   :  { %10711 = vmatprep.subr.bf16.mxu1 %v11316_v6 }
0x12c2   :  { %v4507_v34 = vpop.xlane.xlu0 %4506 }
0x12c3   :  { %v4511_v35 = vmul.f32 0.03125, %v4507_v34 }
0x12c5   :  { %v4513_v36 = vsub.f32 %v4501_v24, %v4511_v35 }
0x12c6   :  { %v4510_v37 = vpop.xlane.xlu1 %4509 }
0x12c7   :  { %v4512_v39 = vmul.f32 0.03125, %v4510_v37  ;;  %v4515_v38 = vmul.f32 %v4513_v36, %v4513_v36 }
0x12c9   :  { %v4514_v31 = vsub.f32 %v4502_v45, %v4512_v39  ;;  %v4517_v40 = vsel %vm158_vm2, %v4515_v38, 0.0 }
0x12ca   :  { %4518 = vadd.xlane.f32.xlu0 %v4517_v40 }
0x12cb   :  { %v4516_v26 = vmul.f32 %v4514_v31, %v4514_v31 }
0x12cd   :  { %v4520_v16 = vsel %vm158_vm2, %v4516_v26, 0.0 }
0x12ce   :  { %4521 = vadd.xlane.f32.xlu1 %v4520_v16 }
0x1353   :  { %v4519_v27 = vpop.xlane.xlu0 %4518 }
0x1354   :  { %v4523_v46 = vmul.f32 0.03125, %v4519_v27 }
0x1356   :  { %v4525_v47 = vadd.f32 1e-05, %v4523_v46 }
0x1357   :  { %v4522_v48 = vpop.xlane.xlu1 %4521 }
0x1358   :  { %11250 = vrsqrt.f32 %v4525_v47  ;;  %v4524_v13 = vmul.f32 0.03125, %v4522_v48 }
0x135a   :  { %v4526_v9 = vadd.f32 1e-05, %v4524_v13 }
0x135c   :  { %11252 = vrsqrt.f32 %v4526_v9 }
0x1365   :  { %v11251_v29 = vpop.eup %11250 }
0x1366   :  { %v4529_v49 = vmul.f32 %v11251_v29, %v4513_v36 }
0x1368   :  { %v4535_v54 = vmul.f32 %v9367_v50, %v4529_v49  ;;  %v11068_v49 = vld [vmem:[%s13362_s3 + $0xd8] sm:$0xff]  }
0x1369   :  { %v11253_v53 = vpop.eup %11252 }
0x136a   :  { %v4530_v12 = vmul.f32 %v11253_v53, %v4514_v31  ;;  %v12401_v30 = vadd.f32 %v9368_v21, %v4535_v54  ;;  %v11069_v54 = vld [vmem:[%s13362_s3 + $0xd0] sm:$0xff]  }
0x136c   :  { %v4536_v56 = vmul.f32 %v9367_v50, %v4530_v12  ;;  %v11070_v12 = vld [vmem:[%s13362_s3 + $0x118] sm:$0xff]  }
0x136e   :  { %v12403_v58 = vadd.f32 %v9368_v21, %v4536_v56  ;;  %v11071_v56 = vld [vmem:[%s13362_s3 + $0x110] sm:$0xff]  }
0x1370   :  { %v12410_v18 = vpack.c.bf16 %v12403_v58, %v12401_v30 }
0x1372   :  { %10700 = vmatmul.mubr.msk.bf16.vlgmr.msra.gmra.mxu1 %vm158_vm2, %v12410_v18  ;;  %10708 = vmatmul.mubr.msk.bf16.vlgmr.msra.gmra.mxu0 %vm158_vm2, %v12410_v18 }
0x1373   :  { %10712 = vmatpush3.bf16.msra.mxu1 %v11066_v55  ;;  %10715 = vmatprep.mubr.msk.bf16.mxu1 %vm11317_vm1, %v11316_v6  ;;  %v11072_v55 = vld [vmem:[%s13362_s3 + $0x158] sm:$0xff]  }
0x1374   :  { %10713 = vmatprep.subr.bf16.mxu1 %v11316_v6  ;;  %10721 = vmatprep.mubr.msk.f32.mxu0 %vm11317_vm1, %v11316_v6 }
0x1377   :  { %10714 = vmatpush3.bf16.msra.mxu1 %v11067_v59  ;;  %v11073_v59 = vld [vmem:[%s13362_s3 + $0x150] sm:$0xff]  }
0x1378   :  { %10729 = vmatprep.subr.mxu1 %v11316_v6 }
0x137a   :  { %10716 = vmatmul.mubr.msk.bf16.vlgmr.msra.gmra.mxu1 %vm158_vm2, %v12410_v18 }
0x137b   :  { %10731 = vmatprep.mubr.msk.f32.mxu1 %vm11317_vm1, %v11316_v6 }
0x1432   :  { %v4606_v15 = vpop.f32.mrf.mxu1  ;;  %v4674_v20 = vpop.f32.mrf.mxu0 }
0x1433   :  { %v4607_v62 = vadd.f32 %v9374_v57, %v4606_v15  ;;  %v4675_v63 = vadd.f32 %v9383_v61, %v4674_v20 }
0x1434   :  { %v10701_v0 = vpop.f32.mrf.mxu1  ;;  %v10709_v1 = vpop.f32.mrf.mxu0 }
0x1435   :  { %v4613_v4 = vmul.f32 0.35355338, %v4607_v62  ;;  %10720 = vmatpush3.xpose.msk.msra.mxu0 %vm337_vm3, %v4675_v63  ;;  %v9408_v0 = vld [vmem:[%s13363_s4 + $0xd] ss:$0 sm:$0xff] }
0x1436   :  { %v4609_v5 = vpop.f32.mrf.mxu1  ;;  %v4677_v11 = vpop.f32.mrf.mxu0  ;;  %10724 = vmatprep.subr.mxu0 %v11316_v6 }
0x1437   :  { %v4610_v14 = vadd.f32 %v9374_v57, %v4609_v5  ;;  %v4678_v41 = vadd.f32 %v9383_v61, %v4677_v11 }
0x1438   :  { %v10702_v19 = vpop.f32.mrf.mxu1  ;;  %v10710_v22 = vpop.f32.mrf.mxu0  ;;  %10722 = vmatmul.mubr.msk.f32.vlgmr.msra.gmra.mxu0 %vm337_vm3, %v4613_v4  ;;  %v9417_v4 = vld [vmem:[%s13363_s4 + $0x11] ss:$0 sm:$0xff] }
0x1439   :  { %v4614_v24 = vmul.f32 0.35355338, %v4610_v14  ;;  %10725 = vmatpush3.xpose.msk.msra.mxu0 %vm337_vm3, %v4678_v41  ;;  %10726 = vmatprep.mubr.msk.f32.mxu0 %vm11317_vm1, %v11316_v6 }
0x143a   :  { %v4740_v25 = vpop.f32.mrf.mxu1  ;;  %10734 = vmatprep.subr.mxu0 %v11316_v6 }
0x143b   :  { %v4741_v32 = vadd.f32 %v9392_v23, %v4740_v25 }
0x143c   :  { %v10717_v45 = vpop.f32.mrf.mxu1  ;;  %10727 = vmatmul.mubr.msk.f32.vlgmr.msra.gmra.mxu0 %vm337_vm3, %v4614_v24 }
0x143d   :  { %10730 = vmatpush3.msra.mxu1 %v4741_v32  ;;  %10736 = vmatprep.mubr.msk.f32.mxu0 %vm11317_vm1, %v11316_v6 }
0x143e   :  { %v4743_v33 = vpop.f32.mrf.mxu1  ;;  %10739 = vmatprep.subr.bf16.mxu1 %v11316_v6 }
0x143f   :  { %v4744_v34 = vadd.f32 %v9392_v23, %v4743_v33  ;;  %v9426_v23 = vld [vmem:[%s13363_s4 + $0x15] ss:$0 sm:$0xff] }
0x1440   :  { %v10718_v35 = vpop.f32.mrf.mxu1 }
0x1441   :  { %10735 = vmatpush3.msra.mxu0 %v4744_v34 }
0x1442   :  { %10747 = vmatprep.subr.bf16.mxu0 %v11316_v6 }
0x14f8   :  { %v4819_v36 = vpop.f32.mrf.mxu0 }
0x14f9   :  { %v4899_v37 = vsel %vm337_vm3, %v4819_v36, -inf }
0x14fa   :  { %4900 = vmax.xlane.f32.xlu1 %v4899_v37  ;;  %v10723_v39 = vpop.f32.mrf.mxu0 }
0x14fc   :  { %v4895_v38 = vpop.f32.mrf.mxu0 }
0x14fd   :  { %v4902_v31 = vsel %vm337_vm3, %v4895_v38, -inf }
0x14fe   :  { %4903 = vmax.xlane.f32.xlu0 %v4902_v31  ;;  %v10728_v40 = vpop.f32.mrf.mxu0 }
0x1583   :  { %v4901_v26 = vpop.xlane.xlu1 %4900 }
0x1584   :  { %v4905_v16 = vsub.f32 %v4819_v36, %v4901_v26 }
0x1586   :  { %v4907_v28 = vmul.f32 1.442695, %v4905_v16 }
0x1587   :  { %v4904_v2 = vpop.xlane.xlu0 %4903 }
0x1588   :  { %11254 = vpow2.f32 %v4907_v28  ;;  %v4906_v10 = vsub.f32 %v4895_v38, %v4904_v2 }
0x158a   :  { %v4909_v3 = vmul.f32 1.442695, %v4906_v10 }
0x158c   :  { %11256 = vpow2.f32 %v4909_v3 }
0x1595   :  { %v11255_v27 = vpop.eup %11254 }
0x1596   :  { %v4911_v46 = vsel %vm337_vm3, %v11255_v27, 0.0 }
0x1597   :  { %4912 = vadd.xlane.f32.xlu1 %v4911_v46 }
0x1599   :  { %v11257_v47 = vpop.eup %11256 }
0x159a   :  { %v4914_v48 = vsel %vm337_vm3, %v11257_v47, 0.0 }
0x159b   :  { %4915 = vadd.xlane.f32.xlu0 %v4914_v48 }
0x1620   :  { %v4913_v13 = vpop.xlane.xlu1 %4912 }
0x1621   :  { %11258 = vrcp.f32 %v4913_v13 }
0x1624   :  { %v4916_v9 = vpop.xlane.xlu0 %4915 }
0x1625   :  { %11260 = vrcp.f32 %v4916_v9 }
0x162e   :  { %v11259_v29 = vpop.eup %11258 }
0x162f   :  { %v4919_v50 = vmul.f32 %v11259_v29, %v11255_v27 }
0x1631   :  { %10732 = vmatmul.mubr.msk.f32.vlgmr.msra.gmra.mxu1 %vm337_vm3, %v4919_v50 }
0x1632   :  { %v11261_v53 = vpop.eup %11260  ;;  %10740 = vmatpush3.bf16.msra.mxu1 %v11068_v49  ;;  %10743 = vmatprep.mubr.msk.bf16.mxu1 %vm11317_vm1, %v11316_v6 }
0x1633   :  { %10741 = vmatprep.subr.bf16.mxu1 %v11316_v6  ;;  %v4920_v21 = vmul.f32 %v11261_v53, %v11257_v47 }
0x1635   :  { %10737 = vmatmul.mubr.msk.f32.vlgmr.msra.gmra.mxu0 %vm337_vm3, %v4920_v21 }
0x1636   :  { %10742 = vmatpush3.bf16.msra.mxu1 %v11069_v54  ;;  %10748 = vmatpush3.bf16.msra.mxu0 %v11070_v12 }
0x1637   :  { %10749 = vmatprep.subr.bf16.mxu0 %v11316_v6  ;;  %10755 = vmatprep.subr.bf16.mxu1 %v11316_v6 }
0x1638   :  { %10751 = vmatprep.mubr.msk.bf16.mxu0 %vm11317_vm1, %v11316_v6 }
0x1639   :  { %10744 = vmatmul.mubr.msk.bf16.vlgmr.msra.gmra.mxu1 %vm158_vm2, %v12410_v18 }
0x163a   :  { %10750 = vmatpush3.bf16.msra.mxu0 %v11071_v56  ;;  %10756 = vmatpush3.bf16.msra.mxu1 %v11072_v55  ;;  %v9402_v56 = vld [vmem:[%s13364_s5 + $0x10] sm:$0xf] }
0x163b   :  { %10757 = vmatprep.subr.bf16.mxu1 %v11316_v6  ;;  %10759 = vmatprep.mubr.msk.bf16.mxu1 %vm11317_vm1, %v11316_v6 }
0x163c   :  { %10763 = vmatprep.subr.mxu0 %v11316_v6 }
0x163d   :  { %10752 = vmatmul.mubr.msk.bf16.vlgmr.msra.gmra.mxu0 %vm158_vm2, %v12410_v18 }
0x163e   :  { %10758 = vmatpush3.bf16.msra.mxu1 %v11073_v59  ;;  %10765 = vmatprep.mubr.msk.f32.mxu0 %vm11317_vm1, %v11316_v6 }
0x163f   :  { %10773 = vmatprep.subr.mxu1 %v11316_v6 }
0x1641   :  { %10760 = vmatmul.mubr.msk.bf16.vlgmr.msra.gmra.mxu1 %vm158_vm2, %v12410_v18 }
0x1642   :  { %10775 = vmatprep.mubr.msk.f32.mxu1 %vm11317_vm1, %v11316_v6 }
0x16f1   :  { %v12496_v57 = vpop.f32.mrf.mxu1 }
0x16f3   :  { %v10733_v61 = vpop.f32.mrf.mxu1 }
0x16f4   :  { %v5644_v61 = vsel %vm1186_vm4, %v9402_v56, 0 }
0x16f5   :  { %v12498_v15 = vpop.f32.mrf.mxu0 }
0x16f6   :  { %v5067_v20 = vpack.c.bf16 %v12498_v15, %v12496_v57  ;;  %v9436_v57 = vld [vmem:[%s13364_s5 + $0x14] sm:$0xf] }
0x16f7   :  { %v10738_v62 = vpop.f32.mrf.mxu0  ;;  %v5597_v15 = vsel %vm1186_vm4, %v9436_v57, 0 }
0x16f8   :  { %v11074_v62 = vld [vmem:[%s13362_s3 + $0x128] sm:$0xff]  }
0x16f9   :  { %v5129_v63 = vpop.f32.mrf.mxu1 }
0x16fa   :  { %v5130_v5 = vadd.f32 %v9408_v0, %v5129_v63  ;;  %v11075_v63 = vld [vmem:[%s13362_s3 + $0x120] sm:$0xff]  }
0x16fb   :  { %v10745_v1 = vpop.f32.mrf.mxu1 }
0x16fc   :  { %v5136_v24 = vmul.f32 0.35355338, %v5130_v5 }
0x16fd   :  { %v5132_v11 = vpop.f32.mrf.mxu1  ;;  %v5197_v14 = vpop.f32.mrf.mxu0 }
0x16fe   :  { %v5198_v41 = vadd.f32 %v9417_v4, %v5197_v14  ;;  %v5133_v25 = vadd.f32 %v9408_v0, %v5132_v11 }
0x16ff   :  { %v10746_v19 = vpop.f32.mrf.mxu1  ;;  %v10753_v22 = vpop.f32.mrf.mxu0 }
0x1700   :  { %10764 = vmatpush3.xpose.msk.msra.mxu0 %vm337_vm3, %v5198_v41  ;;  %v5137_v37 = vmul.f32 0.35355338, %v5133_v25  ;;  %v11077_v41 = vld [vmem:[%s13362_s3 + $0xe0] sm:$0xff]   ;;  %v9453_v25 = vld [vmem:[%s13363_s4 + $0x12] ss:$0 sm:$0xff] }
0x1701   :  { %v5200_v32 = vpop.f32.mrf.mxu0  ;;  %v5263_v45 = vpop.f32.mrf.mxu1  ;;  %10768 = vmatprep.subr.mxu0 %v11316_v6 }
0x1702   :  { %v5201_v33 = vadd.f32 %v9417_v4, %v5200_v32  ;;  %v5264_v34 = vadd.f32 %v9426_v23, %v5263_v45  ;;  %v11076_v4 = vld [vmem:[%s13362_s3 + $0xe8] sm:$0xff]   ;;  %v11079_v45 = vld [vmem:[%s13362_s3 + $0x160] sm:$0xff]  }
0x1703   :  { %v10754_v35 = vpop.f32.mrf.mxu0  ;;  %v10761_v36 = vpop.f32.mrf.mxu1  ;;  %10766 = vmatmul.mubr.msk.f32.vlgmr.msra.gmra.mxu0 %vm337_vm3, %v5136_v24 }
0x1704   :  { %10769 = vmatpush3.xpose.msk.msra.mxu0 %vm337_vm3, %v5201_v33  ;;  %10774 = vmatpush3.msra.mxu1 %v5264_v34 }
0x1705   :  { %v5266_v39 = vpop.f32.mrf.mxu1  ;;  %10770 = vmatprep.mubr.msk.f32.mxu0 %vm11317_vm1, %v11316_v6  ;;  %10778 = vmatprep.subr.mxu0 %v11316_v6 }
0x1706   :  { %v5267_v38 = vadd.f32 %v9426_v23, %v5266_v39  ;;  %10783 = vmatprep.subr.bf16.mxu1 %v11316_v6  ;;  %v11078_v23 = vld [vmem:[%s13362_s3 + $0x168] sm:$0xff]  }
0x1707   :  { %v10762_v31 = vpop.f32.mrf.mxu1  ;;  %10771 = vmatmul.mubr.msk.f32.vlgmr.msra.gmra.mxu0 %vm337_vm3, %v5137_v37 }
0x1708   :  { %10779 = vmatpush3.msra.mxu0 %v5267_v38  ;;  %10780 = vmatprep.mubr.msk.f32.mxu0 %vm11317_vm1, %v11316_v6 }
0x1709   :  { %10789 = vmatprep.subr.bf16.mxu0 %v11316_v6 }
0x17c3   :  { %v5342_v40 = vpop.f32.mrf.mxu0 }
0x17c4   :  { %v5422_v26 = vsel %vm337_vm3, %v5342_v40, -inf }
0x17c5   :  { %5423 = vmax.xlane.f32.xlu0 %v5422_v26  ;;  %v10767_v16 = vpop.f32.mrf.mxu0  ;;  %v9444_v26 = vld [vmem:[%s13363_s4 + $0xe] ss:$0 sm:$0xff] }
0x17c7   :  { %v5418_v28 = vpop.f32.mrf.mxu0 }
0x17c8   :  { %v5425_v2 = vsel %vm337_vm3, %v5418_v28, -inf }
0x17c9   :  { %5426 = vmax.xlane.f32.xlu1 %v5425_v2  ;;  %v10772_v10 = vpop.f32.mrf.mxu0 }
0x184e   :  { %v5424_v3 = vpop.xlane.xlu0 %5423 }
0x184f   :  { %v5428_v27 = vsub.f32 %v5342_v40, %v5424_v3 }
0x1851   :  { %v5430_v46 = vmul.f32 1.442695, %v5428_v27 }
0x1852   :  { %v5427_v47 = vpop.xlane.xlu1 %5426 }
0x1853   :  { %11262 = vpow2.f32 %v5430_v46  ;;  %v5429_v48 = vsub.f32 %v5418_v28, %v5427_v47  ;;  %v9462_v47 = vld [vmem:[%s13363_s4 + $0x16] ss:$0 sm:$0xff] }
0x1855   :  { %v5432_v13 = vmul.f32 1.442695, %v5429_v48 }
0x1857   :  { %11264 = vpow2.f32 %v5432_v13 }
0x1860   :  { %v11263_v9 = vpop.eup %11262 }
0x1861   :  { %v5434_v29 = vsel %vm337_vm3, %v11263_v9, 0.0 }
0x1862   :  { %5435 = vadd.xlane.f32.xlu0 %v5434_v29 }
0x1864   :  { %v11265_v49 = vpop.eup %11264 }
0x1865   :  { %v5437_v50 = vsel %vm337_vm3, %v11265_v49, 0.0 }
0x1866   :  { %5438 = vadd.xlane.f32.xlu1 %v5437_v50 }
0x18eb   :  { %v5436_v53 = vpop.xlane.xlu0 %5435 }
0x18ec   :  { %11266 = vrcp.f32 %v5436_v53 }
0x18ef   :  { %v5439_v54 = vpop.xlane.xlu1 %5438 }
0x18f0   :  { %11268 = vrcp.f32 %v5439_v54 }
0x18f9   :  { %v11267_v12 = vpop.eup %11266 }
0x18fa   :  { %v5442_v21 = vmul.f32 %v11267_v12, %v11263_v9 }
0x18fc   :  { %10776 = vmatmul.mubr.msk.f32.vlgmr.msra.gmra.mxu1 %vm337_vm3, %v5442_v21 }
0x18fd   :  { %v11269_v55 = vpop.eup %11268  ;;  %10785 = vmatprep.mubr.msk.bf16.mxu1 %vm11317_vm1, %v11316_v6  ;;  %10784 = vmatpush3.bf16.msra.mxu1 %v5597_v15 }
0x18fe   :  { %v5443_v59 = vmul.f32 %v11269_v55, %v11265_v49  ;;  %10795 = vmatprep.subr.bf16.mxu1 %v11316_v6 }
0x1900   :  { %10781 = vmatmul.mubr.msk.f32.vlgmr.msra.gmra.mxu0 %vm337_vm3, %v5443_v59 }
0x1901   :  { %10790 = vmatpush3.bf16.msra.mxu0 %v5644_v61  ;;  %10791 = vmatprep.mubr.msk.bf16.mxu0 %vm11317_vm1, %v11316_v6 }
0x1902   :  { %10803 = vmatprep.subr.bf16.mxu0 %v11316_v6 }
0x1904   :  { %10792 = vmatmul.mubr.msk.bf16.vlgmr.msra.gmra.mxu0 %vm337_vm3, %v5067_v20 }
0x1905   :  { %10804 = vmatpush3.bf16.msra.mxu0 %v11074_v62  ;;  %10807 = vmatprep.mubr.msk.bf16.mxu0 %vm11317_vm1, %v11316_v6 }
0x1906   :  { %10805 = vmatprep.subr.bf16.mxu0 %v11316_v6 }
0x1909   :  { %10806 = vmatpush3.bf16.msra.mxu0 %v11075_v63 }
0x190a   :  { %10819 = vmatprep.subr.mxu0 %v11316_v6 }
0x190c   :  { %10808 = vmatmul.mubr.msk.bf16.vlgmr.msra.gmra.mxu0 %vm158_vm2, %v12410_v18 }
0x190d   :  { %10821 = vmatprep.mubr.msk.f32.mxu0 %vm11317_vm1, %v11316_v6 }
0x19bc   :  { %v5513_v20 = vpop.f32.mrf.mxu1 }
0x19be   :  { %v10777_v0 = vpop.f32.mrf.mxu1 }
0x19c0   :  { %v5586_v1 = vpop.f32.mrf.mxu0 }
0x19c1   :  { %v5590_v5 = vpack.c.bf16 %v5586_v1, %v5513_v20 }
0x19c2   :  { %v10782_v11 = vpop.f32.mrf.mxu0 }
0x19c3   :  { %10786 = vmatmul.mubr.msk.bf16.vlgmr.msra.gmra.mxu1 %vm337_vm3, %v5590_v5 }
0x19c4   :  { %v12565_v14 = vpop.f32.mrf.mxu0  ;;  %10796 = vmatpush3.bf16.msra.mxu1 %v11076_v4  ;;  %10799 = vmatprep.mubr.msk.bf16.mxu1 %vm11317_vm1, %v11316_v6 }
0x19c5   :  { %10797 = vmatprep.subr.bf16.mxu1 %v11316_v6 }
0x19c6   :  { %v10793_v19 = vpop.f32.mrf.mxu0 }
0x19c8   :  { %v12573_v22 = vpop.f32.mrf.mxu0  ;;  %10798 = vmatpush3.bf16.msra.mxu1 %v11077_v41 }
0x19c9   :  { %10811 = vmatprep.subr.bf16.mxu1 %v11316_v6 }
0x19ca   :  { %v10794_v24 = vpop.f32.mrf.mxu0 }
0x19cb   :  { %10800 = vmatmul.mubr.msk.bf16.vlgmr.msra.gmra.mxu1 %vm158_vm2, %v12410_v18 }
0x19cc   :  { %v5814_v32 = vpop.f32.mrf.mxu0  ;;  %10812 = vmatpush3.bf16.msra.mxu1 %v11078_v23  ;;  %10815 = vmatprep.mubr.msk.bf16.mxu1 %vm11317_vm1, %v11316_v6 }
0x19cd   :  { %v5815_v33 = vadd.f32 %v9453_v25, %v5814_v32  ;;  %10813 = vmatprep.subr.bf16.mxu1 %v11316_v6 }
0x19ce   :  { %v10809_v34 = vpop.f32.mrf.mxu0 }
0x19cf   :  { %10820 = vmatpush3.xpose.msk.msra.mxu0 %vm337_vm3, %v5815_v33  ;;  %v11082_v33 = vld [vmem:[%s13362_s3 + $0x178] sm:$0xff]   ;;  %v11083_v34 = vld [vmem:[%s13362_s3 + $0x170] sm:$0xff]  }
0x19d0   :  { %v5817_v35 = vpop.f32.mrf.mxu0  ;;  %10814 = vmatpush3.bf16.msra.mxu1 %v11079_v45  ;;  %10824 = vmatprep.subr.mxu0 %v11316_v6  ;;  %v11081_v45 = vld [vmem:[%s13362_s3 + $0xf0] sm:$0xff]  }
0x19d1   :  { %v5818_v36 = vadd.f32 %v9453_v25, %v5817_v35  ;;  %10829 = vmatprep.subr.mxu1 %v11316_v6  ;;  %v11080_v25 = vld [vmem:[%s13362_s3 + $0xf8] sm:$0xff]  }
0x19d2   :  { %v10810_v37 = vpop.f32.mrf.mxu0  ;;  %v9472_v35 = vld [vmem:[%s13364_s5 + $0x18] sm:$0xf] }
0x19d3   :  { %10816 = vmatmul.mubr.msk.bf16.vlgmr.msra.gmra.mxu1 %vm158_vm2, %v12410_v18 }
0x19d4   :  { %10831 = vmatprep.mubr.msk.f32.mxu1 %vm11317_vm1, %v11316_v6 }
0x1a83   :  { %v12597_v39 = vpop.f32.mrf.mxu1 }
0x1a85   :  { %v10787_v38 = vpop.f32.mrf.mxu1 }
0x1a87   :  { %v12599_v31 = vpop.f32.mrf.mxu1 }
0x1a89   :  { %v10788_v40 = vpop.f32.mrf.mxu1 }
0x1a8b   :  { %v5746_v16 = vpop.f32.mrf.mxu1 }
0x1a8c   :  { %v5747_v28 = vadd.f32 %v9444_v26, %v5746_v16 }
0x1a8d   :  { %v10801_v2 = vpop.f32.mrf.mxu1 }
0x1a8e   :  { %v5753_v10 = vmul.f32 0.35355338, %v5747_v28  ;;  %v11085_v2 = vld [vmem:[%s13362_s3 + $0x130] sm:$0xff]  }
0x1a8f   :  { %v5749_v3 = vpop.f32.mrf.mxu1 }
0x1a90   :  { %v5750_v27 = vadd.f32 %v9444_v26, %v5749_v3  ;;  %10822 = vmatmul.mubr.msk.f32.vlgmr.msra.gmra.mxu0 %vm337_vm3, %v5753_v10  ;;  %v11084_v26 = vld [vmem:[%s13362_s3 + $0x138] sm:$0xff]  }
0x1a91   :  { %10825 = vmatpush3.xpose.msk.msra.mxu0 %vm337_vm3, %v5818_v36  ;;  %v10802_v46 = vpop.f32.mrf.mxu1  ;;  %10826 = vmatprep.mubr.msk.f32.mxu0 %vm11317_vm1, %v11316_v6  ;;  %v6214_v36 = vsel %vm1186_vm4, %v9472_v35, 0 }
0x1a92   :  { %v5754_v48 = vmul.f32 0.35355338, %v5750_v27  ;;  %10834 = vmatprep.subr.mxu0 %v11316_v6 }
0x1a93   :  { %v5880_v13 = vpop.f32.mrf.mxu1 }
0x1a94   :  { %v5881_v9 = vadd.f32 %v9462_v47, %v5880_v13  ;;  %10827 = vmatmul.mubr.msk.f32.vlgmr.msra.gmra.mxu0 %vm337_vm3, %v5754_v48 }
0x1a95   :  { %v10817_v29 = vpop.f32.mrf.mxu1  ;;  %10836 = vmatprep.mubr.msk.f32.mxu0 %vm11317_vm1, %v11316_v6 }
0x1a96   :  { %10830 = vmatpush3.msra.mxu1 %v5881_v9 }
0x1a97   :  { %v5883_v49 = vpop.f32.mrf.mxu1  ;;  %10839 = vmatprep.subr.bf16.mxu1 %v11316_v6 }
0x1a98   :  { %v5884_v50 = vadd.f32 %v9462_v47, %v5883_v49  ;;  %v9497_v47 = vld [vmem:[%s13363_s4 + $0x17] ss:$0 sm:$0xff] }
0x1a99   :  { %v10818_v53 = vpop.f32.mrf.mxu1 }
0x1a9a   :  { %10835 = vmatpush3.msra.mxu0 %v5884_v50 }
0x1a9b   :  { %10845 = vmatprep.subr.bf16.mxu0 %v11316_v6 }
0x1b50   :  { %v5959_v54 = vpop.f32.mrf.mxu0 }
0x1b51   :  { %v6039_v12 = vsel %vm337_vm3, %v5959_v54, -inf }
0x1b52   :  { %6040 = vmax.xlane.f32.xlu0 %v6039_v12  ;;  %v10823_v21 = vpop.f32.mrf.mxu0 }
0x1b53   :  { %v5684_v21 = vadd.f32 %v12573_v22, %v12599_v31 }
0x1b54   :  { %v6035_v56 = vpop.f32.mrf.mxu0 }
0x1b55   :  { %v6042_v55 = vsel %vm337_vm3, %v6035_v56, -inf }
0x1b56   :  { %6043 = vmax.xlane.f32.xlu1 %v6042_v55  ;;  %v10828_v59 = vpop.f32.mrf.mxu0  ;;  %v9479_v55 = vld [vmem:[%s13363_s4 + $0xf] ss:$0 sm:$0xff] }
0x1bdb   :  { %v6041_v61 = vpop.xlane.xlu0 %6040 }
0x1bdc   :  { %v6045_v62 = vsub.f32 %v5959_v54, %v6041_v61 }
0x1bde   :  { %v6047_v63 = vmul.f32 1.442695, %v6045_v62  ;;  %v9488_v62 = vld [vmem:[%s13363_s4 + $0x13] ss:$0 sm:$0xff] }
0x1bdf   :  { %v6044_v57 = vpop.xlane.xlu1 %6043 }
0x1be0   :  { %11270 = vpow2.f32 %v6047_v63  ;;  %v6046_v15 = vsub.f32 %v6035_v56, %v6044_v57 }
0x1be2   :  { %v6049_v20 = vmul.f32 1.442695, %v6046_v15 }
0x1be4   :  { %11272 = vpow2.f32 %v6049_v20 }
0x1bed   :  { %v11271_v0 = vpop.eup %11270 }
0x1bee   :  { %v6051_v1 = vsel %vm337_vm3, %v11271_v0, 0.0 }
0x1bef   :  { %6052 = vadd.xlane.f32.xlu0 %v6051_v1 }
0x1bf1   :  { %v11273_v4 = vpop.eup %11272 }
0x1bf2   :  { %v6054_v5 = vsel %vm337_vm3, %v11273_v4, 0.0 }
0x1bf3   :  { %6055 = vadd.xlane.f32.xlu1 %v6054_v5 }
0x1c78   :  { %v6053_v11 = vpop.xlane.xlu0 %6052 }
0x1c79   :  { %11274 = vrcp.f32 %v6053_v11 }
0x1c7c   :  { %v6056_v41 = vpop.xlane.xlu1 %6055 }
0x1c7d   :  { %11276 = vrcp.f32 %v6056_v41 }
0x1c86   :  { %v11275_v19 = vpop.eup %11274 }
0x1c87   :  { %v6059_v23 = vmul.f32 %v11275_v19, %v11271_v0 }
0x1c89   :  { %10832 = vmatmul.mubr.msk.f32.vlgmr.msra.gmra.mxu1 %vm337_vm3, %v6059_v23 }
0x1c8a   :  { %v11277_v24 = vpop.eup %11276  ;;  %10841 = vmatprep.mubr.msk.bf16.mxu1 %vm11317_vm1, %v11316_v6  ;;  %10840 = vmatpush3.bf16.msra.mxu1 %v6214_v36 }
0x1c8b   :  { %v6060_v32 = vmul.f32 %v11277_v24, %v11273_v4  ;;  %10853 = vmatprep.subr.bf16.mxu1 %v11316_v6 }
0x1c8d   :  { %10837 = vmatmul.mubr.msk.f32.vlgmr.msra.gmra.mxu0 %vm337_vm3, %v6060_v32 }
0x1c8e   :  { %10846 = vmatpush3.bf16.msra.mxu0 %v11080_v25  ;;  %10849 = vmatprep.mubr.msk.bf16.mxu0 %vm11317_vm1, %v11316_v6 }
0x1c8f   :  { %10847 = vmatprep.subr.bf16.mxu0 %v11316_v6 }
0x1c92   :  { %10848 = vmatpush3.bf16.msra.mxu0 %v11081_v45 }
0x1c93   :  { %10861 = vmatprep.subr.bf16.mxu0 %v11316_v6 }
0x1c95   :  { %10850 = vmatmul.mubr.msk.bf16.vlgmr.msra.gmra.mxu0 %vm158_vm2, %v12410_v18 }
0x1c96   :  { %10862 = vmatpush3.bf16.msra.mxu0 %v11082_v33  ;;  %10865 = vmatprep.mubr.msk.bf16.mxu0 %vm11317_vm1, %v11316_v6 }
0x1c97   :  { %10863 = vmatprep.subr.bf16.mxu0 %v11316_v6 }
0x1c9a   :  { %10864 = vmatpush3.bf16.msra.mxu0 %v11083_v34 }
0x1c9b   :  { %10879 = vmatprep.subr.mxu0 %v11316_v6 }
0x1c9d   :  { %10866 = vmatmul.mubr.msk.bf16.vlgmr.msra.gmra.mxu0 %vm158_vm2, %v12410_v18 }
0x1c9e   :  { %10881 = vmatprep.mubr.msk.f32.mxu0 %vm11317_vm1, %v11316_v6 }
0x1d49   :  { %v6130_v37 = vpop.f32.mrf.mxu1 }
0x1d4b   :  { %v10833_v38 = vpop.f32.mrf.mxu1 }
0x1d4d   :  { %v6203_v40 = vpop.f32.mrf.mxu0 }
0x1d4e   :  { %v6207_v16 = vpack.c.bf16 %v6203_v40, %v6130_v37 }
0x1d4f   :  { %v10838_v28 = vpop.f32.mrf.mxu0 }
0x1d50   :  { %10842 = vmatmul.mubr.msk.bf16.vlgmr.msra.gmra.mxu1 %vm337_vm3, %v6207_v16 }
0x1d51   :  { %10854 = vmatpush3.bf16.msra.mxu1 %v11084_v26  ;;  %10857 = vmatprep.mubr.msk.bf16.mxu1 %vm11317_vm1, %v11316_v6 }
0x1d52   :  { %10855 = vmatprep.subr.bf16.mxu1 %v11316_v6 }
0x1d55   :  { %v6318_v10 = vpop.f32.mrf.mxu0  ;;  %10856 = vmatpush3.bf16.msra.mxu1 %v11085_v2 }
0x1d56   :  { %10869 = vmatprep.subr.mxu1 %v11316_v6 }
0x1d57   :  { %v10851_v3 = vpop.f32.mrf.mxu0 }
0x1d58   :  { %10858 = vmatmul.mubr.msk.bf16.vlgmr.msra.gmra.mxu1 %vm158_vm2, %v12410_v18  ;;  %v5681_v18 = vadd.f32 %v12565_v14, %v12597_v39  ;;  %v6319_v14 = vadd.f32 %v9479_v55, %v6318_v10  ;;  %v9507_v3 = vld [vmem:[%s13364_s5 + $0x1c] sm:$0xf] }
0x1d59   :  { %v6321_v27 = vpop.f32.mrf.mxu0  ;;  %10871 = vmatprep.mubr.msk.f32.mxu1 %vm11317_vm1, %v11316_v6 }
0x1d5a   :  { %v6325_v15 = vmul.f32 0.35355338, %v6319_v14  ;;  %v6322_v22 = vadd.f32 %v9479_v55, %v6321_v27  ;;  %v6786_v27 = vsel %vm1186_vm4, %v9507_v3, 0 }
0x1d5b   :  { %v10852_v46 = vpop.f32.mrf.mxu0 }
0x1d5c   :  { %v6326_v1 = vmul.f32 0.35355338, %v6322_v22 }
0x1d5d   :  { %v6452_v48 = vpop.f32.mrf.mxu0 }
0x1d5e   :  { %v6453_v13 = vadd.f32 %v9497_v47, %v6452_v48 }
0x1d5f   :  { %v10867_v9 = vpop.f32.mrf.mxu0 }
0x1d60   :  { %10880 = vmatpush3.msra.mxu0 %v6453_v13 }
0x1d61   :  { %v6455_v29 = vpop.f32.mrf.mxu0  ;;  %10889 = vmatprep.subr.bf16.mxu0 %v11316_v6 }
0x1d62   :  { %v6456_v49 = vadd.f32 %v9497_v47, %v6455_v29 }
0x1d63   :  { %v10868_v50 = vpop.f32.mrf.mxu0 }
0x1e10   :  { %v6250_v53 = vpop.f32.mrf.mxu1 }
0x1e11   :  { %v12677_v54 = vadd.f32 %v6250_v53, %v5681_v18 }
0x1e12   :  { %v10843_v12 = vpop.f32.mrf.mxu1 }
0x1e14   :  { %v6253_v56 = vpop.f32.mrf.mxu1 }
0x1e15   :  { %v12684_v59 = vadd.f32 %v6253_v56, %v5684_v21 }
0x1e16   :  { %v10844_v61 = vpop.f32.mrf.mxu1 }
0x1e18   :  { %v6386_v39 = vpop.f32.mrf.mxu1 }
0x1e19   :  { %v6387_v63 = vadd.f32 %v9488_v62, %v6386_v39 }
0x1e1a   :  { %v10859_v57 = vpop.f32.mrf.mxu1 }
0x1e1b   :  { %10870 = vmatpush3.xpose.msk.msra.mxu1 %vm337_vm3, %v6387_v63 }
0x1e1c   :  { %v6389_v31 = vpop.f32.mrf.mxu1  ;;  %10874 = vmatprep.subr.mxu1 %v11316_v6 }
0x1e1d   :  { %v6390_v20 = vadd.f32 %v9488_v62, %v6389_v31 }
0x1e1e   :  { %v10860_v0 = vpop.f32.mrf.mxu1  ;;  %10872 = vmatmul.mubr.msk.f32.vlgmr.msra.gmra.mxu1 %vm337_vm3, %v6325_v15 }
0x1e1f   :  { %10875 = vmatpush3.xpose.msk.msra.mxu1 %vm337_vm3, %v6390_v20  ;;  %10876 = vmatprep.mubr.msk.f32.mxu1 %vm11317_vm1, %v11316_v6 }
0x1e20   :  { %10884 = vmatprep.subr.mxu1 %v11316_v6 }
0x1e22   :  { %10877 = vmatmul.mubr.msk.f32.vlgmr.msra.gmra.mxu1 %vm337_vm3, %v6326_v1  ;;  %v9536_v1 = vld [vmem:[%s13365_s6 + $0x1c0] sm:$0xff] }
0x1e23   :  { %10885 = vmatpush3.msra.mxu1 %v6456_v49  ;;  %10886 = vmatprep.mubr.msk.f32.mxu1 %vm11317_vm1, %v11316_v6  ;;  %v9509_v49 = vld [vmem:[%s13361_s2 + $0xf] ss:$0 sm:$0xff] }
0x1ede   :  { %v6531_v4 = vpop.f32.mrf.mxu1 }
0x1edf   :  { %v6611_v5 = vsel %vm337_vm3, %v6531_v4, -inf }
0x1ee0   :  { %6612 = vmax.xlane.f32.xlu0 %v6611_v5  ;;  %v10873_v11 = vpop.f32.mrf.mxu1 }
0x1ee1   :  { %v9537_v11 = vld [vmem:[%s13365_s6 + $0x1c8] sm:$0xff] }
0x1ee2   :  { %v6607_v41 = vpop.f32.mrf.mxu1 }
0x1ee3   :  { %v6614_v19 = vsel %vm337_vm3, %v6607_v41, -inf }
0x1ee4   :  { %6615 = vmax.xlane.f32.xlu1 %v6614_v19  ;;  %v10878_v23 = vpop.f32.mrf.mxu1 }
0x1f69   :  { %v6613_v24 = vpop.xlane.xlu0 %6612 }
0x1f6a   :  { %v6617_v25 = vsub.f32 %v6531_v4, %v6613_v24  ;;  %v9529_v4 = vld [vmem:[%s13365_s6 + $0x188] sm:$0xff]  ;;  %v9512_v24 = vld [vmem:[%s13365_s6 + $0x100] sm:$0xff] }
0x1f6b   :  { %v9564_v19 = vcombine.low %v9529_v4, %v9537_v11  ;;  %v9565_v23 = vcombine.high %v9529_v4, %v9537_v11  ;;  %v9524_v4 = vld [vmem:[%s13365_s6 + $0x160] sm:$0xff]  ;;  %v9525_v11 = vld [vmem:[%s13365_s6 + $0x168] sm:$0xff] }
0x1f6c   :  { %v6619_v32 = vmul.f32 1.442695, %v6617_v25  ;;  %v9520_v25 = vld [vmem:[%s13365_s6 + $0x140] sm:$0xff] }
0x1f6d   :  { %v6616_v45 = vpop.xlane.xlu1 %6615 }
0x1f6e   :  { %11278 = vpow2.f32 %v6619_v32  ;;  %v6618_v33 = vsub.f32 %v6607_v41, %v6616_v45  ;;  %v9513_v32 = vld [vmem:[%s13365_s6 + $0x108] sm:$0xff]  ;;  %v9547_v45 = vcombine.high %v9512_v24, %v9520_v25 }
0x1f70   :  { %v6621_v34 = vmul.f32 1.442695, %v6618_v33  ;;  %v9521_v33 = vld [vmem:[%s13365_s6 + $0x148] sm:$0xff] }
0x1f72   :  { %11280 = vpow2.f32 %v6621_v34  ;;  %v9546_v34 = vcombine.low %v9512_v24, %v9520_v25  ;;  %v9534_v25 = vld [vmem:[%s13365_s6 + $0x1b0] sm:$0xff] }
0x1f7b   :  { %v11279_v35 = vpop.eup %11278 }
0x1f7c   :  { %v6623_v36 = vsel %vm337_vm3, %v11279_v35, 0.0 }
0x1f7d   :  { %6624 = vadd.xlane.f32.xlu0 %v6623_v36  ;;  %v9549_v36 = vcombine.high %v9513_v32, %v9521_v33 }
0x1f7f   :  { %v11281_v37 = vpop.eup %11280 }
0x1f80   :  { %v6626_v38 = vsel %vm337_vm3, %v11281_v37, 0.0 }
0x1f81   :  { %6627 = vadd.xlane.f32.xlu1 %v6626_v38  ;;  %v9538_v38 = vld [vmem:[%s13365_s6 + $0x1d0] sm:$0xff] }
0x2006   :  { %v6625_v40 = vpop.xlane.xlu0 %6624 }
0x2007   :  { %11282 = vrcp.f32 %v6625_v40  ;;  %v9531_v40 = vld [vmem:[%s13365_s6 + $0x198] sm:$0xff] }
0x200a   :  { %v6628_v26 = vpop.xlane.xlu1 %6627 }
0x200b   :  { %11284 = vrcp.f32 %v6628_v26 }
0x2014   :  { %v11283_v16 = vpop.eup %11282 }
0x2015   :  { %v6631_v28 = vmul.f32 %v11283_v16, %v11279_v35  ;;  %v9548_v35 = vcombine.low %v9513_v32, %v9521_v33  ;;  %v9539_v16 = vld [vmem:[%s13365_s6 + $0x1d8] sm:$0xff]  ;;  %v9542_v32 = vld [vmem:[%s13365_s6 + $0x1f0] sm:$0xff] }
0x2016   :  { %v9543_v33 = vld [vmem:[%s13365_s6 + $0x1f8] sm:$0xff] }
0x2017   :  { %10882 = vmatmul.mubr.msk.f32.vlgmr.msra.gmra.mxu0 %vm337_vm3, %v6631_v28 }
0x2018   :  { %v11285_v2 = vpop.eup %11284  ;;  %10891 = vmatprep.mubr.msk.bf16.mxu0 %vm11317_vm1, %v11316_v6  ;;  %10890 = vmatpush3.bf16.msra.mxu0 %v6786_v27 }
0x2019   :  { %v6632_v10 = vmul.f32 %v11285_v2, %v11281_v37  ;;  %7217 = vmatprep.subr.bf16.mxu0 %v9565_v23  ;;  %v9530_v37 = vld [vmem:[%s13365_s6 + $0x190] sm:$0xff]  ;;  %v9568_v2 = vcombine.low %v9531_v40, %v9539_v16 }
0x201a   :  { %v9567_v26 = vcombine.high %v9530_v37, %v9538_v38  ;;  %v9566_v28 = vcombine.low %v9530_v37, %v9538_v38  ;;  %v9518_v38 = vld [vmem:[%s13365_s6 + $0x130] sm:$0xff] }
0x201b   :  { %10887 = vmatmul.mubr.msk.f32.vlgmr.msra.gmra.mxu1 %vm337_vm3, %v6632_v10  ;;  %v9569_v10 = vcombine.high %v9531_v40, %v9539_v16  ;;  %v9526_v40 = vld [vmem:[%s13365_s6 + $0x170] sm:$0xff]  ;;  %v9527_v16 = vld [vmem:[%s13365_s6 + $0x178] sm:$0xff] }
0x201c   :  { %7194 = vmatprep.mubr.bf16.mxu1 %v11318_v60 }
0x20d7   :  { %v6702_v46 = vpop.f32.mrf.mxu0 }
0x20d9   :  { %v10883_v47 = vpop.f32.mrf.mxu0 }
0x20db   :  { %v6775_v48 = vpop.f32.mrf.mxu1 }
0x20dc   :  { %v6779_v13 = vpack.c.bf16 %v6775_v48, %v6702_v46 }
0x20dd   :  { %v10888_v9 = vpop.f32.mrf.mxu1 }
0x20de   :  { %10892 = vmatmul.mubr.msk.bf16.vlgmr.msra.gmra.mxu0 %vm337_vm3, %v6779_v13 }
0x20df   :  { %7237 = vmatprep.mubr.bf16.mxu0 %v11318_v60  ;;  %7218 = vmatpush1.bf16.msra.mxu0 %v9564_v19 }
0x20e0   :  { %7219 = vmatprep.subr.bf16.mxu0 %v9549_v36  ;;  %v9575_v36 = vcombine.high %v9534_v25, %v9542_v32 }
0x20e3   :  { %7220 = vmatpush1.bf16.msra.mxu0 %v9548_v35 }
0x20e4   :  { %7303 = vmatprep.subr.bf16.mxu0 %v9569_v10  ;;  %v9559_v10 = vcombine.high %v9518_v38, %v9526_v40 }
0x219e   :  { %v6822_v29 = vpop.f32.mrf.mxu0 }
0x219f   :  { %v6829_v50 = vadd.f32 %v6822_v29, %v12677_v54 }
0x21a0   :  { %v10893_v18 = vpop.f32.mrf.mxu0 }
0x21a1   :  { %v6836_v53 = vadd.f32 %v9509_v49, %v6829_v50 }
0x21a2   :  { %v6825_v12 = vpop.f32.mrf.mxu0 }
0x21a3   :  { %v6830_v21 = vadd.f32 %v6825_v12, %v12684_v59  ;;  %v6838_v56 = vadd.f32 %v6836_v53, %v12401_v30  ;;  %v9511_v12 = vld [vmem:[%s13361_s2 + $0x11] ss:$0 sm:$0xff] }
0x21a4   :  { %v10894_v55 = vpop.f32.mrf.mxu0 }
0x21a5   :  { %v6837_v61 = vadd.f32 %v9509_v49, %v6830_v21  ;;  %v6842_v62 = vsel %vm158_vm2, %v6838_v56, 0.0  ;;  %v9510_v49 = vld [vmem:[%s13361_s2 + $0x10] ss:$0 sm:$0xff] }
0x21a6   :  { %6843 = vadd.xlane.f32.xlu0 %v6842_v62  ;;  %v9522_v55 = vld [vmem:[%s13365_s6 + $0x150] sm:$0xff]  ;;  %v9523_v62 = vld [vmem:[%s13365_s6 + $0x158] sm:$0xff] }
0x21a7   :  { %v6839_v14 = vadd.f32 %v6837_v61, %v12403_v58  ;;  %v9528_v58 = vld [vmem:[%s13365_s6 + $0x180] sm:$0xff]  ;;  %v9515_v61 = vld [vmem:[%s13365_s6 + $0x118] sm:$0xff] }
0x21a8   :  { %v9563_v5 = vcombine.high %v9528_v58, %v9536_v1  ;;  %v9562_v41 = vcombine.low %v9528_v58, %v9536_v1  ;;  %v9516_v1 = vld [vmem:[%s13365_s6 + $0x120] sm:$0xff] }
0x21a9   :  { %v6845_v39 = vsel %vm158_vm2, %v6839_v14, 0.0  ;;  %v9555_v23 = vcombine.high %v9516_v1, %v9524_v4 }
0x21aa   :  { %6846 = vadd.xlane.f32.xlu1 %v6845_v39  ;;  %7174 = vmatprep.subr.bf16.mxu1 %v9563_v5  ;;  %v9517_v5 = vld [vmem:[%s13365_s6 + $0x128] sm:$0xff] }
0x21ab   :  { %7175 = vmatpush1.bf16.msra.mxu1 %v9562_v41  ;;  %v9557_v24 = vcombine.high %v9517_v5, %v9525_v11  ;;  %v9556_v35 = vcombine.low %v9517_v5, %v9525_v11  ;;  %v11115_v5 = vld [vmem:[%s13367_s8 + $0x4c0] sm:$0xff]  }
0x21ac   :  { %7176 = vmatprep.subr.bf16.mxu1 %v9547_v45  ;;  %v9535_v45 = vld [vmem:[%s13365_s6 + $0x1b8] sm:$0xff]  ;;  %v11116_v11 = vld [vmem:[%s13367_s8 + $0x400] sm:$0xff]  }
0x21ad   :  { %v9577_v37 = vcombine.high %v9535_v45, %v9543_v33 }
0x21af   :  { %7177 = vmatpush1.bf16.msra.mxu1 %v9546_v34  ;;  %v9554_v34 = vcombine.low %v9516_v1, %v9524_v4  ;;  %v11113_v1 = vld [vmem:[%s13367_s8 + $0x488] sm:$0xff]   ;;  %v11114_v4 = vld [vmem:[%s13367_s8 + $0x440] sm:$0xff]  }
0x21b0   :  { %7260 = vmatprep.subr.bf16.mxu1 %v9567_v26  ;;  %v9519_v26 = vld [vmem:[%s13365_s6 + $0x138] sm:$0xff] }
0x222f   :  { %v6844_v63 = vpop.xlane.xlu0 %6843 }
0x2230   :  { %v6848_v57 = vmul.f32 0.03125, %v6844_v63 }
0x2232   :  { %v6850_v54 = vsub.f32 %v6838_v56, %v6848_v57  ;;  %v9514_v56 = vld [vmem:[%s13365_s6 + $0x110] sm:$0xff] }
0x2233   :  { %v6847_v15 = vpop.xlane.xlu1 %6846  ;;  %v9551_v57 = vcombine.high %v9514_v56, %v9522_v55 }
0x2234   :  { %v6849_v22 = vmul.f32 0.03125, %v6847_v15  ;;  %v6852_v31 = vmul.f32 %v6850_v54, %v6850_v54  ;;  %v9532_v15 = vld [vmem:[%s13365_s6 + $0x1a0] sm:$0xff] }
0x2236   :  { %v6851_v20 = vsub.f32 %v6839_v14, %v6849_v22  ;;  %v6854_v59 = vsel %vm158_vm2, %v6852_v31, 0.0  ;;  %v9540_v22 = vld [vmem:[%s13365_s6 + $0x1e0] sm:$0xff]  ;;  %v9533_v31 = vld [vmem:[%s13365_s6 + $0x1a8] sm:$0xff] }
0x2237   :  { %6855 = vadd.xlane.f32.xlu0 %v6854_v59  ;;  %v9550_v59 = vcombine.low %v9514_v56, %v9522_v55  ;;  %v9570_v41 = vcombine.low %v9532_v15, %v9540_v22  ;;  %v11098_v56 = vld [vmem:[%s13367_s8 + $0x460] sm:$0xff]  }
0x2238   :  { %v6853_v30 = vmul.f32 %v6851_v20, %v6851_v20  ;;  %v11099_v55 = vld [vmem:[%s13367_s8 + $0x4e0] sm:$0xff]  }
0x223a   :  { %v6857_v0 = vsel %vm158_vm2, %v6853_v30, 0.0  ;;  %v9552_v30 = vcombine.low %v9515_v61, %v9523_v62 }
0x223b   :  { %6858 = vadd.xlane.f32.xlu1 %v6857_v0  ;;  %v9571_v0 = vcombine.high %v9532_v15, %v9540_v22  ;;  %v11105_v15 = vld [vmem:[%s13367_s8 + $0x498] sm:$0xff]   ;;  %v11106_v22 = vld [vmem:[%s13367_s8 + $0x450] sm:$0xff]  }
0x22c0   :  { %v6856_v3 = vpop.xlane.xlu0 %6855 }
0x22c1   :  { %v6860_v27 = vmul.f32 0.03125, %v6856_v3  ;;  %v9561_v3 = vcombine.high %v9519_v26, %v9527_v16 }
0x22c3   :  { %v6862_v46 = vadd.f32 1e-05, %v6860_v27  ;;  %v9558_v27 = vcombine.low %v9518_v38, %v9526_v40 }
0x22c4   :  { %v6859_v47 = vpop.xlane.xlu1 %6858 }
0x22c5   :  { %11286 = vrsqrt.f32 %v6862_v46  ;;  %v6861_v48 = vmul.f32 0.03125, %v6859_v47  ;;  %v9560_v46 = vcombine.low %v9519_v26, %v9527_v16  ;;  %v11086_v47 = vld [vmem:[%s13367_s8 + $0x478] sm:$0xff]  }
0x22c7   :  { %v6863_v13 = vadd.f32 1e-05, %v6861_v48  ;;  %v11087_v48 = vld [vmem:[%s13367_s8 + $0x4f8] sm:$0xff]  }
0x22c9   :  { %11288 = vrsqrt.f32 %v6863_v13  ;;  %v11088_v13 = vld [vmem:[%s13367_s8 + $0x438] sm:$0xff]  }
0x22d2   :  { %v11287_v9 = vpop.eup %11286 }
0x22d3   :  { %v6866_v29 = vmul.f32 %v11287_v9, %v6850_v54  ;;  %v9553_v54 = vcombine.high %v9515_v61, %v9523_v62  ;;  %v11089_v9 = vld [vmem:[%s13367_s8 + $0x4b8] sm:$0xff]   ;;  %v11100_v61 = vld [vmem:[%s13367_s8 + $0x420] sm:$0xff]  }
0x22d4   :  { %v11101_v62 = vld [vmem:[%s13367_s8 + $0x4a0] sm:$0xff]  }
0x22d5   :  { %v6872_v18 = vmul.f32 %v9510_v49, %v6866_v29  ;;  %v11090_v29 = vld [vmem:[%s13367_s8 + $0x470] sm:$0xff]  }
0x22d6   :  { %v11289_v50 = vpop.eup %11288 }
0x22d7   :  { %v6867_v53 = vmul.f32 %v11289_v50, %v6851_v20  ;;  %v12779_v14 = vadd.f32 %v9511_v12, %v6872_v18  ;;  %v9541_v20 = vld [vmem:[%s13365_s6 + $0x1e8] sm:$0xff]  ;;  %v11093_v50 = vld [vmem:[%s13367_s8 + $0x4b0] sm:$0xff]  }
0x22d8   :  { %v9573_v58 = vcombine.high %v9533_v31, %v9541_v20  ;;  %v9572_v19 = vcombine.low %v9533_v31, %v9541_v20  ;;  %v11094_v18 = vld [vmem:[%s13367_s8 + $0x468] sm:$0xff]   ;;  %v11107_v31 = vld [vmem:[%s13367_s8 + $0x4d0] sm:$0xff]  }
0x22d9   :  { %v6873_v21 = vmul.f32 %v9510_v49, %v6867_v53  ;;  %v11092_v49 = vld [vmem:[%s13367_s8 + $0x430] sm:$0xff]   ;;  %v11095_v53 = vld [vmem:[%s13367_s8 + $0x4e8] sm:$0xff]  }
0x22da   :  { %v11108_v20 = vld [vmem:[%s13367_s8 + $0x410] sm:$0xff]  }
0x22db   :  { %v12781_v39 = vadd.f32 %v9511_v12, %v6873_v21  ;;  %v11096_v12 = vld [vmem:[%s13367_s8 + $0x428] sm:$0xff]  }
0x22dc   :  { %v11097_v21 = vld [vmem:[%s13367_s8 + $0x4a8] sm:$0xff]  }
0x22dd   :  { %v12785_v63 = vpack.c.bf16 %v12781_v39, %v12779_v14 }
0x22df   :  { %9578 = vmatmul.mubr.msk.bf16.vlgmr.msra.gmra.mxu1 %vm158_vm2, %v12785_v63  ;;  %9579 = vmatmul.mubr.msk.bf16.vlgmr.msra.gmra.mxu0 %vm158_vm2, %v12785_v63 }
0x22e0   :  { %7261 = vmatpush1.bf16.msra.mxu1 %v9566_v28  ;;  %7304 = vmatpush1.bf16.msra.mxu0 %v9568_v2  ;;  %v9574_v28 = vcombine.low %v9534_v25, %v9542_v32  ;;  %v9576_v2 = vcombine.low %v9535_v45, %v9543_v33 }
0x22e1   :  { %7262 = vmatprep.subr.bf16.mxu1 %v9551_v57  ;;  %7305 = vmatprep.subr.bf16.mxu0 %v9553_v54  ;;  %v11103_v57 = vld [vmem:[%s13367_s8 + $0x4d8] sm:$0xff]  }
0x22e2   :  { %7280 = vmatprep.mubr.bf16.mxu1 %v11318_v60  ;;  %7323 = vmatprep.mubr.bf16.mxu0 %v11318_v60  ;;  %v11104_v54 = vld [vmem:[%s13367_s8 + $0x418] sm:$0xff]  }
0x22e4   :  { %7263 = vmatpush1.bf16.msra.mxu1 %v9550_v59  ;;  %7306 = vmatpush1.bf16.msra.mxu0 %v9552_v30  ;;  %v11109_v59 = vld [vmem:[%s13367_s8 + $0x490] sm:$0xff]   ;;  %v11110_v30 = vld [vmem:[%s13367_s8 + $0x448] sm:$0xff]  }
0x22e5   :  { %7346 = vmatprep.subr.bf16.mxu1 %v9571_v0  ;;  %7389 = vmatprep.subr.bf16.mxu0 %v9573_v58  ;;  %v11111_v0 = vld [vmem:[%s13367_s8 + $0x4c8] sm:$0xff]  }
0x22e6   :  { %v11112_v58 = vld [vmem:[%s13367_s8 + $0x408] sm:$0xff]  }
0x22e7   :  { %9580 = vmatmul.mubr.msk.bf16.vlgmr.msra.gmra.mxu1 %vm158_vm2, %v12785_v63  ;;  %9581 = vmatmul.mubr.msk.bf16.vlgmr.msra.gmra.mxu0 %vm158_vm2, %v12785_v63 }
0x22e8   :  { %7347 = vmatpush1.bf16.msra.mxu1 %v9570_v41  ;;  %7390 = vmatpush1.bf16.msra.mxu0 %v9572_v19  ;;  %v11117_v41 = vld [vmem:[%s13367_s8 + $0x480] sm:$0xff]   ;;  %v11118_v19 = vld [vmem:[%s13367_s8 + $0x578] sm:$0xff]  }
0x22e9   :  { %7348 = vmatprep.subr.bf16.mxu1 %v9555_v23  ;;  %7391 = vmatprep.subr.bf16.mxu0 %v9557_v24  ;;  %v11119_v23 = vld [vmem:[%s13367_s8 + $0x5f8] sm:$0xff]   ;;  %v12962_v24 = vld [vmem:[%s13366_s7 + $0x10] sm:$0xff] }
0x22ea   :  { %7366 = vmatprep.mubr.bf16.mxu1 %v11318_v60  ;;  %7409 = vmatprep.mubr.bf16.mxu0 %v11318_v60  ;;  %v6926_v45 = vrot.slane %v12962_v24, %v11981_v42  ;;  %v6934_v33 = vrot.slane %v12962_v24, %v11984_v44 }
0x22ec   :  { %7349 = vmatpush1.bf16.msra.mxu1 %v9554_v34  ;;  %7392 = vmatpush1.bf16.msra.mxu0 %v9556_v35  ;;  %v6922_v34 = vrot.slane %v12962_v24, %v11987_v43  ;;  %v6930_v35 = vrot.slane %v12962_v24, %v11990_v17 }
0x22ed   :  { %7432 = vmatprep.subr.bf16.mxu1 %v9575_v36  ;;  %7475 = vmatprep.subr.bf16.mxu0 %v9577_v37 }
0x22ef   :  { %9582 = vmatmul.mubr.msk.bf16.vlgmr.msra.gmra.mxu1 %vm158_vm2, %v12785_v63  ;;  %9583 = vmatmul.mubr.msk.bf16.vlgmr.msra.gmra.mxu0 %vm158_vm2, %v12785_v63 }
0x22f0   :  { %7433 = vmatpush1.bf16.msra.mxu1 %v9574_v28  ;;  %7476 = vmatpush1.bf16.msra.mxu0 %v9576_v2 }
0x22f1   :  { %7434 = vmatprep.subr.bf16.mxu1 %v9559_v10  ;;  %7477 = vmatprep.subr.bf16.mxu0 %v9561_v3 }
0x22f2   :  { %7452 = vmatprep.mubr.bf16.mxu1 %v11318_v60  ;;  %7495 = vmatprep.mubr.bf16.mxu0 %v11318_v60  ;;  %v11091_v60 = vld [vmem:[%s13367_s8 + $0x4f0] sm:$0xff]  }
0x22f4   :  { %7435 = vmatpush1.bf16.msra.mxu1 %v9558_v27  ;;  %7478 = vmatpush1.bf16.msra.mxu0 %v9560_v46 }
0x22f5   :  { %10307 = vmatprep.subr.bf16.mxu1 %v11086_v47  ;;  %10329 = vmatprep.subr.bf16.mxu0 %v11087_v48 }
0x22f7   :  { %9584 = vmatmul.mubr.msk.bf16.vlgmr.msra.gmra.mxu1 %vm158_vm2, %v12785_v63  ;;  %9585 = vmatmul.mubr.msk.bf16.vlgmr.msra.gmra.mxu0 %vm158_vm2, %v12785_v63  ;;  %v11102_v63 = vld [vmem:[%s13367_s8 + $0x458] sm:$0xff]  }
0x22f8   :  { %10308 = vmatpush3.bf16.msra.mxu1 %v11088_v13  ;;  %10330 = vmatpush3.bf16.msra.mxu0 %v11089_v9 }
0x22f9   :  { %10309 = vmatprep.subr.bf16.mxu1 %v11090_v29  ;;  %10331 = vmatprep.subr.bf16.mxu0 %v11091_v60 }
0x22fc   :  { %10310 = vmatpush3.bf16.msra.mxu1 %v11092_v49  ;;  %10332 = vmatpush3.bf16.msra.mxu0 %v11093_v50  ;;  %v6942_v49 = vrot.slane %v12962_v24, %v12006_v51  ;;  %v6950_v50 = vrot.slane %v12962_v24, %v12009_v52 }
0x22fd   :  { %10311 = vmatprep.subr.bf16.mxu1 %v11094_v18  ;;  %10333 = vmatprep.subr.bf16.mxu0 %v11095_v53 }
0x2300   :  { %10312 = vmatpush3.bf16.msra.mxu1 %v11096_v12  ;;  %10334 = vmatpush3.bf16.msra.mxu0 %v11097_v21 }
0x2301   :  { %10313 = vmatprep.subr.bf16.mxu1 %v11098_v56  ;;  %10335 = vmatprep.subr.bf16.mxu0 %v11099_v55 }
0x2304   :  { %10314 = vmatpush3.bf16.msra.mxu1 %v11100_v61  ;;  %10336 = vmatpush3.bf16.msra.mxu0 %v11101_v62 }
0x2305   :  { %10315 = vmatprep.subr.bf16.mxu1 %v11102_v63  ;;  %10337 = vmatprep.subr.bf16.mxu0 %v11103_v57 }
0x2308   :  { %10316 = vmatpush3.bf16.msra.mxu1 %v11104_v54  ;;  %10338 = vmatpush3.bf16.msra.mxu0 %v11105_v15  ;;  %v11120_v54 = vld [vmem:[%s13367_s8 + $0x538] sm:$0xff]  }
0x2309   :  { %10317 = vmatprep.subr.bf16.mxu1 %v11106_v22  ;;  %10339 = vmatprep.subr.bf16.mxu0 %v11107_v31  ;;  %v11121_v15 = vld [vmem:[%s13367_s8 + $0x5b8] sm:$0xff]  }
0x230c   :  { %10318 = vmatpush3.bf16.msra.mxu1 %v11108_v20  ;;  %10340 = vmatpush3.bf16.msra.mxu0 %v11109_v59 }
0x230d   :  { %10319 = vmatprep.subr.bf16.mxu1 %v11110_v30  ;;  %10341 = vmatprep.subr.bf16.mxu0 %v11111_v0  ;;  %v11122_v30 = vld [vmem:[%s13367_s8 + $0x570] sm:$0xff]  }
0x230e   :  { %v11123_v0 = vld [vmem:[%s13367_s8 + $0x5f0] sm:$0xff]  }
0x2310   :  { %10320 = vmatpush3.bf16.msra.mxu1 %v11112_v58  ;;  %10342 = vmatpush3.bf16.msra.mxu0 %v11113_v1 }
0x2311   :  { %10321 = vmatprep.subr.bf16.mxu1 %v11114_v4  ;;  %10343 = vmatprep.subr.bf16.mxu0 %v11115_v5 }
0x2314   :  { %10322 = vmatpush3.bf16.msra.mxu1 %v11116_v11  ;;  %10344 = vmatpush3.bf16.msra.mxu0 %v11117_v41 }
0x2315   :  { %10351 = vmatprep.subr.bf16.mxu1 %v11118_v19  ;;  %10373 = vmatprep.subr.bf16.mxu0 %v11119_v23  ;;  %v11124_v19 = vld [vmem:[%s13367_s8 + $0x530] sm:$0xff]  }
0x2316   :  { %v11125_v23 = vld [vmem:[%s13367_s8 + $0x5b0] sm:$0xff]  }
0x239f   :  { %v7196_v25 = vpop.f32.mrf.mxu1  ;;  %v7239_v32 = vpop.f32.mrf.mxu0 }
0x23a0   :  { %v7197_v10 = vadd.f32 %v7196_v25, %v6922_v34  ;;  %v7240_v3 = vadd.f32 %v7239_v32, %v6930_v35  ;;  %v11126_v25 = vld [vmem:[%s13367_s8 + $0x568] sm:$0xff]  }
0x23a1   :  { %v7198_v36 = vpop.f32.mrf.mxu1  ;;  %v7241_v37 = vpop.f32.mrf.mxu0 }
0x23a2   :  { %v7199_v26 = vadd.f32 %v7198_v36, %v6926_v45  ;;  %v7242_v16 = vadd.f32 %v7241_v37, %v6934_v33  ;;  %v7506_v56 = vmax.f32 %v7197_v10, 0.0  ;;  %v7508_v55 = vmax.f32 %v7240_v3, 0.0  ;;  %v11133_v3 = vld [vmem:[%s13367_s8 + $0x5a0] sm:$0xff]  }
0x23a3   :  { %v7200_v38 = vpop.f32.mrf.mxu1  ;;  %v7243_v40 = vpop.f32.mrf.mxu0 }
0x23a4   :  { %v7201_v28 = vadd.f32 %v7200_v38, %v6922_v34  ;;  %v7244_v2 = vadd.f32 %v7243_v40, %v6930_v35  ;;  %v7507_v18 = vmax.f32 %v7199_v26, 0.0  ;;  %v7509_v53 = vmax.f32 %v7242_v16, 0.0  ;;  %v11127_v35 = vld [vmem:[%s13367_s8 + $0x5e8] sm:$0xff]   ;;  %v11130_v26 = vld [vmem:[%s13367_s8 + $0x560] sm:$0xff]  }
0x23a5   :  { %v7202_v27 = vpop.f32.mrf.mxu1  ;;  %v7245_v46 = vpop.f32.mrf.mxu0  ;;  %v11128_v38 = vld [vmem:[%s13367_s8 + $0x528] sm:$0xff]   ;;  %v11131_v16 = vld [vmem:[%s13367_s8 + $0x5e0] sm:$0xff]  }
0x23a6   :  { %v7203_v47 = vadd.f32 %v7202_v27, %v6926_v45  ;;  %v7246_v48 = vadd.f32 %v7245_v46, %v6934_v33  ;;  %v7522_v13 = vmax.f32 %v7201_v28, 0.0  ;;  %v7524_v9 = vmax.f32 %v7244_v2, 0.0  ;;  %v11129_v40 = vld [vmem:[%s13367_s8 + $0x5a8] sm:$0xff]   ;;  %v11132_v2 = vld [vmem:[%s13367_s8 + $0x520] sm:$0xff]   ;;  %v11134_v27 = vld [vmem:[%s13367_s8 + $0x558] sm:$0xff]  }
0x23a7   :  { %v12972_v29 = vpop.f32.mrf.mxu1  ;;  %v12974_v60 = vpop.f32.mrf.mxu0  ;;  %v11135_v46 = vld [vmem:[%s13367_s8 + $0x5d8] sm:$0xff]  }
0x23a8   :  { %v7523_v12 = vmax.f32 %v7203_v47, 0.0  ;;  %v7525_v21 = vmax.f32 %v7246_v48, 0.0  ;;  %v7538_v22 = vpack.c.bf16 %v7522_v13, %v7506_v56  ;;  %v7540_v31 = vpack.c.bf16 %v7524_v9, %v7508_v55  ;;  %v11136_v48 = vld [vmem:[%s13367_s8 + $0x518] sm:$0xff]   ;;  %v11142_v56 = vld [vmem:[%s13367_s8 + $0x548] sm:$0xff]  }
0x23a9   :  { %v7284_v61 = vpop.f32.mrf.mxu1  ;;  %v7327_v62 = vpop.f32.mrf.mxu0  ;;  %v11137_v9 = vld [vmem:[%s13367_s8 + $0x598] sm:$0xff]   ;;  %v11143_v55 = vld [vmem:[%s13367_s8 + $0x5c8] sm:$0xff]  }
0x23aa   :  { %v7539_v63 = vpack.c.bf16 %v7523_v12, %v7507_v18  ;;  %v7541_v57 = vpack.c.bf16 %v7525_v21, %v7509_v53  ;;  %v7285_v58 = vadd.f32 %v7284_v61, %v6942_v49  ;;  %v7328_v1 = vadd.f32 %v7327_v62, %v6950_v50  ;;  %v11140_v53 = vld [vmem:[%s13367_s8 + $0x510] sm:$0xff]  }
0x23ab   :  { %v12986_v20 = vpop.f32.mrf.mxu1  ;;  %v12988_v59 = vpop.f32.mrf.mxu0  ;;  %v11141_v21 = vld [vmem:[%s13367_s8 + $0x590] sm:$0xff]   ;;  %v6938_v61 = vrot.slane %v12962_v24, %v12088_v7  ;;  %v6946_v62 = vrot.slane %v12962_v24, %v12091_v8  ;;  %v11145_v24 = vld [vmem:[%s13367_s8 + $0x588] sm:$0xff]  }
0x23ac   :  { %8616 = vmatprep.mubr.bf16.mxu1 %v7539_v63  ;;  %8657 = vmatprep.mubr.bf16.mxu0 %v7541_v57  ;;  %v7511_v32 = vmax.f32 %v7285_v58, 0.0  ;;  %v7513_v45 = vmax.f32 %v7328_v1, 0.0  ;;  %v13071_v63 = vld [vmem:[%s13366_s7 + $0x18] sm:$0xff] }
0x23ad   :  { %v7288_v4 = vpop.f32.mrf.mxu1  ;;  %v7331_v5 = vpop.f32.mrf.mxu0  ;;  %8617 = vmatmul.mubr.bf16.vlgmr.msra.gmra.mxu1 %v7538_v22  ;;  %8658 = vmatmul.mubr.bf16.vlgmr.msra.gmra.mxu0 %v7540_v31  ;;  %v6958_v22 = vrot.slane %v13071_v63, %v11981_v42  ;;  %v6966_v58 = vrot.slane %v13071_v63, %v11984_v44  ;;  %v11147_v42 = vld [vmem:[%s13367_s8 + $0x5c0] sm:$0xff]  }
0x23ae   :  { %v7289_v11 = vadd.f32 %v7288_v4, %v6942_v49  ;;  %v7332_v41 = vadd.f32 %v7331_v5, %v6950_v50  ;;  %10352 = vmatpush3.bf16.msra.mxu1 %v11120_v54  ;;  %10374 = vmatpush3.bf16.msra.mxu0 %v11121_v15  ;;  %v11138_v49 = vld [vmem:[%s13367_s8 + $0x550] sm:$0xff]   ;;  %v11144_v54 = vld [vmem:[%s13367_s8 + $0x508] sm:$0xff]   ;;  %v7287_v15 = vadd.f32 %v12986_v20, %v6938_v61  ;;  %v11149_v44 = vld [vmem:[%s13367_s8 + $0x580] sm:$0xff]  }
0x23af   :  { %10353 = vmatprep.subr.bf16.mxu1 %v11122_v30  ;;  %10375 = vmatprep.subr.bf16.mxu0 %v11123_v0  ;;  %v13020_v28 = vpop.f32.mrf.mxu1  ;;  %v13025_v10 = vpop.f32.mrf.mxu0  ;;  %v11139_v50 = vld [vmem:[%s13367_s8 + $0x5d0] sm:$0xff]   ;;  %v11146_v30 = vld [vmem:[%s13367_s8 + $0x540] sm:$0xff]   ;;  %v7330_v0 = vadd.f32 %v12988_v59, %v6946_v62  ;;  %v7283_v20 = vadd.f32 %v12972_v29, %v6938_v61  ;;  %v7326_v4 = vadd.f32 %v12974_v60, %v6946_v62  ;;  %v11150_v29 = vld [vmem:[%s13367_s8 + $0x678] sm:$0xff]  }
0x23b0   :  { %v7527_v33 = vmax.f32 %v7289_v11, 0.0  ;;  %v7529_v34 = vmax.f32 %v7332_v41, 0.0  ;;  %v11148_v11 = vld [vmem:[%s13367_s8 + $0x500] sm:$0xff]   ;;  %v7526_v59 = vmax.f32 %v7287_v15, 0.0  ;;  %v11166_v61 = vld [vmem:[%s13367_s8 + $0x658] sm:$0xff]  }
0x23b1   :  { %v7370_v47 = vpop.f32.mrf.mxu1  ;;  %v7413_v13 = vpop.f32.mrf.mxu0  ;;  %v11167_v62 = vld [vmem:[%s13367_s8 + $0x6d8] sm:$0xff]  }
0x23b2   :  { %v7543_v36 = vpack.c.bf16 %v7527_v33, %v7511_v32  ;;  %v7545_v37 = vpack.c.bf16 %v7529_v34, %v7513_v45  ;;  %10354 = vmatpush3.bf16.msra.mxu1 %v11124_v19  ;;  %10376 = vmatpush3.bf16.msra.mxu0 %v11125_v23  ;;  %v7371_v41 = vadd.f32 %v7370_v47, %v6958_v22  ;;  %v7528_v19 = vmax.f32 %v7330_v0, 0.0  ;;  %v11151_v23 = vld [vmem:[%s13367_s8 + $0x6f8] sm:$0xff]   ;;  %v11158_v47 = vld [vmem:[%s13367_s8 + $0x668] sm:$0xff]   ;;  %v11172_v0 = vld [vmem:[%s13367_s8 + $0x610] sm:$0xff]  }
0x23b3   :  { %10355 = vmatprep.subr.bf16.mxu1 %v11126_v25  ;;  %10377 = vmatprep.subr.bf16.mxu0 %v11127_v35  ;;  %v13048_v18 = vpop.f32.mrf.mxu1  ;;  %v13053_v12 = vpop.f32.mrf.mxu0  ;;  %v7414_v60 = vadd.f32 %v7413_v13, %v6966_v58  ;;  %v7510_v25 = vmax.f32 %v7283_v20, 0.0  ;;  %v7512_v45 = vmax.f32 %v7326_v4, 0.0  ;;  %v11152_v34 = vld [vmem:[%s13367_s8 + $0x638] sm:$0xff]   ;;  %v11160_v13 = vld [vmem:[%s13367_s8 + $0x628] sm:$0xff]   ;;  %v6954_v4 = vrot.slane %v13071_v63, %v11987_v43 }
0x23b4   :  { %8698 = vmatprep.mubr.bf16.mxu1 %v7543_v36  ;;  %8739 = vmatprep.mubr.bf16.mxu0 %v7545_v37  ;;  %v7515_v36 = vmax.f32 %v7371_v41, 0.0  ;;  %v11153_v37 = vld [vmem:[%s13367_s8 + $0x6b8] sm:$0xff]   ;;  %v11174_v20 = vld [vmem:[%s13367_s8 + $0x648] sm:$0xff]  }
0x23b5   :  { %v7374_v57 = vpop.f32.mrf.mxu1  ;;  %v7417_v31 = vpop.f32.mrf.mxu0  ;;  %v7542_v35 = vpack.c.bf16 %v7526_v59, %v7510_v25  ;;  %v11176_v59 = vld [vmem:[%s13367_s8 + $0x608] sm:$0xff]   ;;  %v7373_v41 = vadd.f32 %v13048_v18, %v6954_v4  ;;  %v7369_v18 = vadd.f32 %v13020_v28, %v6954_v4  ;;  %v11182_v28 = vld [vmem:[%s13367_s8 + $0x778] sm:$0xff]   ;;  %v11204_v4 = vld [vmem:[%s13367_s8 + $0x710] sm:$0xff]  }
0x23b6   :  { %10356 = vmatpush3.bf16.msra.mxu1 %v11128_v38  ;;  %10378 = vmatpush3.bf16.msra.mxu0 %v11129_v40  ;;  %v7375_v1 = vadd.f32 %v7374_v57, %v6958_v22  ;;  %v7418_v5 = vadd.f32 %v7417_v31, %v6966_v58  ;;  %v7544_v38 = vpack.c.bf16 %v7528_v19, %v7512_v45  ;;  %v7517_v40 = vmax.f32 %v7414_v60, 0.0  ;;  %v11169_v22 = vld [vmem:[%s13367_s8 + $0x698] sm:$0xff]   ;;  %v11170_v31 = vld [vmem:[%s13367_s8 + $0x650] sm:$0xff]   ;;  %v11177_v43 = vld [vmem:[%s13367_s8 + $0x688] sm:$0xff]  }
0x23b7   :  { %10357 = vmatprep.subr.bf16.mxu1 %v11130_v26  ;;  %10379 = vmatprep.subr.bf16.mxu0 %v11131_v16  ;;  %v11154_v26 = vld [vmem:[%s13367_s8 + $0x670] sm:$0xff]   ;;  %v6982_v60 = vrot.slane %v13071_v63, %v12009_v52  ;;  %v11180_v45 = vld [vmem:[%s13367_s8 + $0x600] sm:$0xff]  }
0x23b8   :  { %v7531_v32 = vmax.f32 %v7375_v1, 0.0  ;;  %v7533_v33 = vmax.f32 %v7418_v5, 0.0  ;;  %v11175_v1 = vld [vmem:[%s13367_s8 + $0x6c8] sm:$0xff]   ;;  %v6962_v5 = vrot.slane %v13071_v63, %v11990_v17  ;;  %v11178_v17 = vld [vmem:[%s13367_s8 + $0x640] sm:$0xff]  }
0x23b9   :  { %v11181_v52 = vld [vmem:[%s13367_s8 + $0x680] sm:$0xff]  }
0x23ba   :  { %10358 = vmatpush3.bf16.msra.mxu1 %v11132_v2  ;;  %10380 = vmatpush3.bf16.msra.mxu0 %v11133_v3  ;;  %v7547_v16 = vpack.c.bf16 %v7531_v32, %v7515_v36  ;;  %v11155_v2 = vld [vmem:[%s13367_s8 + $0x6f0] sm:$0xff]   ;;  %v7549_v3 = vpack.c.bf16 %v7533_v33, %v7517_v40  ;;  %v7416_v19 = vadd.f32 %v13053_v12, %v6962_v5  ;;  %v7530_v12 = vmax.f32 %v7373_v41, 0.0 }
0x23bb   :  { %10359 = vmatprep.subr.bf16.mxu1 %v11134_v27  ;;  %10381 = vmatprep.subr.bf16.mxu0 %v11135_v46  ;;  %v11156_v27 = vld [vmem:[%s13367_s8 + $0x630] sm:$0xff]   ;;  %v7412_v25 = vadd.f32 %v13025_v10, %v6962_v5  ;;  %v7514_v36 = vmax.f32 %v7369_v18, 0.0  ;;  %v6970_v41 = vrot.slane %v13071_v63, %v12088_v7  ;;  %v11210_v7 = vld [vmem:[%s13367_s8 + $0x740] sm:$0xff]  }
0x23bc   :  { %v11157_v46 = vld [vmem:[%s13367_s8 + $0x6b0] sm:$0xff]  }
0x23bd   :  { %v11205_v5 = vld [vmem:[%s13367_s8 + $0x790] sm:$0xff]  }
0x23be   :  { %10360 = vmatpush3.bf16.msra.mxu1 %v11136_v48  ;;  %10382 = vmatpush3.bf16.msra.mxu0 %v11137_v9  ;;  %v11159_v48 = vld [vmem:[%s13367_s8 + $0x6e8] sm:$0xff]  }
0x23bf   :  { %10361 = vmatprep.subr.bf16.mxu1 %v11138_v49  ;;  %10383 = vmatprep.subr.bf16.mxu0 %v11139_v50  ;;  %v11161_v9 = vld [vmem:[%s13367_s8 + $0x6a8] sm:$0xff]   ;;  %v11162_v49 = vld [vmem:[%s13367_s8 + $0x660] sm:$0xff]  }
0x23c0   :  { %v11163_v50 = vld [vmem:[%s13367_s8 + $0x6e0] sm:$0xff]  }
0x23c2   :  { %10362 = vmatpush3.bf16.msra.mxu1 %v11140_v53  ;;  %10384 = vmatpush3.bf16.msra.mxu0 %v11141_v21  ;;  %v13141_v53 = vpop.f32.mrf.mxu1  ;;  %v11164_v21 = vld [vmem:[%s13367_s8 + $0x620] sm:$0xff]  }
0x23c3   :  { %10363 = vmatprep.subr.bf16.mxu1 %v11142_v56  ;;  %10385 = vmatprep.subr.bf16.mxu0 %v11143_v55  ;;  %v13146_v56 = vpop.f32.mrf.mxu0  ;;  %v11165_v55 = vld [vmem:[%s13367_s8 + $0x6a0] sm:$0xff]  }
0x23c4   :  { %v7456_v57 = vpop.f32.mrf.mxu1 }
0x23c5   :  { %v7499_v15 = vpop.f32.mrf.mxu0 }
0x23c6   :  { %10364 = vmatpush3.bf16.msra.mxu1 %v11144_v54  ;;  %10386 = vmatpush3.bf16.msra.mxu0 %v11145_v24  ;;  %v11168_v54 = vld [vmem:[%s13367_s8 + $0x618] sm:$0xff]   ;;  %v11171_v24 = vld [vmem:[%s13367_s8 + $0x6d0] sm:$0xff]   ;;  %v7500_v10 = vadd.f32 %v7499_v15, %v6982_v60  ;;  %v11196_v15 = vld [vmem:[%s13367_s8 + $0x720] sm:$0xff]  }
0x23c7   :  { %10365 = vmatprep.subr.bf16.mxu1 %v11146_v30  ;;  %10387 = vmatprep.subr.bf16.mxu0 %v11147_v42  ;;  %v13169_v30 = vpop.f32.mrf.mxu1  ;;  %v13174_v58 = vpop.f32.mrf.mxu0  ;;  %v11173_v42 = vld [vmem:[%s13367_s8 + $0x690] sm:$0xff]  }
0x23ca   :  { %10366 = vmatpush3.bf16.msra.mxu1 %v11148_v11  ;;  %10388 = vmatpush3.bf16.msra.mxu0 %v11149_v44  ;;  %v7460_v11 = vpop.f32.mrf.mxu1  ;;  %v6974_v44 = vrot.slane %v13071_v63, %v12006_v51  ;;  %v11179_v51 = vld [vmem:[%s13367_s8 + $0x6c0] sm:$0xff]  }
0x23cb   :  { %10395 = vmatprep.subr.bf16.mxu1 %v11150_v29  ;;  %10417 = vmatprep.subr.bf16.mxu0 %v11151_v23  ;;  %v7503_v29 = vpop.f32.mrf.mxu0 }
0x23cc   :  { %v7461_v23 = vadd.f32 %v7460_v11, %v6974_v44  ;;  %v7504_v32 = vadd.f32 %v7503_v29, %v6982_v60  ;;  %v7457_v33 = vadd.f32 %v7456_v57, %v6974_v44  ;;  %v11194_v57 = vld [vmem:[%s13367_s8 + $0x760] sm:$0xff]   ;;  %v11206_v11 = vld [vmem:[%s13367_s8 + $0x748] sm:$0xff]   ;;  %v6978_v44 = vrot.slane %v13071_v63, %v12091_v8 }
0x23cd   :  { %8699 = vmatmul.mubr.bf16.vlgmr.msra.gmra.mxu1 %v7542_v35  ;;  %8740 = vmatmul.mubr.bf16.vlgmr.msra.gmra.mxu0 %v7544_v38  ;;  %v11183_v35 = vld [vmem:[%s13367_s8 + $0x7f8] sm:$0xff]   ;;  %v7516_v38 = vmax.f32 %v7412_v25, 0.0  ;;  %v11208_v29 = vld [vmem:[%s13367_s8 + $0x708] sm:$0xff]   ;;  %v11211_v8 = vld [vmem:[%s13367_s8 + $0x7c0] sm:$0xff]   ;;  %v7455_v63 = vadd.f32 %v13141_v53, %v6970_v41 }
0x23ce   :  { %10396 = vmatpush3.bf16.msra.mxu1 %v11152_v34  ;;  %8780 = vmatprep.mubr.bf16.mxu1 %v7547_v16  ;;  %v7532_v34 = vmax.f32 %v7416_v19, 0.0  ;;  %v7537_v40 = vmax.f32 %v7504_v32, 0.0  ;;  %v7546_v16 = vpack.c.bf16 %v7530_v12, %v7514_v36  ;;  %v7502_v19 = vadd.f32 %v13174_v58, %v6978_v44  ;;  %v11212_v60 = vld [vmem:[%s13367_s8 + $0x700] sm:$0xff]  }
0x23cf   :  { %10418 = vmatpush3.bf16.msra.mxu0 %v11153_v37  ;;  %8821 = vmatprep.mubr.bf16.mxu0 %v7549_v3  ;;  %v7535_v37 = vmax.f32 %v7461_v23, 0.0  ;;  %v11185_v3 = vld [vmem:[%s13367_s8 + $0x7b8] sm:$0xff]   ;;  %v11213_v58 = vld [vmem:[%s13367_s8 + $0x780] sm:$0xff]   ;;  %v7518_v23 = vmax.f32 %v7455_v63, 0.0 }
0x23d0   :  { %10397 = vmatprep.subr.bf16.mxu1 %v11154_v26  ;;  %10419 = vmatprep.subr.bf16.mxu0 %v11155_v2  ;;  %v11184_v26 = vld [vmem:[%s13367_s8 + $0x738] sm:$0xff]   ;;  %v7519_v2 = vmax.f32 %v7457_v33, 0.0  ;;  %v7536_v18 = vmax.f32 %v7502_v19, 0.0 }
0x23d2   :  { %10398 = vmatpush3.bf16.msra.mxu1 %v11156_v27  ;;  %v7548_v27 = vpack.c.bf16 %v7532_v34, %v7516_v38 }
0x23d3   :  { %10420 = vmatpush3.bf16.msra.mxu0 %v11157_v46  ;;  %10399 = vmatprep.subr.bf16.mxu1 %v11158_v47  ;;  %v7521_v46 = vmax.f32 %v7500_v10, 0.0  ;;  %v11186_v47 = vld [vmem:[%s13367_s8 + $0x770] sm:$0xff]  }
0x23d4   :  { %10421 = vmatprep.subr.bf16.mxu0 %v11159_v48  ;;  %v7551_v48 = vpack.c.bf16 %v7535_v37, %v7519_v2 }
0x23d6   :  { %10400 = vmatpush3.bf16.msra.mxu1 %v11160_v13  ;;  %v11187_v13 = vld [vmem:[%s13367_s8 + $0x7f0] sm:$0xff]  }
0x23d7   :  { %10422 = vmatpush3.bf16.msra.mxu0 %v11161_v9  ;;  %10401 = vmatprep.subr.bf16.mxu1 %v11162_v49  ;;  %v7553_v9 = vpack.c.bf16 %v7537_v40, %v7521_v46  ;;  %v11188_v49 = vld [vmem:[%s13367_s8 + $0x730] sm:$0xff]  }
0x23d8   :  { %10423 = vmatprep.subr.bf16.mxu0 %v11163_v50  ;;  %v11189_v50 = vld [vmem:[%s13367_s8 + $0x7b0] sm:$0xff]  }
0x23da   :  { %10402 = vmatpush3.bf16.msra.mxu1 %v11164_v21  ;;  %v11190_v21 = vld [vmem:[%s13367_s8 + $0x768] sm:$0xff]  }
0x23db   :  { %10424 = vmatpush3.bf16.msra.mxu0 %v11165_v55  ;;  %10403 = vmatprep.subr.bf16.mxu1 %v11166_v61  ;;  %v11191_v55 = vld [vmem:[%s13367_s8 + $0x7e8] sm:$0xff]  }
0x23dc   :  { %10425 = vmatprep.subr.bf16.mxu0 %v11167_v62  ;;  %v11192_v61 = vld [vmem:[%s13367_s8 + $0x728] sm:$0xff]  }
0x23dd   :  { %v11193_v62 = vld [vmem:[%s13367_s8 + $0x7a8] sm:$0xff]  }
0x23de   :  { %10404 = vmatpush3.bf16.msra.mxu1 %v11168_v54  ;;  %v11195_v54 = vld [vmem:[%s13367_s8 + $0x7e0] sm:$0xff]  }
0x23df   :  { %10426 = vmatpush3.bf16.msra.mxu0 %v11169_v22  ;;  %10405 = vmatprep.subr.bf16.mxu1 %v11170_v31  ;;  %v11197_v22 = vld [vmem:[%s13367_s8 + $0x7a0] sm:$0xff]   ;;  %v11198_v31 = vld [vmem:[%s13367_s8 + $0x758] sm:$0xff]  }
0x23e0   :  { %10427 = vmatprep.subr.bf16.mxu0 %v11171_v24  ;;  %v11199_v24 = vld [vmem:[%s13367_s8 + $0x7d8] sm:$0xff]  }
0x23e2   :  { %10406 = vmatpush3.bf16.msra.mxu1 %v11172_v0  ;;  %v11200_v0 = vld [vmem:[%s13367_s8 + $0x718] sm:$0xff]  }
0x23e3   :  { %10428 = vmatpush3.bf16.msra.mxu0 %v11173_v42  ;;  %10407 = vmatprep.subr.bf16.mxu1 %v11174_v20  ;;  %v11201_v42 = vld [vmem:[%s13367_s8 + $0x798] sm:$0xff]   ;;  %v11202_v20 = vld [vmem:[%s13367_s8 + $0x750] sm:$0xff]  }
0x23e4   :  { %10429 = vmatprep.subr.bf16.mxu0 %v11175_v1  ;;  %v11203_v1 = vld [vmem:[%s13367_s8 + $0x7d0] sm:$0xff]  }
0x23e6   :  { %10408 = vmatpush3.bf16.msra.mxu1 %v11176_v59  ;;  %v11207_v59 = vld [vmem:[%s13367_s8 + $0x7c8] sm:$0xff]  }
0x23e7   :  { %10430 = vmatpush3.bf16.msra.mxu0 %v11177_v43  ;;  %10409 = vmatprep.subr.bf16.mxu1 %v11178_v17  ;;  %v7459_v43 = vadd.f32 %v13169_v30, %v6970_v41  ;;  %v11209_v17 = vld [vmem:[%s13367_s8 + $0x788] sm:$0xff]   ;;  %v7498_v30 = vadd.f32 %v13146_v56, %v6978_v44 }
0x23e8   :  { %10431 = vmatprep.subr.bf16.mxu0 %v11179_v51 }
0x23e9   :  { %v7534_v51 = vmax.f32 %v7459_v43, 0.0  ;;  %v7520_v25 = vmax.f32 %v7498_v30, 0.0 }
0x23ea   :  { %10410 = vmatpush3.bf16.msra.mxu1 %v11180_v45 }
0x23eb   :  { %10432 = vmatpush3.bf16.msra.mxu0 %v11181_v52  ;;  %10439 = vmatprep.subr.bf16.mxu1 %v11182_v28  ;;  %v7550_v53 = vpack.c.bf16 %v7534_v51, %v7518_v23  ;;  %v7552_v56 = vpack.c.bf16 %v7536_v18, %v7520_v25 }
0x23ec   :  { %10461 = vmatprep.subr.bf16.mxu0 %v11183_v35 }
0x23ed   :  { %8781 = vmatmul.mubr.bf16.vlgmr.msra.gmra.mxu1 %v7546_v16 }
0x23ee   :  { %8822 = vmatmul.mubr.bf16.vlgmr.msra.gmra.mxu0 %v7548_v27  ;;  %10440 = vmatpush3.bf16.msra.mxu1 %v11184_v26 }
0x23ef   :  { %8862 = vmatprep.mubr.bf16.mxu1 %v7551_v48  ;;  %10462 = vmatpush3.bf16.msra.mxu0 %v11185_v3  ;;  %v9842_v3 = vld [vmem:[%s13361_s2 + $0x12] ss:$0 sm:$0xff] }
0x23f0   :  { %8903 = vmatprep.mubr.bf16.mxu0 %v7553_v9  ;;  %10441 = vmatprep.subr.bf16.mxu1 %v11186_v47 }
0x23f1   :  { %10463 = vmatprep.subr.bf16.mxu0 %v11187_v13 }
0x23f2   :  { %10442 = vmatpush3.bf16.msra.mxu1 %v11188_v49 }
0x23f3   :  { %10464 = vmatpush3.bf16.msra.mxu0 %v11189_v50  ;;  %10443 = vmatprep.subr.bf16.mxu1 %v11190_v21 }
0x23f4   :  { %10465 = vmatprep.subr.bf16.mxu0 %v11191_v55 }
0x23f6   :  { %10444 = vmatpush3.bf16.msra.mxu1 %v11192_v61 }
0x23f7   :  { %10466 = vmatpush3.bf16.msra.mxu0 %v11193_v62  ;;  %10445 = vmatprep.subr.bf16.mxu1 %v11194_v57 }
0x23f8   :  { %10467 = vmatprep.subr.bf16.mxu0 %v11195_v54 }
0x23fa   :  { %10446 = vmatpush3.bf16.msra.mxu1 %v11196_v15 }
0x23fb   :  { %10468 = vmatpush3.bf16.msra.mxu0 %v11197_v22  ;;  %10447 = vmatprep.subr.bf16.mxu1 %v11198_v31 }
0x23fc   :  { %10469 = vmatprep.subr.bf16.mxu0 %v11199_v24 }
0x23fe   :  { %10448 = vmatpush3.bf16.msra.mxu1 %v11200_v0 }
0x23ff   :  { %10470 = vmatpush3.bf16.msra.mxu0 %v11201_v42  ;;  %10449 = vmatprep.subr.bf16.mxu1 %v11202_v20 }
0x2400   :  { %10471 = vmatprep.subr.bf16.mxu0 %v11203_v1 }
0x2402   :  { %10450 = vmatpush3.bf16.msra.mxu1 %v11204_v4 }
0x2403   :  { %10472 = vmatpush3.bf16.msra.mxu0 %v11205_v5  ;;  %10451 = vmatprep.subr.bf16.mxu1 %v11206_v11 }
0x2404   :  { %10473 = vmatprep.subr.bf16.mxu0 %v11207_v59 }
0x2406   :  { %10452 = vmatpush3.bf16.msra.mxu1 %v11208_v29 }
0x2407   :  { %10474 = vmatpush3.bf16.msra.mxu0 %v11209_v17  ;;  %10453 = vmatprep.subr.bf16.mxu1 %v11210_v7 }
0x2408   :  { %10475 = vmatprep.subr.bf16.mxu0 %v11211_v8 }
0x240a   :  { %10454 = vmatpush3.bf16.msra.mxu1 %v11212_v60 }
0x240b   :  { %10476 = vmatpush3.bf16.msra.mxu0 %v11213_v58  ;;  %10895 = vmatprep.subr.mxu1 %v11316_v6 }
0x240d   :  { %8863 = vmatmul.mubr.bf16.vlgmr.msra.gmra.mxu1 %v7550_v53 }
0x240e   :  { %8904 = vmatmul.mubr.bf16.vlgmr.msra.gmra.mxu0 %v7552_v56  ;;  %10903 = vmatprep.mubr.msk.f32.mxu1 %vm11317_vm1, %v11316_v6 }
0x246d   :  { %v10323_v32 = vpop.f32.mrf.mxu1  ;;  %v10345_v45 = vpop.f32.mrf.mxu0 }
0x246f   :  { %v10324_v12 = vpop.f32.mrf.mxu1  ;;  %v10346_v33 = vpop.f32.mrf.mxu0 }
0x2470   :  { %v10325_v2 = vadd.f32 %v10324_v12, %v10323_v32  ;;  %v10347_v49 = vadd.f32 %v10346_v33, %v10345_v45 }
0x2471   :  { %v10326_v52 = vpop.f32.mrf.mxu1  ;;  %v10348_v28 = vpop.f32.mrf.mxu0 }
0x2472   :  { %v8619_v47 = vadd.f32 %v10325_v2, %v9842_v3 }
0x2473   :  { %v10327_v34 = vpop.f32.mrf.mxu1  ;;  %v10349_v35 = vpop.f32.mrf.mxu0 }
0x2474   :  { %v10328_v48 = vadd.f32 %v10327_v34, %v10326_v52  ;;  %v8660_v21 = vadd.f32 %v10347_v49, %v8619_v47  ;;  %v10350_v57 = vadd.f32 %v10349_v35, %v10348_v28  ;;  %v8954_v47 = vld [vmem:[%s13368_s9] sm:$0xff] }
0x2476   :  { %v8622_v55 = vadd.f32 %v10328_v48, %v9842_v3 }
0x2478   :  { %v8663_v22 = vadd.f32 %v10350_v57, %v8622_v55 }
0x248d   :  { %v10367_v10 = vpop.f32.mrf.mxu1  ;;  %v10389_v36 = vpop.f32.mrf.mxu0 }
0x248f   :  { %v10368_v37 = vpop.f32.mrf.mxu1  ;;  %v10390_v38 = vpop.f32.mrf.mxu0 }
0x2490   :  { %v10369_v50 = vadd.f32 %v10368_v37, %v10367_v10  ;;  %v10391_v31 = vadd.f32 %v10390_v38, %v10389_v36 }
0x2491   :  { %v10370_v40 = vpop.f32.mrf.mxu1  ;;  %v10392_v26 = vpop.f32.mrf.mxu0 }
0x2492   :  { %v8701_v54 = vadd.f32 %v10369_v50, %v8660_v21 }
0x2493   :  { %v10371_v16 = vpop.f32.mrf.mxu1  ;;  %v10393_v46 = vpop.f32.mrf.mxu0 }
0x2494   :  { %v10372_v15 = vadd.f32 %v10371_v16, %v10370_v40  ;;  %v8742_v20 = vadd.f32 %v10391_v31, %v8701_v54  ;;  %v10394_v4 = vadd.f32 %v10393_v46, %v10392_v26  ;;  %v8955_v46 = vld [vmem:[%s13368_s9 + $0x8] sm:$0xff] }
0x2496   :  { %v8704_v1 = vadd.f32 %v10372_v15, %v8663_v22 }
0x2498   :  { %v8745_v44 = vadd.f32 %v10394_v4, %v8704_v1  ;;  %v9973_v1 = vld [vmem:[%s13369_s10] ss:$0 sm:$0xff] }
0x24ad   :  { %v10411_v27 = vpop.f32.mrf.mxu1 }
0x24ae   :  { %v10433_v13 = vpop.f32.mrf.mxu0 }
0x24af   :  { %v10412_v9 = vpop.f32.mrf.mxu1 }
0x24b0   :  { %v10434_v61 = vpop.f32.mrf.mxu0  ;;  %v10413_v24 = vadd.f32 %v10412_v9, %v10411_v27  ;;  %v8956_v27 = vld [vmem:[%s13368_s9 + $0x10] sm:$0xff] }
0x24b1   :  { %v10414_v62 = vpop.f32.mrf.mxu1  ;;  %v10435_v29 = vadd.f32 %v10434_v61, %v10433_v13  ;;  %v9971_v61 = vld [vmem:[%s13361_s2 + $0x13] ss:$0 sm:$0xff] }
0x24b2   :  { %v10436_v0 = vpop.f32.mrf.mxu0  ;;  %v8783_v5 = vadd.f32 %v10413_v24, %v8742_v20 }
0x24b3   :  { %v10415_v42 = vpop.f32.mrf.mxu1 }
0x24b4   :  { %v10416_v11 = vadd.f32 %v10415_v42, %v10414_v62  ;;  %v10437_v59 = vpop.f32.mrf.mxu0  ;;  %v8824_v7 = vadd.f32 %v10435_v29, %v8783_v5 }
0x24b5   :  { %v10438_v60 = vadd.f32 %v10437_v59, %v10436_v0 }
0x24b6   :  { %v8786_v19 = vadd.f32 %v10416_v11, %v8745_v44 }
0x24b8   :  { %v8827_v25 = vadd.f32 %v10438_v60, %v8786_v19 }
0x24cd   :  { %v10455_v41 = vpop.f32.mrf.mxu1 }
0x24ce   :  { %v10477_v43 = vpop.f32.mrf.mxu0 }
0x24cf   :  { %v10456_v17 = vpop.f32.mrf.mxu1 }
0x24d0   :  { %v10457_v8 = vadd.f32 %v10456_v17, %v10455_v41  ;;  %v10478_v63 = vpop.f32.mrf.mxu0 }
0x24d1   :  { %v10458_v30 = vpop.f32.mrf.mxu1  ;;  %v10479_v58 = vadd.f32 %v10478_v63, %v10477_v43 }
0x24d2   :  { %v8865_v51 = vadd.f32 %v10457_v8, %v8824_v7  ;;  %v10480_v18 = vpop.f32.mrf.mxu0 }
0x24d3   :  { %v10459_v23 = vpop.f32.mrf.mxu1 }
0x24d4   :  { %v8906_v53 = vadd.f32 %v10479_v58, %v8865_v51  ;;  %v10460_v56 = vadd.f32 %v10459_v23, %v10458_v30  ;;  %v10481_v32 = vpop.f32.mrf.mxu0 }
0x24d5   :  { %v10482_v12 = vadd.f32 %v10481_v32, %v10480_v18 }
0x24d6   :  { %v8868_v45 = vadd.f32 %v10460_v56, %v8827_v25  ;;  %v8912_v33 = vadd.f32 %v8906_v53, %v12779_v14 }
0x24d8   :  { %v8909_v52 = vadd.f32 %v10482_v12, %v8868_v45  ;;  %v8916_v28 = vsel %vm158_vm2, %v8912_v33, 0.0 }
0x24d9   :  { %8917 = vadd.xlane.f32.xlu0 %v8916_v28 }
0x24da   :  { %v8913_v34 = vadd.f32 %v8909_v52, %v12781_v39  ;;  %v8957_v39 = vld [vmem:[%s13368_s9 + $0x18] sm:$0xff] }
0x24db   :  { %10896 = vmatpush3.msra.mxu1 %v8957_v39 }
0x24dc   :  { %v8919_v10 = vsel %vm158_vm2, %v8913_v34, 0.0  ;;  %10897 = vmatprep.subr.mxu1 %v11316_v6 }
0x24dd   :  { %8920 = vadd.xlane.f32.xlu1 %v8919_v10  ;;  %10898 = vmatpush3.msra.mxu1 %v8956_v27 }
0x24de   :  { %10899 = vmatprep.subr.mxu1 %v11316_v6 }
0x24df   :  { %10900 = vmatpush3.msra.mxu1 %v8955_v46 }
0x24e0   :  { %10901 = vmatprep.subr.mxu1 %v11316_v6  ;;  %v9972_v6 = vld [vmem:[%s13361_s2 + $0x14] ss:$0 sm:$0xff]  ;;  %s11294_s2 = scalar_lea.vmem %s9051_s13, 32 }
0x24e1   :  { %10902 = vmatpush3.msra.mxu1 %v8954_v47  ;;  %p11295_p0 = scmp.ne.s32.totalorder %s9051_s13, %s11294_s2  ;;  %p11300_p2 = scmp.lt.s32.totalorder %s11294_s2, %s11294_s2 }
0x24e3   :  { %p11301_p3 = por %p11300_p2, %p11299_p1 }
0x24e5   :  { %p11302_p4 = pnand %p11301_p3, %p11295_p0 }
0x2562   :  { %v8918_v35 = vpop.xlane.xlu0 %8917 }
0x2563   :  { %v8922_v36 = vmul.f32 0.03125, %v8918_v35 }
0x2565   :  { %v8924_v37 = vsub.f32 %v8912_v33, %v8922_v36 }
0x2566   :  { %v8921_v38 = vpop.xlane.xlu1 %8920 }
0x2567   :  { %v8923_v40 = vmul.f32 0.03125, %v8921_v38  ;;  %v8926_v26 = vmul.f32 %v8924_v37, %v8924_v37 }
0x2569   :  { %v8925_v16 = vsub.f32 %v8913_v34, %v8923_v40  ;;  %v8928_v2 = vsel %vm158_vm2, %v8926_v26, 0.0 }
0x256a   :  { %8929 = vadd.xlane.f32.xlu0 %v8928_v2 }
0x256b   :  { %v8927_v14 = vmul.f32 %v8925_v16, %v8925_v16 }
0x256d   :  { %v8931_v3 = vsel %vm158_vm2, %v8927_v14, 0.0 }
0x256e   :  { %8932 = vadd.xlane.f32.xlu1 %v8931_v3 }
0x25f3   :  { %v8930_v48 = vpop.xlane.xlu0 %8929 }
0x25f4   :  { %v8934_v13 = vmul.f32 0.03125, %v8930_v48 }
0x25f6   :  { %v8936_v9 = vadd.f32 1e-05, %v8934_v13 }
0x25f7   :  { %v8933_v49 = vpop.xlane.xlu1 %8932 }
0x25f8   :  { %11290 = vrsqrt.f32 %v8936_v9  ;;  %v8935_v50 = vmul.f32 0.03125, %v8933_v49 }
0x25fa   :  { %v8937_v21 = vadd.f32 1e-05, %v8935_v50 }
0x25fc   :  { %11292 = vrsqrt.f32 %v8937_v21 }
0x2605   :  { %v11291_v55 = vpop.eup %11290 }
0x2606   :  { %v8940_v62 = vmul.f32 %v11291_v55, %v8924_v37 }
0x2608   :  { %v8946_v57 = vmul.f32 %v9971_v61, %v8940_v62 }
0x2609   :  { %v11293_v54 = vpop.eup %11292 }
0x260a   :  { %v8941_v15 = vmul.f32 %v11293_v54, %v8925_v16  ;;  %v8952_v31 = vadd.f32 %v9972_v6, %v8946_v57 }
0x260c   :  { %v8947_v22 = vmul.f32 %v9971_v61, %v8941_v15  ;;  %v8967_v0 = vrot.slane %v8952_v31, 7 }
0x260e   :  { %v8953_v24 = vadd.f32 %v9972_v6, %v8947_v22 }
0x2610   :  { %v8968_v42 = vrot.slane %v8953_v24, 6 }
0x2612   :  { %v8970_v20 = vsel %vm8969_vm5, %v8968_v42, %v8967_v0 }
0x2613   :  { %10904 = vmatmul.mubr.msk.f32.vlgmr.msra.gmra.mxu1 %vm158_vm2, %v8970_v20 }
0x26d3   :  { %v9039_v4 = vpop.f32.mrf.mxu1 }
0x26d4   :  { %v9040_v5 = vadd.f32 %v9973_v1, %v9039_v4 }
0x26d5   :  { %v10905_v11 = vpop.f32.mrf.mxu1 }
0x26d6   :  { %9043 = vst [vmem:[#allocation2] sm:$0x3] %v9040_v5 }
0x26d7   :  { %11305 = shalt.err (!%p11302_p4)
}
0x26d8   :  { %9053 = dma.vmem_to_hbm [thread:$0]  %s9051_s13, 32, %s13370_s11, [#allocation3]  }
0x26d9   :  { %11314 = dma.done.wait [#allocation3], 32  }
0x26da   :  { %11315 = vsyncadd [#allocation3], 4294967264 }
0x26db   :  { %9057 = vsyncpa [#allocation3], 1 }

</bundles_post_ra>
